<compile_context>
chip_gen: v6e
topology: v6e:2x2x1
jax: 0.10.0
libtpu: 0.0.40
codegen_flags: <defaults>
</compile_context>

<pallas_src>
import functools

import jax
import jax.numpy as jnp
import numpy as np
from jax.experimental import pallas as pl
from jax.experimental.pallas import tpu as pltpu

B_BLOCK = 8                    # sublane tile: batch rows per grid step
MXU_DTYPE = jnp.float32        # set jnp.bfloat16 on v6e/v7x for ~3x MXU throughput


def _round_up(x, m):
    return ((x + m - 1) // m) * m


# ----------------------------------------------------------------------------
# Fused multi-layer LSTM + Linear(H, 1) kernel.  One grid step = one block of
# 8 batch rows; everything for that block stays resident in VMEM.
# Gate order matches PyTorch: i, f, g, o.
# ----------------------------------------------------------------------------
def _make_fused_lstm_kernel(T, H_pad, num_layers, chunks, ct_max, mxu_dtype):
    G = 4 * H_pad
    multi_layer = num_layers > 1

    def kernel(*args):
        x_ref = args[0]                                   # (T*B_BLOCK, D_pad)
        off = 1
        layer_refs = []
        for _ in range(num_layers):
            layer_refs.append(args[off:off + 3])          # w_ih_t, w_hh_t, bias
            off += 3
        wfc_ref = args[off]                               # (H_pad, 128)
        bfc_ref = args[off + 1]                           # (1, 128)
        out_ref = args[off + 2]                           # (B_BLOCK, 128)
        off += 3
        gx_ref = args[off]                                # (2*ct_max*B_BLOCK, G)
        off += 1
        hseq_ref = args[off] if multi_layer else None     # (T*B_BLOCK, H_pad)
        if multi_layer:
            off += 1
        h_ref, c_ref = args[off], args[off + 1]           # (B_BLOCK, H_pad)

        def project(seq_ref, wih_ref, b_ref, slot, t0, ct):
            # Hoisted input projection for one time chunk: a single
            # MXU-friendly (ct*B_BLOCK, d_in) x (d_in, 4H) matmul.
            base = slot * ct_max * B_BLOCK
            gx_ref[base:base + ct * B_BLOCK, :] = (
                jnp.dot(seq_ref[t0 * B_BLOCK:(t0 + ct) * B_BLOCK, :]
                        .astype(mxu_dtype),
                        wih_ref[...].astype(mxu_dtype),
                        preferred_element_type=jnp.float32)
                + b_ref[...])

        seq_ref = x_ref
        for li, (wih_ref, whh_ref, b_ref) in enumerate(layer_refs):
            last_layer = li == num_layers - 1
            h_ref[...] = jnp.zeros_like(h_ref)
            c_ref[...] = jnp.zeros_like(c_ref)

            # Prime slot 0 with the first chunk's input projection.
            project(seq_ref, wih_ref, b_ref, 0, chunks[0][0], chunks[0][1])

            for ci, (t0, ct) in enumerate(chunks):
                slot = ci % 2
                if ci + 1 < len(chunks):
                    # Issue the next chunk's projection matmul before this
                    # chunk's serial recurrence so the MXU work can overlap
                    # the latency-bound VPU/EUP recurrence.
                    nt0, nct = chunks[ci + 1]
                    project(seq_ref, wih_ref, b_ref, 1 - slot, nt0, nct)

                base = slot * ct_max * B_BLOCK

                def step(t, carry, whh_ref=whh_ref, base=base, t0=t0,
                         last_layer=last_layer):
                    row = pl.multiple_of(base + t * B_BLOCK, B_BLOCK)
                    gates = gx_ref[pl.ds(row, B_BLOCK), :] + jnp.dot(
                        h_ref[...].astype(mxu_dtype),
                        whh_ref[...].astype(mxu_dtype),
                        preferred_element_type=jnp.float32)
                    # H_pad is a multiple of 128 -> lane-aligned free views.
                    i_g = jax.nn.sigmoid(gates[:, 0 * H_pad:1 * H_pad])
                    f_g = jax.nn.sigmoid(gates[:, 1 * H_pad:2 * H_pad])
                    g_g = jnp.tanh(gates[:, 2 * H_pad:3 * H_pad])
                    o_g = jax.nn.sigmoid(gates[:, 3 * H_pad:4 * H_pad])
                    c_new = f_g * c_ref[...] + i_g * g_g
                    h_new = o_g * jnp.tanh(c_new)
                    c_ref[...] = c_new
                    h_ref[...] = h_new
                    if not last_layer:
                        # Only intermediate layers need the full h sequence;
                        # the last layer's consumer (FC) only needs h_T.
                        row_g = pl.multiple_of((t0 + t) * B_BLOCK, B_BLOCK)
                        hseq_ref[pl.ds(row_g, B_BLOCK), :] = h_new
                    return carry

                jax.lax.fori_loop(0, ct, step, 0, unroll=min(8, ct))

            seq_ref = hseq_ref                            # next layer's input

        # Dropout(out[:, -1, :]) is identity at inference; FC fused here.
        # (B_BLOCK, 128) lane-dense store; real result lives in column 0.
        out_ref[...] = (
            jnp.dot(h_ref[...].astype(mxu_dtype),
                    wfc_ref[...].astype(mxu_dtype),
                    preferred_element_type=jnp.float32)
            + bfc_ref[...])

    return kernel


# ----------------------------------------------------------------------------
# Parameter padding helpers (PyTorch-shaped params -> (8,128)-aligned slabs).
# Each gate is padded independently so it occupies an aligned 128-lane block
# of the (d_in_pad, 4*H_pad) weight.
# ----------------------------------------------------------------------------
def _pad_layer_params(lp, H, H_pad, D_in, D_pad):
    w_ih = lp["w_ih"].reshape(4, H, D_in)
    w_ih = jnp.pad(w_ih, ((0, 0), (0, H_pad - H), (0, D_pad - D_in)))
    w_ih_t = jnp.transpose(w_ih, (2, 0, 1)).reshape(D_pad, 4 * H_pad)

    w_hh = lp["w_hh"].reshape(4, H, H)
    w_hh = jnp.pad(w_hh, ((0, 0), (0, H_pad - H), (0, H_pad - H)))
    w_hh_t = jnp.transpose(w_hh, (2, 0, 1)).reshape(H_pad, 4 * H_pad)

    bias = (lp["b_ih"] + lp["b_hh"]).reshape(4, H)
    bias = jnp.pad(bias, ((0, 0), (0, H_pad - H))).reshape(1, 4 * H_pad)
    return w_ih_t, w_hh_t, bias


# ----------------------------------------------------------------------------
# Forward pass (eval mode), matching AdvancedLSTMModel.forward.
# ----------------------------------------------------------------------------
@functools.partial(jax.jit, static_argnames=("time_chunk",))
def advanced_lstm_forward(params, x_btd, time_chunk=32):
    x_btd = x_btd.astype(jnp.float32)
    B, T, D = x_btd.shape
    layers = params["layers"]
    L = len(layers)
    H = layers[0]["w_hh"].shape[1]

    B_pad = _round_up(B, B_BLOCK)
    nB = B_pad // B_BLOCK
    D_pad = _round_up(D, 128)
    H_pad = _round_up(H, 128)
    G = 4 * H_pad

    # Static time-chunk schedule (last chunk may be ragged).
    ct_max = min(T, time_chunk)
    chunks = []
    t0 = 0
    while t0 < T:
        ct = min(ct_max, T - t0)
        chunks.append((t0, ct))
        t0 += ct
    chunks = tuple(chunks)

    # (B, T, D) -> per-batch-block, time-major slabs: (nB, T*B_BLOCK, D_pad).
    x = jnp.transpose(x_btd, (1, 0, 2))                          # (T, B, D)
    x = jnp.pad(x, ((0, 0), (0, B_pad - B), (0, D_pad - D)))     # (T, B_pad, D_pad)
    x = x.reshape(T, nB, B_BLOCK, D_pad).transpose(1, 0, 2, 3)
    x = x.reshape(nB, T * B_BLOCK, D_pad)

    flat_inputs = [x]
    in_specs = [pl.BlockSpec((None, T * B_BLOCK, D_pad), lambda b: (b, 0, 0))]
    d_in, d_in_pad = D, D_pad
    for lp in layers:
        w_ih_t, w_hh_t, bias = _pad_layer_params(lp, H, H_pad, d_in, d_in_pad)
        flat_inputs += [w_ih_t, w_hh_t, bias]
        in_specs += [
            pl.BlockSpec((d_in_pad, G), lambda b: (0, 0)),
            pl.BlockSpec((H_pad, G), lambda b: (0, 0)),
            pl.BlockSpec((1, G), lambda b: (0, 0)),
        ]
        d_in, d_in_pad = H, H_pad

    # FC weights padded to a full 128-lane output tile; column 0 is real.
    w_fc_t = jnp.pad(jnp.transpose(params["w_fc"]),
                     ((0, H_pad - H), (0, 127)))                 # (H_pad, 128)
    b_fc = jnp.pad(params["b_fc"].reshape(1, 1), ((0, 0), (0, 127)))
    flat_inputs += [w_fc_t, b_fc]
    in_specs += [
        pl.BlockSpec((H_pad, 128), lambda b: (0, 0)),
        pl.BlockSpec((1, 128), lambda b: (0, 0)),
    ]

    scratch_shapes = [pltpu.VMEM((2 * ct_max * B_BLOCK, G), jnp.float32)]  # gx 2-slot
    if L > 1:
        scratch_shapes.append(pltpu.VMEM((T * B_BLOCK, H_pad), jnp.float32))  # h seq
    scratch_shapes += [pltpu.VMEM((B_BLOCK, H_pad), jnp.float32),             # h
                       pltpu.VMEM((B_BLOCK, H_pad), jnp.float32)]             # c

    # Rough VMEM footprint (inputs double-buffered by the pipeliner) -> raise
    # the scoped limit only when the default (16 MiB on v5e) would be tight.
    fb = 4
    est = 2 * T * B_BLOCK * D_pad * fb
    dp = D_pad
    for _ in range(L):
        est += 2 * (dp * G + H_pad * G + G) * fb
        dp = H_pad
    est += 2 * (H_pad * 128 + 128) * fb + 2 * B_BLOCK * 128 * fb
    est += (2 * ct_max * B_BLOCK * G + 2 * B_BLOCK * H_pad) * fb
    if L > 1:
        est += T * B_BLOCK * H_pad * fb
    vmem_limit = None
    if est > (12 << 20):
        vmem_limit = int(min(est * 3 // 2 + (2 << 20), 96 << 20))

    kernel = _make_fused_lstm_kernel(T, H_pad, L, chunks, ct_max, MXU_DTYPE)

    out = pl.pallas_call(
        kernel,
        out_shape=jax.ShapeDtypeStruct((nB, B_BLOCK, 128), jnp.float32),
        grid_spec=pltpu.PrefetchScalarGridSpec(
            num_scalar_prefetch=0,
            grid=(nB,),
            in_specs=in_specs,
            out_specs=pl.BlockSpec((None, B_BLOCK, 128), lambda b: (b, 0, 0)),
            scratch_shapes=scratch_shapes,
        ),
        compiler_params=pltpu.CompilerParams(
            dimension_semantics=("parallel",),      # batch blocks: v7x 2-TC split
            vmem_limit_bytes=vmem_limit),
    )(*flat_inputs)

    return out.reshape(B_pad, 128)[:B, :1]


# ----------------------------------------------------------------------------
# Parameter construction (Xavier-normal weights / zero biases, PyTorch shapes).
# ----------------------------------------------------------------------------
def _xavier_normal(key, shape):
    fan_out, fan_in = shape
    std = jnp.sqrt(2.0 / (fan_in + fan_out))
    return std * jax.random.normal(key, shape, dtype=jnp.float32)


def init_params(key, input_size, hidden_size, num_layers):
    layers = []
    for layer in range(num_layers):
        d_in = input_size if layer == 0 else hidden_size
        key, k1, k2 = jax.random.split(key, 3)
        layers.append({
            "w_ih": _xavier_normal(k1, (4 * hidden_size, d_in)),
            "w_hh": _xavier_normal(k2, (4 * hidden_size, hidden_size)),
            "b_ih": jnp.zeros((4 * hidden_size,), jnp.float32),
            "b_hh": jnp.zeros((4 * hidden_size,), jnp.float32),
        })
    key, kf = jax.random.split(key)
    return {
        "layers": layers,
        "w_fc": _xavier_normal(kf, (1, hidden_size)),
        "b_fc": jnp.zeros((1,), jnp.float32),
    }


# ----------------------------------------------------------------------------
# Pure-JAX reference (same math, unpadded) for correctness checks.
# ----------------------------------------------------------------------------
def reference_forward(params, x_btd):
    x = jnp.transpose(x_btd.astype(jnp.float32), (1, 0, 2))  # (T, B, D)
    T, B, _ = x.shape
    h = None
    for lp in params["layers"]:
        w_ih, w_hh = lp["w_ih"], lp["w_hh"]
        bias = lp["b_ih"] + lp["b_hh"]
        H = w_hh.shape[1]
        gx = jnp.einsum("tbd,gd->tbg", x, w_ih) + bias
        h = jnp.zeros((B, H), jnp.float32)
        c = jnp.zeros((B, H), jnp.float32)
        hs = []
        for t in range(T):
            gates = gx[t] + h @ w_hh.T
            i_g = jax.nn.sigmoid(gates[:, 0:H])
            f_g = jax.nn.sigmoid(gates[:, H:2 * H])
            g_g = jnp.tanh(gates[:, 2 * H:3 * H])
            o_g = jax.nn.sigmoid(gates[:, 3 * H:4 * H])
            c = f_g * c + i_g * g_g
            h = o_g * jnp.tanh(c)
            hs.append(h)
        x = jnp.stack(hs, axis=0)
    return h @ params["w_fc"].T + params["b_fc"]


if __name__ == "__main__":
    INPUT_SIZE = 16
    HIDDEN_SIZE = 32
    NUM_LAYERS = 2
    BATCH = 2
    SEQ = 8

    key = jax.random.PRNGKey(0)
    key, kx, kp = jax.random.split(key, 3)

    x = jax.random.normal(kx, (BATCH, SEQ, INPUT_SIZE), dtype=jnp.float32)
    params = init_params(kp, INPUT_SIZE, HIDDEN_SIZE, NUM_LAYERS)

    # time_chunk=3 -> chunks (0,3),(3,3),(6,2): exercises the 2-slot gx
    # pipeline and the ragged last chunk even at SEQ=8.
    out = jax.block_until_ready(advanced_lstm_forward(params, x, time_chunk=3))
    assert out.shape == (BATCH, 1), out.shape
    ref = jax.block_until_ready(reference_forward(params, x))
    np.testing.assert_allclose(np.asarray(out), np.asarray(ref),
                               rtol=2e-3, atol=1e-3)

    # Robustness: nonzero biases (module init zeroes them, but a trained
    # checkpoint would not) -- padded rows/lanes must not contaminate output.
    key, k1, k3 = jax.random.split(key, 3)
    params_b = {
        "layers": [dict(lp) for lp in params["layers"]],
        "w_fc": params["w_fc"],
        "b_fc": 0.1 * jax.random.normal(k3, params["b_fc"].shape, jnp.float32),
    }
    for i, lp in enumerate(params_b["layers"]):
        kk1, kk2 = jax.random.split(jax.random.fold_in(k1, i))
        lp["b_ih"] = 0.1 * jax.random.normal(kk1, lp["b_ih"].shape, jnp.float32)
        lp["b_hh"] = 0.1 * jax.random.normal(kk2, lp["b_hh"].shape, jnp.float32)
    out_b = jax.block_until_ready(
        advanced_lstm_forward(params_b, x, time_chunk=3))
    ref_b = jax.block_until_ready(reference_forward(params_b, x))
    np.testing.assert_allclose(np.asarray(out_b), np.asarray(ref_b),
                               rtol=2e-3, atol=1e-3)

    print("KERNEL_OK")
</pallas_src>

<mosaic_0001>
module attributes {stable_mosaic.version = 11 : i64} {
  func.func @kernel(%arg0: i32, %arg1: memref<1x64x128xf32, #tpu.memory_space<vmem>>, %arg2: memref<128x512xf32, #tpu.memory_space<vmem>>, %arg3: memref<128x512xf32, #tpu.memory_space<vmem>>, %arg4: memref<1x512xf32, #tpu.memory_space<vmem>>, %arg5: memref<128x512xf32, #tpu.memory_space<vmem>>, %arg6: memref<128x512xf32, #tpu.memory_space<vmem>>, %arg7: memref<1x512xf32, #tpu.memory_space<vmem>>, %arg8: memref<128x128xf32, #tpu.memory_space<vmem>>, %arg9: memref<1x128xf32, #tpu.memory_space<vmem>>, %arg10: memref<1x8x128xf32, #tpu.memory_space<vmem>>, %arg11: memref<48x512xf32, #tpu.memory_space<vmem>>, %arg12: memref<64x128xf32, #tpu.memory_space<vmem>>, %arg13: memref<8x128xf32, #tpu.memory_space<vmem>>, %arg14: memref<8x128xf32, #tpu.memory_space<vmem>>) attributes {dimension_semantics = [#tpu.dimension_semantics<parallel>], iteration_bounds = array<i64: 1>, scalar_prefetch = 0 : i64, scratch_operands = 4 : i64, tpu.core_type = #tpu.core_type<tc>, window_params = [{transform_indices = @transform_0, window_bounds = array<i64: 1, 64, 128>}, {pipeline_mode = #tpu.pipeline_mode<synchronous>, transform_indices = @transform_1, window_bounds = array<i64: 128, 512>}, {pipeline_mode = #tpu.pipeline_mode<synchronous>, transform_indices = @transform_2, window_bounds = array<i64: 128, 512>}, {pipeline_mode = #tpu.pipeline_mode<synchronous>, transform_indices = @transform_3, window_bounds = array<i64: 1, 512>}, {pipeline_mode = #tpu.pipeline_mode<synchronous>, transform_indices = @transform_4, window_bounds = array<i64: 128, 512>}, {pipeline_mode = #tpu.pipeline_mode<synchronous>, transform_indices = @transform_5, window_bounds = array<i64: 128, 512>}, {pipeline_mode = #tpu.pipeline_mode<synchronous>, transform_indices = @transform_6, window_bounds = array<i64: 1, 512>}, {pipeline_mode = #tpu.pipeline_mode<synchronous>, transform_indices = @transform_7, window_bounds = array<i64: 128, 128>}, {pipeline_mode = #tpu.pipeline_mode<synchronous>, transform_indices = @transform_8, window_bounds = array<i64: 1, 128>}, {transform_indices = @transform_9, window_bounds = array<i64: 1, 8, 128>}]} {
    %cst = arith.constant 0.000000e+00 : f32
    %0 = vector.broadcast %cst : f32 to vector<8x128xf32>
    %c0 = arith.constant 0 : index
    %c0_0 = arith.constant 0 : index
    %1 = vector.load %arg13[%c0, %c0_0] : memref<8x128xf32, #tpu.memory_space<vmem>>, vector<8x128xf32>
    tpu.vector_store %arg13[%c0, %c0_0], %0 {strides = array<i32>} : memref<8x128xf32, #tpu.memory_space<vmem>>, vector<8x128xf32>,
    %cst_1 = arith.constant 0.000000e+00 : f32
    %2 = vector.broadcast %cst_1 : f32 to vector<8x128xf32>
    %c0_2 = arith.constant 0 : index
    %c0_3 = arith.constant 0 : index
    %3 = vector.load %arg14[%c0_2, %c0_3] : memref<8x128xf32, #tpu.memory_space<vmem>>, vector<8x128xf32>
    tpu.vector_store %arg14[%c0_2, %c0_3], %2 {strides = array<i32>} : memref<8x128xf32, #tpu.memory_space<vmem>>, vector<8x128xf32>,
    %c0_4 = arith.constant 0 : index
    %c0_5 = arith.constant 0 : index
    %c0_6 = arith.constant 0 : index
    %4 = vector.load %arg1[%c0_4, %c0_5, %c0_6] : memref<1x64x128xf32, #tpu.memory_space<vmem>>, vector<1x24x128xf32>
    %5 = vector.shape_cast %4 : vector<1x24x128xf32> to vector<24x128xf32>
    %c0_7 = arith.constant 0 : index
    %c0_8 = arith.constant 0 : index
    %6 = vector.load %arg2[%c0_7, %c0_8] : memref<128x512xf32, #tpu.memory_space<vmem>>, vector<128x512xf32>
    %cst_9 = arith.constant dense<0.000000e+00> : vector<24x512xf32>
    %7 = tpu.matmul %5, %6, %cst_9 {dimension_numbers = #tpu.dot_dimension_numbers<[1], [0], [0], [1], [0, 0, 1, 1], [], []>} : vector<24x128xf32>, vector<128x512xf32>, vector<24x512xf32> -> vector<24x512xf32>
    %c0_10 = arith.constant 0 : index
    %c0_11 = arith.constant 0 : index
    %8 = vector.load %arg4[%c0_10, %c0_11] : memref<1x512xf32, #tpu.memory_space<vmem>>, vector<1x512xf32>
    %9 = vector.broadcast %8 : vector<1x512xf32> to vector<24x512xf32>
    %10 = arith.addf %7, %9 : vector<24x512xf32>
    %c0_12 = arith.constant 0 : index
    %c0_13 = arith.constant 0 : index
    %11 = vector.load %arg11[%c0_12, %c0_13] : memref<48x512xf32, #tpu.memory_space<vmem>>, vector<24x512xf32>
    tpu.vector_store %arg11[%c0_12, %c0_13], %10 {strides = array<i32>} : memref<48x512xf32, #tpu.memory_space<vmem>>, vector<24x512xf32>,
    %c0_14 = arith.constant 0 : index
    %c24 = arith.constant 24 : index
    %c0_15 = arith.constant 0 : index
    %12 = vector.load %arg1[%c0_14, %c24, %c0_15] : memref<1x64x128xf32, #tpu.memory_space<vmem>>, vector<1x24x128xf32>
    %13 = vector.shape_cast %12 : vector<1x24x128xf32> to vector<24x128xf32>
    %c0_16 = arith.constant 0 : index
    %c0_17 = arith.constant 0 : index
    %14 = vector.load %arg2[%c0_16, %c0_17] : memref<128x512xf32, #tpu.memory_space<vmem>>, vector<128x512xf32>
    %cst_18 = arith.constant dense<0.000000e+00> : vector<24x512xf32>
    %15 = tpu.matmul %13, %14, %cst_18 {dimension_numbers = #tpu.dot_dimension_numbers<[1], [0], [0], [1], [0, 0, 1, 1], [], []>} : vector<24x128xf32>, vector<128x512xf32>, vector<24x512xf32> -> vector<24x512xf32>
    %c0_19 = arith.constant 0 : index
    %c0_20 = arith.constant 0 : index
    %16 = vector.load %arg4[%c0_19, %c0_20] : memref<1x512xf32, #tpu.memory_space<vmem>>, vector<1x512xf32>
    %17 = vector.broadcast %16 : vector<1x512xf32> to vector<24x512xf32>
    %18 = arith.addf %15, %17 : vector<24x512xf32>
    %c24_21 = arith.constant 24 : index
    %c0_22 = arith.constant 0 : index
    %19 = vector.load %arg11[%c24_21, %c0_22] : memref<48x512xf32, #tpu.memory_space<vmem>>, vector<24x512xf32>
    tpu.vector_store %arg11[%c24_21, %c0_22], %18 {strides = array<i32>} : memref<48x512xf32, #tpu.memory_space<vmem>>, vector<24x512xf32>,
    %c0_i32 = arith.constant 0 : i32
    %c8_i32 = arith.constant 8 : i32
    %20 = arith.muli %c0_i32, %c8_i32 : i32
    %c0_i32_23 = arith.constant 0 : i32
    %21 = arith.addi %c0_i32_23, %20 : i32
    %22 = tpu.assume_multiple %21, 8 : i32
    %23 = arith.index_cast %22 : i32 to index
    %c0_24 = arith.constant 0 : index
    %24 = vector.load %arg11[%23, %c0_24] : memref<48x512xf32, #tpu.memory_space<vmem>>, vector<8x512xf32>
    %c0_25 = arith.constant 0 : index
    %c0_26 = arith.constant 0 : index
    %25 = vector.load %arg13[%c0_25, %c0_26] : memref<8x128xf32, #tpu.memory_space<vmem>>, vector<8x128xf32>
    %c0_27 = arith.constant 0 : index
    %c0_28 = arith.constant 0 : index
    %26 = vector.load %arg3[%c0_27, %c0_28] : memref<128x512xf32, #tpu.memory_space<vmem>>, vector<128x512xf32>
    %cst_29 = arith.constant dense<0.000000e+00> : vector<8x512xf32>
    %27 = tpu.matmul %25, %26, %cst_29 {dimension_numbers = #tpu.dot_dimension_numbers<[1], [0], [0], [1], [0, 0, 1, 1], [], []>} : vector<8x128xf32>, vector<128x512xf32>, vector<8x512xf32> -> vector<8x512xf32>
    %28 = arith.addf %24, %27 : vector<8x512xf32>
    %29 = vector.extract_strided_slice %28 {offsets = [0, 0], sizes = [8, 128], strides = [1, 1]} : vector<8x512xf32> to vector<8x128xf32>
    %30 = arith.negf %29 : vector<8x128xf32>
    %31 = math.exp %30 : vector<8x128xf32>
    %cst_30 = arith.constant 1.000000e+00 : f32
    %32 = vector.broadcast %cst_30 : f32 to vector<8x128xf32>
    %33 = arith.addf %32, %31 : vector<8x128xf32>
    %34 = arith.divf %32, %33 : vector<8x128xf32>
    %35 = vector.extract_strided_slice %28 {offsets = [0, 128], sizes = [8, 128], strides = [1, 1]} : vector<8x512xf32> to vector<8x128xf32>
    %36 = arith.negf %35 : vector<8x128xf32>
    %37 = math.exp %36 : vector<8x128xf32>
    %cst_31 = arith.constant 1.000000e+00 : f32
    %38 = vector.broadcast %cst_31 : f32 to vector<8x128xf32>
    %39 = arith.addf %38, %37 : vector<8x128xf32>
    %40 = arith.divf %38, %39 : vector<8x128xf32>
    %41 = vector.extract_strided_slice %28 {offsets = [0, 256], sizes = [8, 128], strides = [1, 1]} : vector<8x512xf32> to vector<8x128xf32>
    %42 = math.tanh %41 : vector<8x128xf32>
    %43 = vector.extract_strided_slice %28 {offsets = [0, 384], sizes = [8, 128], strides = [1, 1]} : vector<8x512xf32> to vector<8x128xf32>
    %44 = arith.negf %43 : vector<8x128xf32>
    %45 = math.exp %44 : vector<8x128xf32>
    %cst_32 = arith.constant 1.000000e+00 : f32
    %46 = vector.broadcast %cst_32 : f32 to vector<8x128xf32>
    %47 = arith.addf %46, %45 : vector<8x128xf32>
    %48 = arith.divf %46, %47 : vector<8x128xf32>
    %c0_33 = arith.constant 0 : index
    %c0_34 = arith.constant 0 : index
    %49 = vector.load %arg14[%c0_33, %c0_34] : memref<8x128xf32, #tpu.memory_space<vmem>>, vector<8x128xf32>
    %50 = arith.mulf %40, %49 : vector<8x128xf32>
    %51 = arith.mulf %34, %42 : vector<8x128xf32>
    %52 = arith.addf %50, %51 : vector<8x128xf32>
    %53 = math.tanh %52 : vector<8x128xf32>
    %54 = arith.mulf %48, %53 : vector<8x128xf32>
    %c0_35 = arith.constant 0 : index
    %c0_36 = arith.constant 0 : index
    %55 = vector.load %arg14[%c0_35, %c0_36] : memref<8x128xf32, #tpu.memory_space<vmem>>, vector<8x128xf32>
    tpu.vector_store %arg14[%c0_35, %c0_36], %52 {strides = array<i32>} : memref<8x128xf32, #tpu.memory_space<vmem>>, vector<8x128xf32>,
    %c0_37 = arith.constant 0 : index
    %c0_38 = arith.constant 0 : index
    %56 = vector.load %arg13[%c0_37, %c0_38] : memref<8x128xf32, #tpu.memory_space<vmem>>, vector<8x128xf32>
    tpu.vector_store %arg13[%c0_37, %c0_38], %54 {strides = array<i32>} : memref<8x128xf32, #tpu.memory_space<vmem>>, vector<8x128xf32>,
    %c0_i32_39 = arith.constant 0 : i32
    %57 = arith.addi %c0_i32_39, %c0_i32 : i32
    %c8_i32_40 = arith.constant 8 : i32
    %58 = arith.muli %57, %c8_i32_40 : i32
    %59 = tpu.assume_multiple %58, 8 : i32
    %60 = arith.index_cast %59 : i32 to index
    %c0_41 = arith.constant 0 : index
    %61 = vector.load %arg12[%60, %c0_41] : memref<64x128xf32, #tpu.memory_space<vmem>>, vector<8x128xf32>
    tpu.vector_store %arg12[%60, %c0_41], %54 {strides = array<i32>} : memref<64x128xf32, #tpu.memory_space<vmem>>, vector<8x128xf32>,
    %c1_i32 = arith.constant 1 : i32
    %c8_i32_42 = arith.constant 8 : i32
    %62 = arith.muli %c1_i32, %c8_i32_42 : i32
    %c0_i32_43 = arith.constant 0 : i32
    %63 = arith.addi %c0_i32_43, %62 : i32
    %64 = tpu.assume_multiple %63, 8 : i32
    %65 = arith.index_cast %64 : i32 to index
    %c0_44 = arith.constant 0 : index
    %66 = vector.load %arg11[%65, %c0_44] : memref<48x512xf32, #tpu.memory_space<vmem>>, vector<8x512xf32>
    %c0_45 = arith.constant 0 : index
    %c0_46 = arith.constant 0 : index
    %67 = vector.load %arg13[%c0_45, %c0_46] : memref<8x128xf32, #tpu.memory_space<vmem>>, vector<8x128xf32>
    %c0_47 = arith.constant 0 : index
    %c0_48 = arith.constant 0 : index
    %68 = vector.load %arg3[%c0_47, %c0_48] : memref<128x512xf32, #tpu.memory_space<vmem>>, vector<128x512xf32>
    %cst_49 = arith.constant dense<0.000000e+00> : vector<8x512xf32>
    %69 = tpu.matmul %67, %68, %cst_49 {dimension_numbers = #tpu.dot_dimension_numbers<[1], [0], [0], [1], [0, 0, 1, 1], [], []>} : vector<8x128xf32>, vector<128x512xf32>, vector<8x512xf32> -> vector<8x512xf32>
    %70 = arith.addf %66, %69 : vector<8x512xf32>
    %71 = vector.extract_strided_slice %70 {offsets = [0, 0], sizes = [8, 128], strides = [1, 1]} : vector<8x512xf32> to vector<8x128xf32>
    %72 = arith.negf %71 : vector<8x128xf32>
    %73 = math.exp %72 : vector<8x128xf32>
    %cst_50 = arith.constant 1.000000e+00 : f32
    %74 = vector.broadcast %cst_50 : f32 to vector<8x128xf32>
    %75 = arith.addf %74, %73 : vector<8x128xf32>
    %76 = arith.divf %74, %75 : vector<8x128xf32>
    %77 = vector.extract_strided_slice %70 {offsets = [0, 128], sizes = [8, 128], strides = [1, 1]} : vector<8x512xf32> to vector<8x128xf32>
    %78 = arith.negf %77 : vector<8x128xf32>
    %79 = math.exp %78 : vector<8x128xf32>
    %cst_51 = arith.constant 1.000000e+00 : f32
    %80 = vector.broadcast %cst_51 : f32 to vector<8x128xf32>
    %81 = arith.addf %80, %79 : vector<8x128xf32>
    %82 = arith.divf %80, %81 : vector<8x128xf32>
    %83 = vector.extract_strided_slice %70 {offsets = [0, 256], sizes = [8, 128], strides = [1, 1]} : vector<8x512xf32> to vector<8x128xf32>
    %84 = math.tanh %83 : vector<8x128xf32>
    %85 = vector.extract_strided_slice %70 {offsets = [0, 384], sizes = [8, 128], strides = [1, 1]} : vector<8x512xf32> to vector<8x128xf32>
    %86 = arith.negf %85 : vector<8x128xf32>
    %87 = math.exp %86 : vector<8x128xf32>
    %cst_52 = arith.constant 1.000000e+00 : f32
    %88 = vector.broadcast %cst_52 : f32 to vector<8x128xf32>
    %89 = arith.addf %88, %87 : vector<8x128xf32>
    %90 = arith.divf %88, %89 : vector<8x128xf32>
    %c0_53 = arith.constant 0 : index
    %c0_54 = arith.constant 0 : index
    %91 = vector.load %arg14[%c0_53, %c0_54] : memref<8x128xf32, #tpu.memory_space<vmem>>, vector<8x128xf32>
    %92 = arith.mulf %82, %91 : vector<8x128xf32>
    %93 = arith.mulf %76, %84 : vector<8x128xf32>
    %94 = arith.addf %92, %93 : vector<8x128xf32>
    %95 = math.tanh %94 : vector<8x128xf32>
    %96 = arith.mulf %90, %95 : vector<8x128xf32>
    %c0_55 = arith.constant 0 : index
    %c0_56 = arith.constant 0 : index
    %97 = vector.load %arg14[%c0_55, %c0_56] : memref<8x128xf32, #tpu.memory_space<vmem>>, vector<8x128xf32>
    tpu.vector_store %arg14[%c0_55, %c0_56], %94 {strides = array<i32>} : memref<8x128xf32, #tpu.memory_space<vmem>>, vector<8x128xf32>,
    %c0_57 = arith.constant 0 : index
    %c0_58 = arith.constant 0 : index
    %98 = vector.load %arg13[%c0_57, %c0_58] : memref<8x128xf32, #tpu.memory_space<vmem>>, vector<8x128xf32>
    tpu.vector_store %arg13[%c0_57, %c0_58], %96 {strides = array<i32>} : memref<8x128xf32, #tpu.memory_space<vmem>>, vector<8x128xf32>,
    %c0_i32_59 = arith.constant 0 : i32
    %99 = arith.addi %c0_i32_59, %c1_i32 : i32
    %c8_i32_60 = arith.constant 8 : i32
    %100 = arith.muli %99, %c8_i32_60 : i32
    %101 = tpu.assume_multiple %100, 8 : i32
    %102 = arith.index_cast %101 : i32 to index
    %c0_61 = arith.constant 0 : index
    %103 = vector.load %arg12[%102, %c0_61] : memref<64x128xf32, #tpu.memory_space<vmem>>, vector<8x128xf32>
    tpu.vector_store %arg12[%102, %c0_61], %96 {strides = array<i32>} : memref<64x128xf32, #tpu.memory_space<vmem>>, vector<8x128xf32>,
    %c2_i32 = arith.constant 2 : i32
    %c8_i32_62 = arith.constant 8 : i32
    %104 = arith.muli %c2_i32, %c8_i32_62 : i32
    %c0_i32_63 = arith.constant 0 : i32
    %105 = arith.addi %c0_i32_63, %104 : i32
    %106 = tpu.assume_multiple %105, 8 : i32
    %107 = arith.index_cast %106 : i32 to index
    %c0_64 = arith.constant 0 : index
    %108 = vector.load %arg11[%107, %c0_64] : memref<48x512xf32, #tpu.memory_space<vmem>>, vector<8x512xf32>
    %c0_65 = arith.constant 0 : index
    %c0_66 = arith.constant 0 : index
    %109 = vector.load %arg13[%c0_65, %c0_66] : memref<8x128xf32, #tpu.memory_space<vmem>>, vector<8x128xf32>
    %c0_67 = arith.constant 0 : index
    %c0_68 = arith.constant 0 : index
    %110 = vector.load %arg3[%c0_67, %c0_68] : memref<128x512xf32, #tpu.memory_space<vmem>>, vector<128x512xf32>
    %cst_69 = arith.constant dense<0.000000e+00> : vector<8x512xf32>
    %111 = tpu.matmul %109, %110, %cst_69 {dimension_numbers = #tpu.dot_dimension_numbers<[1], [0], [0], [1], [0, 0, 1, 1], [], []>} : vector<8x128xf32>, vector<128x512xf32>, vector<8x512xf32> -> vector<8x512xf32>
    %112 = arith.addf %108, %111 : vector<8x512xf32>
    %113 = vector.extract_strided_slice %112 {offsets = [0, 0], sizes = [8, 128], strides = [1, 1]} : vector<8x512xf32> to vector<8x128xf32>
    %114 = arith.negf %113 : vector<8x128xf32>
    %115 = math.exp %114 : vector<8x128xf32>
    %cst_70 = arith.constant 1.000000e+00 : f32
    %116 = vector.broadcast %cst_70 : f32 to vector<8x128xf32>
    %117 = arith.addf %116, %115 : vector<8x128xf32>
    %118 = arith.divf %116, %117 : vector<8x128xf32>
    %119 = vector.extract_strided_slice %112 {offsets = [0, 128], sizes = [8, 128], strides = [1, 1]} : vector<8x512xf32> to vector<8x128xf32>
    %120 = arith.negf %119 : vector<8x128xf32>
    %121 = math.exp %120 : vector<8x128xf32>
    %cst_71 = arith.constant 1.000000e+00 : f32
    %122 = vector.broadcast %cst_71 : f32 to vector<8x128xf32>
    %123 = arith.addf %122, %121 : vector<8x128xf32>
    %124 = arith.divf %122, %123 : vector<8x128xf32>
    %125 = vector.extract_strided_slice %112 {offsets = [0, 256], sizes = [8, 128], strides = [1, 1]} : vector<8x512xf32> to vector<8x128xf32>
    %126 = math.tanh %125 : vector<8x128xf32>
    %127 = vector.extract_strided_slice %112 {offsets = [0, 384], sizes = [8, 128], strides = [1, 1]} : vector<8x512xf32> to vector<8x128xf32>
    %128 = arith.negf %127 : vector<8x128xf32>
    %129 = math.exp %128 : vector<8x128xf32>
    %cst_72 = arith.constant 1.000000e+00 : f32
    %130 = vector.broadcast %cst_72 : f32 to vector<8x128xf32>
    %131 = arith.addf %130, %129 : vector<8x128xf32>
    %132 = arith.divf %130, %131 : vector<8x128xf32>
    %c0_73 = arith.constant 0 : index
    %c0_74 = arith.constant 0 : index
    %133 = vector.load %arg14[%c0_73, %c0_74] : memref<8x128xf32, #tpu.memory_space<vmem>>, vector<8x128xf32>
    %134 = arith.mulf %124, %133 : vector<8x128xf32>
    %135 = arith.mulf %118, %126 : vector<8x128xf32>
    %136 = arith.addf %134, %135 : vector<8x128xf32>
    %137 = math.tanh %136 : vector<8x128xf32>
    %138 = arith.mulf %132, %137 : vector<8x128xf32>
    %c0_75 = arith.constant 0 : index
    %c0_76 = arith.constant 0 : index
    %139 = vector.load %arg14[%c0_75, %c0_76] : memref<8x128xf32, #tpu.memory_space<vmem>>, vector<8x128xf32>
    tpu.vector_store %arg14[%c0_75, %c0_76], %136 {strides = array<i32>} : memref<8x128xf32, #tpu.memory_space<vmem>>, vector<8x128xf32>,
    %c0_77 = arith.constant 0 : index
    %c0_78 = arith.constant 0 : index
    %140 = vector.load %arg13[%c0_77, %c0_78] : memref<8x128xf32, #tpu.memory_space<vmem>>, vector<8x128xf32>
    tpu.vector_store %arg13[%c0_77, %c0_78], %138 {strides = array<i32>} : memref<8x128xf32, #tpu.memory_space<vmem>>, vector<8x128xf32>,
    %c0_i32_79 = arith.constant 0 : i32
    %141 = arith.addi %c0_i32_79, %c2_i32 : i32
    %c8_i32_80 = arith.constant 8 : i32
    %142 = arith.muli %141, %c8_i32_80 : i32
    %143 = tpu.assume_multiple %142, 8 : i32
    %144 = arith.index_cast %143 : i32 to index
    %c0_81 = arith.constant 0 : index
    %145 = vector.load %arg12[%144, %c0_81] : memref<64x128xf32, #tpu.memory_space<vmem>>, vector<8x128xf32>
    tpu.vector_store %arg12[%144, %c0_81], %138 {strides = array<i32>} : memref<64x128xf32, #tpu.memory_space<vmem>>, vector<8x128xf32>,
    %c3_i32 = arith.constant 3 : i32
    %c0_82 = arith.constant 0 : index
    %c48 = arith.constant 48 : index
    %c0_83 = arith.constant 0 : index
    %146 = vector.load %arg1[%c0_82, %c48, %c0_83] : memref<1x64x128xf32, #tpu.memory_space<vmem>>, vector<1x16x128xf32>
    %147 = vector.shape_cast %146 : vector<1x16x128xf32> to vector<16x128xf32>
    %c0_84 = arith.constant 0 : index
    %c0_85 = arith.constant 0 : index
    %148 = vector.load %arg2[%c0_84, %c0_85] : memref<128x512xf32, #tpu.memory_space<vmem>>, vector<128x512xf32>
    %cst_86 = arith.constant dense<0.000000e+00> : vector<16x512xf32>
    %149 = tpu.matmul %147, %148, %cst_86 {dimension_numbers = #tpu.dot_dimension_numbers<[1], [0], [0], [1], [0, 0, 1, 1], [], []>} : vector<16x128xf32>, vector<128x512xf32>, vector<16x512xf32> -> vector<16x512xf32>
    %c0_87 = arith.constant 0 : index
    %c0_88 = arith.constant 0 : index
    %150 = vector.load %arg4[%c0_87, %c0_88] : memref<1x512xf32, #tpu.memory_space<vmem>>, vector<1x512xf32>
    %151 = vector.broadcast %150 : vector<1x512xf32> to vector<16x512xf32>
    %152 = arith.addf %149, %151 : vector<16x512xf32>
    %c0_89 = arith.constant 0 : index
    %c0_90 = arith.constant 0 : index
    %153 = vector.load %arg11[%c0_89, %c0_90] : memref<48x512xf32, #tpu.memory_space<vmem>>, vector<16x512xf32>
    tpu.vector_store %arg11[%c0_89, %c0_90], %152 {strides = array<i32>} : memref<48x512xf32, #tpu.memory_space<vmem>>, vector<16x512xf32>,
    %c0_i32_91 = arith.constant 0 : i32
    %c8_i32_92 = arith.constant 8 : i32
    %154 = arith.muli %c0_i32_91, %c8_i32_92 : i32
    %c24_i32 = arith.constant 24 : i32
    %155 = arith.addi %c24_i32, %154 : i32
    %156 = tpu.assume_multiple %155, 8 : i32
    %157 = arith.index_cast %156 : i32 to index
    %c0_93 = arith.constant 0 : index
    %158 = vector.load %arg11[%157, %c0_93] : memref<48x512xf32, #tpu.memory_space<vmem>>, vector<8x512xf32>
    %c0_94 = arith.constant 0 : index
    %c0_95 = arith.constant 0 : index
    %159 = vector.load %arg13[%c0_94, %c0_95] : memref<8x128xf32, #tpu.memory_space<vmem>>, vector<8x128xf32>
    %c0_96 = arith.constant 0 : index
    %c0_97 = arith.constant 0 : index
    %160 = vector.load %arg3[%c0_96, %c0_97] : memref<128x512xf32, #tpu.memory_space<vmem>>, vector<128x512xf32>
    %cst_98 = arith.constant dense<0.000000e+00> : vector<8x512xf32>
    %161 = tpu.matmul %159, %160, %cst_98 {dimension_numbers = #tpu.dot_dimension_numbers<[1], [0], [0], [1], [0, 0, 1, 1], [], []>} : vector<8x128xf32>, vector<128x512xf32>, vector<8x512xf32> -> vector<8x512xf32>
    %162 = arith.addf %158, %161 : vector<8x512xf32>
    %163 = vector.extract_strided_slice %162 {offsets = [0, 0], sizes = [8, 128], strides = [1, 1]} : vector<8x512xf32> to vector<8x128xf32>
    %164 = arith.negf %163 : vector<8x128xf32>
    %165 = math.exp %164 : vector<8x128xf32>
    %cst_99 = arith.constant 1.000000e+00 : f32
    %166 = vector.broadcast %cst_99 : f32 to vector<8x128xf32>
    %167 = arith.addf %166, %165 : vector<8x128xf32>
    %168 = arith.divf %166, %167 : vector<8x128xf32>
    %169 = vector.extract_strided_slice %162 {offsets = [0, 128], sizes = [8, 128], strides = [1, 1]} : vector<8x512xf32> to vector<8x128xf32>
    %170 = arith.negf %169 : vector<8x128xf32>
    %171 = math.exp %170 : vector<8x128xf32>
    %cst_100 = arith.constant 1.000000e+00 : f32
    %172 = vector.broadcast %cst_100 : f32 to vector<8x128xf32>
    %173 = arith.addf %172, %171 : vector<8x128xf32>
    %174 = arith.divf %172, %173 : vector<8x128xf32>
    %175 = vector.extract_strided_slice %162 {offsets = [0, 256], sizes = [8, 128], strides = [1, 1]} : vector<8x512xf32> to vector<8x128xf32>
    %176 = math.tanh %175 : vector<8x128xf32>
    %177 = vector.extract_strided_slice %162 {offsets = [0, 384], sizes = [8, 128], strides = [1, 1]} : vector<8x512xf32> to vector<8x128xf32>
    %178 = arith.negf %177 : vector<8x128xf32>
    %179 = math.exp %178 : vector<8x128xf32>
    %cst_101 = arith.constant 1.000000e+00 : f32
    %180 = vector.broadcast %cst_101 : f32 to vector<8x128xf32>
    %181 = arith.addf %180, %179 : vector<8x128xf32>
    %182 = arith.divf %180, %181 : vector<8x128xf32>
    %c0_102 = arith.constant 0 : index
    %c0_103 = arith.constant 0 : index
    %183 = vector.load %arg14[%c0_102, %c0_103] : memref<8x128xf32, #tpu.memory_space<vmem>>, vector<8x128xf32>
    %184 = arith.mulf %174, %183 : vector<8x128xf32>
    %185 = arith.mulf %168, %176 : vector<8x128xf32>
    %186 = arith.addf %184, %185 : vector<8x128xf32>
    %187 = math.tanh %186 : vector<8x128xf32>
    %188 = arith.mulf %182, %187 : vector<8x128xf32>
    %c0_104 = arith.constant 0 : index
    %c0_105 = arith.constant 0 : index
    %189 = vector.load %arg14[%c0_104, %c0_105] : memref<8x128xf32, #tpu.memory_space<vmem>>, vector<8x128xf32>
    tpu.vector_store %arg14[%c0_104, %c0_105], %186 {strides = array<i32>} : memref<8x128xf32, #tpu.memory_space<vmem>>, vector<8x128xf32>,
    %c0_106 = arith.constant 0 : index
    %c0_107 = arith.constant 0 : index
    %190 = vector.load %arg13[%c0_106, %c0_107] : memref<8x128xf32, #tpu.memory_space<vmem>>, vector<8x128xf32>
    tpu.vector_store %arg13[%c0_106, %c0_107], %188 {strides = array<i32>} : memref<8x128xf32, #tpu.memory_space<vmem>>, vector<8x128xf32>,
    %c3_i32_108 = arith.constant 3 : i32
    %191 = arith.addi %c3_i32_108, %c0_i32_91 : i32
    %c8_i32_109 = arith.constant 8 : i32
    %192 = arith.muli %191, %c8_i32_109 : i32
    %193 = tpu.assume_multiple %192, 8 : i32
    %194 = arith.index_cast %193 : i32 to index
    %c0_110 = arith.constant 0 : index
    %195 = vector.load %arg12[%194, %c0_110] : memref<64x128xf32, #tpu.memory_space<vmem>>, vector<8x128xf32>
    tpu.vector_store %arg12[%194, %c0_110], %188 {strides = array<i32>} : memref<64x128xf32, #tpu.memory_space<vmem>>, vector<8x128xf32>,
    %c1_i32_111 = arith.constant 1 : i32
    %c8_i32_112 = arith.constant 8 : i32
    %196 = arith.muli %c1_i32_111, %c8_i32_112 : i32
    %c24_i32_113 = arith.constant 24 : i32
    %197 = arith.addi %c24_i32_113, %196 : i32
    %198 = tpu.assume_multiple %197, 8 : i32
    %199 = arith.index_cast %198 : i32 to index
    %c0_114 = arith.constant 0 : index
    %200 = vector.load %arg11[%199, %c0_114] : memref<48x512xf32, #tpu.memory_space<vmem>>, vector<8x512xf32>
    %c0_115 = arith.constant 0 : index
    %c0_116 = arith.constant 0 : index
    %201 = vector.load %arg13[%c0_115, %c0_116] : memref<8x128xf32, #tpu.memory_space<vmem>>, vector<8x128xf32>
    %c0_117 = arith.constant 0 : index
    %c0_118 = arith.constant 0 : index
    %202 = vector.load %arg3[%c0_117, %c0_118] : memref<128x512xf32, #tpu.memory_space<vmem>>, vector<128x512xf32>
    %cst_119 = arith.constant dense<0.000000e+00> : vector<8x512xf32>
    %203 = tpu.matmul %201, %202, %cst_119 {dimension_numbers = #tpu.dot_dimension_numbers<[1], [0], [0], [1], [0, 0, 1, 1], [], []>} : vector<8x128xf32>, vector<128x512xf32>, vector<8x512xf32> -> vector<8x512xf32>
    %204 = arith.addf %200, %203 : vector<8x512xf32>
    %205 = vector.extract_strided_slice %204 {offsets = [0, 0], sizes = [8, 128], strides = [1, 1]} : vector<8x512xf32> to vector<8x128xf32>
    %206 = arith.negf %205 : vector<8x128xf32>
    %207 = math.exp %206 : vector<8x128xf32>
    %cst_120 = arith.constant 1.000000e+00 : f32
    %208 = vector.broadcast %cst_120 : f32 to vector<8x128xf32>
    %209 = arith.addf %208, %207 : vector<8x128xf32>
    %210 = arith.divf %208, %209 : vector<8x128xf32>
    %211 = vector.extract_strided_slice %204 {offsets = [0, 128], sizes = [8, 128], strides = [1, 1]} : vector<8x512xf32> to vector<8x128xf32>
    %212 = arith.negf %211 : vector<8x128xf32>
    %213 = math.exp %212 : vector<8x128xf32>
    %cst_121 = arith.constant 1.000000e+00 : f32
    %214 = vector.broadcast %cst_121 : f32 to vector<8x128xf32>
    %215 = arith.addf %214, %213 : vector<8x128xf32>
    %216 = arith.divf %214, %215 : vector<8x128xf32>
    %217 = vector.extract_strided_slice %204 {offsets = [0, 256], sizes = [8, 128], strides = [1, 1]} : vector<8x512xf32> to vector<8x128xf32>
    %218 = math.tanh %217 : vector<8x128xf32>
    %219 = vector.extract_strided_slice %204 {offsets = [0, 384], sizes = [8, 128], strides = [1, 1]} : vector<8x512xf32> to vector<8x128xf32>
    %220 = arith.negf %219 : vector<8x128xf32>
    %221 = math.exp %220 : vector<8x128xf32>
    %cst_122 = arith.constant 1.000000e+00 : f32
    %222 = vector.broadcast %cst_122 : f32 to vector<8x128xf32>
    %223 = arith.addf %222, %221 : vector<8x128xf32>
    %224 = arith.divf %222, %223 : vector<8x128xf32>
    %c0_123 = arith.constant 0 : index
    %c0_124 = arith.constant 0 : index
    %225 = vector.load %arg14[%c0_123, %c0_124] : memref<8x128xf32, #tpu.memory_space<vmem>>, vector<8x128xf32>
    %226 = arith.mulf %216, %225 : vector<8x128xf32>
    %227 = arith.mulf %210, %218 : vector<8x128xf32>
    %228 = arith.addf %226, %227 : vector<8x128xf32>
    %229 = math.tanh %228 : vector<8x128xf32>
    %230 = arith.mulf %224, %229 : vector<8x128xf32>
    %c0_125 = arith.constant 0 : index
    %c0_126 = arith.constant 0 : index
    %231 = vector.load %arg14[%c0_125, %c0_126] : memref<8x128xf32, #tpu.memory_space<vmem>>, vector<8x128xf32>
    tpu.vector_store %arg14[%c0_125, %c0_126], %228 {strides = array<i32>} : memref<8x128xf32, #tpu.memory_space<vmem>>, vector<8x128xf32>,
    %c0_127 = arith.constant 0 : index
    %c0_128 = arith.constant 0 : index
    %232 = vector.load %arg13[%c0_127, %c0_128] : memref<8x128xf32, #tpu.memory_space<vmem>>, vector<8x128xf32>
    tpu.vector_store %arg13[%c0_127, %c0_128], %230 {strides = array<i32>} : memref<8x128xf32, #tpu.memory_space<vmem>>, vector<8x128xf32>,
    %c3_i32_129 = arith.constant 3 : i32
    %233 = arith.addi %c3_i32_129, %c1_i32_111 : i32
    %c8_i32_130 = arith.constant 8 : i32
    %234 = arith.muli %233, %c8_i32_130 : i32
    %235 = tpu.assume_multiple %234, 8 : i32
    %236 = arith.index_cast %235 : i32 to index
    %c0_131 = arith.constant 0 : index
    %237 = vector.load %arg12[%236, %c0_131] : memref<64x128xf32, #tpu.memory_space<vmem>>, vector<8x128xf32>
    tpu.vector_store %arg12[%236, %c0_131], %230 {strides = array<i32>} : memref<64x128xf32, #tpu.memory_space<vmem>>, vector<8x128xf32>,
    %c2_i32_132 = arith.constant 2 : i32
    %c8_i32_133 = arith.constant 8 : i32
    %238 = arith.muli %c2_i32_132, %c8_i32_133 : i32
    %c24_i32_134 = arith.constant 24 : i32
    %239 = arith.addi %c24_i32_134, %238 : i32
    %240 = tpu.assume_multiple %239, 8 : i32
    %241 = arith.index_cast %240 : i32 to index
    %c0_135 = arith.constant 0 : index
    %242 = vector.load %arg11[%241, %c0_135] : memref<48x512xf32, #tpu.memory_space<vmem>>, vector<8x512xf32>
    %c0_136 = arith.constant 0 : index
    %c0_137 = arith.constant 0 : index
    %243 = vector.load %arg13[%c0_136, %c0_137] : memref<8x128xf32, #tpu.memory_space<vmem>>, vector<8x128xf32>
    %c0_138 = arith.constant 0 : index
    %c0_139 = arith.constant 0 : index
    %244 = vector.load %arg3[%c0_138, %c0_139] : memref<128x512xf32, #tpu.memory_space<vmem>>, vector<128x512xf32>
    %cst_140 = arith.constant dense<0.000000e+00> : vector<8x512xf32>
    %245 = tpu.matmul %243, %244, %cst_140 {dimension_numbers = #tpu.dot_dimension_numbers<[1], [0], [0], [1], [0, 0, 1, 1], [], []>} : vector<8x128xf32>, vector<128x512xf32>, vector<8x512xf32> -> vector<8x512xf32>
    %246 = arith.addf %242, %245 : vector<8x512xf32>
    %247 = vector.extract_strided_slice %246 {offsets = [0, 0], sizes = [8, 128], strides = [1, 1]} : vector<8x512xf32> to vector<8x128xf32>
    %248 = arith.negf %247 : vector<8x128xf32>
    %249 = math.exp %248 : vector<8x128xf32>
    %cst_141 = arith.constant 1.000000e+00 : f32
    %250 = vector.broadcast %cst_141 : f32 to vector<8x128xf32>
    %251 = arith.addf %250, %249 : vector<8x128xf32>
    %252 = arith.divf %250, %251 : vector<8x128xf32>
    %253 = vector.extract_strided_slice %246 {offsets = [0, 128], sizes = [8, 128], strides = [1, 1]} : vector<8x512xf32> to vector<8x128xf32>
    %254 = arith.negf %253 : vector<8x128xf32>
    %255 = math.exp %254 : vector<8x128xf32>
    %cst_142 = arith.constant 1.000000e+00 : f32
    %256 = vector.broadcast %cst_142 : f32 to vector<8x128xf32>
    %257 = arith.addf %256, %255 : vector<8x128xf32>
    %258 = arith.divf %256, %257 : vector<8x128xf32>
    %259 = vector.extract_strided_slice %246 {offsets = [0, 256], sizes = [8, 128], strides = [1, 1]} : vector<8x512xf32> to vector<8x128xf32>
    %260 = math.tanh %259 : vector<8x128xf32>
    %261 = vector.extract_strided_slice %246 {offsets = [0, 384], sizes = [8, 128], strides = [1, 1]} : vector<8x512xf32> to vector<8x128xf32>
    %262 = arith.negf %261 : vector<8x128xf32>
    %263 = math.exp %262 : vector<8x128xf32>
    %cst_143 = arith.constant 1.000000e+00 : f32
    %264 = vector.broadcast %cst_143 : f32 to vector<8x128xf32>
    %265 = arith.addf %264, %263 : vector<8x128xf32>
    %266 = arith.divf %264, %265 : vector<8x128xf32>
    %c0_144 = arith.constant 0 : index
    %c0_145 = arith.constant 0 : index
    %267 = vector.load %arg14[%c0_144, %c0_145] : memref<8x128xf32, #tpu.memory_space<vmem>>, vector<8x128xf32>
    %268 = arith.mulf %258, %267 : vector<8x128xf32>
    %269 = arith.mulf %252, %260 : vector<8x128xf32>
    %270 = arith.addf %268, %269 : vector<8x128xf32>
    %271 = math.tanh %270 : vector<8x128xf32>
    %272 = arith.mulf %266, %271 : vector<8x128xf32>
    %c0_146 = arith.constant 0 : index
    %c0_147 = arith.constant 0 : index
    %273 = vector.load %arg14[%c0_146, %c0_147] : memref<8x128xf32, #tpu.memory_space<vmem>>, vector<8x128xf32>
    tpu.vector_store %arg14[%c0_146, %c0_147], %270 {strides = array<i32>} : memref<8x128xf32, #tpu.memory_space<vmem>>, vector<8x128xf32>,
    %c0_148 = arith.constant 0 : index
    %c0_149 = arith.constant 0 : index
    %274 = vector.load %arg13[%c0_148, %c0_149] : memref<8x128xf32, #tpu.memory_space<vmem>>, vector<8x128xf32>
    tpu.vector_store %arg13[%c0_148, %c0_149], %272 {strides = array<i32>} : memref<8x128xf32, #tpu.memory_space<vmem>>, vector<8x128xf32>,
    %c3_i32_150 = arith.constant 3 : i32
    %275 = arith.addi %c3_i32_150, %c2_i32_132 : i32
    %c8_i32_151 = arith.constant 8 : i32
    %276 = arith.muli %275, %c8_i32_151 : i32
    %277 = tpu.assume_multiple %276, 8 : i32
    %278 = arith.index_cast %277 : i32 to index
    %c0_152 = arith.constant 0 : index
    %279 = vector.load %arg12[%278, %c0_152] : memref<64x128xf32, #tpu.memory_space<vmem>>, vector<8x128xf32>
    tpu.vector_store %arg12[%278, %c0_152], %272 {strides = array<i32>} : memref<64x128xf32, #tpu.memory_space<vmem>>, vector<8x128xf32>,
    %c3_i32_153 = arith.constant 3 : i32
    %c0_i32_154 = arith.constant 0 : i32
    %c8_i32_155 = arith.constant 8 : i32
    %280 = arith.muli %c0_i32_154, %c8_i32_155 : i32
    %c0_i32_156 = arith.constant 0 : i32
    %281 = arith.addi %c0_i32_156, %280 : i32
    %282 = tpu.assume_multiple %281, 8 : i32
    %283 = arith.index_cast %282 : i32 to index
    %c0_157 = arith.constant 0 : index
    %284 = vector.load %arg11[%283, %c0_157] : memref<48x512xf32, #tpu.memory_space<vmem>>, vector<8x512xf32>
    %c0_158 = arith.constant 0 : index
    %c0_159 = arith.constant 0 : index
    %285 = vector.load %arg13[%c0_158, %c0_159] : memref<8x128xf32, #tpu.memory_space<vmem>>, vector<8x128xf32>
    %c0_160 = arith.constant 0 : index
    %c0_161 = arith.constant 0 : index
    %286 = vector.load %arg3[%c0_160, %c0_161] : memref<128x512xf32, #tpu.memory_space<vmem>>, vector<128x512xf32>
    %cst_162 = arith.constant dense<0.000000e+00> : vector<8x512xf32>
    %287 = tpu.matmul %285, %286, %cst_162 {dimension_numbers = #tpu.dot_dimension_numbers<[1], [0], [0], [1], [0, 0, 1, 1], [], []>} : vector<8x128xf32>, vector<128x512xf32>, vector<8x512xf32> -> vector<8x512xf32>
    %288 = arith.addf %284, %287 : vector<8x512xf32>
    %289 = vector.extract_strided_slice %288 {offsets = [0, 0], sizes = [8, 128], strides = [1, 1]} : vector<8x512xf32> to vector<8x128xf32>
    %290 = arith.negf %289 : vector<8x128xf32>
    %291 = math.exp %290 : vector<8x128xf32>
    %cst_163 = arith.constant 1.000000e+00 : f32
    %292 = vector.broadcast %cst_163 : f32 to vector<8x128xf32>
    %293 = arith.addf %292, %291 : vector<8x128xf32>
    %294 = arith.divf %292, %293 : vector<8x128xf32>
    %295 = vector.extract_strided_slice %288 {offsets = [0, 128], sizes = [8, 128], strides = [1, 1]} : vector<8x512xf32> to vector<8x128xf32>
    %296 = arith.negf %295 : vector<8x128xf32>
    %297 = math.exp %296 : vector<8x128xf32>
    %cst_164 = arith.constant 1.000000e+00 : f32
    %298 = vector.broadcast %cst_164 : f32 to vector<8x128xf32>
    %299 = arith.addf %298, %297 : vector<8x128xf32>
    %300 = arith.divf %298, %299 : vector<8x128xf32>
    %301 = vector.extract_strided_slice %288 {offsets = [0, 256], sizes = [8, 128], strides = [1, 1]} : vector<8x512xf32> to vector<8x128xf32>
    %302 = math.tanh %301 : vector<8x128xf32>
    %303 = vector.extract_strided_slice %288 {offsets = [0, 384], sizes = [8, 128], strides = [1, 1]} : vector<8x512xf32> to vector<8x128xf32>
    %304 = arith.negf %303 : vector<8x128xf32>
    %305 = math.exp %304 : vector<8x128xf32>
    %cst_165 = arith.constant 1.000000e+00 : f32
    %306 = vector.broadcast %cst_165 : f32 to vector<8x128xf32>
    %307 = arith.addf %306, %305 : vector<8x128xf32>
    %308 = arith.divf %306, %307 : vector<8x128xf32>
    %c0_166 = arith.constant 0 : index
    %c0_167 = arith.constant 0 : index
    %309 = vector.load %arg14[%c0_166, %c0_167] : memref<8x128xf32, #tpu.memory_space<vmem>>, vector<8x128xf32>
    %310 = arith.mulf %300, %309 : vector<8x128xf32>
    %311 = arith.mulf %294, %302 : vector<8x128xf32>
    %312 = arith.addf %310, %311 : vector<8x128xf32>
    %313 = math.tanh %312 : vector<8x128xf32>
    %314 = arith.mulf %308, %313 : vector<8x128xf32>
    %c0_168 = arith.constant 0 : index
    %c0_169 = arith.constant 0 : index
    %315 = vector.load %arg14[%c0_168, %c0_169] : memref<8x128xf32, #tpu.memory_space<vmem>>, vector<8x128xf32>
    tpu.vector_store %arg14[%c0_168, %c0_169], %312 {strides = array<i32>} : memref<8x128xf32, #tpu.memory_space<vmem>>, vector<8x128xf32>,
    %c0_170 = arith.constant 0 : index
    %c0_171 = arith.constant 0 : index
    %316 = vector.load %arg13[%c0_170, %c0_171] : memref<8x128xf32, #tpu.memory_space<vmem>>, vector<8x128xf32>
    tpu.vector_store %arg13[%c0_170, %c0_171], %314 {strides = array<i32>} : memref<8x128xf32, #tpu.memory_space<vmem>>, vector<8x128xf32>,
    %c6_i32 = arith.constant 6 : i32
    %317 = arith.addi %c6_i32, %c0_i32_154 : i32
    %c8_i32_172 = arith.constant 8 : i32
    %318 = arith.muli %317, %c8_i32_172 : i32
    %319 = tpu.assume_multiple %318, 8 : i32
    %320 = arith.index_cast %319 : i32 to index
    %c0_173 = arith.constant 0 : index
    %321 = vector.load %arg12[%320, %c0_173] : memref<64x128xf32, #tpu.memory_space<vmem>>, vector<8x128xf32>
    tpu.vector_store %arg12[%320, %c0_173], %314 {strides = array<i32>} : memref<64x128xf32, #tpu.memory_space<vmem>>, vector<8x128xf32>,
    %c1_i32_174 = arith.constant 1 : i32
    %c8_i32_175 = arith.constant 8 : i32
    %322 = arith.muli %c1_i32_174, %c8_i32_175 : i32
    %c0_i32_176 = arith.constant 0 : i32
    %323 = arith.addi %c0_i32_176, %322 : i32
    %324 = tpu.assume_multiple %323, 8 : i32
    %325 = arith.index_cast %324 : i32 to index
    %c0_177 = arith.constant 0 : index
    %326 = vector.load %arg11[%325, %c0_177] : memref<48x512xf32, #tpu.memory_space<vmem>>, vector<8x512xf32>
    %c0_178 = arith.constant 0 : index
    %c0_179 = arith.constant 0 : index
    %327 = vector.load %arg13[%c0_178, %c0_179] : memref<8x128xf32, #tpu.memory_space<vmem>>, vector<8x128xf32>
    %c0_180 = arith.constant 0 : index
    %c0_181 = arith.constant 0 : index
    %328 = vector.load %arg3[%c0_180, %c0_181] : memref<128x512xf32, #tpu.memory_space<vmem>>, vector<128x512xf32>
    %cst_182 = arith.constant dense<0.000000e+00> : vector<8x512xf32>
    %329 = tpu.matmul %327, %328, %cst_182 {dimension_numbers = #tpu.dot_dimension_numbers<[1], [0], [0], [1], [0, 0, 1, 1], [], []>} : vector<8x128xf32>, vector<128x512xf32>, vector<8x512xf32> -> vector<8x512xf32>
    %330 = arith.addf %326, %329 : vector<8x512xf32>
    %331 = vector.extract_strided_slice %330 {offsets = [0, 0], sizes = [8, 128], strides = [1, 1]} : vector<8x512xf32> to vector<8x128xf32>
    %332 = arith.negf %331 : vector<8x128xf32>
    %333 = math.exp %332 : vector<8x128xf32>
    %cst_183 = arith.constant 1.000000e+00 : f32
    %334 = vector.broadcast %cst_183 : f32 to vector<8x128xf32>
    %335 = arith.addf %334, %333 : vector<8x128xf32>
    %336 = arith.divf %334, %335 : vector<8x128xf32>
    %337 = vector.extract_strided_slice %330 {offsets = [0, 128], sizes = [8, 128], strides = [1, 1]} : vector<8x512xf32> to vector<8x128xf32>
    %338 = arith.negf %337 : vector<8x128xf32>
    %339 = math.exp %338 : vector<8x128xf32>
    %cst_184 = arith.constant 1.000000e+00 : f32
    %340 = vector.broadcast %cst_184 : f32 to vector<8x128xf32>
    %341 = arith.addf %340, %339 : vector<8x128xf32>
    %342 = arith.divf %340, %341 : vector<8x128xf32>
    %343 = vector.extract_strided_slice %330 {offsets = [0, 256], sizes = [8, 128], strides = [1, 1]} : vector<8x512xf32> to vector<8x128xf32>
    %344 = math.tanh %343 : vector<8x128xf32>
    %345 = vector.extract_strided_slice %330 {offsets = [0, 384], sizes = [8, 128], strides = [1, 1]} : vector<8x512xf32> to vector<8x128xf32>
    %346 = arith.negf %345 : vector<8x128xf32>
    %347 = math.exp %346 : vector<8x128xf32>
    %cst_185 = arith.constant 1.000000e+00 : f32
    %348 = vector.broadcast %cst_185 : f32 to vector<8x128xf32>
    %349 = arith.addf %348, %347 : vector<8x128xf32>
    %350 = arith.divf %348, %349 : vector<8x128xf32>
    %c0_186 = arith.constant 0 : index
    %c0_187 = arith.constant 0 : index
    %351 = vector.load %arg14[%c0_186, %c0_187] : memref<8x128xf32, #tpu.memory_space<vmem>>, vector<8x128xf32>
    %352 = arith.mulf %342, %351 : vector<8x128xf32>
    %353 = arith.mulf %336, %344 : vector<8x128xf32>
    %354 = arith.addf %352, %353 : vector<8x128xf32>
    %355 = math.tanh %354 : vector<8x128xf32>
    %356 = arith.mulf %350, %355 : vector<8x128xf32>
    %c0_188 = arith.constant 0 : index
    %c0_189 = arith.constant 0 : index
    %357 = vector.load %arg14[%c0_188, %c0_189] : memref<8x128xf32, #tpu.memory_space<vmem>>, vector<8x128xf32>
    tpu.vector_store %arg14[%c0_188, %c0_189], %354 {strides = array<i32>} : memref<8x128xf32, #tpu.memory_space<vmem>>, vector<8x128xf32>,
    %c0_190 = arith.constant 0 : index
    %c0_191 = arith.constant 0 : index
    %358 = vector.load %arg13[%c0_190, %c0_191] : memref<8x128xf32, #tpu.memory_space<vmem>>, vector<8x128xf32>
    tpu.vector_store %arg13[%c0_190, %c0_191], %356 {strides = array<i32>} : memref<8x128xf32, #tpu.memory_space<vmem>>, vector<8x128xf32>,
    %c6_i32_192 = arith.constant 6 : i32
    %359 = arith.addi %c6_i32_192, %c1_i32_174 : i32
    %c8_i32_193 = arith.constant 8 : i32
    %360 = arith.muli %359, %c8_i32_193 : i32
    %361 = tpu.assume_multiple %360, 8 : i32
    %362 = arith.index_cast %361 : i32 to index
    %c0_194 = arith.constant 0 : index
    %363 = vector.load %arg12[%362, %c0_194] : memref<64x128xf32, #tpu.memory_space<vmem>>, vector<8x128xf32>
    tpu.vector_store %arg12[%362, %c0_194], %356 {strides = array<i32>} : memref<64x128xf32, #tpu.memory_space<vmem>>, vector<8x128xf32>,
    %c2_i32_195 = arith.constant 2 : i32
    %cst_196 = arith.constant 0.000000e+00 : f32
    %364 = vector.broadcast %cst_196 : f32 to vector<8x128xf32>
    %c0_197 = arith.constant 0 : index
    %c0_198 = arith.constant 0 : index
    %365 = vector.load %arg13[%c0_197, %c0_198] : memref<8x128xf32, #tpu.memory_space<vmem>>, vector<8x128xf32>
    tpu.vector_store %arg13[%c0_197, %c0_198], %364 {strides = array<i32>} : memref<8x128xf32, #tpu.memory_space<vmem>>, vector<8x128xf32>,
    %cst_199 = arith.constant 0.000000e+00 : f32
    %366 = vector.broadcast %cst_199 : f32 to vector<8x128xf32>
    %c0_200 = arith.constant 0 : index
    %c0_201 = arith.constant 0 : index
    %367 = vector.load %arg14[%c0_200, %c0_201] : memref<8x128xf32, #tpu.memory_space<vmem>>, vector<8x128xf32>
    tpu.vector_store %arg14[%c0_200, %c0_201], %366 {strides = array<i32>} : memref<8x128xf32, #tpu.memory_space<vmem>>, vector<8x128xf32>,
    %c0_202 = arith.constant 0 : index
    %c0_203 = arith.constant 0 : index
    %368 = vector.load %arg12[%c0_202, %c0_203] : memref<64x128xf32, #tpu.memory_space<vmem>>, vector<24x128xf32>
    %c0_204 = arith.constant 0 : index
    %c0_205 = arith.constant 0 : index
    %369 = vector.load %arg5[%c0_204, %c0_205] : memref<128x512xf32, #tpu.memory_space<vmem>>, vector<128x512xf32>
    %cst_206 = arith.constant dense<0.000000e+00> : vector<24x512xf32>
    %370 = tpu.matmul %368, %369, %cst_206 {dimension_numbers = #tpu.dot_dimension_numbers<[1], [0], [0], [1], [0, 0, 1, 1], [], []>} : vector<24x128xf32>, vector<128x512xf32>, vector<24x512xf32> -> vector<24x512xf32>
    %c0_207 = arith.constant 0 : index
    %c0_208 = arith.constant 0 : index
    %371 = vector.load %arg7[%c0_207, %c0_208] : memref<1x512xf32, #tpu.memory_space<vmem>>, vector<1x512xf32>
    %372 = vector.broadcast %371 : vector<1x512xf32> to vector<24x512xf32>
    %373 = arith.addf %370, %372 : vector<24x512xf32>
    %c0_209 = arith.constant 0 : index
    %c0_210 = arith.constant 0 : index
    %374 = vector.load %arg11[%c0_209, %c0_210] : memref<48x512xf32, #tpu.memory_space<vmem>>, vector<24x512xf32>
    tpu.vector_store %arg11[%c0_209, %c0_210], %373 {strides = array<i32>} : memref<48x512xf32, #tpu.memory_space<vmem>>, vector<24x512xf32>,
    %c24_211 = arith.constant 24 : index
    %c0_212 = arith.constant 0 : index
    %375 = vector.load %arg12[%c24_211, %c0_212] : memref<64x128xf32, #tpu.memory_space<vmem>>, vector<24x128xf32>
    %c0_213 = arith.constant 0 : index
    %c0_214 = arith.constant 0 : index
    %376 = vector.load %arg5[%c0_213, %c0_214] : memref<128x512xf32, #tpu.memory_space<vmem>>, vector<128x512xf32>
    %cst_215 = arith.constant dense<0.000000e+00> : vector<24x512xf32>
    %377 = tpu.matmul %375, %376, %cst_215 {dimension_numbers = #tpu.dot_dimension_numbers<[1], [0], [0], [1], [0, 0, 1, 1], [], []>} : vector<24x128xf32>, vector<128x512xf32>, vector<24x512xf32> -> vector<24x512xf32>
    %c0_216 = arith.constant 0 : index
    %c0_217 = arith.constant 0 : index
    %378 = vector.load %arg7[%c0_216, %c0_217] : memref<1x512xf32, #tpu.memory_space<vmem>>, vector<1x512xf32>
    %379 = vector.broadcast %378 : vector<1x512xf32> to vector<24x512xf32>
    %380 = arith.addf %377, %379 : vector<24x512xf32>
    %c24_218 = arith.constant 24 : index
    %c0_219 = arith.constant 0 : index
    %381 = vector.load %arg11[%c24_218, %c0_219] : memref<48x512xf32, #tpu.memory_space<vmem>>, vector<24x512xf32>
    tpu.vector_store %arg11[%c24_218, %c0_219], %380 {strides = array<i32>} : memref<48x512xf32, #tpu.memory_space<vmem>>, vector<24x512xf32>,
    %c0_i32_220 = arith.constant 0 : i32
    %c8_i32_221 = arith.constant 8 : i32
    %382 = arith.muli %c0_i32_220, %c8_i32_221 : i32
    %c0_i32_222 = arith.constant 0 : i32
    %383 = arith.addi %c0_i32_222, %382 : i32
    %384 = tpu.assume_multiple %383, 8 : i32
    %385 = arith.index_cast %384 : i32 to index
    %c0_223 = arith.constant 0 : index
    %386 = vector.load %arg11[%385, %c0_223] : memref<48x512xf32, #tpu.memory_space<vmem>>, vector<8x512xf32>
    %c0_224 = arith.constant 0 : index
    %c0_225 = arith.constant 0 : index
    %387 = vector.load %arg13[%c0_224, %c0_225] : memref<8x128xf32, #tpu.memory_space<vmem>>, vector<8x128xf32>
    %c0_226 = arith.constant 0 : index
    %c0_227 = arith.constant 0 : index
    %388 = vector.load %arg6[%c0_226, %c0_227] : memref<128x512xf32, #tpu.memory_space<vmem>>, vector<128x512xf32>
    %cst_228 = arith.constant dense<0.000000e+00> : vector<8x512xf32>
    %389 = tpu.matmul %387, %388, %cst_228 {dimension_numbers = #tpu.dot_dimension_numbers<[1], [0], [0], [1], [0, 0, 1, 1], [], []>} : vector<8x128xf32>, vector<128x512xf32>, vector<8x512xf32> -> vector<8x512xf32>
    %390 = arith.addf %386, %389 : vector<8x512xf32>
    %391 = vector.extract_strided_slice %390 {offsets = [0, 0], sizes = [8, 128], strides = [1, 1]} : vector<8x512xf32> to vector<8x128xf32>
    %392 = arith.negf %391 : vector<8x128xf32>
    %393 = math.exp %392 : vector<8x128xf32>
    %cst_229 = arith.constant 1.000000e+00 : f32
    %394 = vector.broadcast %cst_229 : f32 to vector<8x128xf32>
    %395 = arith.addf %394, %393 : vector<8x128xf32>
    %396 = arith.divf %394, %395 : vector<8x128xf32>
    %397 = vector.extract_strided_slice %390 {offsets = [0, 128], sizes = [8, 128], strides = [1, 1]} : vector<8x512xf32> to vector<8x128xf32>
    %398 = arith.negf %397 : vector<8x128xf32>
    %399 = math.exp %398 : vector<8x128xf32>
    %cst_230 = arith.constant 1.000000e+00 : f32
    %400 = vector.broadcast %cst_230 : f32 to vector<8x128xf32>
    %401 = arith.addf %400, %399 : vector<8x128xf32>
    %402 = arith.divf %400, %401 : vector<8x128xf32>
    %403 = vector.extract_strided_slice %390 {offsets = [0, 256], sizes = [8, 128], strides = [1, 1]} : vector<8x512xf32> to vector<8x128xf32>
    %404 = math.tanh %403 : vector<8x128xf32>
    %405 = vector.extract_strided_slice %390 {offsets = [0, 384], sizes = [8, 128], strides = [1, 1]} : vector<8x512xf32> to vector<8x128xf32>
    %406 = arith.negf %405 : vector<8x128xf32>
    %407 = math.exp %406 : vector<8x128xf32>
    %cst_231 = arith.constant 1.000000e+00 : f32
    %408 = vector.broadcast %cst_231 : f32 to vector<8x128xf32>
    %409 = arith.addf %408, %407 : vector<8x128xf32>
    %410 = arith.divf %408, %409 : vector<8x128xf32>
    %c0_232 = arith.constant 0 : index
    %c0_233 = arith.constant 0 : index
    %411 = vector.load %arg14[%c0_232, %c0_233] : memref<8x128xf32, #tpu.memory_space<vmem>>, vector<8x128xf32>
    %412 = arith.mulf %402, %411 : vector<8x128xf32>
    %413 = arith.mulf %396, %404 : vector<8x128xf32>
    %414 = arith.addf %412, %413 : vector<8x128xf32>
    %415 = math.tanh %414 : vector<8x128xf32>
    %416 = arith.mulf %410, %415 : vector<8x128xf32>
    %c0_234 = arith.constant 0 : index
    %c0_235 = arith.constant 0 : index
    %417 = vector.load %arg14[%c0_234, %c0_235] : memref<8x128xf32, #tpu.memory_space<vmem>>, vector<8x128xf32>
    tpu.vector_store %arg14[%c0_234, %c0_235], %414 {strides = array<i32>} : memref<8x128xf32, #tpu.memory_space<vmem>>, vector<8x128xf32>,
    %c0_236 = arith.constant 0 : index
    %c0_237 = arith.constant 0 : index
    %418 = vector.load %arg13[%c0_236, %c0_237] : memref<8x128xf32, #tpu.memory_space<vmem>>, vector<8x128xf32>
    tpu.vector_store %arg13[%c0_236, %c0_237], %416 {strides = array<i32>} : memref<8x128xf32, #tpu.memory_space<vmem>>, vector<8x128xf32>,
    %c1_i32_238 = arith.constant 1 : i32
    %c8_i32_239 = arith.constant 8 : i32
    %419 = arith.muli %c1_i32_238, %c8_i32_239 : i32
    %c0_i32_240 = arith.constant 0 : i32
    %420 = arith.addi %c0_i32_240, %419 : i32
    %421 = tpu.assume_multiple %420, 8 : i32
    %422 = arith.index_cast %421 : i32 to index
    %c0_241 = arith.constant 0 : index
    %423 = vector.load %arg11[%422, %c0_241] : memref<48x512xf32, #tpu.memory_space<vmem>>, vector<8x512xf32>
    %c0_242 = arith.constant 0 : index
    %c0_243 = arith.constant 0 : index
    %424 = vector.load %arg13[%c0_242, %c0_243] : memref<8x128xf32, #tpu.memory_space<vmem>>, vector<8x128xf32>
    %c0_244 = arith.constant 0 : index
    %c0_245 = arith.constant 0 : index
    %425 = vector.load %arg6[%c0_244, %c0_245] : memref<128x512xf32, #tpu.memory_space<vmem>>, vector<128x512xf32>
    %cst_246 = arith.constant dense<0.000000e+00> : vector<8x512xf32>
    %426 = tpu.matmul %424, %425, %cst_246 {dimension_numbers = #tpu.dot_dimension_numbers<[1], [0], [0], [1], [0, 0, 1, 1], [], []>} : vector<8x128xf32>, vector<128x512xf32>, vector<8x512xf32> -> vector<8x512xf32>
    %427 = arith.addf %423, %426 : vector<8x512xf32>
    %428 = vector.extract_strided_slice %427 {offsets = [0, 0], sizes = [8, 128], strides = [1, 1]} : vector<8x512xf32> to vector<8x128xf32>
    %429 = arith.negf %428 : vector<8x128xf32>
    %430 = math.exp %429 : vector<8x128xf32>
    %cst_247 = arith.constant 1.000000e+00 : f32
    %431 = vector.broadcast %cst_247 : f32 to vector<8x128xf32>
    %432 = arith.addf %431, %430 : vector<8x128xf32>
    %433 = arith.divf %431, %432 : vector<8x128xf32>
    %434 = vector.extract_strided_slice %427 {offsets = [0, 128], sizes = [8, 128], strides = [1, 1]} : vector<8x512xf32> to vector<8x128xf32>
    %435 = arith.negf %434 : vector<8x128xf32>
    %436 = math.exp %435 : vector<8x128xf32>
    %cst_248 = arith.constant 1.000000e+00 : f32
    %437 = vector.broadcast %cst_248 : f32 to vector<8x128xf32>
    %438 = arith.addf %437, %436 : vector<8x128xf32>
    %439 = arith.divf %437, %438 : vector<8x128xf32>
    %440 = vector.extract_strided_slice %427 {offsets = [0, 256], sizes = [8, 128], strides = [1, 1]} : vector<8x512xf32> to vector<8x128xf32>
    %441 = math.tanh %440 : vector<8x128xf32>
    %442 = vector.extract_strided_slice %427 {offsets = [0, 384], sizes = [8, 128], strides = [1, 1]} : vector<8x512xf32> to vector<8x128xf32>
    %443 = arith.negf %442 : vector<8x128xf32>
    %444 = math.exp %443 : vector<8x128xf32>
    %cst_249 = arith.constant 1.000000e+00 : f32
    %445 = vector.broadcast %cst_249 : f32 to vector<8x128xf32>
    %446 = arith.addf %445, %444 : vector<8x128xf32>
    %447 = arith.divf %445, %446 : vector<8x128xf32>
    %c0_250 = arith.constant 0 : index
    %c0_251 = arith.constant 0 : index
    %448 = vector.load %arg14[%c0_250, %c0_251] : memref<8x128xf32, #tpu.memory_space<vmem>>, vector<8x128xf32>
    %449 = arith.mulf %439, %448 : vector<8x128xf32>
    %450 = arith.mulf %433, %441 : vector<8x128xf32>
    %451 = arith.addf %449, %450 : vector<8x128xf32>
    %452 = math.tanh %451 : vector<8x128xf32>
    %453 = arith.mulf %447, %452 : vector<8x128xf32>
    %c0_252 = arith.constant 0 : index
    %c0_253 = arith.constant 0 : index
    %454 = vector.load %arg14[%c0_252, %c0_253] : memref<8x128xf32, #tpu.memory_space<vmem>>, vector<8x128xf32>
    tpu.vector_store %arg14[%c0_252, %c0_253], %451 {strides = array<i32>} : memref<8x128xf32, #tpu.memory_space<vmem>>, vector<8x128xf32>,
    %c0_254 = arith.constant 0 : index
    %c0_255 = arith.constant 0 : index
    %455 = vector.load %arg13[%c0_254, %c0_255] : memref<8x128xf32, #tpu.memory_space<vmem>>, vector<8x128xf32>
    tpu.vector_store %arg13[%c0_254, %c0_255], %453 {strides = array<i32>} : memref<8x128xf32, #tpu.memory_space<vmem>>, vector<8x128xf32>,
    %c2_i32_256 = arith.constant 2 : i32
    %c8_i32_257 = arith.constant 8 : i32
    %456 = arith.muli %c2_i32_256, %c8_i32_257 : i32
    %c0_i32_258 = arith.constant 0 : i32
    %457 = arith.addi %c0_i32_258, %456 : i32
    %458 = tpu.assume_multiple %457, 8 : i32
    %459 = arith.index_cast %458 : i32 to index
    %c0_259 = arith.constant 0 : index
    %460 = vector.load %arg11[%459, %c0_259] : memref<48x512xf32, #tpu.memory_space<vmem>>, vector<8x512xf32>
    %c0_260 = arith.constant 0 : index
    %c0_261 = arith.constant 0 : index
    %461 = vector.load %arg13[%c0_260, %c0_261] : memref<8x128xf32, #tpu.memory_space<vmem>>, vector<8x128xf32>
    %c0_262 = arith.constant 0 : index
    %c0_263 = arith.constant 0 : index
    %462 = vector.load %arg6[%c0_262, %c0_263] : memref<128x512xf32, #tpu.memory_space<vmem>>, vector<128x512xf32>
    %cst_264 = arith.constant dense<0.000000e+00> : vector<8x512xf32>
    %463 = tpu.matmul %461, %462, %cst_264 {dimension_numbers = #tpu.dot_dimension_numbers<[1], [0], [0], [1], [0, 0, 1, 1], [], []>} : vector<8x128xf32>, vector<128x512xf32>, vector<8x512xf32> -> vector<8x512xf32>
    %464 = arith.addf %460, %463 : vector<8x512xf32>
    %465 = vector.extract_strided_slice %464 {offsets = [0, 0], sizes = [8, 128], strides = [1, 1]} : vector<8x512xf32> to vector<8x128xf32>
    %466 = arith.negf %465 : vector<8x128xf32>
    %467 = math.exp %466 : vector<8x128xf32>
    %cst_265 = arith.constant 1.000000e+00 : f32
    %468 = vector.broadcast %cst_265 : f32 to vector<8x128xf32>
    %469 = arith.addf %468, %467 : vector<8x128xf32>
    %470 = arith.divf %468, %469 : vector<8x128xf32>
    %471 = vector.extract_strided_slice %464 {offsets = [0, 128], sizes = [8, 128], strides = [1, 1]} : vector<8x512xf32> to vector<8x128xf32>
    %472 = arith.negf %471 : vector<8x128xf32>
    %473 = math.exp %472 : vector<8x128xf32>
    %cst_266 = arith.constant 1.000000e+00 : f32
    %474 = vector.broadcast %cst_266 : f32 to vector<8x128xf32>
    %475 = arith.addf %474, %473 : vector<8x128xf32>
    %476 = arith.divf %474, %475 : vector<8x128xf32>
    %477 = vector.extract_strided_slice %464 {offsets = [0, 256], sizes = [8, 128], strides = [1, 1]} : vector<8x512xf32> to vector<8x128xf32>
    %478 = math.tanh %477 : vector<8x128xf32>
    %479 = vector.extract_strided_slice %464 {offsets = [0, 384], sizes = [8, 128], strides = [1, 1]} : vector<8x512xf32> to vector<8x128xf32>
    %480 = arith.negf %479 : vector<8x128xf32>
    %481 = math.exp %480 : vector<8x128xf32>
    %cst_267 = arith.constant 1.000000e+00 : f32
    %482 = vector.broadcast %cst_267 : f32 to vector<8x128xf32>
    %483 = arith.addf %482, %481 : vector<8x128xf32>
    %484 = arith.divf %482, %483 : vector<8x128xf32>
    %c0_268 = arith.constant 0 : index
    %c0_269 = arith.constant 0 : index
    %485 = vector.load %arg14[%c0_268, %c0_269] : memref<8x128xf32, #tpu.memory_space<vmem>>, vector<8x128xf32>
    %486 = arith.mulf %476, %485 : vector<8x128xf32>
    %487 = arith.mulf %470, %478 : vector<8x128xf32>
    %488 = arith.addf %486, %487 : vector<8x128xf32>
    %489 = math.tanh %488 : vector<8x128xf32>
    %490 = arith.mulf %484, %489 : vector<8x128xf32>
    %c0_270 = arith.constant 0 : index
    %c0_271 = arith.constant 0 : index
    %491 = vector.load %arg14[%c0_270, %c0_271] : memref<8x128xf32, #tpu.memory_space<vmem>>, vector<8x128xf32>
    tpu.vector_store %arg14[%c0_270, %c0_271], %488 {strides = array<i32>} : memref<8x128xf32, #tpu.memory_space<vmem>>, vector<8x128xf32>,
    %c0_272 = arith.constant 0 : index
    %c0_273 = arith.constant 0 : index
    %492 = vector.load %arg13[%c0_272, %c0_273] : memref<8x128xf32, #tpu.memory_space<vmem>>, vector<8x128xf32>
    tpu.vector_store %arg13[%c0_272, %c0_273], %490 {strides = array<i32>} : memref<8x128xf32, #tpu.memory_space<vmem>>, vector<8x128xf32>,
    %c3_i32_274 = arith.constant 3 : i32
    %c48_275 = arith.constant 48 : index
    %c0_276 = arith.constant 0 : index
    %493 = vector.load %arg12[%c48_275, %c0_276] : memref<64x128xf32, #tpu.memory_space<vmem>>, vector<16x128xf32>
    %c0_277 = arith.constant 0 : index
    %c0_278 = arith.constant 0 : index
    %494 = vector.load %arg5[%c0_277, %c0_278] : memref<128x512xf32, #tpu.memory_space<vmem>>, vector<128x512xf32>
    %cst_279 = arith.constant dense<0.000000e+00> : vector<16x512xf32>
    %495 = tpu.matmul %493, %494, %cst_279 {dimension_numbers = #tpu.dot_dimension_numbers<[1], [0], [0], [1], [0, 0, 1, 1], [], []>} : vector<16x128xf32>, vector<128x512xf32>, vector<16x512xf32> -> vector<16x512xf32>
    %c0_280 = arith.constant 0 : index
    %c0_281 = arith.constant 0 : index
    %496 = vector.load %arg7[%c0_280, %c0_281] : memref<1x512xf32, #tpu.memory_space<vmem>>, vector<1x512xf32>
    %497 = vector.broadcast %496 : vector<1x512xf32> to vector<16x512xf32>
    %498 = arith.addf %495, %497 : vector<16x512xf32>
    %c0_282 = arith.constant 0 : index
    %c0_283 = arith.constant 0 : index
    %499 = vector.load %arg11[%c0_282, %c0_283] : memref<48x512xf32, #tpu.memory_space<vmem>>, vector<16x512xf32>
    tpu.vector_store %arg11[%c0_282, %c0_283], %498 {strides = array<i32>} : memref<48x512xf32, #tpu.memory_space<vmem>>, vector<16x512xf32>,
    %c0_i32_284 = arith.constant 0 : i32
    %c8_i32_285 = arith.constant 8 : i32
    %500 = arith.muli %c0_i32_284, %c8_i32_285 : i32
    %c24_i32_286 = arith.constant 24 : i32
    %501 = arith.addi %c24_i32_286, %500 : i32
    %502 = tpu.assume_multiple %501, 8 : i32
    %503 = arith.index_cast %502 : i32 to index
    %c0_287 = arith.constant 0 : index
    %504 = vector.load %arg11[%503, %c0_287] : memref<48x512xf32, #tpu.memory_space<vmem>>, vector<8x512xf32>
    %c0_288 = arith.constant 0 : index
    %c0_289 = arith.constant 0 : index
    %505 = vector.load %arg13[%c0_288, %c0_289] : memref<8x128xf32, #tpu.memory_space<vmem>>, vector<8x128xf32>
    %c0_290 = arith.constant 0 : index
    %c0_291 = arith.constant 0 : index
    %506 = vector.load %arg6[%c0_290, %c0_291] : memref<128x512xf32, #tpu.memory_space<vmem>>, vector<128x512xf32>
    %cst_292 = arith.constant dense<0.000000e+00> : vector<8x512xf32>
    %507 = tpu.matmul %505, %506, %cst_292 {dimension_numbers = #tpu.dot_dimension_numbers<[1], [0], [0], [1], [0, 0, 1, 1], [], []>} : vector<8x128xf32>, vector<128x512xf32>, vector<8x512xf32> -> vector<8x512xf32>
    %508 = arith.addf %504, %507 : vector<8x512xf32>
    %509 = vector.extract_strided_slice %508 {offsets = [0, 0], sizes = [8, 128], strides = [1, 1]} : vector<8x512xf32> to vector<8x128xf32>
    %510 = arith.negf %509 : vector<8x128xf32>
    %511 = math.exp %510 : vector<8x128xf32>
    %cst_293 = arith.constant 1.000000e+00 : f32
    %512 = vector.broadcast %cst_293 : f32 to vector<8x128xf32>
    %513 = arith.addf %512, %511 : vector<8x128xf32>
    %514 = arith.divf %512, %513 : vector<8x128xf32>
    %515 = vector.extract_strided_slice %508 {offsets = [0, 128], sizes = [8, 128], strides = [1, 1]} : vector<8x512xf32> to vector<8x128xf32>
    %516 = arith.negf %515 : vector<8x128xf32>
    %517 = math.exp %516 : vector<8x128xf32>
    %cst_294 = arith.constant 1.000000e+00 : f32
    %518 = vector.broadcast %cst_294 : f32 to vector<8x128xf32>
    %519 = arith.addf %518, %517 : vector<8x128xf32>
    %520 = arith.divf %518, %519 : vector<8x128xf32>
    %521 = vector.extract_strided_slice %508 {offsets = [0, 256], sizes = [8, 128], strides = [1, 1]} : vector<8x512xf32> to vector<8x128xf32>
    %522 = math.tanh %521 : vector<8x128xf32>
    %523 = vector.extract_strided_slice %508 {offsets = [0, 384], sizes = [8, 128], strides = [1, 1]} : vector<8x512xf32> to vector<8x128xf32>
    %524 = arith.negf %523 : vector<8x128xf32>
    %525 = math.exp %524 : vector<8x128xf32>
    %cst_295 = arith.constant 1.000000e+00 : f32
    %526 = vector.broadcast %cst_295 : f32 to vector<8x128xf32>
    %527 = arith.addf %526, %525 : vector<8x128xf32>
    %528 = arith.divf %526, %527 : vector<8x128xf32>
    %c0_296 = arith.constant 0 : index
    %c0_297 = arith.constant 0 : index
    %529 = vector.load %arg14[%c0_296, %c0_297] : memref<8x128xf32, #tpu.memory_space<vmem>>, vector<8x128xf32>
    %530 = arith.mulf %520, %529 : vector<8x128xf32>
    %531 = arith.mulf %514, %522 : vector<8x128xf32>
    %532 = arith.addf %530, %531 : vector<8x128xf32>
    %533 = math.tanh %532 : vector<8x128xf32>
    %534 = arith.mulf %528, %533 : vector<8x128xf32>
    %c0_298 = arith.constant 0 : index
    %c0_299 = arith.constant 0 : index
    %535 = vector.load %arg14[%c0_298, %c0_299] : memref<8x128xf32, #tpu.memory_space<vmem>>, vector<8x128xf32>
    tpu.vector_store %arg14[%c0_298, %c0_299], %532 {strides = array<i32>} : memref<8x128xf32, #tpu.memory_space<vmem>>, vector<8x128xf32>,
    %c0_300 = arith.constant 0 : index
    %c0_301 = arith.constant 0 : index
    %536 = vector.load %arg13[%c0_300, %c0_301] : memref<8x128xf32, #tpu.memory_space<vmem>>, vector<8x128xf32>
    tpu.vector_store %arg13[%c0_300, %c0_301], %534 {strides = array<i32>} : memref<8x128xf32, #tpu.memory_space<vmem>>, vector<8x128xf32>,
    %c1_i32_302 = arith.constant 1 : i32
    %c8_i32_303 = arith.constant 8 : i32
    %537 = arith.muli %c1_i32_302, %c8_i32_303 : i32
    %c24_i32_304 = arith.constant 24 : i32
    %538 = arith.addi %c24_i32_304, %537 : i32
    %539 = tpu.assume_multiple %538, 8 : i32
    %540 = arith.index_cast %539 : i32 to index
    %c0_305 = arith.constant 0 : index
    %541 = vector.load %arg11[%540, %c0_305] : memref<48x512xf32, #tpu.memory_space<vmem>>, vector<8x512xf32>
    %c0_306 = arith.constant 0 : index
    %c0_307 = arith.constant 0 : index
    %542 = vector.load %arg13[%c0_306, %c0_307] : memref<8x128xf32, #tpu.memory_space<vmem>>, vector<8x128xf32>
    %c0_308 = arith.constant 0 : index
    %c0_309 = arith.constant 0 : index
    %543 = vector.load %arg6[%c0_308, %c0_309] : memref<128x512xf32, #tpu.memory_space<vmem>>, vector<128x512xf32>
    %cst_310 = arith.constant dense<0.000000e+00> : vector<8x512xf32>
    %544 = tpu.matmul %542, %543, %cst_310 {dimension_numbers = #tpu.dot_dimension_numbers<[1], [0], [0], [1], [0, 0, 1, 1], [], []>} : vector<8x128xf32>, vector<128x512xf32>, vector<8x512xf32> -> vector<8x512xf32>
    %545 = arith.addf %541, %544 : vector<8x512xf32>
    %546 = vector.extract_strided_slice %545 {offsets = [0, 0], sizes = [8, 128], strides = [1, 1]} : vector<8x512xf32> to vector<8x128xf32>
    %547 = arith.negf %546 : vector<8x128xf32>
    %548 = math.exp %547 : vector<8x128xf32>
    %cst_311 = arith.constant 1.000000e+00 : f32
    %549 = vector.broadcast %cst_311 : f32 to vector<8x128xf32>
    %550 = arith.addf %549, %548 : vector<8x128xf32>
    %551 = arith.divf %549, %550 : vector<8x128xf32>
    %552 = vector.extract_strided_slice %545 {offsets = [0, 128], sizes = [8, 128], strides = [1, 1]} : vector<8x512xf32> to vector<8x128xf32>
    %553 = arith.negf %552 : vector<8x128xf32>
    %554 = math.exp %553 : vector<8x128xf32>
    %cst_312 = arith.constant 1.000000e+00 : f32
    %555 = vector.broadcast %cst_312 : f32 to vector<8x128xf32>
    %556 = arith.addf %555, %554 : vector<8x128xf32>
    %557 = arith.divf %555, %556 : vector<8x128xf32>
    %558 = vector.extract_strided_slice %545 {offsets = [0, 256], sizes = [8, 128], strides = [1, 1]} : vector<8x512xf32> to vector<8x128xf32>
    %559 = math.tanh %558 : vector<8x128xf32>
    %560 = vector.extract_strided_slice %545 {offsets = [0, 384], sizes = [8, 128], strides = [1, 1]} : vector<8x512xf32> to vector<8x128xf32>
    %561 = arith.negf %560 : vector<8x128xf32>
    %562 = math.exp %561 : vector<8x128xf32>
    %cst_313 = arith.constant 1.000000e+00 : f32
    %563 = vector.broadcast %cst_313 : f32 to vector<8x128xf32>
    %564 = arith.addf %563, %562 : vector<8x128xf32>
    %565 = arith.divf %563, %564 : vector<8x128xf32>
    %c0_314 = arith.constant 0 : index
    %c0_315 = arith.constant 0 : index
    %566 = vector.load %arg14[%c0_314, %c0_315] : memref<8x128xf32, #tpu.memory_space<vmem>>, vector<8x128xf32>
    %567 = arith.mulf %557, %566 : vector<8x128xf32>
    %568 = arith.mulf %551, %559 : vector<8x128xf32>
    %569 = arith.addf %567, %568 : vector<8x128xf32>
    %570 = math.tanh %569 : vector<8x128xf32>
    %571 = arith.mulf %565, %570 : vector<8x128xf32>
    %c0_316 = arith.constant 0 : index
    %c0_317 = arith.constant 0 : index
    %572 = vector.load %arg14[%c0_316, %c0_317] : memref<8x128xf32, #tpu.memory_space<vmem>>, vector<8x128xf32>
    tpu.vector_store %arg14[%c0_316, %c0_317], %569 {strides = array<i32>} : memref<8x128xf32, #tpu.memory_space<vmem>>, vector<8x128xf32>,
    %c0_318 = arith.constant 0 : index
    %c0_319 = arith.constant 0 : index
    %573 = vector.load %arg13[%c0_318, %c0_319] : memref<8x128xf32, #tpu.memory_space<vmem>>, vector<8x128xf32>
    tpu.vector_store %arg13[%c0_318, %c0_319], %571 {strides = array<i32>} : memref<8x128xf32, #tpu.memory_space<vmem>>, vector<8x128xf32>,
    %c2_i32_320 = arith.constant 2 : i32
    %c8_i32_321 = arith.constant 8 : i32
    %574 = arith.muli %c2_i32_320, %c8_i32_321 : i32
    %c24_i32_322 = arith.constant 24 : i32
    %575 = arith.addi %c24_i32_322, %574 : i32
    %576 = tpu.assume_multiple %575, 8 : i32
    %577 = arith.index_cast %576 : i32 to index
    %c0_323 = arith.constant 0 : index
    %578 = vector.load %arg11[%577, %c0_323] : memref<48x512xf32, #tpu.memory_space<vmem>>, vector<8x512xf32>
    %c0_324 = arith.constant 0 : index
    %c0_325 = arith.constant 0 : index
    %579 = vector.load %arg13[%c0_324, %c0_325] : memref<8x128xf32, #tpu.memory_space<vmem>>, vector<8x128xf32>
    %c0_326 = arith.constant 0 : index
    %c0_327 = arith.constant 0 : index
    %580 = vector.load %arg6[%c0_326, %c0_327] : memref<128x512xf32, #tpu.memory_space<vmem>>, vector<128x512xf32>
    %cst_328 = arith.constant dense<0.000000e+00> : vector<8x512xf32>
    %581 = tpu.matmul %579, %580, %cst_328 {dimension_numbers = #tpu.dot_dimension_numbers<[1], [0], [0], [1], [0, 0, 1, 1], [], []>} : vector<8x128xf32>, vector<128x512xf32>, vector<8x512xf32> -> vector<8x512xf32>
    %582 = arith.addf %578, %581 : vector<8x512xf32>
    %583 = vector.extract_strided_slice %582 {offsets = [0, 0], sizes = [8, 128], strides = [1, 1]} : vector<8x512xf32> to vector<8x128xf32>
    %584 = arith.negf %583 : vector<8x128xf32>
    %585 = math.exp %584 : vector<8x128xf32>
    %cst_329 = arith.constant 1.000000e+00 : f32
    %586 = vector.broadcast %cst_329 : f32 to vector<8x128xf32>
    %587 = arith.addf %586, %585 : vector<8x128xf32>
    %588 = arith.divf %586, %587 : vector<8x128xf32>
    %589 = vector.extract_strided_slice %582 {offsets = [0, 128], sizes = [8, 128], strides = [1, 1]} : vector<8x512xf32> to vector<8x128xf32>
    %590 = arith.negf %589 : vector<8x128xf32>
    %591 = math.exp %590 : vector<8x128xf32>
    %cst_330 = arith.constant 1.000000e+00 : f32
    %592 = vector.broadcast %cst_330 : f32 to vector<8x128xf32>
    %593 = arith.addf %592, %591 : vector<8x128xf32>
    %594 = arith.divf %592, %593 : vector<8x128xf32>
    %595 = vector.extract_strided_slice %582 {offsets = [0, 256], sizes = [8, 128], strides = [1, 1]} : vector<8x512xf32> to vector<8x128xf32>
    %596 = math.tanh %595 : vector<8x128xf32>
    %597 = vector.extract_strided_slice %582 {offsets = [0, 384], sizes = [8, 128], strides = [1, 1]} : vector<8x512xf32> to vector<8x128xf32>
    %598 = arith.negf %597 : vector<8x128xf32>
    %599 = math.exp %598 : vector<8x128xf32>
    %cst_331 = arith.constant 1.000000e+00 : f32
    %600 = vector.broadcast %cst_331 : f32 to vector<8x128xf32>
    %601 = arith.addf %600, %599 : vector<8x128xf32>
    %602 = arith.divf %600, %601 : vector<8x128xf32>
    %c0_332 = arith.constant 0 : index
    %c0_333 = arith.constant 0 : index
    %603 = vector.load %arg14[%c0_332, %c0_333] : memref<8x128xf32, #tpu.memory_space<vmem>>, vector<8x128xf32>
    %604 = arith.mulf %594, %603 : vector<8x128xf32>
    %605 = arith.mulf %588, %596 : vector<8x128xf32>
    %606 = arith.addf %604, %605 : vector<8x128xf32>
    %607 = math.tanh %606 : vector<8x128xf32>
    %608 = arith.mulf %602, %607 : vector<8x128xf32>
    %c0_334 = arith.constant 0 : index
    %c0_335 = arith.constant 0 : index
    %609 = vector.load %arg14[%c0_334, %c0_335] : memref<8x128xf32, #tpu.memory_space<vmem>>, vector<8x128xf32>
    tpu.vector_store %arg14[%c0_334, %c0_335], %606 {strides = array<i32>} : memref<8x128xf32, #tpu.memory_space<vmem>>, vector<8x128xf32>,
    %c0_336 = arith.constant 0 : index
    %c0_337 = arith.constant 0 : index
    %610 = vector.load %arg13[%c0_336, %c0_337] : memref<8x128xf32, #tpu.memory_space<vmem>>, vector<8x128xf32>
    tpu.vector_store %arg13[%c0_336, %c0_337], %608 {strides = array<i32>} : memref<8x128xf32, #tpu.memory_space<vmem>>, vector<8x128xf32>,
    %c3_i32_338 = arith.constant 3 : i32
    %c0_i32_339 = arith.constant 0 : i32
    %c8_i32_340 = arith.constant 8 : i32
    %611 = arith.muli %c0_i32_339, %c8_i32_340 : i32
    %c0_i32_341 = arith.constant 0 : i32
    %612 = arith.addi %c0_i32_341, %611 : i32
    %613 = tpu.assume_multiple %612, 8 : i32
    %614 = arith.index_cast %613 : i32 to index
    %c0_342 = arith.constant 0 : index
    %615 = vector.load %arg11[%614, %c0_342] : memref<48x512xf32, #tpu.memory_space<vmem>>, vector<8x512xf32>
    %c0_343 = arith.constant 0 : index
    %c0_344 = arith.constant 0 : index
    %616 = vector.load %arg13[%c0_343, %c0_344] : memref<8x128xf32, #tpu.memory_space<vmem>>, vector<8x128xf32>
    %c0_345 = arith.constant 0 : index
    %c0_346 = arith.constant 0 : index
    %617 = vector.load %arg6[%c0_345, %c0_346] : memref<128x512xf32, #tpu.memory_space<vmem>>, vector<128x512xf32>
    %cst_347 = arith.constant dense<0.000000e+00> : vector<8x512xf32>
    %618 = tpu.matmul %616, %617, %cst_347 {dimension_numbers = #tpu.dot_dimension_numbers<[1], [0], [0], [1], [0, 0, 1, 1], [], []>} : vector<8x128xf32>, vector<128x512xf32>, vector<8x512xf32> -> vector<8x512xf32>
    %619 = arith.addf %615, %618 : vector<8x512xf32>
    %620 = vector.extract_strided_slice %619 {offsets = [0, 0], sizes = [8, 128], strides = [1, 1]} : vector<8x512xf32> to vector<8x128xf32>
    %621 = arith.negf %620 : vector<8x128xf32>
    %622 = math.exp %621 : vector<8x128xf32>
    %cst_348 = arith.constant 1.000000e+00 : f32
    %623 = vector.broadcast %cst_348 : f32 to vector<8x128xf32>
    %624 = arith.addf %623, %622 : vector<8x128xf32>
    %625 = arith.divf %623, %624 : vector<8x128xf32>
    %626 = vector.extract_strided_slice %619 {offsets = [0, 128], sizes = [8, 128], strides = [1, 1]} : vector<8x512xf32> to vector<8x128xf32>
    %627 = arith.negf %626 : vector<8x128xf32>
    %628 = math.exp %627 : vector<8x128xf32>
    %cst_349 = arith.constant 1.000000e+00 : f32
    %629 = vector.broadcast %cst_349 : f32 to vector<8x128xf32>
    %630 = arith.addf %629, %628 : vector<8x128xf32>
    %631 = arith.divf %629, %630 : vector<8x128xf32>
    %632 = vector.extract_strided_slice %619 {offsets = [0, 256], sizes = [8, 128], strides = [1, 1]} : vector<8x512xf32> to vector<8x128xf32>
    %633 = math.tanh %632 : vector<8x128xf32>
    %634 = vector.extract_strided_slice %619 {offsets = [0, 384], sizes = [8, 128], strides = [1, 1]} : vector<8x512xf32> to vector<8x128xf32>
    %635 = arith.negf %634 : vector<8x128xf32>
    %636 = math.exp %635 : vector<8x128xf32>
    %cst_350 = arith.constant 1.000000e+00 : f32
    %637 = vector.broadcast %cst_350 : f32 to vector<8x128xf32>
    %638 = arith.addf %637, %636 : vector<8x128xf32>
    %639 = arith.divf %637, %638 : vector<8x128xf32>
    %c0_351 = arith.constant 0 : index
    %c0_352 = arith.constant 0 : index
    %640 = vector.load %arg14[%c0_351, %c0_352] : memref<8x128xf32, #tpu.memory_space<vmem>>, vector<8x128xf32>
    %641 = arith.mulf %631, %640 : vector<8x128xf32>
    %642 = arith.mulf %625, %633 : vector<8x128xf32>
    %643 = arith.addf %641, %642 : vector<8x128xf32>
    %644 = math.tanh %643 : vector<8x128xf32>
    %645 = arith.mulf %639, %644 : vector<8x128xf32>
    %c0_353 = arith.constant 0 : index
    %c0_354 = arith.constant 0 : index
    %646 = vector.load %arg14[%c0_353, %c0_354] : memref<8x128xf32, #tpu.memory_space<vmem>>, vector<8x128xf32>
    tpu.vector_store %arg14[%c0_353, %c0_354], %643 {strides = array<i32>} : memref<8x128xf32, #tpu.memory_space<vmem>>, vector<8x128xf32>,
    %c0_355 = arith.constant 0 : index
    %c0_356 = arith.constant 0 : index
    %647 = vector.load %arg13[%c0_355, %c0_356] : memref<8x128xf32, #tpu.memory_space<vmem>>, vector<8x128xf32>
    tpu.vector_store %arg13[%c0_355, %c0_356], %645 {strides = array<i32>} : memref<8x128xf32, #tpu.memory_space<vmem>>, vector<8x128xf32>,
    %c1_i32_357 = arith.constant 1 : i32
    %c8_i32_358 = arith.constant 8 : i32
    %648 = arith.muli %c1_i32_357, %c8_i32_358 : i32
    %c0_i32_359 = arith.constant 0 : i32
    %649 = arith.addi %c0_i32_359, %648 : i32
    %650 = tpu.assume_multiple %649, 8 : i32
    %651 = arith.index_cast %650 : i32 to index
    %c0_360 = arith.constant 0 : index
    %652 = vector.load %arg11[%651, %c0_360] : memref<48x512xf32, #tpu.memory_space<vmem>>, vector<8x512xf32>
    %c0_361 = arith.constant 0 : index
    %c0_362 = arith.constant 0 : index
    %653 = vector.load %arg13[%c0_361, %c0_362] : memref<8x128xf32, #tpu.memory_space<vmem>>, vector<8x128xf32>
    %c0_363 = arith.constant 0 : index
    %c0_364 = arith.constant 0 : index
    %654 = vector.load %arg6[%c0_363, %c0_364] : memref<128x512xf32, #tpu.memory_space<vmem>>, vector<128x512xf32>
    %cst_365 = arith.constant dense<0.000000e+00> : vector<8x512xf32>
    %655 = tpu.matmul %653, %654, %cst_365 {dimension_numbers = #tpu.dot_dimension_numbers<[1], [0], [0], [1], [0, 0, 1, 1], [], []>} : vector<8x128xf32>, vector<128x512xf32>, vector<8x512xf32> -> vector<8x512xf32>
    %656 = arith.addf %652, %655 : vector<8x512xf32>
    %657 = vector.extract_strided_slice %656 {offsets = [0, 0], sizes = [8, 128], strides = [1, 1]} : vector<8x512xf32> to vector<8x128xf32>
    %658 = arith.negf %657 : vector<8x128xf32>
    %659 = math.exp %658 : vector<8x128xf32>
    %cst_366 = arith.constant 1.000000e+00 : f32
    %660 = vector.broadcast %cst_366 : f32 to vector<8x128xf32>
    %661 = arith.addf %660, %659 : vector<8x128xf32>
    %662 = arith.divf %660, %661 : vector<8x128xf32>
    %663 = vector.extract_strided_slice %656 {offsets = [0, 128], sizes = [8, 128], strides = [1, 1]} : vector<8x512xf32> to vector<8x128xf32>
    %664 = arith.negf %663 : vector<8x128xf32>
    %665 = math.exp %664 : vector<8x128xf32>
    %cst_367 = arith.constant 1.000000e+00 : f32
    %666 = vector.broadcast %cst_367 : f32 to vector<8x128xf32>
    %667 = arith.addf %666, %665 : vector<8x128xf32>
    %668 = arith.divf %666, %667 : vector<8x128xf32>
    %669 = vector.extract_strided_slice %656 {offsets = [0, 256], sizes = [8, 128], strides = [1, 1]} : vector<8x512xf32> to vector<8x128xf32>
    %670 = math.tanh %669 : vector<8x128xf32>
    %671 = vector.extract_strided_slice %656 {offsets = [0, 384], sizes = [8, 128], strides = [1, 1]} : vector<8x512xf32> to vector<8x128xf32>
    %672 = arith.negf %671 : vector<8x128xf32>
    %673 = math.exp %672 : vector<8x128xf32>
    %cst_368 = arith.constant 1.000000e+00 : f32
    %674 = vector.broadcast %cst_368 : f32 to vector<8x128xf32>
    %675 = arith.addf %674, %673 : vector<8x128xf32>
    %676 = arith.divf %674, %675 : vector<8x128xf32>
    %c0_369 = arith.constant 0 : index
    %c0_370 = arith.constant 0 : index
    %677 = vector.load %arg14[%c0_369, %c0_370] : memref<8x128xf32, #tpu.memory_space<vmem>>, vector<8x128xf32>
    %678 = arith.mulf %668, %677 : vector<8x128xf32>
    %679 = arith.mulf %662, %670 : vector<8x128xf32>
    %680 = arith.addf %678, %679 : vector<8x128xf32>
    %681 = math.tanh %680 : vector<8x128xf32>
    %682 = arith.mulf %676, %681 : vector<8x128xf32>
    %c0_371 = arith.constant 0 : index
    %c0_372 = arith.constant 0 : index
    %683 = vector.load %arg14[%c0_371, %c0_372] : memref<8x128xf32, #tpu.memory_space<vmem>>, vector<8x128xf32>
    tpu.vector_store %arg14[%c0_371, %c0_372], %680 {strides = array<i32>} : memref<8x128xf32, #tpu.memory_space<vmem>>, vector<8x128xf32>,
    %c0_373 = arith.constant 0 : index
    %c0_374 = arith.constant 0 : index
    %684 = vector.load %arg13[%c0_373, %c0_374] : memref<8x128xf32, #tpu.memory_space<vmem>>, vector<8x128xf32>
    tpu.vector_store %arg13[%c0_373, %c0_374], %682 {strides = array<i32>} : memref<8x128xf32, #tpu.memory_space<vmem>>, vector<8x128xf32>,
    %c2_i32_375 = arith.constant 2 : i32
    %c0_376 = arith.constant 0 : index
    %c0_377 = arith.constant 0 : index
    %685 = vector.load %arg13[%c0_376, %c0_377] : memref<8x128xf32, #tpu.memory_space<vmem>>, vector<8x128xf32>
    %c0_378 = arith.constant 0 : index
    %c0_379 = arith.constant 0 : index
    %686 = vector.load %arg8[%c0_378, %c0_379] : memref<128x128xf32, #tpu.memory_space<vmem>>, vector<128x128xf32>
    %cst_380 = arith.constant dense<0.000000e+00> : vector<8x128xf32>
    %687 = tpu.matmul %685, %686, %cst_380 {dimension_numbers = #tpu.dot_dimension_numbers<[1], [0], [0], [1], [0, 0, 1, 1], [], []>} : vector<8x128xf32>, vector<128x128xf32>, vector<8x128xf32> -> vector<8x128xf32>
    %c0_381 = arith.constant 0 : index
    %c0_382 = arith.constant 0 : index
    %688 = vector.load %arg9[%c0_381, %c0_382] : memref<1x128xf32, #tpu.memory_space<vmem>>, vector<1x128xf32>
    %689 = vector.broadcast %688 : vector<1x128xf32> to vector<8x128xf32>
    %690 = arith.addf %687, %689 : vector<8x128xf32>
    %c0_383 = arith.constant 0 : index
    %c0_384 = arith.constant 0 : index
    %c0_385 = arith.constant 0 : index
    %691 = vector.load %arg10[%c0_383, %c0_384, %c0_385] : memref<1x8x128xf32, #tpu.memory_space<vmem>>, vector<1x8x128xf32>
    %692 = vector.shape_cast %691 : vector<1x8x128xf32> to vector<8x128xf32>
    %693 = vector.shape_cast %690 : vector<8x128xf32> to vector<1x8x128xf32>
    tpu.vector_store %arg10[%c0_383, %c0_384, %c0_385], %693 {strides = array<i32>} : memref<1x8x128xf32, #tpu.memory_space<vmem>>, vector<1x8x128xf32>,
    return
  }
  func.func @transform_0(%arg0: i32) -> (i32, i32, i32) {
    %c0_i32 = arith.constant 0 : i32
    %c0_i32_0 = arith.constant 0 : i32
    %c0_i32_1 = arith.constant 0 : i32
    return %arg0, %c0_i32, %c0_i32_0 : i32, i32, i32
  }
  func.func @transform_1(%arg0: i32) -> (i32, i32) {
    %c0_i32 = arith.constant 0 : i32
    %c0_i32_0 = arith.constant 0 : i32
    %c0_i32_1 = arith.constant 0 : i32
    return %c0_i32, %c0_i32_0 : i32, i32
  }
  func.func @transform_2(%arg0: i32) -> (i32, i32) {
    %c0_i32 = arith.constant 0 : i32
    %c0_i32_0 = arith.constant 0 : i32
    %c0_i32_1 = arith.constant 0 : i32
    return %c0_i32, %c0_i32_0 : i32, i32
  }
  func.func @transform_3(%arg0: i32) -> (i32, i32) {
    %c0_i32 = arith.constant 0 : i32
    %c0_i32_0 = arith.constant 0 : i32
    %c0_i32_1 = arith.constant 0 : i32
    return %c0_i32, %c0_i32_0 : i32, i32
  }
  func.func @transform_4(%arg0: i32) -> (i32, i32) {
    %c0_i32 = arith.constant 0 : i32
    %c0_i32_0 = arith.constant 0 : i32
    %c0_i32_1 = arith.constant 0 : i32
    return %c0_i32, %c0_i32_0 : i32, i32
  }
  func.func @transform_5(%arg0: i32) -> (i32, i32) {
    %c0_i32 = arith.constant 0 : i32
    %c0_i32_0 = arith.constant 0 : i32
    %c0_i32_1 = arith.constant 0 : i32
    return %c0_i32, %c0_i32_0 : i32, i32
  }
  func.func @transform_6(%arg0: i32) -> (i32, i32) {
    %c0_i32 = arith.constant 0 : i32
    %c0_i32_0 = arith.constant 0 : i32
    %c0_i32_1 = arith.constant 0 : i32
    return %c0_i32, %c0_i32_0 : i32, i32
  }
  func.func @transform_7(%arg0: i32) -> (i32, i32) {
    %c0_i32 = arith.constant 0 : i32
    %c0_i32_0 = arith.constant 0 : i32
    %c0_i32_1 = arith.constant 0 : i32
    return %c0_i32, %c0_i32_0 : i32, i32
  }
  func.func @transform_8(%arg0: i32) -> (i32, i32) {
    %c0_i32 = arith.constant 0 : i32
    %c0_i32_0 = arith.constant 0 : i32
    %c0_i32_1 = arith.constant 0 : i32
    return %c0_i32, %c0_i32_0 : i32, i32
  }
  func.func @transform_9(%arg0: i32) -> (i32, i32, i32) {
    %c0_i32 = arith.constant 0 : i32
    %c0_i32_0 = arith.constant 0 : i32
    %c0_i32_1 = arith.constant 0 : i32
    return %arg0, %c0_i32, %c0_i32_0 : i32, i32, i32
  }
}

</mosaic_0001>

<bundles_post_ra>
// kernel: advanced_lstm_forward.1
= control target key start
LH: loop header
LB: loop body
LE: loop exit
PB: predicated region body
PF: predicated region fallthrough
CT: control target
= control target key end

     0   :  { %v10455_v3 = vmov 0.0   ;;  %vm5973_vm0 = vmmov 0   ;;  %s10445_s1 = inlined_call_operand.vmem [shape: f32[128,512], index: 1, kind: input, shape index: {}]   ;;  %s10446_s0 = inlined_call_operand.vmem [shape: f32[1,64,128], index: 0, kind: input, shape index: {}]   ;;  %s10447_s2 = inlined_call_operand.vmem [shape: f32[128,512], index: 2, kind: input, shape index: {}]   ;;  %s10448_s3 = inlined_call_operand.vmem [shape: f32[1,512], index: 3, kind: input, shape index: {}]   ;;  %s10449_s4 = inlined_call_operand.vmem [shape: f32[128,512], index: 4, kind: input, shape index: {}]   ;;  %s10450_s5 = inlined_call_operand.vmem [shape: f32[128,512], index: 5, kind: input, shape index: {}]   ;;  %s10451_s6 = inlined_call_operand.vmem [shape: f32[1,512], index: 6, kind: input, shape index: {}]   ;;  %s10452_s7 = inlined_call_operand.vmem [shape: f32[128,128], index: 7, kind: input, shape index: {}]   ;;  %s10453_s8 = inlined_call_operand.vmem [shape: f32[1,128], index: 8, kind: input, shape index: {}]   ;;  %s10454_s9 = inlined_call_operand.vmem [shape: f32[1,8,128], index: 9, kind: output, shape index: {}]  }
   0x1   :  { %v6027_v0 = vld [vmem:[%s10445_s1 + $0x1e8] sm:$0xff]  ;;  %v6032_v1 = vld [vmem:[%s10445_s1 + $0x1f8] sm:$0xff]  ;;  %v6037_v2 = vld [vmem:[%s10445_s1 + $0x1e0] sm:$0xff]  ;;  %187 = vmatprep.mubr.f32.mxu0 %v10455_v3  ;;  %270 = vmatprep.mubr.f32.mxu1 %v10455_v3 }
   0x2   :  { %123 = vmatprep.subr.mxu0 %v6027_v0  ;;  %206 = vmatprep.subr.mxu1 %v6032_v1  ;;  %v6046_v4 = vld [vmem:[%s10445_s1 + $0x1f0] sm:$0xff]  ;;  %v6051_v5 = vld [vmem:[%s10445_s1 + $0x1c8] sm:$0xff]  ;;  %v6056_v6 = vld [vmem:[%s10445_s1 + $0x1d8] sm:$0xff] }
   0x3   :  { %124 = vmatpush1.msra.mxu0 %v6037_v2  ;;  %207 = vmatpush1.msra.mxu1 %v6046_v4  ;;  %v6063_v7 = vld [vmem:[%s10445_s1 + $0x1c0] sm:$0xff]  ;;  %v6068_v8 = vld [vmem:[%s10445_s1 + $0x1d0] sm:$0xff]  ;;  %v6073_v9 = vld [vmem:[%s10445_s1 + $0x1a8] sm:$0xff] }
   0x4   :  { %125 = vmatprep.subr.mxu0 %v6051_v5  ;;  %208 = vmatprep.subr.mxu1 %v6056_v6  ;;  %v6080_v10 = vld [vmem:[%s10445_s1 + $0x1b8] sm:$0xff]  ;;  %v6085_v11 = vld [vmem:[%s10445_s1 + $0x1a0] sm:$0xff]  ;;  %v6090_v12 = vld [vmem:[%s10445_s1 + $0x1b0] sm:$0xff] }
   0x5   :  { %126 = vmatpush1.msra.mxu0 %v6063_v7  ;;  %209 = vmatpush1.msra.mxu1 %v6068_v8  ;;  %v6097_v13 = vld [vmem:[%s10445_s1 + $0x188] sm:$0xff]  ;;  %v6102_v14 = vld [vmem:[%s10445_s1 + $0x198] sm:$0xff]  ;;  %v6109_v15 = vld [vmem:[%s10445_s1 + $0x180] sm:$0xff] }
   0x6   :  { %127 = vmatprep.subr.mxu0 %v6073_v9  ;;  %210 = vmatprep.subr.mxu1 %v6080_v10  ;;  %v6114_v16 = vld [vmem:[%s10445_s1 + $0x190] sm:$0xff]  ;;  %v6121_v17 = vld [vmem:[%s10445_s1 + $0x168] sm:$0xff]  ;;  %v6126_v18 = vld [vmem:[%s10445_s1 + $0x178] sm:$0xff] }
   0x7   :  { %128 = vmatpush1.msra.mxu0 %v6085_v11  ;;  %211 = vmatpush1.msra.mxu1 %v6090_v12  ;;  %v6133_v19 = vld [vmem:[%s10445_s1 + $0x160] sm:$0xff]  ;;  %v6138_v20 = vld [vmem:[%s10445_s1 + $0x170] sm:$0xff]  ;;  %v6145_v21 = vld [vmem:[%s10445_s1 + $0x148] sm:$0xff] }
   0x8   :  { %129 = vmatprep.subr.mxu0 %v6097_v13  ;;  %212 = vmatprep.subr.mxu1 %v6102_v14  ;;  %v6150_v22 = vld [vmem:[%s10445_s1 + $0x158] sm:$0xff]  ;;  %v6157_v23 = vld [vmem:[%s10445_s1 + $0x140] sm:$0xff]  ;;  %v6162_v24 = vld [vmem:[%s10445_s1 + $0x150] sm:$0xff] }
   0x9   :  { %130 = vmatpush1.msra.mxu0 %v6109_v15  ;;  %213 = vmatpush1.msra.mxu1 %v6114_v16  ;;  %v6169_v25 = vld [vmem:[%s10445_s1 + $0x128] sm:$0xff]  ;;  %v6174_v26 = vld [vmem:[%s10445_s1 + $0x138] sm:$0xff]  ;;  %v6181_v27 = vld [vmem:[%s10445_s1 + $0x120] sm:$0xff] }
   0xa   :  { %131 = vmatprep.subr.mxu0 %v6121_v17  ;;  %214 = vmatprep.subr.mxu1 %v6126_v18  ;;  %v6186_v28 = vld [vmem:[%s10445_s1 + $0x130] sm:$0xff]  ;;  %v6193_v29 = vld [vmem:[%s10445_s1 + $0x108] sm:$0xff]  ;;  %v6198_v30 = vld [vmem:[%s10445_s1 + $0x118] sm:$0xff] }
   0xb   :  { %132 = vmatpush1.msra.mxu0 %v6133_v19  ;;  %215 = vmatpush1.msra.mxu1 %v6138_v20  ;;  %v6205_v31 = vld [vmem:[%s10445_s1 + $0x100] sm:$0xff]  ;;  %v6210_v32 = vld [vmem:[%s10445_s1 + $0x110] sm:$0xff]  ;;  %v6217_v33 = vld [vmem:[%s10445_s1 + $0xe8] sm:$0xff] }
   0xc   :  { %133 = vmatprep.subr.mxu0 %v6145_v21  ;;  %216 = vmatprep.subr.mxu1 %v6150_v22  ;;  %v6222_v34 = vld [vmem:[%s10445_s1 + $0xf8] sm:$0xff]  ;;  %v6229_v35 = vld [vmem:[%s10445_s1 + $0xe0] sm:$0xff]  ;;  %v6234_v36 = vld [vmem:[%s10445_s1 + $0xf0] sm:$0xff] }
   0xd   :  { %134 = vmatpush1.msra.mxu0 %v6157_v23  ;;  %217 = vmatpush1.msra.mxu1 %v6162_v24  ;;  %v6241_v37 = vld [vmem:[%s10445_s1 + $0xc8] sm:$0xff]  ;;  %v6246_v38 = vld [vmem:[%s10445_s1 + $0xd8] sm:$0xff]  ;;  %v6253_v39 = vld [vmem:[%s10445_s1 + $0xc0] sm:$0xff] }
   0xe   :  { %135 = vmatprep.subr.mxu0 %v6169_v25  ;;  %218 = vmatprep.subr.mxu1 %v6174_v26  ;;  %v6258_v40 = vld [vmem:[%s10445_s1 + $0xd0] sm:$0xff]  ;;  %v6265_v41 = vld [vmem:[%s10445_s1 + $0xa8] sm:$0xff]  ;;  %v6270_v42 = vld [vmem:[%s10445_s1 + $0xb8] sm:$0xff] }
   0xf   :  { %136 = vmatpush1.msra.mxu0 %v6181_v27  ;;  %219 = vmatpush1.msra.mxu1 %v6186_v28  ;;  %v6277_v43 = vld [vmem:[%s10445_s1 + $0xa0] sm:$0xff]  ;;  %v6282_v44 = vld [vmem:[%s10445_s1 + $0xb0] sm:$0xff]  ;;  %v6289_v45 = vld [vmem:[%s10445_s1 + $0x88] sm:$0xff] }
  0x10   :  { %137 = vmatprep.subr.mxu0 %v6193_v29  ;;  %220 = vmatprep.subr.mxu1 %v6198_v30  ;;  %v6294_v46 = vld [vmem:[%s10445_s1 + $0x98] sm:$0xff]  ;;  %v6301_v47 = vld [vmem:[%s10445_s1 + $0x80] sm:$0xff]  ;;  %v6306_v48 = vld [vmem:[%s10445_s1 + $0x90] sm:$0xff] }
  0x11   :  { %138 = vmatpush1.msra.mxu0 %v6205_v31  ;;  %221 = vmatpush1.msra.mxu1 %v6210_v32  ;;  %v6313_v49 = vld [vmem:[%s10445_s1 + $0x68] sm:$0xff]  ;;  %v6318_v50 = vld [vmem:[%s10445_s1 + $0x78] sm:$0xff]  ;;  %v6325_v51 = vld [vmem:[%s10445_s1 + $0x60] sm:$0xff] }
  0x12   :  { %139 = vmatprep.subr.mxu0 %v6217_v33  ;;  %222 = vmatprep.subr.mxu1 %v6222_v34  ;;  %v6330_v52 = vld [vmem:[%s10445_s1 + $0x70] sm:$0xff]  ;;  %v6337_v53 = vld [vmem:[%s10445_s1 + $0x48] sm:$0xff]  ;;  %v6342_v54 = vld [vmem:[%s10445_s1 + $0x58] sm:$0xff] }
  0x13   :  { %140 = vmatpush1.msra.mxu0 %v6229_v35  ;;  %223 = vmatpush1.msra.mxu1 %v6234_v36  ;;  %v6349_v55 = vld [vmem:[%s10445_s1 + $0x40] sm:$0xff]  ;;  %v6354_v56 = vld [vmem:[%s10445_s1 + $0x50] sm:$0xff]  ;;  %v6361_v57 = vld [vmem:[%s10445_s1 + $0x28] sm:$0xff] }
  0x14   :  { %141 = vmatprep.subr.mxu0 %v6241_v37  ;;  %224 = vmatprep.subr.mxu1 %v6246_v38  ;;  %10655 = vst [vmem:[#allocation6_spill] sm:$0xff] %v6361_v57  ;;  %v6366_v58 = vld [vmem:[%s10445_s1 + $0x38] sm:$0xff]  ;;  %v6373_v59 = vld [vmem:[%s10445_s1 + $0x20] sm:$0xff]  ;;  %v6378_v60 = vld [vmem:[%s10445_s1 + $0x30] sm:$0xff] }
  0x15   :  { %142 = vmatpush1.msra.mxu0 %v6253_v39  ;;  %225 = vmatpush1.msra.mxu1 %v6258_v40  ;;  %v6385_v61 = vld [vmem:[%s10445_s1 + $0x8] sm:$0xff]  ;;  %v6390_v62 = vld [vmem:[%s10445_s1 + $0x18] sm:$0xff]  ;;  %v6397_v63 = vld [vmem:[%s10445_s1] sm:$0xff] }
  0x16   :  { %143 = vmatprep.subr.mxu0 %v6265_v41  ;;  %226 = vmatprep.subr.mxu1 %v6270_v42  ;;  %v6402_v3 = vld [vmem:[%s10445_s1 + $0x10] sm:$0xff] }
  0x17   :  { %144 = vmatpush1.msra.mxu0 %v6277_v43  ;;  %227 = vmatpush1.msra.mxu1 %v6282_v44 }
  0x18   :  { %145 = vmatprep.subr.mxu0 %v6289_v45  ;;  %228 = vmatprep.subr.mxu1 %v6294_v46 }
  0x19   :  { %146 = vmatpush1.msra.mxu0 %v6301_v47  ;;  %229 = vmatpush1.msra.mxu1 %v6306_v48 }
  0x1a   :  { %147 = vmatprep.subr.mxu0 %v6313_v49  ;;  %230 = vmatprep.subr.mxu1 %v6318_v50 }
  0x1b   :  { %148 = vmatpush1.msra.mxu0 %v6325_v51  ;;  %231 = vmatpush1.msra.mxu1 %v6330_v52 }
  0x1c   :  { %149 = vmatprep.subr.mxu0 %v6337_v53  ;;  %232 = vmatprep.subr.mxu1 %v6342_v54 }
  0x1d   :  { %150 = vmatpush1.msra.mxu0 %v6349_v55  ;;  %233 = vmatpush1.msra.mxu1 %v6354_v56 }
  0x1e   :  { %151 = vmatprep.subr.mxu0 %v6361_v57  ;;  %234 = vmatprep.subr.mxu1 %v6366_v58  ;;  %v34_v57 = vld [vmem:[%s10446_s0] sm:$0xff] }
  0x1f   :  { %152 = vmatpush1.msra.mxu0 %v6373_v59  ;;  %235 = vmatpush1.msra.mxu1 %v6378_v60 }
  0x20   :  { %153 = vmatprep.subr.mxu0 %v6385_v61  ;;  %236 = vmatprep.subr.mxu1 %v6390_v62 }
  0x21   :  { %154 = vmatpush1.msra.mxu0 %v6397_v63  ;;  %237 = vmatpush1.msra.mxu1 %v6402_v3 }
  0x22   :  { %188 = vmatmul.mubr.f32.vlgmr.msra.gmra.mxu0 %v34_v57  ;;  %390 = vmatprep.subr.mxu0 %v6027_v0  ;;  %v35_v0 = vld [vmem:[%s10446_s0 + $0x8] sm:$0xff] }
  0x23   :  { %473 = vmatprep.subr.mxu1 %v6032_v1  ;;  %271 = vmatmul.mubr.f32.vlgmr.msra.gmra.mxu1 %v34_v57  ;;  %v10656_v1 = vmov 0.0   ;;  %v6804_v57 = vld [vmem:[%s10447_s2 + $0x70] sm:$0xff] }
  0x24   :  { %391 = vmatpush1.msra.mxu0 %v6037_v2  ;;  %474 = vmatpush1.msra.mxu1 %v6046_v4  ;;  %v36_v2 = vld [vmem:[%s10446_s0 + $0x10] sm:$0xff]  ;;  %v10657_v4 = vld [vmem:[#allocation6_spill] sm:$0xff]  ;;  %10669 = vst [vmem:[#allocation17_spill] sm:$0xff] %v6804_v57 }
  0x25   :  { %392 = vmatprep.subr.mxu0 %v6051_v5  ;;  %475 = vmatprep.subr.mxu1 %v6056_v6  ;;  %v301_v5 = vld [vmem:[%s10446_s0 + $0x18] sm:$0xff]  ;;  %v6491_v6 = vld [vmem:[%s10447_s2 + $0x1e8] sm:$0xff] }
  0x26   :  { %393 = vmatpush1.msra.mxu0 %v6063_v7  ;;  %476 = vmatpush1.msra.mxu1 %v6068_v8  ;;  %v6498_v7 = vld [vmem:[%s10447_s2 + $0x1f8] sm:$0xff]  ;;  %v6504_v8 = vld [vmem:[%s10447_s2 + $0x1e0] sm:$0xff] }
  0x27   :  { %394 = vmatprep.subr.mxu0 %v6073_v9  ;;  %477 = vmatprep.subr.mxu1 %v6080_v10  ;;  %v6509_v9 = vld [vmem:[%s10447_s2 + $0x1f0] sm:$0xff]  ;;  %v6516_v10 = vld [vmem:[%s10447_s2 + $0x1c8] sm:$0xff] }
  0x28   :  { %395 = vmatpush1.msra.mxu0 %v6085_v11  ;;  %478 = vmatpush1.msra.mxu1 %v6090_v12  ;;  %v6527_v11 = vld [vmem:[%s10447_s2 + $0x1c0] sm:$0xff]  ;;  %v6532_v12 = vld [vmem:[%s10447_s2 + $0x1d0] sm:$0xff] }
  0x29   :  { %396 = vmatprep.subr.mxu0 %v6097_v13  ;;  %479 = vmatprep.subr.mxu1 %v6102_v14  ;;  %v6539_v13 = vld [vmem:[%s10447_s2 + $0x1a8] sm:$0xff]  ;;  %v6544_v14 = vld [vmem:[%s10447_s2 + $0x1b8] sm:$0xff] }
  0x2a   :  { %397 = vmatpush1.msra.mxu0 %v6109_v15  ;;  %480 = vmatpush1.msra.mxu1 %v6114_v16  ;;  %v6551_v15 = vld [vmem:[%s10447_s2 + $0x1a0] sm:$0xff]  ;;  %v6556_v16 = vld [vmem:[%s10447_s2 + $0x1b0] sm:$0xff] }
  0x2b   :  { %398 = vmatprep.subr.mxu0 %v6121_v17  ;;  %481 = vmatprep.subr.mxu1 %v6126_v18  ;;  %v6563_v17 = vld [vmem:[%s10447_s2 + $0x188] sm:$0xff]  ;;  %v6568_v18 = vld [vmem:[%s10447_s2 + $0x198] sm:$0xff] }
  0x2c   :  { %399 = vmatpush1.msra.mxu0 %v6133_v19  ;;  %482 = vmatpush1.msra.mxu1 %v6138_v20  ;;  %v6575_v19 = vld [vmem:[%s10447_s2 + $0x180] sm:$0xff]  ;;  %v6580_v20 = vld [vmem:[%s10447_s2 + $0x190] sm:$0xff] }
  0x2d   :  { %400 = vmatprep.subr.mxu0 %v6145_v21  ;;  %483 = vmatprep.subr.mxu1 %v6150_v22  ;;  %v6587_v21 = vld [vmem:[%s10447_s2 + $0x168] sm:$0xff]  ;;  %v6592_v22 = vld [vmem:[%s10447_s2 + $0x178] sm:$0xff] }
  0x2e   :  { %401 = vmatpush1.msra.mxu0 %v6157_v23  ;;  %484 = vmatpush1.msra.mxu1 %v6162_v24  ;;  %v6599_v23 = vld [vmem:[%s10447_s2 + $0x160] sm:$0xff]  ;;  %v6604_v24 = vld [vmem:[%s10447_s2 + $0x170] sm:$0xff] }
  0x2f   :  { %402 = vmatprep.subr.mxu0 %v6169_v25  ;;  %485 = vmatprep.subr.mxu1 %v6174_v26  ;;  %v6611_v25 = vld [vmem:[%s10447_s2 + $0x148] sm:$0xff]  ;;  %v6616_v26 = vld [vmem:[%s10447_s2 + $0x158] sm:$0xff] }
  0x30   :  { %403 = vmatpush1.msra.mxu0 %v6181_v27  ;;  %486 = vmatpush1.msra.mxu1 %v6186_v28  ;;  %v6623_v27 = vld [vmem:[%s10447_s2 + $0x140] sm:$0xff]  ;;  %v6628_v28 = vld [vmem:[%s10447_s2 + $0x150] sm:$0xff] }
  0x31   :  { %404 = vmatprep.subr.mxu0 %v6193_v29  ;;  %487 = vmatprep.subr.mxu1 %v6198_v30  ;;  %v6635_v29 = vld [vmem:[%s10447_s2 + $0x128] sm:$0xff]  ;;  %v6640_v30 = vld [vmem:[%s10447_s2 + $0x138] sm:$0xff] }
  0x32   :  { %405 = vmatpush1.msra.mxu0 %v6205_v31  ;;  %488 = vmatpush1.msra.mxu1 %v6210_v32  ;;  %v6647_v31 = vld [vmem:[%s10447_s2 + $0x120] sm:$0xff]  ;;  %v6652_v32 = vld [vmem:[%s10447_s2 + $0x130] sm:$0xff] }
  0x33   :  { %406 = vmatprep.subr.mxu0 %v6217_v33  ;;  %489 = vmatprep.subr.mxu1 %v6222_v34  ;;  %v6659_v33 = vld [vmem:[%s10447_s2 + $0x108] sm:$0xff]  ;;  %v6664_v34 = vld [vmem:[%s10447_s2 + $0x118] sm:$0xff] }
  0x34   :  { %407 = vmatpush1.msra.mxu0 %v6229_v35  ;;  %490 = vmatpush1.msra.mxu1 %v6234_v36  ;;  %v6671_v35 = vld [vmem:[%s10447_s2 + $0x100] sm:$0xff]  ;;  %v6676_v36 = vld [vmem:[%s10447_s2 + $0x110] sm:$0xff] }
  0x35   :  { %408 = vmatprep.subr.mxu0 %v6241_v37  ;;  %491 = vmatprep.subr.mxu1 %v6246_v38  ;;  %v6683_v37 = vld [vmem:[%s10447_s2 + $0xe8] sm:$0xff]  ;;  %v6688_v38 = vld [vmem:[%s10447_s2 + $0xf8] sm:$0xff] }
  0x36   :  { %409 = vmatpush1.msra.mxu0 %v6253_v39  ;;  %492 = vmatpush1.msra.mxu1 %v6258_v40  ;;  %v6695_v39 = vld [vmem:[%s10447_s2 + $0xe0] sm:$0xff]  ;;  %v6700_v40 = vld [vmem:[%s10447_s2 + $0xf0] sm:$0xff] }
  0x37   :  { %410 = vmatprep.subr.mxu0 %v6265_v41  ;;  %493 = vmatprep.subr.mxu1 %v6270_v42  ;;  %v6707_v41 = vld [vmem:[%s10447_s2 + $0xc8] sm:$0xff]  ;;  %v6712_v42 = vld [vmem:[%s10447_s2 + $0xd8] sm:$0xff] }
  0x38   :  { %411 = vmatpush1.msra.mxu0 %v6277_v43  ;;  %494 = vmatpush1.msra.mxu1 %v6282_v44  ;;  %v6719_v43 = vld [vmem:[%s10447_s2 + $0xc0] sm:$0xff]  ;;  %v6724_v44 = vld [vmem:[%s10447_s2 + $0xd0] sm:$0xff] }
  0x39   :  { %193 = vmatprep.mubr.f32.mxu0 %v10656_v1  ;;  %412 = vmatprep.subr.mxu0 %v6289_v45  ;;  %v6731_v45 = vld [vmem:[%s10447_s2 + $0xa8] sm:$0xff] }
  0x3a   :  { %495 = vmatprep.subr.mxu1 %v6294_v46  ;;  %194 = vmatmul.mubr.f32.gmra.mxu0 %v35_v0  ;;  %10658 = vst [vmem:[#allocation6_spill] sm:$0xff] %v6731_v45  ;;  %v6736_v46 = vld [vmem:[%s10447_s2 + $0xb8] sm:$0xff] }
  0x3b   :  { %413 = vmatpush1.msra.mxu0 %v6301_v47  ;;  %496 = vmatpush1.msra.mxu1 %v6306_v48  ;;  %10659 = vst [vmem:[#allocation7_spill] sm:$0xff] %v6736_v46  ;;  %v6743_v47 = vld [vmem:[%s10447_s2 + $0xa0] sm:$0xff]  ;;  %v6750_v48 = vld [vmem:[%s10447_s2 + $0xb0] sm:$0xff] }
  0x3c   :  { %276 = vmatprep.mubr.f32.mxu1 %v10656_v1  ;;  %414 = vmatprep.subr.mxu0 %v6313_v49  ;;  %10660 = vst [vmem:[#allocation8_spill] sm:$0xff] %v6743_v47  ;;  %10661 = vst [vmem:[#allocation9_spill] sm:$0xff] %v6750_v48  ;;  %v302_v49 = vld [vmem:[%s10446_s0 + $0x20] sm:$0xff] }
  0x3d   :  { %497 = vmatprep.subr.mxu1 %v6318_v50  ;;  %277 = vmatmul.mubr.f32.gmra.mxu1 %v35_v0  ;;  %v6760_v50 = vld [vmem:[%s10447_s2 + $0x88] sm:$0xff]  ;;  %v6843_v0 = vld [vmem:[%s10447_s2 + $0x38] sm:$0xff] }
  0x3e   :  { %415 = vmatpush1.msra.mxu0 %v6325_v51  ;;  %498 = vmatpush1.msra.mxu1 %v6330_v52  ;;  %10662 = vst [vmem:[#allocation10_spill] sm:$0xff] %v6760_v50  ;;  %v6765_v51 = vld [vmem:[%s10447_s2 + $0x98] sm:$0xff]  ;;  %v6772_v52 = vld [vmem:[%s10447_s2 + $0x80] sm:$0xff]  ;;  %10675 = vst [vmem:[#allocation23_spill] sm:$0xff] %v6843_v0 }
  0x3f   :  { %199 = vmatprep.mubr.f32.mxu0 %v10656_v1  ;;  %416 = vmatprep.subr.mxu0 %v6337_v53  ;;  %10663 = vst [vmem:[#allocation11_spill] sm:$0xff] %v6765_v51  ;;  %10664 = vst [vmem:[#allocation12_spill] sm:$0xff] %v6772_v52  ;;  %v6778_v53 = vld [vmem:[%s10447_s2 + $0x90] sm:$0xff] }
  0x40   :  { %499 = vmatprep.subr.mxu1 %v6342_v54  ;;  %200 = vmatmul.mubr.f32.gmra.mxu0 %v36_v2  ;;  %10665 = vst [vmem:[#allocation13_spill] sm:$0xff] %v6778_v53  ;;  %v6783_v54 = vld [vmem:[%s10447_s2 + $0x68] sm:$0xff] }
  0x41   :  { %417 = vmatpush1.msra.mxu0 %v6349_v55  ;;  %500 = vmatpush1.msra.mxu1 %v6354_v56  ;;  %10666 = vst [vmem:[#allocation14_spill] sm:$0xff] %v6783_v54  ;;  %v6790_v55 = vld [vmem:[%s10447_s2 + $0x78] sm:$0xff]  ;;  %v6797_v56 = vld [vmem:[%s10447_s2 + $0x60] sm:$0xff] }
  0x42   :  { %282 = vmatprep.mubr.f32.mxu1 %v10656_v1  ;;  %418 = vmatprep.subr.mxu0 %v10657_v4  ;;  %10667 = vst [vmem:[#allocation15_spill] sm:$0xff] %v6790_v55  ;;  %10668 = vst [vmem:[#allocation16_spill] sm:$0xff] %v6797_v56  ;;  %v6855_v4 = vld [vmem:[%s10447_s2 + $0x30] sm:$0xff] }
  0x43   :  { %501 = vmatprep.subr.mxu1 %v6366_v58  ;;  %283 = vmatmul.mubr.f32.gmra.mxu1 %v36_v2  ;;  %v303_v58 = vld [vmem:[%s10446_s0 + $0x28] sm:$0xff]  ;;  %v6850_v2 = vld [vmem:[%s10447_s2 + $0x20] sm:$0xff]  ;;  %10677 = vst [vmem:[#allocation25_spill] sm:$0xff] %v6855_v4 }
  0x44   :  { %419 = vmatpush1.msra.mxu0 %v6373_v59  ;;  %502 = vmatpush1.msra.mxu1 %v6378_v60  ;;  %v6813_v59 = vld [vmem:[%s10447_s2 + $0x48] sm:$0xff]  ;;  %v6818_v60 = vld [vmem:[%s10447_s2 + $0x58] sm:$0xff]  ;;  %10676 = vst [vmem:[#allocation24_spill] sm:$0xff] %v6850_v2 }
  0x45   :  { %420 = vmatprep.subr.mxu0 %v6385_v61  ;;  %503 = vmatprep.subr.mxu1 %v6390_v62  ;;  %10670 = vst [vmem:[#allocation18_spill] sm:$0xff] %v6813_v59  ;;  %10671 = vst [vmem:[#allocation19_spill] sm:$0xff] %v6818_v60  ;;  %v6825_v61 = vld [vmem:[%s10447_s2 + $0x40] sm:$0xff]  ;;  %v6831_v62 = vld [vmem:[%s10447_s2 + $0x50] sm:$0xff] }
  0x46   :  { %421 = vmatpush1.msra.mxu0 %v6397_v63  ;;  %454 = vmatprep.mubr.f32.mxu0 %v10656_v1  ;;  %10672 = vst [vmem:[#allocation20_spill] sm:$0xff] %v6825_v61  ;;  %10673 = vst [vmem:[#allocation21_spill] sm:$0xff] %v6831_v62  ;;  %v6836_v63 = vld [vmem:[%s10447_s2 + $0x28] sm:$0xff] }
  0x47   :  { %504 = vmatpush1.msra.mxu1 %v6402_v3  ;;  %455 = vmatmul.mubr.f32.vlgmr.msra.gmra.mxu0 %v301_v5  ;;  %v6521_v3 = vld [vmem:[%s10447_s2 + $0x1d8] sm:$0xff]  ;;  %10674 = vst [vmem:[#allocation22_spill] sm:$0xff] %v6836_v63 }
  0x48   :  { %537 = vmatprep.mubr.f32.mxu1 %v10656_v1  ;;  %640 = vmatprep.subr.mxu0 %v6491_v6 }
  0x49   :  { %711 = vmatprep.subr.mxu1 %v6498_v7  ;;  %538 = vmatmul.mubr.f32.vlgmr.msra.gmra.mxu1 %v301_v5  ;;  %v6862_v5 = vld [vmem:[%s10447_s2 + $0x8] sm:$0xff] }
  0x4a   :  { %641 = vmatpush1.msra.mxu0 %v6504_v8  ;;  %712 = vmatpush1.msra.mxu1 %v6509_v9  ;;  %10678 = vst [vmem:[#allocation26_spill] sm:$0xff] %v6862_v5 }
  0x4b   :  { %642 = vmatprep.subr.mxu0 %v6516_v10  ;;  %713 = vmatprep.subr.mxu1 %v6521_v3 }
  0x4c   :  { %643 = vmatpush1.msra.mxu0 %v6527_v11  ;;  %714 = vmatpush1.msra.mxu1 %v6532_v12 }
  0x4d   :  { %644 = vmatprep.subr.mxu0 %v6539_v13  ;;  %715 = vmatprep.subr.mxu1 %v6544_v14 }
  0x4e   :  { %645 = vmatpush1.msra.mxu0 %v6551_v15  ;;  %716 = vmatpush1.msra.mxu1 %v6556_v16 }
  0x4f   :  { %646 = vmatprep.subr.mxu0 %v6563_v17  ;;  %717 = vmatprep.subr.mxu1 %v6568_v18 }
  0x50   :  { %647 = vmatpush1.msra.mxu0 %v6575_v19  ;;  %718 = vmatpush1.msra.mxu1 %v6580_v20 }
  0x51   :  { %648 = vmatprep.subr.mxu0 %v6587_v21  ;;  %719 = vmatprep.subr.mxu1 %v6592_v22 }
  0x52   :  { %649 = vmatpush1.msra.mxu0 %v6599_v23  ;;  %720 = vmatpush1.msra.mxu1 %v6604_v24 }
  0x53   :  { %650 = vmatprep.subr.mxu0 %v6611_v25  ;;  %721 = vmatprep.subr.mxu1 %v6616_v26 }
  0x54   :  { %651 = vmatpush1.msra.mxu0 %v6623_v27  ;;  %722 = vmatpush1.msra.mxu1 %v6628_v28 }
  0x55   :  { %652 = vmatprep.subr.mxu0 %v6635_v29  ;;  %723 = vmatprep.subr.mxu1 %v6640_v30 }
  0x56   :  { %653 = vmatpush1.msra.mxu0 %v6647_v31  ;;  %724 = vmatpush1.msra.mxu1 %v6652_v32 }
  0x57   :  { %654 = vmatprep.subr.mxu0 %v6659_v33  ;;  %725 = vmatprep.subr.mxu1 %v6664_v34 }
  0x58   :  { %655 = vmatpush1.msra.mxu0 %v6671_v35  ;;  %726 = vmatpush1.msra.mxu1 %v6676_v36 }
  0x59   :  { %656 = vmatprep.subr.mxu0 %v6683_v37  ;;  %727 = vmatprep.subr.mxu1 %v6688_v38 }
  0x5a   :  { %657 = vmatpush1.msra.mxu0 %v6695_v39  ;;  %728 = vmatpush1.msra.mxu1 %v6700_v40 }
  0x5b   :  { %658 = vmatprep.subr.mxu0 %v6707_v41  ;;  %729 = vmatprep.subr.mxu1 %v6712_v42 }
  0x5c   :  { %659 = vmatpush1.msra.mxu0 %v6719_v43  ;;  %730 = vmatpush1.msra.mxu1 %v6724_v44 }
  0x5d   :  { %660 = vmatprep.subr.mxu0 %v6731_v45  ;;  %731 = vmatprep.subr.mxu1 %v6736_v46 }
  0x5e   :  { %460 = vmatprep.mubr.f32.mxu0 %v10656_v1  ;;  %661 = vmatpush1.msra.mxu0 %v6743_v47 }
  0x5f   :  { %732 = vmatpush1.msra.mxu1 %v6750_v48  ;;  %461 = vmatmul.mubr.f32.gmra.mxu0 %v302_v49 }
  0x60   :  { %662 = vmatprep.subr.mxu0 %v6760_v50  ;;  %733 = vmatprep.subr.mxu1 %v6765_v51 }
  0x61   :  { %543 = vmatprep.mubr.f32.mxu1 %v10656_v1  ;;  %663 = vmatpush1.msra.mxu0 %v6772_v52 }
  0x62   :  { %734 = vmatpush1.msra.mxu1 %v6778_v53  ;;  %664 = vmatprep.subr.mxu0 %v6783_v54 }
  0x63   :  { %544 = vmatmul.mubr.f32.gmra.mxu1 %v302_v49  ;;  %735 = vmatprep.subr.mxu1 %v6790_v55  ;;  %v6867_v49 = vld [vmem:[%s10447_s2 + $0x18] sm:$0xff] }
  0x64   :  { %466 = vmatprep.mubr.f32.mxu0 %v10656_v1  ;;  %665 = vmatpush1.msra.mxu0 %v6797_v56  ;;  %10679 = vst [vmem:[#allocation27_spill] sm:$0xff] %v6867_v49 }
  0x65   :  { %736 = vmatpush1.msra.mxu1 %v6804_v57  ;;  %467 = vmatmul.mubr.f32.gmra.mxu0 %v303_v58 }
  0x66   :  { %666 = vmatprep.subr.mxu0 %v6813_v59  ;;  %737 = vmatprep.subr.mxu1 %v6818_v60 }
  0x67   :  { %549 = vmatprep.mubr.f32.mxu1 %v10656_v1  ;;  %667 = vmatpush1.msra.mxu0 %v6825_v61  ;;  %v6873_v61 = vld [vmem:[%s10447_s2] sm:$0xff] }
  0x68   :  { %738 = vmatpush1.msra.mxu1 %v6831_v62  ;;  %668 = vmatprep.subr.mxu0 %v6836_v63  ;;  %10680 = vst [vmem:[#allocation28_spill] sm:$0xff] %v6873_v61  ;;  %v6880_v63 = vld [vmem:[%s10447_s2 + $0x10] sm:$0xff] }
  0x69   :  { %550 = vmatmul.mubr.f32.gmra.mxu1 %v303_v58  ;;  %739 = vmatprep.subr.mxu1 %v6843_v0  ;;  %10681 = vst [vmem:[#allocation29_spill] sm:$0xff] %v6880_v63  ;;  %v10682_v58 = vld [vmem:[#allocation20_spill] sm:$0xff] }
  0x6a   :  { %669 = vmatpush1.msra.mxu0 %v6850_v2  ;;  %740 = vmatpush1.msra.mxu1 %v6855_v4 }
  0x6b   :  { %670 = vmatprep.subr.mxu0 %v6862_v5  ;;  %741 = vmatprep.subr.mxu1 %v6867_v49 }
  0x6c   :  { %671 = vmatpush1.msra.mxu0 %v6873_v61  ;;  %704 = vmatprep.mubr.f32.mxu0 %v10656_v1 }
  0x6d   :  { %742 = vmatpush1.msra.mxu1 %v6880_v63  ;;  %775 = vmatprep.mubr.f32.mxu1 %v10656_v1 }
  0x6e   :  { %705 = vmatmul.mubr.f32.vlgmr.msra.gmra.mxu0 %v10656_v1  ;;  %776 = vmatmul.mubr.f32.vlgmr.msra.gmra.mxu1 %v10656_v1 }
  0x6f   :  { %886 = vmatprep.subr.mxu0 %v6491_v6  ;;  %957 = vmatprep.subr.mxu1 %v6498_v7 }
  0x70   :  { %887 = vmatpush1.msra.mxu0 %v6504_v8  ;;  %958 = vmatpush1.msra.mxu1 %v6509_v9 }
  0x71   :  { %888 = vmatprep.subr.mxu0 %v6516_v10  ;;  %959 = vmatprep.subr.mxu1 %v6521_v3 }
  0x72   :  { %889 = vmatpush1.msra.mxu0 %v6527_v11  ;;  %960 = vmatpush1.msra.mxu1 %v6532_v12 }
  0x73   :  { %890 = vmatprep.subr.mxu0 %v6539_v13  ;;  %961 = vmatprep.subr.mxu1 %v6544_v14 }
  0x74   :  { %891 = vmatpush1.msra.mxu0 %v6551_v15  ;;  %962 = vmatpush1.msra.mxu1 %v6556_v16 }
  0x75   :  { %892 = vmatprep.subr.mxu0 %v6563_v17  ;;  %963 = vmatprep.subr.mxu1 %v6568_v18 }
  0x76   :  { %893 = vmatpush1.msra.mxu0 %v6575_v19  ;;  %964 = vmatpush1.msra.mxu1 %v6580_v20 }
  0x77   :  { %894 = vmatprep.subr.mxu0 %v6587_v21  ;;  %965 = vmatprep.subr.mxu1 %v6592_v22 }
  0x78   :  { %895 = vmatpush1.msra.mxu0 %v6599_v23  ;;  %966 = vmatpush1.msra.mxu1 %v6604_v24 }
  0x79   :  { %896 = vmatprep.subr.mxu0 %v6611_v25  ;;  %967 = vmatprep.subr.mxu1 %v6616_v26 }
  0x7a   :  { %897 = vmatpush1.msra.mxu0 %v6623_v27  ;;  %968 = vmatpush1.msra.mxu1 %v6628_v28 }
  0x7b   :  { %898 = vmatprep.subr.mxu0 %v6635_v29  ;;  %969 = vmatprep.subr.mxu1 %v6640_v30 }
  0x7c   :  { %899 = vmatpush1.msra.mxu0 %v6647_v31  ;;  %970 = vmatpush1.msra.mxu1 %v6652_v32 }
  0x7d   :  { %900 = vmatprep.subr.mxu0 %v6659_v33  ;;  %971 = vmatprep.subr.mxu1 %v6664_v34 }
  0x7e   :  { %901 = vmatpush1.msra.mxu0 %v6671_v35  ;;  %972 = vmatpush1.msra.mxu1 %v6676_v36 }
  0x7f   :  { %902 = vmatprep.subr.mxu0 %v6683_v37  ;;  %973 = vmatprep.subr.mxu1 %v6688_v38 }
  0x80   :  { %903 = vmatpush1.msra.mxu0 %v6695_v39  ;;  %974 = vmatpush1.msra.mxu1 %v6700_v40 }
  0x81   :  { %904 = vmatprep.subr.mxu0 %v6707_v41  ;;  %975 = vmatprep.subr.mxu1 %v6712_v42 }
  0x82   :  { %905 = vmatpush1.msra.mxu0 %v6719_v43  ;;  %976 = vmatpush1.msra.mxu1 %v6724_v44 }
  0x83   :  { %906 = vmatprep.subr.mxu0 %v6731_v45  ;;  %977 = vmatprep.subr.mxu1 %v6736_v46 }
  0x84   :  { %907 = vmatpush1.msra.mxu0 %v6743_v47  ;;  %978 = vmatpush1.msra.mxu1 %v6750_v48 }
  0x85   :  { %908 = vmatprep.subr.mxu0 %v6760_v50  ;;  %979 = vmatprep.subr.mxu1 %v6765_v51  ;;  %v10683_v51 = vld [vmem:[#allocation22_spill] sm:$0xff] }
  0x86   :  { %909 = vmatpush1.msra.mxu0 %v6772_v52  ;;  %980 = vmatpush1.msra.mxu1 %v6778_v53 }
  0x87   :  { %910 = vmatprep.subr.mxu0 %v6783_v54  ;;  %981 = vmatprep.subr.mxu1 %v6790_v55 }
  0x88   :  { %911 = vmatpush1.msra.mxu0 %v6797_v56  ;;  %982 = vmatpush1.msra.mxu1 %v6804_v57 }
  0x89   :  { %912 = vmatprep.subr.mxu0 %v6813_v59  ;;  %983 = vmatprep.subr.mxu1 %v6818_v60 }
  0x8a   :  { %913 = vmatpush1.msra.mxu0 %v10682_v58  ;;  %984 = vmatpush1.msra.mxu1 %v6831_v62 }
  0x8b   :  { %914 = vmatprep.subr.mxu0 %v10683_v51  ;;  %985 = vmatprep.subr.mxu1 %v6843_v0  ;;  %v103_v0 = vlaneseq }
  0x8c   :  { %915 = vmatpush1.msra.mxu0 %v6850_v2  ;;  %986 = vmatpush1.msra.mxu1 %v6855_v4 }
  0x8d   :  { %916 = vmatprep.subr.mxu0 %v6862_v5  ;;  %987 = vmatprep.subr.mxu1 %v6867_v49  ;;  %v104_v2 = vshrl.u32 %v103_v0, 7  ;;  %v101_v49 = vld [vmem:[%s10448_s3] sm:$0xf] }
  0x8e   :  { %917 = vmatpush1.msra.mxu0 %v6873_v61  ;;  %950 = vmatprep.mubr.f32.mxu0 %v10656_v1 }
  0x8f   :  { %988 = vmatpush1.msra.mxu1 %v6880_v63  ;;  %1021 = vmatprep.mubr.f32.mxu1 %v10656_v1  ;;  %v6958_v4 = vsub.s32 0, %v104_v2  ;;  %v6963_v61 = vsub.s32 1, %v104_v2  ;;  %v6967_v62 = vsub.s32 2, %v104_v2  ;;  %v6970_v1 = vsub.s32 3, %v104_v2 }
  0x90   :  { %1133 = vmatprep.subr.mxu0 %v6491_v6  ;;  %1204 = vmatprep.subr.mxu1 %v6498_v7 }
  0x91   :  { %10684 = vst [vmem:[#allocation30_spill] sm:$0xff] %v6958_v4  ;;  %10685 = vst [vmem:[#allocation31_spill] sm:$0xff] %v6963_v61  ;;  %v106_v6 = vrot.slane %v101_v49, %v6958_v4  ;;  %v110_v0 = vrot.slane %v101_v49, %v6963_v61  ;;  %v114_v59 = vrot.slane %v101_v49, %v6967_v62 }
  0x92   :  { %10686 = vst [vmem:[#allocation32_spill] sm:$0xff] %v6967_v62  ;;  %10687 = vst [vmem:[#allocation33_spill] sm:$0xff] %v6970_v1  ;;  %v118_v54 = vrot.slane %v101_v49, %v6970_v1 }
  0xe2   :  { %v189_v51 = vpop.f32.mrf.mxu0 }
  0xe3   :  { %v6965_v5 = vpop.f32.mrf.mxu1 }
  0xe4   :  { %v191_v63 = vpop.f32.mrf.mxu0 }
  0xe5   :  { %v274_v58 = vpop.f32.mrf.mxu1 }
  0xfa   :  { %v195_v7 = vpop.f32.mrf.mxu0 }
  0xfb   :  { %v6973_v60 = vadd.f32 %v195_v7, %v106_v6 }
  0xfc   :  { %v197_v57 = vpop.f32.mrf.mxu0 }
  0xfd   :  { %10688 = vst [vmem:[#allocation34_spill] sm:$0xff] %v6973_v60  ;;  %v6976_v56 = vadd.f32 %v197_v57, %v110_v0  ;;  %v278_v55 = vpop.f32.mrf.mxu1 }
  0xfe   :  { %v6979_v53 = vadd.f32 %v278_v55, %v114_v59  ;;  %v368_v55 = vld [vmem:[%s10448_s3] sm:$0xf] }
  0xff   :  { %10689 = vst [vmem:[#allocation35_spill] sm:$0xff] %v6976_v56  ;;  %v280_v52 = vpop.f32.mrf.mxu1 }
 0x100   :  { %10690 = vst [vmem:[#allocation36_spill] sm:$0xff] %v6979_v53  ;;  %v201_v50 = vpop.f32.mrf.mxu0  ;;  %v6981_v2 = vadd.f32 %v280_v52, %v118_v54  ;;  %v192_v53 = vadd.f32 %v191_v63, %v110_v0 }
 0x101   :  { %v6983_v48 = vadd.f32 %v201_v50, %v106_v6  ;;  %v7001_v50 = vrot.slane %v368_v55, %v6958_v4  ;;  %v7018_v4 = vrot.slane %v368_v55, %v6970_v1  ;;  %v190_v1 = vadd.f32 %v189_v51, %v106_v6 }
 0x102   :  { %10691 = vst [vmem:[#allocation37_spill] sm:$0xff] %v6981_v2  ;;  %v203_v47 = vpop.f32.mrf.mxu0 }
 0x103   :  { %10692 = vst [vmem:[#allocation38_spill] sm:$0xff] %v6983_v48  ;;  %v6985_v46 = vadd.f32 %v203_v47, %v110_v0  ;;  %v284_v7 = vpop.f32.mrf.mxu1  ;;  %10699 = vst [vmem:[#allocation45_spill] sm:$0xff] %v7001_v50 }
 0x104   :  { %v6987_v60 = vadd.f32 %v284_v7, %v114_v59  ;;  %v7004_v7 = vrot.slane %v368_v55, %v6963_v61  ;;  %10705 = vst [vmem:[#allocation51_spill] sm:$0xff] %v7018_v4 }
 0x105   :  { %10693 = vst [vmem:[#allocation39_spill] sm:$0xff] %v6985_v46  ;;  %v286_v45 = vpop.f32.mrf.mxu1 }
 0x106   :  { %10694 = vst [vmem:[#allocation40_spill] sm:$0xff] %v6987_v60  ;;  %v6989_v57 = vadd.f32 %v286_v45, %v118_v54  ;;  %10700 = vst [vmem:[#allocation46_spill] sm:$0xff] %v7004_v7 }
 0x107   :  { %v6991_v56 = vpop.f32.mrf.mxu0 }
 0x108   :  { %10695 = vst [vmem:[#allocation41_spill] sm:$0xff] %v6989_v57  ;;  %10696 = vst [vmem:[#allocation42_spill] sm:$0xff] %v6991_v56  ;;  %v7012_v57 = vrot.slane %v368_v55, %v6967_v62 }
 0x109   :  { %v6996_v49 = vpop.f32.mrf.mxu0  ;;  %v6998_v52 = vpop.f32.mrf.mxu1 }
 0x10a   :  { %10697 = vst [vmem:[#allocation43_spill] sm:$0xff] %v6996_v49  ;;  %10698 = vst [vmem:[#allocation44_spill] sm:$0xff] %v6998_v52 }
 0x10b   :  { %v7009_v60 = vpop.f32.mrf.mxu1  ;;  %10703 = vst [vmem:[#allocation49_spill] sm:$0xff] %v7012_v57 }
 0x10c   :  { %10702 = vst [vmem:[#allocation48_spill] sm:$0xff] %v7009_v60 }
 0x11f   :  { %v462_v47 = vpop.f32.mrf.mxu0 }
 0x120   :  { %v7007_v45 = vadd.f32 %v462_v47, %v7001_v50 }
 0x121   :  { %v464_v56 = vpop.f32.mrf.mxu0 }
 0x122   :  { %10701 = vst [vmem:[#allocation47_spill] sm:$0xff] %v7007_v45  ;;  %v7015_v49 = vadd.f32 %v464_v56, %v7004_v7 }
 0x123   :  { %v545_v52 = vpop.f32.mrf.mxu1 }
 0x124   :  { %10704 = vst [vmem:[#allocation50_spill] sm:$0xff] %v7015_v49  ;;  %v7021_v46 = vadd.f32 %v545_v52, %v7012_v57 }
 0x125   :  { %v468_v61 = vpop.f32.mrf.mxu0  ;;  %v547_v48 = vpop.f32.mrf.mxu1 }
 0x126   :  { %10706 = vst [vmem:[#allocation52_spill] sm:$0xff] %v7021_v46  ;;  %v7024_v47 = vadd.f32 %v468_v61, %v7001_v50  ;;  %v7027_v45 = vadd.f32 %v547_v48, %v7018_v4 }
 0x127   :  { %v470_v60 = vpop.f32.mrf.mxu0 }
 0x128   :  { %10707 = vst [vmem:[#allocation53_spill] sm:$0xff] %v7024_v47  ;;  %10708 = vst [vmem:[#allocation54_spill] sm:$0xff] %v7027_v45  ;;  %v7030_v62 = vadd.f32 %v470_v60, %v7004_v7 }
 0x129   :  { %v551_v56 = vpop.f32.mrf.mxu1 }
 0x12a   :  { %10709 = vst [vmem:[#allocation55_spill] sm:$0xff] %v7030_v62  ;;  %v7033_v49 = vadd.f32 %v551_v56, %v7012_v57  ;;  %v275_v62 = vadd.f32 %v274_v58, %v118_v54  ;;  %v273_v56 = vadd.f32 %v6965_v5, %v114_v59 }
 0x12b   :  { %v553_v55 = vpop.f32.mrf.mxu1 }
 0x12c   :  { %10710 = vst [vmem:[#allocation56_spill] sm:$0xff] %v7033_v49  ;;  %v7036_v52 = vadd.f32 %v553_v55, %v7018_v4  ;;  %v7683_v4 = vld [vmem:[%s10447_s2 + $0x8] sm:$0xff] }
 0x12e   :  { %10711 = vst [vmem:[#allocation57_spill] sm:$0xff] %v7036_v52  ;;  %v706_v46 = vpop.f32.mrf.mxu0  ;;  %v777_v45 = vpop.f32.mrf.mxu1 }
 0x12f   :  { %v782_v61 = vadd.f32 %v706_v46, %v190_v1  ;;  %v784_v55 = vadd.f32 %v777_v45, %v273_v56 }
 0x130   :  { %v708_v47 = vpop.f32.mrf.mxu0  ;;  %v779_v60 = vpop.f32.mrf.mxu1 }
 0x131   :  { %v5613_v50 = vmul.f32 -1.442695, %v782_v61  ;;  %v783_v48 = vadd.f32 %v708_v47, %v192_v53  ;;  %v785_v7 = vadd.f32 %v779_v60, %v275_v62 }
 0x133   :  { %5716 = vpow2.f32 %v5613_v50  ;;  %v5614_v2 = vmul.f32 -1.442695, %v783_v48  ;;  %v5615_v49 = vmul.f32 -1.442695, %v785_v7 }
 0x135   :  { %5718 = vpow2.f32 %v5614_v2 }
 0x136   :  { %5720 = vpow2.f32 %v5615_v49  ;;  %v10741_v49 = vld [vmem:[#allocation36_spill] sm:$0xff] }
 0x140   :  { %v5717_v57 = vpop.eup %5716 }
 0x141   :  { %v789_v52 = vadd.f32 1.0, %v5717_v57 }
 0x142   :  { %v5719_v51 = vpop.eup %5718 }
 0x143   :  { %5722 = vrcp.f32 %v789_v52  ;;  %v795_v1 = vadd.f32 1.0, %v5719_v51  ;;  %v5721_v46 = vpop.eup %5720 }
 0x144   :  { %5724 = vtanh.f32 %v784_v55  ;;  %v802_v0 = vadd.f32 1.0, %v5721_v46 }
 0x145   :  { %5726 = vrcp.f32 %v795_v1 }
 0x146   :  { %5728 = vrcp.f32 %v802_v0 }
 0x150   :  { %v5723_v53 = vpop.eup %5722 }
 0x151   :  { %v5725_v63 = vpop.eup %5724 }
 0x152   :  { %v5727_v6 = vpop.eup %5726  ;;  %v807_v54 = vmul.f32 %v5725_v63, %v5723_v53 }
 0x153   :  { %v806_v2 = vmul.f32 0.0, %v5727_v6  ;;  %v5729_v59 = vpop.eup %5728 }
 0x155   :  { %v7039_v62 = vadd.f32 %v807_v54, %v806_v2  ;;  %v1370_v2 = vld [vmem:[%s10445_s1 + $0x1e0] sm:$0xff]  ;;  %v1372_v54 = vld [vmem:[%s10445_s1 + $0x1f0] sm:$0xff] }
 0x157   :  { %5730 = vtanh.f32 %v7039_v62 }
 0x164   :  { %v5731_v5 = vpop.eup %5730 }
 0x165   :  { %v7042_v58 = vmul.f32 %v5731_v5, %v5729_v59  ;;  %v1369_v59 = vld [vmem:[%s10445_s1 + $0x1d8] sm:$0xff]  ;;  %v1366_v5 = vld [vmem:[%s10445_s1 + $0x1c0] sm:$0xff] }
 0x167   :  { %10712 = vst [vmem:[#allocation58_spill] sm:$0xff] %v7042_v58  ;;  %951 = vmatmul.mubr.f32.vlgmr.msra.gmra.mxu0 %v7042_v58  ;;  %1022 = vmatmul.mubr.f32.vlgmr.msra.gmra.mxu1 %v7042_v58  ;;  %v7678_v58 = vld [vmem:[%s10447_s2 + $0x30] sm:$0xff] }
 0x168   :  { %1134 = vmatpush1.msra.mxu0 %v6504_v8  ;;  %1205 = vmatpush1.msra.mxu1 %v6509_v9  ;;  %v10713_v8 = vld [vmem:[#allocation6_spill] sm:$0xff]  ;;  %v10714_v9 = vld [vmem:[#allocation7_spill] sm:$0xff] }
 0x169   :  { %1135 = vmatprep.subr.mxu0 %v6516_v10  ;;  %1206 = vmatprep.subr.mxu1 %v6521_v3  ;;  %v10715_v10 = vld [vmem:[#allocation8_spill] sm:$0xff]  ;;  %v10716_v3 = vld [vmem:[#allocation9_spill] sm:$0xff] }
 0x16a   :  { %1136 = vmatpush1.msra.mxu0 %v6527_v11  ;;  %1207 = vmatpush1.msra.mxu1 %v6532_v12  ;;  %v10717_v11 = vld [vmem:[#allocation10_spill] sm:$0xff]  ;;  %v10718_v12 = vld [vmem:[#allocation11_spill] sm:$0xff] }
 0x16b   :  { %1137 = vmatprep.subr.mxu0 %v6539_v13  ;;  %1208 = vmatprep.subr.mxu1 %v6544_v14  ;;  %v10719_v13 = vld [vmem:[#allocation12_spill] sm:$0xff]  ;;  %v10720_v14 = vld [vmem:[#allocation13_spill] sm:$0xff] }
 0x16c   :  { %1138 = vmatpush1.msra.mxu0 %v6551_v15  ;;  %1209 = vmatpush1.msra.mxu1 %v6556_v16  ;;  %v10721_v15 = vld [vmem:[#allocation14_spill] sm:$0xff]  ;;  %v10722_v16 = vld [vmem:[#allocation15_spill] sm:$0xff] }
 0x16d   :  { %1139 = vmatprep.subr.mxu0 %v6563_v17  ;;  %1210 = vmatprep.subr.mxu1 %v6568_v18  ;;  %v10723_v17 = vld [vmem:[#allocation16_spill] sm:$0xff]  ;;  %v10724_v18 = vld [vmem:[#allocation17_spill] sm:$0xff] }
 0x16e   :  { %1140 = vmatpush1.msra.mxu0 %v6575_v19  ;;  %1211 = vmatpush1.msra.mxu1 %v6580_v20  ;;  %v10725_v19 = vld [vmem:[#allocation18_spill] sm:$0xff]  ;;  %v10726_v20 = vld [vmem:[#allocation19_spill] sm:$0xff] }
 0x16f   :  { %1141 = vmatprep.subr.mxu0 %v6587_v21  ;;  %1212 = vmatprep.subr.mxu1 %v6592_v22  ;;  %v10727_v21 = vld [vmem:[#allocation20_spill] sm:$0xff]  ;;  %v10728_v22 = vld [vmem:[#allocation21_spill] sm:$0xff] }
 0x170   :  { %1142 = vmatpush1.msra.mxu0 %v6599_v23  ;;  %1213 = vmatpush1.msra.mxu1 %v6604_v24  ;;  %v10729_v23 = vld [vmem:[#allocation22_spill] sm:$0xff]  ;;  %v10730_v24 = vld [vmem:[#allocation23_spill] sm:$0xff] }
 0x171   :  { %1143 = vmatprep.subr.mxu0 %v6611_v25  ;;  %1214 = vmatprep.subr.mxu1 %v6616_v26  ;;  %v10731_v25 = vld [vmem:[#allocation24_spill] sm:$0xff]  ;;  %v10732_v26 = vld [vmem:[#allocation25_spill] sm:$0xff] }
 0x172   :  { %1144 = vmatpush1.msra.mxu0 %v6623_v27  ;;  %1215 = vmatpush1.msra.mxu1 %v6628_v28  ;;  %v10733_v27 = vld [vmem:[#allocation26_spill] sm:$0xff]  ;;  %v10734_v28 = vld [vmem:[#allocation27_spill] sm:$0xff]  ;;  %10760 = vst [vmem:[#allocation24_spill] sm:$0xff] %v7678_v58  ;;  %10761 = vst [vmem:[#allocation25_spill] sm:$0xff] %v7683_v4 }
 0x173   :  { %1145 = vmatprep.subr.mxu0 %v6635_v29  ;;  %1216 = vmatprep.subr.mxu1 %v6640_v30  ;;  %v10735_v29 = vld [vmem:[#allocation28_spill] sm:$0xff]  ;;  %v10736_v30 = vmov 0.0  }
 0x174   :  { %1146 = vmatpush1.msra.mxu0 %v6647_v31  ;;  %1217 = vmatpush1.msra.mxu1 %v6652_v32  ;;  %v10737_v31 = vld [vmem:[#allocation29_spill] sm:$0xff]  ;;  %v1371_v32 = vld [vmem:[%s10445_s1 + $0x1e8] sm:$0xff] }
 0x175   :  { %1147 = vmatprep.subr.mxu0 %v6659_v33  ;;  %1218 = vmatprep.subr.mxu1 %v6664_v34  ;;  %v1373_v33 = vld [vmem:[%s10445_s1 + $0x1f8] sm:$0xff] }
 0x176   :  { %1148 = vmatpush1.msra.mxu0 %v6671_v35  ;;  %1219 = vmatpush1.msra.mxu1 %v6676_v36  ;;  %v10738_v35 = vld [vmem:[#allocation34_spill] sm:$0xff] }
 0x177   :  { %1149 = vmatprep.subr.mxu0 %v6683_v37  ;;  %1220 = vmatprep.subr.mxu1 %v6688_v38 }
 0x178   :  { %1150 = vmatpush1.msra.mxu0 %v6695_v39  ;;  %1221 = vmatpush1.msra.mxu1 %v6700_v40  ;;  %v10739_v39 = vld [vmem:[#allocation35_spill] sm:$0xff] }
 0x179   :  { %1151 = vmatprep.subr.mxu0 %v6707_v41  ;;  %1222 = vmatprep.subr.mxu1 %v6712_v42 }
 0x17a   :  { %1152 = vmatpush1.msra.mxu0 %v6719_v43  ;;  %1223 = vmatpush1.msra.mxu1 %v6724_v44  ;;  %v10740_v44 = vld [vmem:[#allocation37_spill] sm:$0xff] }
 0x17b   :  { %1153 = vmatprep.subr.mxu0 %v10713_v8  ;;  %1224 = vmatprep.subr.mxu1 %v10714_v9  ;;  %v1368_v8 = vld [vmem:[%s10445_s1 + $0x1d0] sm:$0xff]  ;;  %v1363_v9 = vld [vmem:[%s10445_s1 + $0x1a8] sm:$0xff] }
 0x17c   :  { %1154 = vmatpush1.msra.mxu0 %v10715_v10  ;;  %1225 = vmatpush1.msra.mxu1 %v10716_v3  ;;  %v1365_v10 = vld [vmem:[%s10445_s1 + $0x1b8] sm:$0xff]  ;;  %v1362_v3 = vld [vmem:[%s10445_s1 + $0x1a0] sm:$0xff] }
 0x17d   :  { %1155 = vmatprep.subr.mxu0 %v10717_v11  ;;  %1226 = vmatprep.subr.mxu1 %v10718_v12  ;;  %v1364_v11 = vld [vmem:[%s10445_s1 + $0x1b0] sm:$0xff]  ;;  %v1359_v12 = vld [vmem:[%s10445_s1 + $0x188] sm:$0xff] }
 0x17e   :  { %1156 = vmatpush1.msra.mxu0 %v10719_v13  ;;  %1227 = vmatpush1.msra.mxu1 %v10720_v14  ;;  %v1361_v13 = vld [vmem:[%s10445_s1 + $0x198] sm:$0xff]  ;;  %v1358_v14 = vld [vmem:[%s10445_s1 + $0x180] sm:$0xff] }
 0x17f   :  { %1157 = vmatprep.subr.mxu0 %v10721_v15  ;;  %1228 = vmatprep.subr.mxu1 %v10722_v16  ;;  %v1355_v15 = vld [vmem:[%s10445_s1 + $0x168] sm:$0xff]  ;;  %v1360_v16 = vld [vmem:[%s10445_s1 + $0x190] sm:$0xff] }
 0x180   :  { %1158 = vmatpush1.msra.mxu0 %v10723_v17  ;;  %1229 = vmatpush1.msra.mxu1 %v10724_v18  ;;  %v1354_v17 = vld [vmem:[%s10445_s1 + $0x160] sm:$0xff]  ;;  %v1357_v18 = vld [vmem:[%s10445_s1 + $0x178] sm:$0xff] }
 0x181   :  { %1159 = vmatprep.subr.mxu0 %v10725_v19  ;;  %1230 = vmatprep.subr.mxu1 %v10726_v20  ;;  %v1351_v19 = vld [vmem:[%s10445_s1 + $0x148] sm:$0xff]  ;;  %v1356_v20 = vld [vmem:[%s10445_s1 + $0x170] sm:$0xff] }
 0x182   :  { %1160 = vmatpush1.msra.mxu0 %v10727_v21  ;;  %1231 = vmatpush1.msra.mxu1 %v10728_v22  ;;  %v1350_v21 = vld [vmem:[%s10445_s1 + $0x140] sm:$0xff]  ;;  %v1353_v22 = vld [vmem:[%s10445_s1 + $0x158] sm:$0xff] }
 0x183   :  { %1161 = vmatprep.subr.mxu0 %v10729_v23  ;;  %1232 = vmatprep.subr.mxu1 %v10730_v24  ;;  %v1347_v23 = vld [vmem:[%s10445_s1 + $0x128] sm:$0xff]  ;;  %v1352_v24 = vld [vmem:[%s10445_s1 + $0x150] sm:$0xff] }
 0x184   :  { %1162 = vmatpush1.msra.mxu0 %v10731_v25  ;;  %1233 = vmatpush1.msra.mxu1 %v10732_v26  ;;  %v1346_v25 = vld [vmem:[%s10445_s1 + $0x120] sm:$0xff]  ;;  %v1349_v26 = vld [vmem:[%s10445_s1 + $0x138] sm:$0xff] }
 0x185   :  { %1163 = vmatprep.subr.mxu0 %v10733_v27  ;;  %1234 = vmatprep.subr.mxu1 %v10734_v28  ;;  %v1343_v27 = vld [vmem:[%s10445_s1 + $0x108] sm:$0xff]  ;;  %v1348_v28 = vld [vmem:[%s10445_s1 + $0x130] sm:$0xff] }
 0x186   :  { %1164 = vmatpush1.msra.mxu0 %v10735_v29  ;;  %1197 = vmatprep.mubr.f32.mxu0 %v10736_v30  ;;  %v1342_v29 = vld [vmem:[%s10445_s1 + $0x100] sm:$0xff] }
 0x187   :  { %1235 = vmatpush1.msra.mxu1 %v10737_v31  ;;  %1268 = vmatprep.mubr.f32.mxu1 %v10736_v30  ;;  %v1345_v31 = vld [vmem:[%s10445_s1 + $0x118] sm:$0xff] }
 0x188   :  { %1396 = vmatprep.subr.mxu0 %v1371_v32  ;;  %1473 = vmatprep.subr.mxu1 %v1373_v33  ;;  %v1339_v32 = vld [vmem:[%s10445_s1 + $0xe8] sm:$0xff]  ;;  %v1344_v33 = vld [vmem:[%s10445_s1 + $0x110] sm:$0xff] }
 0x227   :  { %v952_v34 = vpop.f32.mrf.mxu0  ;;  %v1023_v41 = vpop.f32.mrf.mxu1 }
 0x228   :  { %v1028_v36 = vadd.f32 %v952_v34, %v10738_v35  ;;  %v1030_v50 = vadd.f32 %v1023_v41, %v10741_v49  ;;  %v1338_v34 = vld [vmem:[%s10445_s1 + $0xe0] sm:$0xff]  ;;  %v1341_v35 = vld [vmem:[%s10445_s1 + $0xf8] sm:$0xff]  ;;  %v1336_v41 = vld [vmem:[%s10445_s1 + $0xd0] sm:$0xff] }
 0x229   :  { %v954_v37 = vpop.f32.mrf.mxu0  ;;  %v1025_v43 = vpop.f32.mrf.mxu1  ;;  %v1326_v49 = vld [vmem:[%s10445_s1 + $0x80] sm:$0xff] }
 0x22a   :  { %v5616_v38 = vmul.f32 -1.442695, %v1028_v36  ;;  %v1029_v40 = vadd.f32 %v954_v37, %v10739_v39  ;;  %v1031_v57 = vadd.f32 %v1025_v43, %v10740_v44  ;;  %v1335_v36 = vld [vmem:[%s10445_s1 + $0xc8] sm:$0xff]  ;;  %v1340_v37 = vld [vmem:[%s10445_s1 + $0xf0] sm:$0xff]  ;;  %v1337_v39 = vld [vmem:[%s10445_s1 + $0xd8] sm:$0xff] }
 0x22b   :  { %v1333_v43 = vld [vmem:[%s10445_s1 + $0xb8] sm:$0xff]  ;;  %v1327_v44 = vld [vmem:[%s10445_s1 + $0x88] sm:$0xff] }
 0x22c   :  { %5732 = vpow2.f32 %v5616_v38  ;;  %v5617_v42 = vmul.f32 -1.442695, %v1029_v40  ;;  %v5618_v7 = vmul.f32 -1.442695, %v1031_v57  ;;  %v1334_v38 = vld [vmem:[%s10445_s1 + $0xc0] sm:$0xff]  ;;  %v1331_v40 = vld [vmem:[%s10445_s1 + $0xa8] sm:$0xff] }
 0x22d   :  { %v1332_v57 = vld [vmem:[%s10445_s1 + $0xb0] sm:$0xff] }
 0x22e   :  { %5734 = vpow2.f32 %v5617_v42  ;;  %v1330_v42 = vld [vmem:[%s10445_s1 + $0xa0] sm:$0xff] }
 0x22f   :  { %5736 = vtanh.f32 %v1030_v50  ;;  %v1329_v50 = vld [vmem:[%s10445_s1 + $0x98] sm:$0xff] }
 0x230   :  { %5738 = vpow2.f32 %v5618_v7  ;;  %v1323_v7 = vld [vmem:[%s10445_s1 + $0x68] sm:$0xff] }
 0x239   :  { %v5733_v45 = vpop.eup %5732 }
 0x23a   :  { %v1035_v47 = vadd.f32 1.0, %v5733_v45  ;;  %v1328_v45 = vld [vmem:[%s10445_s1 + $0x90] sm:$0xff] }
 0x23b   :  { %v5735_v52 = vpop.eup %5734 }
 0x23c   :  { %5740 = vrcp.f32 %v1035_v47  ;;  %v1041_v61 = vadd.f32 1.0, %v5735_v52  ;;  %v5737_v48 = vpop.eup %5736  ;;  %v1322_v47 = vld [vmem:[%s10445_s1 + $0x60] sm:$0xff]  ;;  %v1325_v52 = vld [vmem:[%s10445_s1 + $0x78] sm:$0xff] }
 0x23d   :  { %v5739_v60 = vpop.eup %5738 }
 0x23e   :  { %5742 = vrcp.f32 %v1041_v61  ;;  %v1048_v1 = vadd.f32 1.0, %v5739_v60  ;;  %v1319_v61 = vld [vmem:[%s10445_s1 + $0x48] sm:$0xff]  ;;  %v1318_v60 = vld [vmem:[%s10445_s1 + $0x40] sm:$0xff] }
 0x240   :  { %5744 = vrcp.f32 %v1048_v1  ;;  %v1314_v1 = vld [vmem:[%s10445_s1 + $0x20] sm:$0xff] }
 0x249   :  { %v5741_v56 = vpop.eup %5740 }
 0x24a   :  { %v1053_v55 = vmul.f32 %v5741_v56, %v5737_v48  ;;  %v1324_v48 = vld [vmem:[%s10445_s1 + $0x70] sm:$0xff]  ;;  %v1321_v56 = vld [vmem:[%s10445_s1 + $0x58] sm:$0xff] }
 0x24b   :  { %v5743_v51 = vpop.eup %5742 }
 0x24c   :  { %v1052_v46 = vmul.f32 %v5743_v51, %v7039_v62  ;;  %v1367_v62 = vld [vmem:[%s10445_s1 + $0x1c8] sm:$0xff]  ;;  %v1320_v51 = vld [vmem:[%s10445_s1 + $0x50] sm:$0xff] }
 0x24d   :  { %v5745_v63 = vpop.eup %5744 }
 0x24e   :  { %v7121_v53 = vadd.f32 %v1053_v55, %v1052_v46  ;;  %v1315_v55 = vld [vmem:[%s10445_s1 + $0x28] sm:$0xff]  ;;  %v1317_v46 = vld [vmem:[%s10445_s1 + $0x38] sm:$0xff] }
 0x250   :  { %5746 = vtanh.f32 %v7121_v53 }
 0x25d   :  { %v5747_v6 = vpop.eup %5746 }
 0x25e   :  { %v7124_v0 = vmul.f32 %v5747_v6, %v5745_v63  ;;  %v1311_v63 = vld [vmem:[%s10445_s1 + $0x8] sm:$0xff]  ;;  %v1316_v6 = vld [vmem:[%s10445_s1 + $0x30] sm:$0xff] }
 0x260   :  { %10742 = vst [vmem:[#allocation6_spill] sm:$0xff] %v7124_v0  ;;  %1198 = vmatmul.mubr.f32.vlgmr.msra.gmra.mxu0 %v7124_v0  ;;  %1269 = vmatmul.mubr.f32.vlgmr.msra.gmra.mxu1 %v7124_v0  ;;  %v7671_v0 = vld [vmem:[%s10447_s2 + $0x20] sm:$0xff] }
 0x261   :  { %1397 = vmatpush1.msra.mxu0 %v1370_v2  ;;  %1474 = vmatpush1.msra.mxu1 %v1372_v54  ;;  %v1310_v2 = vld [vmem:[%s10445_s1] sm:$0xff]  ;;  %v1313_v54 = vld [vmem:[%s10445_s1 + $0x18] sm:$0xff]  ;;  %10759 = vst [vmem:[#allocation23_spill] sm:$0xff] %v7671_v0 }
 0x262   :  { %1398 = vmatprep.subr.mxu0 %v1367_v62  ;;  %1475 = vmatprep.subr.mxu1 %v1369_v59  ;;  %v1308_v62 = vld [vmem:[%s10446_s0 + $0x30] sm:$0xff] }
 0x263   :  { %1399 = vmatpush1.msra.mxu0 %v1366_v5  ;;  %1476 = vmatpush1.msra.mxu1 %v1368_v8  ;;  %v1312_v59 = vld [vmem:[%s10445_s1 + $0x10] sm:$0xff]  ;;  %v7322_v5 = vld [vmem:[%s10447_s2 + $0x1e8] sm:$0xff]  ;;  %v7327_v8 = vld [vmem:[%s10447_s2 + $0x1f8] sm:$0xff] }
 0x264   :  { %1400 = vmatprep.subr.mxu0 %v1363_v9  ;;  %1477 = vmatprep.subr.mxu1 %v1365_v10  ;;  %10743 = vst [vmem:[#allocation7_spill] sm:$0xff] %v7322_v5  ;;  %10744 = vst [vmem:[#allocation8_spill] sm:$0xff] %v7327_v8  ;;  %v7334_v9 = vld [vmem:[%s10447_s2 + $0x1e0] sm:$0xff]  ;;  %v7339_v10 = vld [vmem:[%s10447_s2 + $0x1f0] sm:$0xff] }
 0x265   :  { %1401 = vmatpush1.msra.mxu0 %v1362_v3  ;;  %1478 = vmatpush1.msra.mxu1 %v1364_v11  ;;  %v7345_v3 = vld [vmem:[%s10447_s2 + $0x1c8] sm:$0xff]  ;;  %v7350_v11 = vld [vmem:[%s10447_s2 + $0x1d8] sm:$0xff] }
 0x266   :  { %1402 = vmatprep.subr.mxu0 %v1359_v12  ;;  %1479 = vmatprep.subr.mxu1 %v1361_v13  ;;  %v7357_v12 = vld [vmem:[%s10447_s2 + $0x1c0] sm:$0xff]  ;;  %v7362_v13 = vld [vmem:[%s10447_s2 + $0x1d0] sm:$0xff] }
 0x267   :  { %1403 = vmatpush1.msra.mxu0 %v1358_v14  ;;  %1460 = vmatprep.mubr.f32.mxu0 %v10736_v30  ;;  %v7369_v14 = vld [vmem:[%s10447_s2 + $0x1a8] sm:$0xff] }
 0x268   :  { %1537 = vmatprep.mubr.f32.mxu1 %v10736_v30  ;;  %1404 = vmatprep.subr.mxu0 %v1355_v15  ;;  %v7374_v15 = vld [vmem:[%s10447_s2 + $0x1b8] sm:$0xff] }
 0x269   :  { %1480 = vmatpush1.msra.mxu1 %v1360_v16  ;;  %1405 = vmatpush1.msra.mxu0 %v1354_v17  ;;  %v7381_v16 = vld [vmem:[%s10447_s2 + $0x1a0] sm:$0xff]  ;;  %v7386_v17 = vld [vmem:[%s10447_s2 + $0x1b0] sm:$0xff] }
 0x26a   :  { %1481 = vmatprep.subr.mxu1 %v1357_v18  ;;  %1406 = vmatprep.subr.mxu0 %v1351_v19  ;;  %v7393_v18 = vld [vmem:[%s10447_s2 + $0x188] sm:$0xff]  ;;  %v7398_v19 = vld [vmem:[%s10447_s2 + $0x198] sm:$0xff] }
 0x26b   :  { %1482 = vmatpush1.msra.mxu1 %v1356_v20  ;;  %1407 = vmatpush1.msra.mxu0 %v1350_v21  ;;  %v7405_v20 = vld [vmem:[%s10447_s2 + $0x180] sm:$0xff]  ;;  %v7410_v21 = vld [vmem:[%s10447_s2 + $0x190] sm:$0xff] }
 0x26c   :  { %1483 = vmatprep.subr.mxu1 %v1353_v22  ;;  %1408 = vmatprep.subr.mxu0 %v1347_v23  ;;  %v7417_v22 = vld [vmem:[%s10447_s2 + $0x168] sm:$0xff]  ;;  %v7422_v23 = vld [vmem:[%s10447_s2 + $0x178] sm:$0xff] }
 0x26d   :  { %1484 = vmatpush1.msra.mxu1 %v1352_v24  ;;  %1409 = vmatpush1.msra.mxu0 %v1346_v25  ;;  %v7429_v24 = vld [vmem:[%s10447_s2 + $0x160] sm:$0xff]  ;;  %v7434_v25 = vld [vmem:[%s10447_s2 + $0x170] sm:$0xff] }
 0x26e   :  { %1485 = vmatprep.subr.mxu1 %v1349_v26  ;;  %1410 = vmatprep.subr.mxu0 %v1343_v27  ;;  %v7441_v26 = vld [vmem:[%s10447_s2 + $0x148] sm:$0xff]  ;;  %v7446_v27 = vld [vmem:[%s10447_s2 + $0x158] sm:$0xff] }
 0x26f   :  { %1486 = vmatpush1.msra.mxu1 %v1348_v28  ;;  %1411 = vmatpush1.msra.mxu0 %v1342_v29  ;;  %v7453_v28 = vld [vmem:[%s10447_s2 + $0x140] sm:$0xff]  ;;  %v7458_v29 = vld [vmem:[%s10447_s2 + $0x150] sm:$0xff] }
 0x270   :  { %1487 = vmatprep.subr.mxu1 %v1345_v31  ;;  %1412 = vmatprep.subr.mxu0 %v1339_v32  ;;  %v7465_v31 = vld [vmem:[%s10447_s2 + $0x128] sm:$0xff]  ;;  %v7470_v32 = vld [vmem:[%s10447_s2 + $0x138] sm:$0xff] }
 0x271   :  { %1488 = vmatpush1.msra.mxu1 %v1344_v33  ;;  %1413 = vmatpush1.msra.mxu0 %v1338_v34  ;;  %v7477_v33 = vld [vmem:[%s10447_s2 + $0x120] sm:$0xff]  ;;  %v7482_v34 = vld [vmem:[%s10447_s2 + $0x130] sm:$0xff] }
 0x272   :  { %1489 = vmatprep.subr.mxu1 %v1341_v35  ;;  %1414 = vmatprep.subr.mxu0 %v1335_v36  ;;  %v7489_v35 = vld [vmem:[%s10447_s2 + $0x108] sm:$0xff]  ;;  %v7494_v36 = vld [vmem:[%s10447_s2 + $0x118] sm:$0xff] }
 0x273   :  { %1490 = vmatpush1.msra.mxu1 %v1340_v37  ;;  %1415 = vmatpush1.msra.mxu0 %v1334_v38  ;;  %v7501_v37 = vld [vmem:[%s10447_s2 + $0x100] sm:$0xff]  ;;  %v7506_v38 = vld [vmem:[%s10447_s2 + $0x110] sm:$0xff] }
 0x274   :  { %1491 = vmatprep.subr.mxu1 %v1337_v39  ;;  %1416 = vmatprep.subr.mxu0 %v1331_v40  ;;  %v7513_v39 = vld [vmem:[%s10447_s2 + $0xe8] sm:$0xff]  ;;  %v7518_v40 = vld [vmem:[%s10447_s2 + $0xf8] sm:$0xff] }
 0x275   :  { %1492 = vmatpush1.msra.mxu1 %v1336_v41  ;;  %1417 = vmatpush1.msra.mxu0 %v1330_v42  ;;  %v7523_v41 = vld [vmem:[%s10447_s2 + $0xe0] sm:$0xff]  ;;  %v7530_v42 = vld [vmem:[%s10447_s2 + $0xf0] sm:$0xff] }
 0x276   :  { %1493 = vmatprep.subr.mxu1 %v1333_v43  ;;  %1418 = vmatprep.subr.mxu0 %v1327_v44  ;;  %v7535_v43 = vld [vmem:[%s10447_s2 + $0xc8] sm:$0xff]  ;;  %v7540_v44 = vld [vmem:[%s10447_s2 + $0xd8] sm:$0xff] }
 0x277   :  { %1494 = vmatpush1.msra.mxu1 %v1332_v57  ;;  %1419 = vmatpush1.msra.mxu0 %v1326_v49  ;;  %v7547_v57 = vld [vmem:[%s10447_s2 + $0xc0] sm:$0xff]  ;;  %v7552_v49 = vld [vmem:[%s10447_s2 + $0xd0] sm:$0xff] }
 0x278   :  { %1495 = vmatprep.subr.mxu1 %v1329_v50  ;;  %1420 = vmatprep.subr.mxu0 %v1323_v7  ;;  %v7557_v50 = vld [vmem:[%s10447_s2 + $0xa8] sm:$0xff]  ;;  %v7564_v7 = vld [vmem:[%s10447_s2 + $0xb8] sm:$0xff] }
 0x279   :  { %1496 = vmatpush1.msra.mxu1 %v1328_v45  ;;  %1421 = vmatpush1.msra.mxu0 %v1322_v47  ;;  %v7569_v45 = vld [vmem:[%s10447_s2 + $0xa0] sm:$0xff]  ;;  %v7576_v47 = vld [vmem:[%s10447_s2 + $0xb0] sm:$0xff] }
 0x27a   :  { %1497 = vmatprep.subr.mxu1 %v1325_v52  ;;  %1422 = vmatprep.subr.mxu0 %v1319_v61  ;;  %v7581_v52 = vld [vmem:[%s10447_s2 + $0x88] sm:$0xff]  ;;  %v7588_v61 = vld [vmem:[%s10447_s2 + $0x98] sm:$0xff] }
 0x27b   :  { %1498 = vmatpush1.msra.mxu1 %v1324_v48  ;;  %1423 = vmatpush1.msra.mxu0 %v1318_v60  ;;  %10745 = vst [vmem:[#allocation9_spill] sm:$0xff] %v7581_v52  ;;  %10746 = vst [vmem:[#allocation10_spill] sm:$0xff] %v7588_v61  ;;  %v7593_v48 = vld [vmem:[%s10447_s2 + $0x80] sm:$0xff]  ;;  %v7600_v60 = vld [vmem:[%s10447_s2 + $0x90] sm:$0xff] }
 0x27c   :  { %1499 = vmatprep.subr.mxu1 %v1321_v56  ;;  %1424 = vmatprep.subr.mxu0 %v1315_v55  ;;  %10747 = vst [vmem:[#allocation11_spill] sm:$0xff] %v7593_v48  ;;  %10748 = vst [vmem:[#allocation12_spill] sm:$0xff] %v7600_v60  ;;  %v7605_v56 = vld [vmem:[%s10447_s2 + $0x68] sm:$0xff]  ;;  %v7612_v55 = vld [vmem:[%s10447_s2 + $0x78] sm:$0xff] }
 0x27d   :  { %1500 = vmatpush1.msra.mxu1 %v1320_v51  ;;  %1425 = vmatpush1.msra.mxu0 %v1314_v1  ;;  %10749 = vst [vmem:[#allocation13_spill] sm:$0xff] %v7605_v56  ;;  %10750 = vst [vmem:[#allocation14_spill] sm:$0xff] %v7612_v55  ;;  %v7619_v51 = vld [vmem:[%s10447_s2 + $0x60] sm:$0xff]  ;;  %v7624_v1 = vld [vmem:[%s10447_s2 + $0x70] sm:$0xff] }
 0x27e   :  { %1501 = vmatprep.subr.mxu1 %v1317_v46  ;;  %1426 = vmatprep.subr.mxu0 %v1311_v63  ;;  %10751 = vst [vmem:[#allocation15_spill] sm:$0xff] %v7619_v51  ;;  %10752 = vst [vmem:[#allocation16_spill] sm:$0xff] %v7624_v1  ;;  %v1309_v46 = vld [vmem:[%s10446_s0 + $0x38] sm:$0xff]  ;;  %v7634_v63 = vld [vmem:[%s10447_s2 + $0x48] sm:$0xff] }
 0x27f   :  { %1502 = vmatpush1.msra.mxu1 %v1316_v6  ;;  %1427 = vmatpush1.msra.mxu0 %v1310_v2  ;;  %10753 = vst [vmem:[#allocation17_spill] sm:$0xff] %v7634_v63  ;;  %v7641_v6 = vld [vmem:[%s10447_s2 + $0x58] sm:$0xff]  ;;  %v7648_v2 = vld [vmem:[%s10447_s2 + $0x40] sm:$0xff] }
 0x280   :  { %1503 = vmatprep.subr.mxu1 %v1313_v54  ;;  %1461 = vmatmul.mubr.f32.vlgmr.msra.gmra.mxu0 %v1308_v62  ;;  %10754 = vst [vmem:[#allocation18_spill] sm:$0xff] %v7641_v6  ;;  %10755 = vst [vmem:[#allocation19_spill] sm:$0xff] %v7648_v2  ;;  %v7653_v54 = vld [vmem:[%s10447_s2 + $0x50] sm:$0xff] }
 0x281   :  { %1504 = vmatpush1.msra.mxu1 %v1312_v59  ;;  %1630 = vmatprep.subr.mxu0 %v7322_v5  ;;  %10756 = vst [vmem:[#allocation20_spill] sm:$0xff] %v7653_v54  ;;  %v7666_v59 = vld [vmem:[%s10447_s2 + $0x38] sm:$0xff] }
 0x282   :  { %1701 = vmatprep.subr.mxu1 %v7327_v8  ;;  %1538 = vmatmul.mubr.f32.vlgmr.msra.gmra.mxu1 %v1308_v62  ;;  %v7659_v62 = vld [vmem:[%s10447_s2 + $0x28] sm:$0xff]  ;;  %10758 = vst [vmem:[#allocation22_spill] sm:$0xff] %v7666_v59 }
 0x283   :  { %1631 = vmatpush1.msra.mxu0 %v7334_v9  ;;  %1702 = vmatpush1.msra.mxu1 %v7339_v10  ;;  %10757 = vst [vmem:[#allocation21_spill] sm:$0xff] %v7659_v62 }
 0x284   :  { %1632 = vmatprep.subr.mxu0 %v7345_v3  ;;  %1703 = vmatprep.subr.mxu1 %v7350_v11 }
 0x285   :  { %1633 = vmatpush1.msra.mxu0 %v7357_v12  ;;  %1704 = vmatpush1.msra.mxu1 %v7362_v13 }
 0x286   :  { %1634 = vmatprep.subr.mxu0 %v7369_v14  ;;  %1705 = vmatprep.subr.mxu1 %v7374_v15 }
 0x287   :  { %1635 = vmatpush1.msra.mxu0 %v7381_v16  ;;  %1706 = vmatpush1.msra.mxu1 %v7386_v17 }
 0x288   :  { %1636 = vmatprep.subr.mxu0 %v7393_v18  ;;  %1707 = vmatprep.subr.mxu1 %v7398_v19 }
 0x289   :  { %1637 = vmatpush1.msra.mxu0 %v7405_v20  ;;  %1708 = vmatpush1.msra.mxu1 %v7410_v21 }
 0x28a   :  { %1638 = vmatprep.subr.mxu0 %v7417_v22  ;;  %1709 = vmatprep.subr.mxu1 %v7422_v23 }
 0x28b   :  { %1639 = vmatpush1.msra.mxu0 %v7429_v24  ;;  %1710 = vmatpush1.msra.mxu1 %v7434_v25 }
 0x28c   :  { %1640 = vmatprep.subr.mxu0 %v7441_v26  ;;  %1711 = vmatprep.subr.mxu1 %v7446_v27 }
 0x28d   :  { %1641 = vmatpush1.msra.mxu0 %v7453_v28  ;;  %1712 = vmatpush1.msra.mxu1 %v7458_v29 }
 0x28e   :  { %1642 = vmatprep.subr.mxu0 %v7465_v31  ;;  %1713 = vmatprep.subr.mxu1 %v7470_v32 }
 0x28f   :  { %1643 = vmatpush1.msra.mxu0 %v7477_v33  ;;  %1714 = vmatpush1.msra.mxu1 %v7482_v34 }
 0x290   :  { %1644 = vmatprep.subr.mxu0 %v7489_v35  ;;  %1715 = vmatprep.subr.mxu1 %v7494_v36 }
 0x291   :  { %1645 = vmatpush1.msra.mxu0 %v7501_v37  ;;  %1716 = vmatpush1.msra.mxu1 %v7506_v38 }
 0x292   :  { %1646 = vmatprep.subr.mxu0 %v7513_v39  ;;  %1717 = vmatprep.subr.mxu1 %v7518_v40 }
 0x293   :  { %1647 = vmatpush1.msra.mxu0 %v7523_v41  ;;  %1718 = vmatpush1.msra.mxu1 %v7530_v42 }
 0x294   :  { %1648 = vmatprep.subr.mxu0 %v7535_v43  ;;  %1719 = vmatprep.subr.mxu1 %v7540_v44 }
 0x295   :  { %1649 = vmatpush1.msra.mxu0 %v7547_v57  ;;  %1720 = vmatpush1.msra.mxu1 %v7552_v49 }
 0x296   :  { %1650 = vmatprep.subr.mxu0 %v7557_v50  ;;  %1721 = vmatprep.subr.mxu1 %v7564_v7 }
 0x297   :  { %1651 = vmatpush1.msra.mxu0 %v7569_v45  ;;  %1722 = vmatpush1.msra.mxu1 %v7576_v47 }
 0x298   :  { %1652 = vmatprep.subr.mxu0 %v7581_v52  ;;  %1723 = vmatprep.subr.mxu1 %v7588_v61 }
 0x299   :  { %1653 = vmatpush1.msra.mxu0 %v7593_v48  ;;  %1724 = vmatpush1.msra.mxu1 %v7600_v60 }
 0x29a   :  { %1654 = vmatprep.subr.mxu0 %v7605_v56  ;;  %1725 = vmatprep.subr.mxu1 %v7612_v55  ;;  %v10768_v55 = vld [vmem:[#allocation40_spill] sm:$0xff] }
 0x29b   :  { %1466 = vmatprep.mubr.f32.mxu0 %v10736_v30  ;;  %1655 = vmatpush1.msra.mxu0 %v7619_v51  ;;  %v10767_v51 = vld [vmem:[#allocation41_spill] sm:$0xff] }
 0x29c   :  { %1726 = vmatpush1.msra.mxu1 %v7624_v1  ;;  %1467 = vmatmul.mubr.f32.gmra.mxu0 %v1309_v46 }
 0x29d   :  { %1656 = vmatprep.subr.mxu0 %v7634_v63  ;;  %1727 = vmatprep.subr.mxu1 %v7641_v6  ;;  %v7689_v6 = vld [vmem:[%s10447_s2 + $0x18] sm:$0xff] }
 0x29e   :  { %1543 = vmatprep.mubr.f32.mxu1 %v10736_v30  ;;  %1657 = vmatpush1.msra.mxu0 %v7648_v2  ;;  %10762 = vst [vmem:[#allocation26_spill] sm:$0xff] %v7689_v6 }
 0x29f   :  { %1728 = vmatpush1.msra.mxu1 %v7653_v54  ;;  %1658 = vmatprep.subr.mxu0 %v7659_v62  ;;  %v7694_v54 = vld [vmem:[%s10447_s2] sm:$0xff] }
 0x2a0   :  { %1544 = vmatmul.mubr.f32.gmra.mxu1 %v1309_v46  ;;  %10763 = vst [vmem:[#allocation27_spill] sm:$0xff] %v7694_v54  ;;  %1729 = vmatprep.subr.mxu1 %v7666_v59  ;;  %v7701_v46 = vld [vmem:[%s10447_s2 + $0x10] sm:$0xff]  ;;  %v10765_v59 = vld [vmem:[#allocation38_spill] sm:$0xff] }
 0x2a1   :  { %1659 = vmatpush1.msra.mxu0 %v7671_v0  ;;  %10764 = vst [vmem:[#allocation28_spill] sm:$0xff] %v7701_v46  ;;  %1730 = vmatpush1.msra.mxu1 %v7678_v58 }
 0x2a2   :  { %1660 = vmatprep.subr.mxu0 %v7683_v4  ;;  %1731 = vmatprep.subr.mxu1 %v7689_v6  ;;  %v10766_v4 = vld [vmem:[#allocation39_spill] sm:$0xff] }
 0x2a3   :  { %1661 = vmatpush1.msra.mxu0 %v7694_v54  ;;  %1694 = vmatprep.mubr.f32.mxu0 %v10736_v30 }
 0x2a4   :  { %1732 = vmatpush1.msra.mxu1 %v7701_v46  ;;  %1765 = vmatprep.mubr.f32.mxu1 %v10736_v30 }
 0x2a5   :  { %1877 = vmatprep.subr.mxu0 %v7322_v5  ;;  %1948 = vmatprep.subr.mxu1 %v7327_v8 }
 0x320   :  { %v1199_v0 = vpop.f32.mrf.mxu0  ;;  %v1270_v6 = vpop.f32.mrf.mxu1 }
 0x321   :  { %v1275_v62 = vadd.f32 %v1199_v0, %v10765_v59  ;;  %v1277_v30 = vadd.f32 %v1270_v6, %v10768_v55  ;;  %v10775_v6 = vld [vmem:[#allocation17_spill] sm:$0xff] }
 0x322   :  { %v1201_v58 = vpop.f32.mrf.mxu0  ;;  %v1272_v1 = vpop.f32.mrf.mxu1 }
 0x323   :  { %v5619_v2 = vmul.f32 -1.442695, %v1275_v62  ;;  %v1276_v63 = vadd.f32 %v1201_v58, %v10766_v4  ;;  %v1278_v46 = vadd.f32 %v1272_v1, %v10767_v51  ;;  %v10774_v1 = vld [vmem:[#allocation16_spill] sm:$0xff] }
 0x325   :  { %5748 = vpow2.f32 %v5619_v2  ;;  %v5620_v54 = vmul.f32 -1.442695, %v1276_v63  ;;  %v5621_v56 = vmul.f32 -1.442695, %v1278_v46  ;;  %v10776_v46 = vld [vmem:[#allocation18_spill] sm:$0xff] }
 0x327   :  { %5750 = vpow2.f32 %v5620_v54 }
 0x328   :  { %5752 = vtanh.f32 %v1277_v30 }
 0x329   :  { %5754 = vpow2.f32 %v5621_v56  ;;  %v10773_v56 = vld [vmem:[#allocation15_spill] sm:$0xff] }
 0x332   :  { %v5749_v5 = vpop.eup %5748 }
 0x333   :  { %v1282_v60 = vadd.f32 1.0, %v5749_v5 }
 0x334   :  { %v5751_v8 = vpop.eup %5750 }
 0x335   :  { %5756 = vrcp.f32 %v1282_v60  ;;  %v1288_v0 = vadd.f32 1.0, %v5751_v8  ;;  %v5753_v62 = vpop.eup %5752  ;;  %v10771_v8 = vld [vmem:[#allocation13_spill] sm:$0xff]  ;;  %v10772_v60 = vld [vmem:[#allocation14_spill] sm:$0xff] }
 0x336   :  { %v5755_v4 = vpop.eup %5754 }
 0x337   :  { %5758 = vrcp.f32 %v1288_v0  ;;  %v1295_v54 = vadd.f32 1.0, %v5755_v4  ;;  %v10777_v0 = vld [vmem:[#allocation19_spill] sm:$0xff]  ;;  %v10779_v4 = vld [vmem:[#allocation21_spill] sm:$0xff] }
 0x339   :  { %5760 = vrcp.f32 %v1295_v54  ;;  %v10783_v54 = vld [vmem:[#allocation25_spill] sm:$0xff] }
 0x342   :  { %v5757_v58 = vpop.eup %5756 }
 0x343   :  { %v1300_v2 = vmul.f32 %v5757_v58, %v5753_v62  ;;  %v10778_v62 = vld [vmem:[#allocation20_spill] sm:$0xff]  ;;  %v10780_v58 = vld [vmem:[#allocation22_spill] sm:$0xff] }
 0x344   :  { %v5759_v63 = vpop.eup %5758 }
 0x345   :  { %v1299_v59 = vmul.f32 %v5759_v63, %v7121_v53  ;;  %v10770_v53 = vld [vmem:[#allocation12_spill] sm:$0xff] }
 0x346   :  { %v5761_v5 = vpop.eup %5760  ;;  %v10782_v63 = vld [vmem:[#allocation24_spill] sm:$0xff] }
 0x347   :  { %v7717_v51 = vadd.f32 %v1300_v2, %v1299_v59  ;;  %v10781_v2 = vld [vmem:[#allocation23_spill] sm:$0xff]  ;;  %v10784_v59 = vld [vmem:[#allocation26_spill] sm:$0xff] }
 0x349   :  { %5762 = vtanh.f32 %v7717_v51 }
 0x356   :  { %v5763_v30 = vpop.eup %5762 }
 0x357   :  { %v7720_v55 = vmul.f32 %v5763_v30, %v5761_v5  ;;  %v10785_v5 = vld [vmem:[#allocation27_spill] sm:$0xff]  ;;  %v10786_v30 = vmov 0.0  }
 0x359   :  { %10769 = vst [vmem:[#allocation29_spill] sm:$0xff] %v7720_v55  ;;  %1695 = vmatmul.mubr.f32.vlgmr.msra.gmra.mxu0 %v7720_v55  ;;  %1766 = vmatmul.mubr.f32.vlgmr.msra.gmra.mxu1 %v7720_v55  ;;  %v10787_v55 = vld [vmem:[#allocation28_spill] sm:$0xff] }
 0x35a   :  { %1878 = vmatpush1.msra.mxu0 %v7334_v9  ;;  %1949 = vmatpush1.msra.mxu1 %v7339_v10 }
 0x35b   :  { %1879 = vmatprep.subr.mxu0 %v7345_v3  ;;  %1950 = vmatprep.subr.mxu1 %v7350_v11 }
 0x35c   :  { %1880 = vmatpush1.msra.mxu0 %v7357_v12  ;;  %1951 = vmatpush1.msra.mxu1 %v7362_v13 }
 0x35d   :  { %1881 = vmatprep.subr.mxu0 %v7369_v14  ;;  %1952 = vmatprep.subr.mxu1 %v7374_v15 }
 0x35e   :  { %1882 = vmatpush1.msra.mxu0 %v7381_v16  ;;  %1953 = vmatpush1.msra.mxu1 %v7386_v17 }
 0x35f   :  { %1883 = vmatprep.subr.mxu0 %v7393_v18  ;;  %1954 = vmatprep.subr.mxu1 %v7398_v19 }
 0x360   :  { %1884 = vmatpush1.msra.mxu0 %v7405_v20  ;;  %1955 = vmatpush1.msra.mxu1 %v7410_v21 }
 0x361   :  { %1885 = vmatprep.subr.mxu0 %v7417_v22  ;;  %1956 = vmatprep.subr.mxu1 %v7422_v23 }
 0x362   :  { %1886 = vmatpush1.msra.mxu0 %v7429_v24  ;;  %1957 = vmatpush1.msra.mxu1 %v7434_v25 }
 0x363   :  { %1887 = vmatprep.subr.mxu0 %v7441_v26  ;;  %1958 = vmatprep.subr.mxu1 %v7446_v27 }
 0x364   :  { %1888 = vmatpush1.msra.mxu0 %v7453_v28  ;;  %1959 = vmatpush1.msra.mxu1 %v7458_v29 }
 0x365   :  { %1889 = vmatprep.subr.mxu0 %v7465_v31  ;;  %1960 = vmatprep.subr.mxu1 %v7470_v32 }
 0x366   :  { %1890 = vmatpush1.msra.mxu0 %v7477_v33  ;;  %1961 = vmatpush1.msra.mxu1 %v7482_v34 }
 0x367   :  { %1891 = vmatprep.subr.mxu0 %v7489_v35  ;;  %1962 = vmatprep.subr.mxu1 %v7494_v36 }
 0x368   :  { %1892 = vmatpush1.msra.mxu0 %v7501_v37  ;;  %1963 = vmatpush1.msra.mxu1 %v7506_v38 }
 0x369   :  { %1893 = vmatprep.subr.mxu0 %v7513_v39  ;;  %1964 = vmatprep.subr.mxu1 %v7518_v40 }
 0x36a   :  { %1894 = vmatpush1.msra.mxu0 %v7523_v41  ;;  %1965 = vmatpush1.msra.mxu1 %v7530_v42 }
 0x36b   :  { %1895 = vmatprep.subr.mxu0 %v7535_v43  ;;  %1966 = vmatprep.subr.mxu1 %v7540_v44 }
 0x36c   :  { %1896 = vmatpush1.msra.mxu0 %v7547_v57  ;;  %1967 = vmatpush1.msra.mxu1 %v7552_v49 }
 0x36d   :  { %1897 = vmatprep.subr.mxu0 %v7557_v50  ;;  %1968 = vmatprep.subr.mxu1 %v7564_v7 }
 0x36e   :  { %1898 = vmatpush1.msra.mxu0 %v7569_v45  ;;  %1969 = vmatpush1.msra.mxu1 %v7576_v47 }
 0x36f   :  { %1899 = vmatprep.subr.mxu0 %v7581_v52  ;;  %1970 = vmatprep.subr.mxu1 %v7588_v61 }
 0x370   :  { %1900 = vmatpush1.msra.mxu0 %v7593_v48  ;;  %1971 = vmatpush1.msra.mxu1 %v10770_v53 }
 0x371   :  { %1901 = vmatprep.subr.mxu0 %v10771_v8  ;;  %1972 = vmatprep.subr.mxu1 %v10772_v60  ;;  %v10805_v60 = vld [vmem:[#allocation43_spill] sm:$0xff] }
 0x372   :  { %1902 = vmatpush1.msra.mxu0 %v10773_v56  ;;  %1973 = vmatpush1.msra.mxu1 %v10774_v1  ;;  %v10804_v56 = vld [vmem:[#allocation46_spill] sm:$0xff] }
 0x373   :  { %1903 = vmatprep.subr.mxu0 %v10775_v6  ;;  %1974 = vmatprep.subr.mxu1 %v10776_v46  ;;  %v10803_v6 = vld [vmem:[#allocation42_spill] sm:$0xff] }
 0x374   :  { %1904 = vmatpush1.msra.mxu0 %v10777_v0  ;;  %1975 = vmatpush1.msra.mxu1 %v10778_v62  ;;  %v10788_v62 = vld [vmem:[#allocation7_spill] sm:$0xff] }
 0x375   :  { %1905 = vmatprep.subr.mxu0 %v10779_v4  ;;  %1976 = vmatprep.subr.mxu1 %v10780_v58  ;;  %v10789_v4 = vld [vmem:[#allocation8_spill] sm:$0xff]  ;;  %v7790_v58 = vpop.f32.mrf.mxu0 }
 0x376   :  { %1906 = vmatpush1.msra.mxu0 %v10781_v2  ;;  %1977 = vmatpush1.msra.mxu1 %v10782_v63  ;;  %10790 = vst [vmem:[#allocation34_spill] sm:$0xff] %v7790_v58  ;;  %v10794_v63 = vld [vmem:[#allocation30_spill] sm:$0xff]  ;;  %v10798_v58 = vld [vmem:[#allocation32_spill] sm:$0xff] }
 0x377   :  { %1907 = vmatprep.subr.mxu0 %v10783_v54  ;;  %1978 = vmatprep.subr.mxu1 %v10784_v59  ;;  %v7795_v54 = vld [vmem:[%s10448_s3] sm:$0xf]  ;;  %v7797_v59 = vpop.f32.mrf.mxu1 }
 0x378   :  { %1908 = vmatpush1.msra.mxu0 %v10785_v5  ;;  %1941 = vmatprep.mubr.f32.mxu0 %v10786_v30  ;;  %10791 = vst [vmem:[#allocation35_spill] sm:$0xff] %v7795_v54  ;;  %10792 = vst [vmem:[#allocation37_spill] sm:$0xff] %v7797_v59  ;;  %v7799_v5 = vpop.f32.mrf.mxu0 }
 0x379   :  { %1979 = vmatpush1.msra.mxu1 %v10787_v55  ;;  %2012 = vmatprep.mubr.f32.mxu1 %v10786_v30  ;;  %10793 = vst [vmem:[#allocation36_spill] sm:$0xff] %v7799_v5  ;;  %v7803_v55 = vrot.slane %v7795_v54, %v10794_v63  ;;  %v7805_v2 = vpop.f32.mrf.mxu1  ;;  %v10802_v5 = vld [vmem:[#allocation45_spill] sm:$0xff] }
 0x37a   :  { %2124 = vmatprep.subr.mxu0 %v10788_v62  ;;  %2195 = vmatprep.subr.mxu1 %v10789_v4  ;;  %v1468_v30 = vpop.f32.mrf.mxu0  ;;  %10796 = vst [vmem:[#allocation39_spill] sm:$0xff] %v7805_v2  ;;  %v7812_v62 = vrot.slane %v7795_v54, %v10798_v58  ;;  %v457_v63 = vadd.f32 %v10803_v6, %v10802_v5  ;;  %v10809_v6 = vld [vmem:[#allocation49_spill] sm:$0xff]  ;;  %v10810_v5 = vld [vmem:[#allocation44_spill] sm:$0xff] }
 0x37b   :  { %10795 = vst [vmem:[#allocation38_spill] sm:$0xff] %v7803_v55  ;;  %v7808_v4 = vadd.f32 %v1468_v30, %v7803_v55  ;;  %v1545_v0 = vpop.f32.mrf.mxu1  ;;  %v459_v2 = vadd.f32 %v10805_v60, %v10804_v56  ;;  %v540_v61 = vadd.f32 %v10810_v5, %v10809_v6  ;;  %v10817_v6 = vld [vmem:[#allocation14_spill] sm:$0xff]  ;;  %v10818_v5 = vld [vmem:[#allocation15_spill] sm:$0xff] }
 0x37c   :  { %10799 = vst [vmem:[#allocation40_spill] sm:$0xff] %v7812_v62  ;;  %v7815_v46 = vadd.f32 %v1545_v0, %v7812_v62  ;;  %v7817_v59 = vpop.f32.mrf.mxu0 }
 0x37d   :  { %10797 = vst [vmem:[#allocation41_spill] sm:$0xff] %v7808_v4  ;;  %10801 = vst [vmem:[#allocation60_spill] sm:$0xff] %v7817_v59  ;;  %v7823_v8 = vpop.f32.mrf.mxu1  ;;  %v10808_v59 = vld [vmem:[#allocation48_spill] sm:$0xff] }
 0x37e   :  { %10800 = vst [vmem:[#allocation59_spill] sm:$0xff] %v7815_v46  ;;  %10806 = vst [vmem:[#allocation45_spill] sm:$0xff] %v7823_v8  ;;  %v10807_v46 = vld [vmem:[#allocation51_spill] sm:$0xff] }
 0x37f   :  { %v542_v62 = vadd.f32 %v10808_v59, %v10807_v46 }
 0x419   :  { %v1696_v1 = vpop.f32.mrf.mxu0  ;;  %v1767_v54 = vpop.f32.mrf.mxu1 }
 0x41a   :  { %v1772_v30 = vadd.f32 %v1696_v1, %v457_v63  ;;  %v1774_v52 = vadd.f32 %v1767_v54, %v540_v61  ;;  %v10814_v54 = vld [vmem:[#allocation11_spill] sm:$0xff] }
 0x41b   :  { %v1698_v4 = vpop.f32.mrf.mxu0  ;;  %v1769_v0 = vpop.f32.mrf.mxu1 }
 0x41c   :  { %v5622_v55 = vmul.f32 -1.442695, %v1772_v30  ;;  %v1773_v58 = vadd.f32 %v1698_v4, %v459_v2  ;;  %v1775_v48 = vadd.f32 %v1769_v0, %v542_v62  ;;  %v10815_v30 = vld [vmem:[#allocation12_spill] sm:$0xff]  ;;  %v10816_v0 = vld [vmem:[#allocation13_spill] sm:$0xff] }
 0x41e   :  { %5764 = vpow2.f32 %v5622_v55  ;;  %v5623_v53 = vmul.f32 -1.442695, %v1773_v58  ;;  %v5624_v60 = vmul.f32 -1.442695, %v1775_v48 }
 0x420   :  { %5766 = vpow2.f32 %v5623_v53 }
 0x421   :  { %5768 = vtanh.f32 %v1774_v52 }
 0x422   :  { %5770 = vpow2.f32 %v5624_v60  ;;  %v10819_v60 = vld [vmem:[#allocation16_spill] sm:$0xff] }
 0x42b   :  { %v5765_v56 = vpop.eup %5764 }
 0x42c   :  { %v1779_v8 = vadd.f32 1.0, %v5765_v56  ;;  %v10820_v56 = vld [vmem:[#allocation17_spill] sm:$0xff] }
 0x42d   :  { %v5767_v1 = vpop.eup %5766 }
 0x42e   :  { %5772 = vrcp.f32 %v1779_v8  ;;  %v1785_v55 = vadd.f32 1.0, %v5767_v1  ;;  %v5769_v4 = vpop.eup %5768  ;;  %v10813_v8 = vld [vmem:[#allocation10_spill] sm:$0xff] }
 0x42f   :  { %v5771_v53 = vpop.eup %5770  ;;  %v10821_v1 = vld [vmem:[#allocation18_spill] sm:$0xff] }
 0x430   :  { %5774 = vrcp.f32 %v1785_v55  ;;  %v1792_v46 = vadd.f32 1.0, %v5771_v53  ;;  %v10822_v55 = vld [vmem:[#allocation19_spill] sm:$0xff]  ;;  %v10824_v53 = vld [vmem:[#allocation21_spill] sm:$0xff] }
 0x432   :  { %5776 = vrcp.f32 %v1792_v46  ;;  %v10828_v46 = vld [vmem:[#allocation25_spill] sm:$0xff] }
 0x43b   :  { %v5773_v58 = vpop.eup %5772 }
 0x43c   :  { %v1797_v2 = vmul.f32 %v5773_v58, %v5769_v4  ;;  %v10823_v4 = vld [vmem:[#allocation20_spill] sm:$0xff]  ;;  %v10825_v58 = vld [vmem:[#allocation22_spill] sm:$0xff] }
 0x43d   :  { %v5775_v63 = vpop.eup %5774 }
 0x43e   :  { %v1796_v62 = vmul.f32 %v5775_v63, %v7717_v51  ;;  %v10812_v51 = vld [vmem:[#allocation9_spill] sm:$0xff]  ;;  %v10827_v63 = vld [vmem:[#allocation24_spill] sm:$0xff] }
 0x43f   :  { %v5777_v61 = vpop.eup %5776 }
 0x440   :  { %v7830_v59 = vadd.f32 %v1797_v2, %v1796_v62  ;;  %v10826_v2 = vld [vmem:[#allocation23_spill] sm:$0xff]  ;;  %v10829_v62 = vld [vmem:[#allocation26_spill] sm:$0xff] }
 0x442   :  { %5778 = vtanh.f32 %v7830_v59 }
 0x44f   :  { %v5779_v52 = vpop.eup %5778 }
 0x450   :  { %v7833_v48 = vmul.f32 %v5779_v52, %v5777_v61  ;;  %v10830_v61 = vld [vmem:[#allocation27_spill] sm:$0xff]  ;;  %v10831_v52 = vmov 0.0  }
 0x452   :  { %10811 = vst [vmem:[#allocation42_spill] sm:$0xff] %v7833_v48  ;;  %1942 = vmatmul.mubr.f32.vlgmr.msra.gmra.mxu0 %v7833_v48  ;;  %2013 = vmatmul.mubr.f32.vlgmr.msra.gmra.mxu1 %v7833_v48  ;;  %v10832_v48 = vld [vmem:[#allocation28_spill] sm:$0xff] }
 0x453   :  { %2125 = vmatpush1.msra.mxu0 %v7334_v9  ;;  %2196 = vmatpush1.msra.mxu1 %v7339_v10 }
 0x454   :  { %2126 = vmatprep.subr.mxu0 %v7345_v3  ;;  %2197 = vmatprep.subr.mxu1 %v7350_v11 }
 0x455   :  { %2127 = vmatpush1.msra.mxu0 %v7357_v12  ;;  %2198 = vmatpush1.msra.mxu1 %v7362_v13 }
 0x456   :  { %2128 = vmatprep.subr.mxu0 %v7369_v14  ;;  %2199 = vmatprep.subr.mxu1 %v7374_v15 }
 0x457   :  { %2129 = vmatpush1.msra.mxu0 %v7381_v16  ;;  %2200 = vmatpush1.msra.mxu1 %v7386_v17 }
 0x458   :  { %2130 = vmatprep.subr.mxu0 %v7393_v18  ;;  %2201 = vmatprep.subr.mxu1 %v7398_v19 }
 0x459   :  { %2131 = vmatpush1.msra.mxu0 %v7405_v20  ;;  %2202 = vmatpush1.msra.mxu1 %v7410_v21 }
 0x45a   :  { %2132 = vmatprep.subr.mxu0 %v7417_v22  ;;  %2203 = vmatprep.subr.mxu1 %v7422_v23 }
 0x45b   :  { %2133 = vmatpush1.msra.mxu0 %v7429_v24  ;;  %2204 = vmatpush1.msra.mxu1 %v7434_v25 }
 0x45c   :  { %2134 = vmatprep.subr.mxu0 %v7441_v26  ;;  %2205 = vmatprep.subr.mxu1 %v7446_v27 }
 0x45d   :  { %2135 = vmatpush1.msra.mxu0 %v7453_v28  ;;  %2206 = vmatpush1.msra.mxu1 %v7458_v29 }
 0x45e   :  { %2136 = vmatprep.subr.mxu0 %v7465_v31  ;;  %2207 = vmatprep.subr.mxu1 %v7470_v32 }
 0x45f   :  { %2137 = vmatpush1.msra.mxu0 %v7477_v33  ;;  %2208 = vmatpush1.msra.mxu1 %v7482_v34 }
 0x460   :  { %2138 = vmatprep.subr.mxu0 %v7489_v35  ;;  %2209 = vmatprep.subr.mxu1 %v7494_v36 }
 0x461   :  { %2139 = vmatpush1.msra.mxu0 %v7501_v37  ;;  %2210 = vmatpush1.msra.mxu1 %v7506_v38 }
 0x462   :  { %2140 = vmatprep.subr.mxu0 %v7513_v39  ;;  %2211 = vmatprep.subr.mxu1 %v7518_v40 }
 0x463   :  { %2141 = vmatpush1.msra.mxu0 %v7523_v41  ;;  %2212 = vmatpush1.msra.mxu1 %v7530_v42 }
 0x464   :  { %2142 = vmatprep.subr.mxu0 %v7535_v43  ;;  %2213 = vmatprep.subr.mxu1 %v7540_v44 }
 0x465   :  { %2143 = vmatpush1.msra.mxu0 %v7547_v57  ;;  %2214 = vmatpush1.msra.mxu1 %v7552_v49 }
 0x466   :  { %2144 = vmatprep.subr.mxu0 %v7557_v50  ;;  %2215 = vmatprep.subr.mxu1 %v7564_v7 }
 0x467   :  { %2145 = vmatpush1.msra.mxu0 %v7569_v45  ;;  %2216 = vmatpush1.msra.mxu1 %v7576_v47 }
 0x468   :  { %2146 = vmatprep.subr.mxu0 %v10812_v51  ;;  %2217 = vmatprep.subr.mxu1 %v10813_v8 }
 0x469   :  { %2147 = vmatpush1.msra.mxu0 %v10814_v54  ;;  %2218 = vmatpush1.msra.mxu1 %v10815_v30 }
 0x46a   :  { %2148 = vmatprep.subr.mxu0 %v10816_v0  ;;  %2219 = vmatprep.subr.mxu1 %v10817_v6  ;;  %v10838_v6 = vld [vmem:[#allocation52_spill] sm:$0xff] }
 0x46b   :  { %2149 = vmatpush1.msra.mxu0 %v10818_v5  ;;  %2220 = vmatpush1.msra.mxu1 %v10819_v60  ;;  %v10837_v5 = vld [vmem:[#allocation54_spill] sm:$0xff] }
 0x46c   :  { %2150 = vmatprep.subr.mxu0 %v10820_v56  ;;  %2221 = vmatprep.subr.mxu1 %v10821_v1 }
 0x46d   :  { %2151 = vmatpush1.msra.mxu0 %v10822_v55  ;;  %2222 = vmatpush1.msra.mxu1 %v10823_v4  ;;  %v10833_v4 = vld [vmem:[#allocation7_spill] sm:$0xff] }
 0x46e   :  { %2152 = vmatprep.subr.mxu0 %v10824_v53  ;;  %2223 = vmatprep.subr.mxu1 %v10825_v58  ;;  %v10834_v53 = vld [vmem:[#allocation8_spill] sm:$0xff] }
 0x46f   :  { %2153 = vmatpush1.msra.mxu0 %v10826_v2  ;;  %2224 = vmatpush1.msra.mxu1 %v10827_v63  ;;  %v10835_v2 = vld [vmem:[#allocation47_spill] sm:$0xff] }
 0x470   :  { %2154 = vmatprep.subr.mxu0 %v10828_v46  ;;  %2225 = vmatprep.subr.mxu1 %v10829_v62  ;;  %v10836_v46 = vld [vmem:[#allocation50_spill] sm:$0xff] }
 0x471   :  { %2155 = vmatpush1.msra.mxu0 %v10830_v61  ;;  %2188 = vmatprep.mubr.f32.mxu0 %v10831_v52 }
 0x472   :  { %2226 = vmatpush1.msra.mxu1 %v10832_v48  ;;  %2259 = vmatprep.mubr.f32.mxu1 %v10831_v52 }
 0x473   :  { %2368 = vmatprep.subr.mxu0 %v10833_v4  ;;  %2439 = vmatprep.subr.mxu1 %v10834_v53 }
 0x512   :  { %v1943_v58 = vpop.f32.mrf.mxu0  ;;  %v2014_v62 = vpop.f32.mrf.mxu1 }
 0x513   :  { %v2019_v55 = vadd.f32 %v1943_v58, %v10835_v2  ;;  %v2021_v52 = vadd.f32 %v2014_v62, %v10838_v6  ;;  %v2609_v62 = vld [vmem:[%s10447_s2 + $0x1e8] sm:$0xff] }
 0x514   :  { %v1945_v63 = vpop.f32.mrf.mxu0  ;;  %v2016_v60 = vpop.f32.mrf.mxu1 }
 0x515   :  { %v5625_v1 = vmul.f32 -1.442695, %v2019_v55  ;;  %v2020_v56 = vadd.f32 %v1945_v63, %v10836_v46  ;;  %v2022_v48 = vadd.f32 %v2016_v60, %v10837_v5 }
 0x517   :  { %5780 = vpow2.f32 %v5625_v1  ;;  %v5626_v61 = vmul.f32 -1.442695, %v2020_v56  ;;  %v5627_v0 = vmul.f32 -1.442695, %v2022_v48 }
 0x519   :  { %5782 = vpow2.f32 %v5626_v61 }
 0x51a   :  { %5784 = vtanh.f32 %v2021_v52  ;;  %v2611_v52 = vld [vmem:[%s10447_s2 + $0x1f8] sm:$0xff] }
 0x51b   :  { %5786 = vpow2.f32 %v5627_v0 }
 0x524   :  { %v5781_v4 = vpop.eup %5780 }
 0x525   :  { %v2026_v30 = vadd.f32 1.0, %v5781_v4  ;;  %v2608_v4 = vld [vmem:[%s10447_s2 + $0x1e0] sm:$0xff] }
 0x526   :  { %v5783_v53 = vpop.eup %5782 }
 0x527   :  { %5788 = vrcp.f32 %v2026_v30  ;;  %v2032_v58 = vadd.f32 1.0, %v5783_v53  ;;  %v5785_v55 = vpop.eup %5784  ;;  %v2610_v53 = vld [vmem:[%s10447_s2 + $0x1f0] sm:$0xff] }
 0x528   :  { %v5787_v2 = vpop.eup %5786 }
 0x529   :  { %5790 = vrcp.f32 %v2032_v58  ;;  %v2039_v46 = vadd.f32 1.0, %v5787_v2  ;;  %v2605_v58 = vld [vmem:[%s10447_s2 + $0x1c8] sm:$0xff]  ;;  %v2604_v2 = vld [vmem:[%s10447_s2 + $0x1c0] sm:$0xff] }
 0x52b   :  { %5792 = vrcp.f32 %v2039_v46  ;;  %v2600_v46 = vld [vmem:[%s10447_s2 + $0x1a0] sm:$0xff] }
 0x534   :  { %v5789_v1 = vpop.eup %5788 }
 0x535   :  { %v2044_v63 = vmul.f32 %v5789_v1, %v5785_v55  ;;  %v2607_v55 = vld [vmem:[%s10447_s2 + $0x1d8] sm:$0xff]  ;;  %v2606_v1 = vld [vmem:[%s10447_s2 + $0x1d0] sm:$0xff] }
 0x536   :  { %v5791_v56 = vpop.eup %5790 }
 0x537   :  { %v2043_v61 = vmul.f32 %v5791_v56, %v7830_v59  ;;  %v2603_v56 = vld [vmem:[%s10447_s2 + $0x1b8] sm:$0xff] }
 0x538   :  { %v5793_v48 = vpop.eup %5792 }
 0x539   :  { %v7908_v5 = vadd.f32 %v2044_v63, %v2043_v61  ;;  %v2601_v63 = vld [vmem:[%s10447_s2 + $0x1a8] sm:$0xff]  ;;  %v2602_v61 = vld [vmem:[%s10447_s2 + $0x1b0] sm:$0xff] }
 0x53b   :  { %5794 = vtanh.f32 %v7908_v5 }
 0x548   :  { %v5795_v6 = vpop.eup %5794 }
 0x549   :  { %v7911_v60 = vmul.f32 %v5795_v6, %v5793_v48  ;;  %v2599_v48 = vld [vmem:[%s10447_s2 + $0x198] sm:$0xff]  ;;  %v2596_v6 = vld [vmem:[%s10447_s2 + $0x180] sm:$0xff] }
 0x54b   :  { %10839 = vst [vmem:[#allocation46_spill] sm:$0xff] %v7911_v60  ;;  %2189 = vmatmul.mubr.f32.vlgmr.msra.gmra.mxu0 %v7911_v60  ;;  %2260 = vmatmul.mubr.f32.vlgmr.msra.gmra.mxu1 %v7911_v60  ;;  %v8580_v60 = vld [vmem:[%s10449_s4] sm:$0xff] }
 0x54c   :  { %2369 = vmatpush1.msra.mxu0 %v7334_v9  ;;  %2440 = vmatpush1.msra.mxu1 %v7339_v10  ;;  %v10840_v9 = vld [vmem:[#allocation12_spill] sm:$0xff]  ;;  %v10841_v10 = vld [vmem:[#allocation13_spill] sm:$0xff] }
 0x54d   :  { %2370 = vmatprep.subr.mxu0 %v7345_v3  ;;  %2441 = vmatprep.subr.mxu1 %v7350_v11  ;;  %v10842_v3 = vld [vmem:[#allocation14_spill] sm:$0xff]  ;;  %v10843_v11 = vld [vmem:[#allocation15_spill] sm:$0xff] }
 0x54e   :  { %2371 = vmatpush1.msra.mxu0 %v7357_v12  ;;  %2442 = vmatpush1.msra.mxu1 %v7362_v13  ;;  %v10844_v12 = vld [vmem:[#allocation16_spill] sm:$0xff]  ;;  %v10845_v13 = vld [vmem:[#allocation17_spill] sm:$0xff] }
 0x54f   :  { %2372 = vmatprep.subr.mxu0 %v7369_v14  ;;  %2443 = vmatprep.subr.mxu1 %v7374_v15  ;;  %v10846_v14 = vld [vmem:[#allocation18_spill] sm:$0xff]  ;;  %v10847_v15 = vld [vmem:[#allocation19_spill] sm:$0xff] }
 0x550   :  { %2373 = vmatpush1.msra.mxu0 %v7381_v16  ;;  %2444 = vmatpush1.msra.mxu1 %v7386_v17  ;;  %v10848_v16 = vld [vmem:[#allocation20_spill] sm:$0xff]  ;;  %v10849_v17 = vld [vmem:[#allocation21_spill] sm:$0xff] }
 0x551   :  { %2374 = vmatprep.subr.mxu0 %v7393_v18  ;;  %2445 = vmatprep.subr.mxu1 %v7398_v19  ;;  %v10850_v18 = vld [vmem:[#allocation22_spill] sm:$0xff]  ;;  %v10851_v19 = vld [vmem:[#allocation23_spill] sm:$0xff] }
 0x552   :  { %2375 = vmatpush1.msra.mxu0 %v7405_v20  ;;  %2446 = vmatpush1.msra.mxu1 %v7410_v21  ;;  %v10852_v20 = vld [vmem:[#allocation24_spill] sm:$0xff]  ;;  %v10853_v21 = vld [vmem:[#allocation25_spill] sm:$0xff] }
 0x553   :  { %2376 = vmatprep.subr.mxu0 %v7417_v22  ;;  %2447 = vmatprep.subr.mxu1 %v7422_v23  ;;  %v10854_v22 = vld [vmem:[#allocation26_spill] sm:$0xff]  ;;  %v10855_v23 = vld [vmem:[#allocation27_spill] sm:$0xff] }
 0x554   :  { %2377 = vmatpush1.msra.mxu0 %v7429_v24  ;;  %2448 = vmatpush1.msra.mxu1 %v7434_v25  ;;  %v10856_v24 = vmov 0.0   ;;  %v10857_v25 = vld [vmem:[#allocation28_spill] sm:$0xff] }
 0x555   :  { %2378 = vmatprep.subr.mxu0 %v7441_v26  ;;  %2449 = vmatprep.subr.mxu1 %v7446_v27  ;;  %v10858_v27 = vld [vmem:[#allocation53_spill] sm:$0xff] }
 0x556   :  { %2379 = vmatpush1.msra.mxu0 %v7453_v28  ;;  %2450 = vmatpush1.msra.mxu1 %v7458_v29 }
 0x557   :  { %2380 = vmatprep.subr.mxu0 %v7465_v31  ;;  %2451 = vmatprep.subr.mxu1 %v7470_v32  ;;  %v10859_v32 = vld [vmem:[#allocation55_spill] sm:$0xff] }
 0x558   :  { %2381 = vmatpush1.msra.mxu0 %v7477_v33  ;;  %2452 = vmatpush1.msra.mxu1 %v7482_v34 }
 0x559   :  { %2382 = vmatprep.subr.mxu0 %v7489_v35  ;;  %2453 = vmatprep.subr.mxu1 %v7494_v36 }
 0x55a   :  { %2383 = vmatpush1.msra.mxu0 %v7501_v37  ;;  %2454 = vmatpush1.msra.mxu1 %v7506_v38  ;;  %v10860_v37 = vld [vmem:[#allocation57_spill] sm:$0xff] }
 0x55b   :  { %2384 = vmatprep.subr.mxu0 %v7513_v39  ;;  %2455 = vmatprep.subr.mxu1 %v7518_v40  ;;  %v10861_v39 = vld [vmem:[#allocation56_spill] sm:$0xff] }
 0x55c   :  { %2385 = vmatpush1.msra.mxu0 %v7523_v41  ;;  %2456 = vmatpush1.msra.mxu1 %v7530_v42 }
 0x55d   :  { %2386 = vmatprep.subr.mxu0 %v7535_v43  ;;  %2457 = vmatprep.subr.mxu1 %v7540_v44 }
 0x55e   :  { %2387 = vmatpush1.msra.mxu0 %v7547_v57  ;;  %2458 = vmatpush1.msra.mxu1 %v7552_v49 }
 0x55f   :  { %2388 = vmatprep.subr.mxu0 %v7557_v50  ;;  %2459 = vmatprep.subr.mxu1 %v7564_v7 }
 0x560   :  { %2389 = vmatpush1.msra.mxu0 %v7569_v45  ;;  %2460 = vmatpush1.msra.mxu1 %v7576_v47 }
 0x561   :  { %2390 = vmatprep.subr.mxu0 %v10812_v51  ;;  %2461 = vmatprep.subr.mxu1 %v10813_v8 }
 0x562   :  { %2391 = vmatpush1.msra.mxu0 %v10814_v54  ;;  %2462 = vmatpush1.msra.mxu1 %v10840_v9  ;;  %v2598_v9 = vld [vmem:[%s10447_s2 + $0x190] sm:$0xff] }
 0x563   :  { %2392 = vmatprep.subr.mxu0 %v10841_v10  ;;  %2463 = vmatprep.subr.mxu1 %v10842_v3  ;;  %v2593_v10 = vld [vmem:[%s10447_s2 + $0x168] sm:$0xff]  ;;  %v2595_v3 = vld [vmem:[%s10447_s2 + $0x178] sm:$0xff] }
 0x564   :  { %2393 = vmatpush1.msra.mxu0 %v10843_v11  ;;  %2464 = vmatpush1.msra.mxu1 %v10844_v12  ;;  %v2592_v11 = vld [vmem:[%s10447_s2 + $0x160] sm:$0xff]  ;;  %v2594_v12 = vld [vmem:[%s10447_s2 + $0x170] sm:$0xff] }
 0x565   :  { %2394 = vmatprep.subr.mxu0 %v10845_v13  ;;  %2465 = vmatprep.subr.mxu1 %v10846_v14  ;;  %v2589_v13 = vld [vmem:[%s10447_s2 + $0x148] sm:$0xff]  ;;  %v2591_v14 = vld [vmem:[%s10447_s2 + $0x158] sm:$0xff] }
 0x566   :  { %2395 = vmatpush1.msra.mxu0 %v10847_v15  ;;  %2466 = vmatpush1.msra.mxu1 %v10848_v16  ;;  %v2588_v15 = vld [vmem:[%s10447_s2 + $0x140] sm:$0xff]  ;;  %v2590_v16 = vld [vmem:[%s10447_s2 + $0x150] sm:$0xff] }
 0x567   :  { %2396 = vmatprep.subr.mxu0 %v10849_v17  ;;  %2467 = vmatprep.subr.mxu1 %v10850_v18  ;;  %v2585_v17 = vld [vmem:[%s10447_s2 + $0x128] sm:$0xff]  ;;  %v2587_v18 = vld [vmem:[%s10447_s2 + $0x138] sm:$0xff] }
 0x568   :  { %2397 = vmatpush1.msra.mxu0 %v10851_v19  ;;  %2468 = vmatpush1.msra.mxu1 %v10852_v20  ;;  %v2584_v19 = vld [vmem:[%s10447_s2 + $0x120] sm:$0xff]  ;;  %v2586_v20 = vld [vmem:[%s10447_s2 + $0x130] sm:$0xff] }
 0x569   :  { %2398 = vmatprep.subr.mxu0 %v10853_v21  ;;  %2469 = vmatprep.subr.mxu1 %v10854_v22  ;;  %v2581_v21 = vld [vmem:[%s10447_s2 + $0x108] sm:$0xff]  ;;  %v2583_v22 = vld [vmem:[%s10447_s2 + $0x118] sm:$0xff] }
 0x56a   :  { %2399 = vmatpush1.msra.mxu0 %v10855_v23  ;;  %2432 = vmatprep.mubr.f32.mxu0 %v10856_v24  ;;  %v2580_v23 = vld [vmem:[%s10447_s2 + $0x100] sm:$0xff] }
 0x56b   :  { %2470 = vmatpush1.msra.mxu1 %v10857_v25  ;;  %2503 = vmatprep.mubr.f32.mxu1 %v10856_v24  ;;  %v2582_v25 = vld [vmem:[%s10447_s2 + $0x110] sm:$0xff] }
 0x56c   :  { %2612 = vmatprep.subr.mxu0 %v2609_v62  ;;  %2683 = vmatprep.subr.mxu1 %v2611_v52  ;;  %v2549_v62 = vld [vmem:[%s10447_s2 + $0x8] sm:$0xff]  ;;  %v2551_v52 = vld [vmem:[%s10447_s2 + $0x18] sm:$0xff] }
 0x60b   :  { %v2190_v26 = vpop.f32.mrf.mxu0  ;;  %v2261_v34 = vpop.f32.mrf.mxu1 }
 0x60c   :  { %v2266_v28 = vadd.f32 %v2190_v26, %v10858_v27  ;;  %v2268_v40 = vadd.f32 %v2261_v34, %v10861_v39  ;;  %v2577_v26 = vld [vmem:[%s10447_s2 + $0xe8] sm:$0xff]  ;;  %v2579_v27 = vld [vmem:[%s10447_s2 + $0xf8] sm:$0xff]  ;;  %v2574_v34 = vld [vmem:[%s10447_s2 + $0xd0] sm:$0xff] }
 0x60d   :  { %v2192_v29 = vpop.f32.mrf.mxu0  ;;  %v2263_v36 = vpop.f32.mrf.mxu1  ;;  %v2565_v39 = vld [vmem:[%s10447_s2 + $0x88] sm:$0xff] }
 0x60e   :  { %v5628_v31 = vmul.f32 -1.442695, %v2266_v28  ;;  %v2267_v33 = vadd.f32 %v2192_v29, %v10859_v32  ;;  %v2269_v38 = vadd.f32 %v2263_v36, %v10860_v37  ;;  %v2576_v28 = vld [vmem:[%s10447_s2 + $0xe0] sm:$0xff]  ;;  %v2578_v29 = vld [vmem:[%s10447_s2 + $0xf0] sm:$0xff]  ;;  %v2575_v32 = vld [vmem:[%s10447_s2 + $0xd8] sm:$0xff] }
 0x60f   :  { %v2571_v36 = vld [vmem:[%s10447_s2 + $0xb8] sm:$0xff]  ;;  %v2568_v37 = vld [vmem:[%s10447_s2 + $0xa0] sm:$0xff] }
 0x610   :  { %5796 = vpow2.f32 %v5628_v31  ;;  %v5629_v35 = vmul.f32 -1.442695, %v2267_v33  ;;  %v5630_v41 = vmul.f32 -1.442695, %v2269_v38  ;;  %v2573_v31 = vld [vmem:[%s10447_s2 + $0xc8] sm:$0xff]  ;;  %v2572_v33 = vld [vmem:[%s10447_s2 + $0xc0] sm:$0xff] }
 0x611   :  { %v2570_v38 = vld [vmem:[%s10447_s2 + $0xb0] sm:$0xff] }
 0x612   :  { %5798 = vpow2.f32 %v5629_v35  ;;  %v2569_v35 = vld [vmem:[%s10447_s2 + $0xa8] sm:$0xff] }
 0x613   :  { %5800 = vtanh.f32 %v2268_v40  ;;  %v2567_v40 = vld [vmem:[%s10447_s2 + $0x98] sm:$0xff] }
 0x614   :  { %5802 = vpow2.f32 %v5630_v41  ;;  %v2564_v41 = vld [vmem:[%s10447_s2 + $0x80] sm:$0xff] }
 0x61d   :  { %v5797_v42 = vpop.eup %5796 }
 0x61e   :  { %v2273_v43 = vadd.f32 1.0, %v5797_v42  ;;  %v2566_v42 = vld [vmem:[%s10447_s2 + $0x90] sm:$0xff] }
 0x61f   :  { %v5799_v44 = vpop.eup %5798 }
 0x620   :  { %5804 = vrcp.f32 %v2273_v43  ;;  %v2279_v57 = vadd.f32 1.0, %v5799_v44  ;;  %v5801_v49 = vpop.eup %5800  ;;  %v2561_v43 = vld [vmem:[%s10447_s2 + $0x68] sm:$0xff]  ;;  %v2563_v44 = vld [vmem:[%s10447_s2 + $0x78] sm:$0xff] }
 0x621   :  { %v5803_v50 = vpop.eup %5802 }
 0x622   :  { %5806 = vrcp.f32 %v2279_v57  ;;  %v2286_v59 = vadd.f32 1.0, %v5803_v50  ;;  %v2560_v57 = vld [vmem:[%s10447_s2 + $0x60] sm:$0xff]  ;;  %v2557_v50 = vld [vmem:[%s10447_s2 + $0x48] sm:$0xff] }
 0x624   :  { %5808 = vrcp.f32 %v2286_v59  ;;  %v2553_v59 = vld [vmem:[%s10447_s2 + $0x28] sm:$0xff] }
 0x62d   :  { %v5805_v7 = vpop.eup %5804 }
 0x62e   :  { %v2291_v45 = vmul.f32 %v5805_v7, %v5801_v49  ;;  %v2562_v49 = vld [vmem:[%s10447_s2 + $0x70] sm:$0xff]  ;;  %v2559_v7 = vld [vmem:[%s10447_s2 + $0x58] sm:$0xff] }
 0x62f   :  { %v5807_v47 = vpop.eup %5806 }
 0x630   :  { %v2290_v51 = vmul.f32 %v5807_v47, %v7908_v5  ;;  %v2597_v5 = vld [vmem:[%s10447_s2 + $0x188] sm:$0xff]  ;;  %v2558_v47 = vld [vmem:[%s10447_s2 + $0x50] sm:$0xff] }
 0x631   :  { %v5809_v54 = vpop.eup %5808 }
 0x632   :  { %v7984_v8 = vadd.f32 %v2291_v45, %v2290_v51  ;;  %v2556_v45 = vld [vmem:[%s10447_s2 + $0x40] sm:$0xff]  ;;  %v2555_v51 = vld [vmem:[%s10447_s2 + $0x38] sm:$0xff] }
 0x634   :  { %5810 = vtanh.f32 %v7984_v8 }
 0x641   :  { %v5811_v30 = vpop.eup %5810 }
 0x642   :  { %v7987_v0 = vmul.f32 %v5811_v30, %v5809_v54  ;;  %v2552_v54 = vld [vmem:[%s10447_s2 + $0x20] sm:$0xff]  ;;  %v2554_v30 = vld [vmem:[%s10447_s2 + $0x30] sm:$0xff] }
 0x644   :  { %10862 = vst [vmem:[#allocation43_spill] sm:$0xff] %v7987_v0  ;;  %2433 = vmatmul.mubr.f32.vlgmr.msra.gmra.mxu0 %v7987_v0  ;;  %2504 = vmatmul.mubr.f32.vlgmr.msra.gmra.mxu1 %v7987_v0  ;;  %v8573_v0 = vld [vmem:[%s10449_s4 + $0x18] sm:$0xff] }
 0x645   :  { %2676 = vmatprep.mubr.f32.mxu0 %v10856_v24  ;;  %2747 = vmatprep.mubr.f32.mxu1 %v10856_v24 }
 0x646   :  { %2613 = vmatpush1.msra.mxu0 %v2608_v4  ;;  %2684 = vmatpush1.msra.mxu1 %v2610_v53  ;;  %v2548_v4 = vld [vmem:[%s10447_s2] sm:$0xff]  ;;  %v2550_v53 = vld [vmem:[%s10447_s2 + $0x10] sm:$0xff] }
 0x647   :  { %2614 = vmatprep.subr.mxu0 %v2605_v58  ;;  %2685 = vmatprep.subr.mxu1 %v2607_v55  ;;  %v8188_v58 = vld [vmem:[%s10449_s4 + $0x1e8] sm:$0xff]  ;;  %v8193_v55 = vld [vmem:[%s10449_s4 + $0x1f8] sm:$0xff] }
 0x648   :  { %2615 = vmatpush1.msra.mxu0 %v2604_v2  ;;  %2686 = vmatpush1.msra.mxu1 %v2606_v1  ;;  %v10863_v2 = vld [vmem:[#allocation31_spill] sm:$0xff] }
 0x649   :  { %2616 = vmatprep.subr.mxu0 %v2601_v63  ;;  %2687 = vmatprep.subr.mxu1 %v2603_v56  ;;  %v10864_v1 = vld [vmem:[#allocation35_spill] sm:$0xff]  ;;  %v10866_v56 = vld [vmem:[#allocation38_spill] sm:$0xff] }
 0x64a   :  { %2617 = vmatpush1.msra.mxu0 %v2600_v46  ;;  %2688 = vmatpush1.msra.mxu1 %v2602_v61  ;;  %v8199_v63 = vrot.slane %v10864_v1, %v10863_v2  ;;  %v10867_v46 = vld [vmem:[#allocation34_spill] sm:$0xff]  ;;  %v8549_v2 = vld [vmem:[%s10449_s4 + $0x38] sm:$0xff] }
 0x64b   :  { %2618 = vmatprep.subr.mxu0 %v2597_v5  ;;  %2689 = vmatprep.subr.mxu1 %v2599_v48  ;;  %v1463_v61 = vadd.f32 %v10867_v46, %v10866_v56  ;;  %v10868_v48 = vld [vmem:[#allocation36_spill] sm:$0xff]  ;;  %v8333_v56 = vld [vmem:[%s10449_s4 + $0x158] sm:$0xff]  ;;  %v8340_v46 = vld [vmem:[%s10449_s4 + $0x140] sm:$0xff] }
 0x64c   :  { %2619 = vmatpush1.msra.mxu0 %v2596_v6  ;;  %2690 = vmatpush1.msra.mxu1 %v2598_v9  ;;  %10865 = vst [vmem:[#allocation51_spill] sm:$0xff] %v8199_v63  ;;  %v1465_v6 = vadd.f32 %v10868_v48, %v8199_v63  ;;  %v8357_v48 = vld [vmem:[%s10449_s4 + $0x138] sm:$0xff]  ;;  %v8568_v63 = vld [vmem:[%s10449_s4 + $0x8] sm:$0xff] }
 0x64d   :  { %2620 = vmatprep.subr.mxu0 %v2593_v10  ;;  %2691 = vmatprep.subr.mxu1 %v2595_v3 }
 0x64e   :  { %2621 = vmatpush1.msra.mxu0 %v2592_v11  ;;  %2692 = vmatpush1.msra.mxu1 %v2594_v12 }
 0x64f   :  { %2622 = vmatprep.subr.mxu0 %v2589_v13  ;;  %2693 = vmatprep.subr.mxu1 %v2591_v14  ;;  %v10869_v14 = vld [vmem:[#allocation33_spill] sm:$0xff] }
 0x650   :  { %2623 = vmatpush1.msra.mxu0 %v2588_v15  ;;  %2694 = vmatpush1.msra.mxu1 %v2590_v16  ;;  %v8207_v15 = vrot.slane %v10864_v1, %v10869_v14  ;;  %v8328_v1 = vld [vmem:[%s10449_s4 + $0x148] sm:$0xff] }
 0x651   :  { %2624 = vmatprep.subr.mxu0 %v2585_v17  ;;  %2695 = vmatprep.subr.mxu1 %v2587_v18  ;;  %v10871_v17 = vld [vmem:[#allocation39_spill] sm:$0xff] }
 0x652   :  { %2625 = vmatpush1.msra.mxu0 %v2584_v19  ;;  %2696 = vmatpush1.msra.mxu1 %v2586_v20  ;;  %10870 = vst [vmem:[#allocation48_spill] sm:$0xff] %v8207_v15  ;;  %v1542_v18 = vadd.f32 %v10871_v17, %v8207_v15  ;;  %v10872_v20 = vld [vmem:[#allocation40_spill] sm:$0xff]  ;;  %v8412_v17 = vld [vmem:[%s10449_s4 + $0xe0] sm:$0xff]  ;;  %v8544_v14 = vld [vmem:[%s10449_s4 + $0x28] sm:$0xff] }
 0x653   :  { %2626 = vmatprep.subr.mxu0 %v2581_v21  ;;  %2697 = vmatprep.subr.mxu1 %v2583_v22  ;;  %v10873_v21 = vld [vmem:[#allocation37_spill] sm:$0xff]  ;;  %v8561_v15 = vld [vmem:[%s10449_s4 + $0x30] sm:$0xff] }
 0x654   :  { %2627 = vmatpush1.msra.mxu0 %v2580_v23  ;;  %2698 = vmatpush1.msra.mxu1 %v2582_v25  ;;  %v1540_v22 = vadd.f32 %v10873_v21, %v10872_v20  ;;  %v8429_v20 = vld [vmem:[%s10449_s4 + $0xd8] sm:$0xff]  ;;  %v8436_v21 = vld [vmem:[%s10449_s4 + $0xc0] sm:$0xff] }
 0x655   :  { %2628 = vmatprep.subr.mxu0 %v2577_v26  ;;  %2699 = vmatprep.subr.mxu1 %v2579_v27 }
 0x656   :  { %2629 = vmatpush1.msra.mxu0 %v2576_v28  ;;  %2700 = vmatpush1.msra.mxu1 %v2578_v29 }
 0x657   :  { %2630 = vmatprep.subr.mxu0 %v2573_v31  ;;  %2701 = vmatprep.subr.mxu1 %v2575_v32 }
 0x658   :  { %2631 = vmatpush1.msra.mxu0 %v2572_v33  ;;  %2702 = vmatpush1.msra.mxu1 %v2574_v34 }
 0x659   :  { %2632 = vmatprep.subr.mxu0 %v2569_v35  ;;  %2703 = vmatprep.subr.mxu1 %v2571_v36 }
 0x65a   :  { %2633 = vmatpush1.msra.mxu0 %v2568_v37  ;;  %2704 = vmatpush1.msra.mxu1 %v2570_v38 }
 0x65b   :  { %2634 = vmatprep.subr.mxu0 %v2565_v39  ;;  %2705 = vmatprep.subr.mxu1 %v2567_v40 }
 0x65c   :  { %2635 = vmatpush1.msra.mxu0 %v2564_v41  ;;  %2706 = vmatpush1.msra.mxu1 %v2566_v42  ;;  %v8222_v42 = vld [vmem:[%s10449_s4 + $0x1e0] sm:$0xff] }
 0x65d   :  { %2636 = vmatprep.subr.mxu0 %v2561_v43  ;;  %2707 = vmatprep.subr.mxu1 %v2563_v44  ;;  %v8227_v43 = vld [vmem:[%s10449_s4 + $0x1f0] sm:$0xff]  ;;  %v8237_v44 = vld [vmem:[%s10449_s4 + $0x1d8] sm:$0xff] }
 0x65e   :  { %2637 = vmatpush1.msra.mxu0 %v2560_v57  ;;  %2708 = vmatpush1.msra.mxu1 %v2562_v49  ;;  %v8244_v57 = vld [vmem:[%s10449_s4 + $0x1c0] sm:$0xff]  ;;  %v8249_v49 = vld [vmem:[%s10449_s4 + $0x1d0] sm:$0xff] }
 0x65f   :  { %2638 = vmatprep.subr.mxu0 %v2557_v50  ;;  %2709 = vmatprep.subr.mxu1 %v2559_v7  ;;  %v8256_v50 = vld [vmem:[%s10449_s4 + $0x1a8] sm:$0xff]  ;;  %v8261_v7 = vld [vmem:[%s10449_s4 + $0x1b8] sm:$0xff] }
 0x660   :  { %2639 = vmatpush1.msra.mxu0 %v2556_v45  ;;  %2710 = vmatpush1.msra.mxu1 %v2558_v47  ;;  %v8268_v45 = vld [vmem:[%s10449_s4 + $0x1a0] sm:$0xff]  ;;  %v8273_v47 = vld [vmem:[%s10449_s4 + $0x1b0] sm:$0xff] }
 0x661   :  { %2640 = vmatprep.subr.mxu0 %v2553_v59  ;;  %2711 = vmatprep.subr.mxu1 %v2555_v51  ;;  %v8280_v59 = vld [vmem:[%s10449_s4 + $0x188] sm:$0xff]  ;;  %v8285_v51 = vld [vmem:[%s10449_s4 + $0x198] sm:$0xff] }
 0x662   :  { %2641 = vmatpush1.msra.mxu0 %v2552_v54  ;;  %2712 = vmatpush1.msra.mxu1 %v2554_v30  ;;  %v8292_v54 = vld [vmem:[%s10449_s4 + $0x180] sm:$0xff]  ;;  %v8297_v30 = vld [vmem:[%s10449_s4 + $0x190] sm:$0xff] }
 0x663   :  { %2642 = vmatprep.subr.mxu0 %v2549_v62  ;;  %2713 = vmatprep.subr.mxu1 %v2551_v52  ;;  %v8304_v62 = vld [vmem:[%s10449_s4 + $0x168] sm:$0xff]  ;;  %v8309_v52 = vld [vmem:[%s10449_s4 + $0x178] sm:$0xff] }
 0x664   :  { %2643 = vmatpush1.msra.mxu0 %v2548_v4  ;;  %2714 = vmatpush1.msra.mxu1 %v2550_v53  ;;  %v8316_v4 = vld [vmem:[%s10449_s4 + $0x160] sm:$0xff]  ;;  %v8321_v53 = vld [vmem:[%s10449_s4 + $0x170] sm:$0xff] }
 0x665   :  { %2878 = vmatprep.subr.mxu0 %v8188_v58  ;;  %2961 = vmatprep.subr.mxu1 %v8193_v55 }
 0x704   :  { %v2434_v5 = vpop.f32.mrf.mxu0  ;;  %v2505_v12 = vpop.f32.mrf.mxu1 }
 0x705   :  { %v2510_v9 = vadd.f32 %v2434_v5, %v1463_v61  ;;  %v2512_v23 = vadd.f32 %v2505_v12, %v1540_v22  ;;  %v8345_v61 = vld [vmem:[%s10449_s4 + $0x150] sm:$0xff]  ;;  %v8352_v5 = vld [vmem:[%s10449_s4 + $0x128] sm:$0xff] }
 0x706   :  { %v2436_v10 = vpop.f32.mrf.mxu0  ;;  %v2507_v16 = vpop.f32.mrf.mxu1  ;;  %v8393_v12 = vld [vmem:[%s10449_s4 + $0x110] sm:$0xff] }
 0x707   :  { %v5631_v3 = vmul.f32 -1.442695, %v2510_v9  ;;  %v2511_v11 = vadd.f32 %v2436_v10, %v1465_v6  ;;  %v2513_v19 = vadd.f32 %v2507_v16, %v1542_v18  ;;  %v8364_v6 = vld [vmem:[%s10449_s4 + $0x120] sm:$0xff]  ;;  %v8369_v9 = vld [vmem:[%s10449_s4 + $0x130] sm:$0xff]  ;;  %v8376_v10 = vld [vmem:[%s10449_s4 + $0x108] sm:$0xff] }
 0x708   :  { %v8405_v16 = vld [vmem:[%s10449_s4 + $0xf8] sm:$0xff]  ;;  %v8417_v18 = vld [vmem:[%s10449_s4 + $0xf0] sm:$0xff] }
 0x709   :  { %5812 = vpow2.f32 %v5631_v3  ;;  %v5632_v13 = vmul.f32 -1.442695, %v2511_v11  ;;  %v5633_v25 = vmul.f32 -1.442695, %v2513_v19  ;;  %v8381_v3 = vld [vmem:[%s10449_s4 + $0x118] sm:$0xff]  ;;  %v8388_v11 = vld [vmem:[%s10449_s4 + $0x100] sm:$0xff] }
 0x70a   :  { %v8424_v19 = vld [vmem:[%s10449_s4 + $0xc8] sm:$0xff]  ;;  %v8441_v22 = vld [vmem:[%s10449_s4 + $0xd0] sm:$0xff] }
 0x70b   :  { %5814 = vpow2.f32 %v5632_v13  ;;  %v8400_v13 = vld [vmem:[%s10449_s4 + $0xe8] sm:$0xff] }
 0x70c   :  { %5816 = vtanh.f32 %v2512_v23  ;;  %v8448_v23 = vld [vmem:[%s10449_s4 + $0xa8] sm:$0xff] }
 0x70d   :  { %5818 = vpow2.f32 %v5633_v25  ;;  %v8453_v25 = vld [vmem:[%s10449_s4 + $0xb8] sm:$0xff] }
 0x716   :  { %v5813_v26 = vpop.eup %5812 }
 0x717   :  { %v2517_v27 = vadd.f32 1.0, %v5813_v26  ;;  %v8460_v26 = vld [vmem:[%s10449_s4 + $0xa0] sm:$0xff] }
 0x718   :  { %v5815_v28 = vpop.eup %5814 }
 0x719   :  { %5820 = vrcp.f32 %v2517_v27  ;;  %v2523_v29 = vadd.f32 1.0, %v5815_v28  ;;  %v5817_v31 = vpop.eup %5816  ;;  %v8465_v27 = vld [vmem:[%s10449_s4 + $0xb0] sm:$0xff]  ;;  %v8472_v28 = vld [vmem:[%s10449_s4 + $0x88] sm:$0xff] }
 0x71a   :  { %v5819_v32 = vpop.eup %5818 }
 0x71b   :  { %5822 = vrcp.f32 %v2523_v29  ;;  %v2530_v36 = vadd.f32 1.0, %v5819_v32  ;;  %v8477_v29 = vld [vmem:[%s10449_s4 + $0x98] sm:$0xff]  ;;  %v8489_v32 = vld [vmem:[%s10449_s4 + $0x90] sm:$0xff] }
 0x71d   :  { %5824 = vrcp.f32 %v2530_v36  ;;  %v8513_v36 = vld [vmem:[%s10449_s4 + $0x70] sm:$0xff] }
 0x726   :  { %v5821_v33 = vpop.eup %5820 }
 0x727   :  { %v2535_v34 = vmul.f32 %v5821_v33, %v5817_v31  ;;  %v8484_v31 = vld [vmem:[%s10449_s4 + $0x80] sm:$0xff]  ;;  %v8496_v33 = vld [vmem:[%s10449_s4 + $0x68] sm:$0xff] }
 0x728   :  { %v5823_v35 = vpop.eup %5822 }
 0x729   :  { %v2534_v37 = vmul.f32 %v5823_v35, %v7984_v8  ;;  %v8232_v8 = vld [vmem:[%s10449_s4 + $0x1c8] sm:$0xff]  ;;  %v8508_v35 = vld [vmem:[%s10449_s4 + $0x60] sm:$0xff] }
 0x72a   :  { %v5825_v39 = vpop.eup %5824 }
 0x72b   :  { %v8214_v38 = vadd.f32 %v2535_v34, %v2534_v37  ;;  %v8501_v34 = vld [vmem:[%s10449_s4 + $0x78] sm:$0xff]  ;;  %v8520_v37 = vld [vmem:[%s10449_s4 + $0x48] sm:$0xff] }
 0x72d   :  { %10874 = vst [vmem:[#allocation49_spill] sm:$0xff] %v8214_v38  ;;  %5826 = vtanh.f32 %v8214_v38  ;;  %v8556_v38 = vld [vmem:[%s10449_s4 + $0x20] sm:$0xff] }
 0x72e   :  { %10877 = vst [vmem:[#allocation10_spill] sm:$0xff] %v8556_v38 }
 0x73a   :  { %v5827_v40 = vpop.eup %5826 }
 0x73b   :  { %v8217_v41 = vmul.f32 %v5827_v40, %v5825_v39  ;;  %v8525_v39 = vld [vmem:[%s10449_s4 + $0x58] sm:$0xff]  ;;  %v8532_v40 = vld [vmem:[%s10449_s4 + $0x40] sm:$0xff] }
 0x73d   :  { %10875 = vst [vmem:[#allocation44_spill] sm:$0xff] %v8217_v41  ;;  %2677 = vmatmul.mubr.f32.vlgmr.msra.gmra.mxu0 %v8217_v41  ;;  %2748 = vmatmul.mubr.f32.vlgmr.msra.gmra.mxu1 %v8217_v41  ;;  %v8537_v41 = vld [vmem:[%s10449_s4 + $0x50] sm:$0xff] }
 0x73e   :  { %2879 = vmatpush1.msra.mxu0 %v8222_v42  ;;  %2962 = vmatpush1.msra.mxu1 %v8227_v43  ;;  %10876 = vst [vmem:[#allocation9_spill] sm:$0xff] %v8537_v41 }
 0x73f   :  { %2880 = vmatprep.subr.mxu0 %v8232_v8  ;;  %2963 = vmatprep.subr.mxu1 %v8237_v44 }
 0x740   :  { %2881 = vmatpush1.msra.mxu0 %v8244_v57  ;;  %2964 = vmatpush1.msra.mxu1 %v8249_v49 }
 0x741   :  { %2882 = vmatprep.subr.mxu0 %v8256_v50  ;;  %2965 = vmatprep.subr.mxu1 %v8261_v7 }
 0x742   :  { %2883 = vmatpush1.msra.mxu0 %v8268_v45  ;;  %2966 = vmatpush1.msra.mxu1 %v8273_v47 }
 0x743   :  { %2884 = vmatprep.subr.mxu0 %v8280_v59  ;;  %2967 = vmatprep.subr.mxu1 %v8285_v51 }
 0x744   :  { %2885 = vmatpush1.msra.mxu0 %v8292_v54  ;;  %2968 = vmatpush1.msra.mxu1 %v8297_v30 }
 0x745   :  { %2886 = vmatprep.subr.mxu0 %v8304_v62  ;;  %2969 = vmatprep.subr.mxu1 %v8309_v52 }
 0x746   :  { %2887 = vmatpush1.msra.mxu0 %v8316_v4  ;;  %2970 = vmatpush1.msra.mxu1 %v8321_v53 }
 0x747   :  { %2888 = vmatprep.subr.mxu0 %v8328_v1  ;;  %2971 = vmatprep.subr.mxu1 %v8333_v56 }
 0x748   :  { %2889 = vmatpush1.msra.mxu0 %v8340_v46  ;;  %2972 = vmatpush1.msra.mxu1 %v8345_v61 }
 0x749   :  { %2890 = vmatprep.subr.mxu0 %v8352_v5  ;;  %2973 = vmatprep.subr.mxu1 %v8357_v48 }
 0x74a   :  { %2891 = vmatpush1.msra.mxu0 %v8364_v6  ;;  %2974 = vmatpush1.msra.mxu1 %v8369_v9 }
 0x74b   :  { %2892 = vmatprep.subr.mxu0 %v8376_v10  ;;  %2975 = vmatprep.subr.mxu1 %v8381_v3 }
 0x74c   :  { %2893 = vmatpush1.msra.mxu0 %v8388_v11  ;;  %2976 = vmatpush1.msra.mxu1 %v8393_v12 }
 0x74d   :  { %2894 = vmatprep.subr.mxu0 %v8400_v13  ;;  %2977 = vmatprep.subr.mxu1 %v8405_v16 }
 0x74e   :  { %2895 = vmatpush1.msra.mxu0 %v8412_v17  ;;  %2978 = vmatpush1.msra.mxu1 %v8417_v18 }
 0x74f   :  { %2896 = vmatprep.subr.mxu0 %v8424_v19  ;;  %2979 = vmatprep.subr.mxu1 %v8429_v20 }
 0x750   :  { %2897 = vmatpush1.msra.mxu0 %v8436_v21  ;;  %2980 = vmatpush1.msra.mxu1 %v8441_v22 }
 0x751   :  { %2898 = vmatprep.subr.mxu0 %v8448_v23  ;;  %2981 = vmatprep.subr.mxu1 %v8453_v25 }
 0x752   :  { %2899 = vmatpush1.msra.mxu0 %v8460_v26  ;;  %2982 = vmatpush1.msra.mxu1 %v8465_v27 }
 0x753   :  { %2900 = vmatprep.subr.mxu0 %v8472_v28  ;;  %2983 = vmatprep.subr.mxu1 %v8477_v29 }
 0x754   :  { %2901 = vmatpush1.msra.mxu0 %v8484_v31  ;;  %2984 = vmatpush1.msra.mxu1 %v8489_v32 }
 0x755   :  { %2902 = vmatprep.subr.mxu0 %v8496_v33  ;;  %2985 = vmatprep.subr.mxu1 %v8501_v34 }
 0x756   :  { %2903 = vmatpush1.msra.mxu0 %v8508_v35  ;;  %2986 = vmatpush1.msra.mxu1 %v8513_v36 }
 0x757   :  { %2904 = vmatprep.subr.mxu0 %v8520_v37  ;;  %2987 = vmatprep.subr.mxu1 %v8525_v39 }
 0x758   :  { %2905 = vmatpush1.msra.mxu0 %v8532_v40  ;;  %2988 = vmatpush1.msra.mxu1 %v8537_v41  ;;  %v8587_v41 = vld [vmem:[%s10449_s4 + $0x10] sm:$0xff] }
 0x759   :  { %2906 = vmatprep.subr.mxu0 %v8544_v14  ;;  %2989 = vmatprep.subr.mxu1 %v8549_v2 }
 0x75a   :  { %2907 = vmatpush1.msra.mxu0 %v8556_v38  ;;  %2990 = vmatpush1.msra.mxu1 %v8561_v15  ;;  %v10878_v38 = vld [vmem:[#allocation58_spill] sm:$0xff] }
 0x75b   :  { %2908 = vmatprep.subr.mxu0 %v8568_v63  ;;  %2991 = vmatprep.subr.mxu1 %v8573_v0 }
 0x75c   :  { %2909 = vmatpush1.msra.mxu0 %v8580_v60  ;;  %2942 = vmatprep.mubr.f32.mxu0 %v10856_v24 }
 0x75d   :  { %2992 = vmatpush1.msra.mxu1 %v8587_v41  ;;  %3025 = vmatprep.mubr.f32.mxu1 %v10856_v24 }
 0x75e   :  { %2943 = vmatmul.mubr.f32.vlgmr.msra.gmra.mxu0 %v10878_v38  ;;  %3026 = vmatmul.mubr.f32.vlgmr.msra.gmra.mxu1 %v10878_v38  ;;  %v10879_v38 = vld [vmem:[#allocation6_spill] sm:$0xff] }
 0x75f   :  { %3145 = vmatprep.subr.mxu0 %v8188_v58  ;;  %3228 = vmatprep.subr.mxu1 %v8193_v55  ;;  %v10880_v58 = vld [vmem:[#allocation29_spill] sm:$0xff] }
 0x760   :  { %3146 = vmatpush1.msra.mxu0 %v8222_v42  ;;  %3229 = vmatpush1.msra.mxu1 %v8227_v43  ;;  %v10881_v55 = vld [vmem:[#allocation9_spill] sm:$0xff]  ;;  %v10882_v42 = vld [vmem:[#allocation10_spill] sm:$0xff]  ;;  %v8672_v43 = vld [vmem:[%s10450_s5 + $0x1e8] sm:$0xff] }
 0x761   :  { %3147 = vmatprep.subr.mxu0 %v8232_v8  ;;  %3230 = vmatprep.subr.mxu1 %v8237_v44  ;;  %v8715_v8 = vld [vmem:[%s10450_s5 + $0x1d0] sm:$0xff]  ;;  %v8724_v44 = vld [vmem:[%s10450_s5 + $0x1a8] sm:$0xff] }
 0x762   :  { %2948 = vmatprep.mubr.f32.mxu0 %v10856_v24  ;;  %3031 = vmatprep.mubr.f32.mxu1 %v10856_v24 }
 0x763   :  { %3148 = vmatpush1.msra.mxu0 %v8244_v57  ;;  %3231 = vmatpush1.msra.mxu1 %v8249_v49  ;;  %v8729_v57 = vld [vmem:[%s10450_s5 + $0x1b8] sm:$0xff]  ;;  %v8736_v49 = vld [vmem:[%s10450_s5 + $0x1a0] sm:$0xff] }
 0x764   :  { %2949 = vmatmul.mubr.f32.gmra.mxu0 %v10879_v38  ;;  %3032 = vmatmul.mubr.f32.gmra.mxu1 %v10879_v38  ;;  %v9016_v38 = vld [vmem:[%s10450_s5 + $0x28] sm:$0xff] }
 0x765   :  { %3149 = vmatprep.subr.mxu0 %v8256_v50  ;;  %3232 = vmatprep.subr.mxu1 %v8261_v7  ;;  %v8741_v50 = vld [vmem:[%s10450_s5 + $0x1b0] sm:$0xff]  ;;  %v10884_v7 = vld [vmem:[#allocation46_spill] sm:$0xff]  ;;  %10904 = vst [vmem:[#allocation23_spill] sm:$0xff] %v9016_v38 }
 0x766   :  { %3150 = vmatpush1.msra.mxu0 %v8268_v45  ;;  %3233 = vmatpush1.msra.mxu1 %v8273_v47  ;;  %v8748_v45 = vld [vmem:[%s10450_s5 + $0x188] sm:$0xff]  ;;  %v8753_v47 = vld [vmem:[%s10450_s5 + $0x198] sm:$0xff] }
 0x767   :  { %3151 = vmatprep.subr.mxu0 %v8280_v59  ;;  %3234 = vmatprep.subr.mxu1 %v8285_v51  ;;  %v8762_v59 = vld [vmem:[%s10450_s5 + $0x180] sm:$0xff]  ;;  %v8767_v51 = vld [vmem:[%s10450_s5 + $0x190] sm:$0xff] }
 0x768   :  { %2954 = vmatprep.mubr.f32.mxu0 %v10856_v24  ;;  %3037 = vmatprep.mubr.f32.mxu1 %v10856_v24 }
 0x769   :  { %3152 = vmatpush1.msra.mxu0 %v8292_v54  ;;  %3235 = vmatpush1.msra.mxu1 %v8297_v30  ;;  %v8776_v54 = vld [vmem:[%s10450_s5 + $0x168] sm:$0xff]  ;;  %v8781_v30 = vld [vmem:[%s10450_s5 + $0x178] sm:$0xff] }
 0x76a   :  { %2955 = vmatmul.mubr.f32.gmra.mxu0 %v10880_v58  ;;  %3038 = vmatmul.mubr.f32.gmra.mxu1 %v10880_v58  ;;  %v9021_v58 = vld [vmem:[%s10450_s5 + $0x38] sm:$0xff] }
 0x76b   :  { %3153 = vmatprep.subr.mxu0 %v8304_v62  ;;  %3236 = vmatprep.subr.mxu1 %v8309_v52  ;;  %v8788_v62 = vld [vmem:[%s10450_s5 + $0x160] sm:$0xff]  ;;  %v8793_v52 = vld [vmem:[%s10450_s5 + $0x170] sm:$0xff]  ;;  %10905 = vst [vmem:[#allocation24_spill] sm:$0xff] %v9021_v58 }
 0x76c   :  { %3154 = vmatpush1.msra.mxu0 %v8316_v4  ;;  %3237 = vmatpush1.msra.mxu1 %v8321_v53  ;;  %v10885_v4 = vld [vmem:[#allocation43_spill] sm:$0xff] }
 0x76d   :  { %3155 = vmatprep.subr.mxu0 %v8328_v1  ;;  %3238 = vmatprep.subr.mxu1 %v8333_v56  ;;  %v8800_v53 = vld [vmem:[%s10450_s5 + $0x148] sm:$0xff]  ;;  %v8805_v1 = vld [vmem:[%s10450_s5 + $0x158] sm:$0xff]  ;;  %v8812_v56 = vld [vmem:[%s10450_s5 + $0x140] sm:$0xff] }
 0x76e   :  { %3156 = vmatpush1.msra.mxu0 %v8340_v46  ;;  %3239 = vmatpush1.msra.mxu1 %v8345_v61  ;;  %v8817_v46 = vld [vmem:[%s10450_s5 + $0x150] sm:$0xff]  ;;  %v8824_v61 = vld [vmem:[%s10450_s5 + $0x128] sm:$0xff] }
 0x76f   :  { %3157 = vmatprep.subr.mxu0 %v8352_v5  ;;  %3240 = vmatprep.subr.mxu1 %v8357_v48  ;;  %v8829_v5 = vld [vmem:[%s10450_s5 + $0x138] sm:$0xff]  ;;  %v8836_v48 = vld [vmem:[%s10450_s5 + $0x120] sm:$0xff] }
 0x770   :  { %3158 = vmatpush1.msra.mxu0 %v8364_v6  ;;  %3241 = vmatpush1.msra.mxu1 %v8369_v9  ;;  %v8841_v6 = vld [vmem:[%s10450_s5 + $0x130] sm:$0xff]  ;;  %v8848_v9 = vld [vmem:[%s10450_s5 + $0x108] sm:$0xff] }
 0x771   :  { %3159 = vmatprep.subr.mxu0 %v8376_v10  ;;  %3242 = vmatprep.subr.mxu1 %v8381_v3  ;;  %v8853_v10 = vld [vmem:[%s10450_s5 + $0x118] sm:$0xff]  ;;  %v8860_v3 = vld [vmem:[%s10450_s5 + $0x100] sm:$0xff] }
 0x772   :  { %3160 = vmatpush1.msra.mxu0 %v8388_v11  ;;  %3243 = vmatpush1.msra.mxu1 %v8393_v12  ;;  %v8865_v11 = vld [vmem:[%s10450_s5 + $0x110] sm:$0xff]  ;;  %v8872_v12 = vld [vmem:[%s10450_s5 + $0xe8] sm:$0xff] }
 0x773   :  { %3161 = vmatprep.subr.mxu0 %v8400_v13  ;;  %3244 = vmatprep.subr.mxu1 %v8405_v16  ;;  %v8877_v13 = vld [vmem:[%s10450_s5 + $0xf8] sm:$0xff]  ;;  %v8884_v16 = vld [vmem:[%s10450_s5 + $0xe0] sm:$0xff] }
 0x774   :  { %3162 = vmatpush1.msra.mxu0 %v8412_v17  ;;  %3245 = vmatpush1.msra.mxu1 %v8417_v18  ;;  %v8889_v17 = vld [vmem:[%s10450_s5 + $0xf0] sm:$0xff]  ;;  %v8896_v18 = vld [vmem:[%s10450_s5 + $0xc8] sm:$0xff] }
 0x775   :  { %3163 = vmatprep.subr.mxu0 %v8424_v19  ;;  %3246 = vmatprep.subr.mxu1 %v8429_v20  ;;  %v8901_v19 = vld [vmem:[%s10450_s5 + $0xd8] sm:$0xff]  ;;  %v8908_v20 = vld [vmem:[%s10450_s5 + $0xc0] sm:$0xff] }
 0x776   :  { %3164 = vmatpush1.msra.mxu0 %v8436_v21  ;;  %3247 = vmatpush1.msra.mxu1 %v8441_v22  ;;  %10886 = vst [vmem:[#allocation11_spill] sm:$0xff] %v8908_v20  ;;  %v8913_v21 = vld [vmem:[%s10450_s5 + $0xd0] sm:$0xff]  ;;  %v8920_v22 = vld [vmem:[%s10450_s5 + $0xa8] sm:$0xff] }
 0x777   :  { %3165 = vmatprep.subr.mxu0 %v8448_v23  ;;  %3248 = vmatprep.subr.mxu1 %v8453_v25  ;;  %10887 = vst [vmem:[#allocation7_spill] sm:$0xff] %v8913_v21  ;;  %10888 = vst [vmem:[#allocation8_spill] sm:$0xff] %v8920_v22  ;;  %v8925_v23 = vld [vmem:[%s10450_s5 + $0xb8] sm:$0xff]  ;;  %v8932_v25 = vld [vmem:[%s10450_s5 + $0xa0] sm:$0xff] }
 0x778   :  { %3166 = vmatpush1.msra.mxu0 %v8460_v26  ;;  %3249 = vmatpush1.msra.mxu1 %v8465_v27  ;;  %10889 = vst [vmem:[#allocation47_spill] sm:$0xff] %v8925_v23  ;;  %10890 = vst [vmem:[#allocation50_spill] sm:$0xff] %v8932_v25  ;;  %v8937_v26 = vld [vmem:[%s10450_s5 + $0xb0] sm:$0xff]  ;;  %v8944_v27 = vld [vmem:[%s10450_s5 + $0x88] sm:$0xff] }
 0x779   :  { %3167 = vmatprep.subr.mxu0 %v8472_v28  ;;  %3250 = vmatprep.subr.mxu1 %v8477_v29  ;;  %10891 = vst [vmem:[#allocation54_spill] sm:$0xff] %v8937_v26  ;;  %10892 = vst [vmem:[#allocation52_spill] sm:$0xff] %v8944_v27  ;;  %v8949_v28 = vld [vmem:[%s10450_s5 + $0x98] sm:$0xff]  ;;  %v8956_v29 = vld [vmem:[%s10450_s5 + $0x80] sm:$0xff] }
 0x77a   :  { %3168 = vmatpush1.msra.mxu0 %v8484_v31  ;;  %3251 = vmatpush1.msra.mxu1 %v8489_v32  ;;  %10893 = vst [vmem:[#allocation12_spill] sm:$0xff] %v8949_v28  ;;  %10894 = vst [vmem:[#allocation13_spill] sm:$0xff] %v8956_v29  ;;  %v8961_v31 = vld [vmem:[%s10450_s5 + $0x90] sm:$0xff]  ;;  %v8968_v32 = vld [vmem:[%s10450_s5 + $0x68] sm:$0xff] }
 0x77b   :  { %3169 = vmatprep.subr.mxu0 %v8496_v33  ;;  %3252 = vmatprep.subr.mxu1 %v8501_v34  ;;  %10895 = vst [vmem:[#allocation14_spill] sm:$0xff] %v8961_v31  ;;  %10896 = vst [vmem:[#allocation15_spill] sm:$0xff] %v8968_v32  ;;  %v8973_v33 = vld [vmem:[%s10450_s5 + $0x78] sm:$0xff]  ;;  %v8980_v34 = vld [vmem:[%s10450_s5 + $0x60] sm:$0xff] }
 0x77c   :  { %3170 = vmatpush1.msra.mxu0 %v8508_v35  ;;  %3253 = vmatpush1.msra.mxu1 %v8513_v36  ;;  %10897 = vst [vmem:[#allocation16_spill] sm:$0xff] %v8973_v33  ;;  %10898 = vst [vmem:[#allocation17_spill] sm:$0xff] %v8980_v34  ;;  %v8985_v35 = vld [vmem:[%s10450_s5 + $0x70] sm:$0xff]  ;;  %v8992_v36 = vld [vmem:[%s10450_s5 + $0x48] sm:$0xff] }
 0x77d   :  { %3171 = vmatprep.subr.mxu0 %v8520_v37  ;;  %3254 = vmatprep.subr.mxu1 %v8525_v39  ;;  %10899 = vst [vmem:[#allocation18_spill] sm:$0xff] %v8985_v35  ;;  %10900 = vst [vmem:[#allocation19_spill] sm:$0xff] %v8992_v36  ;;  %v8997_v37 = vld [vmem:[%s10450_s5 + $0x58] sm:$0xff]  ;;  %v9004_v39 = vld [vmem:[%s10450_s5 + $0x40] sm:$0xff] }
 0x77e   :  { %3172 = vmatpush1.msra.mxu0 %v8532_v40  ;;  %3255 = vmatpush1.msra.mxu1 %v10881_v55  ;;  %10901 = vst [vmem:[#allocation20_spill] sm:$0xff] %v8997_v37  ;;  %10902 = vst [vmem:[#allocation21_spill] sm:$0xff] %v9004_v39  ;;  %v9009_v40 = vld [vmem:[%s10450_s5 + $0x50] sm:$0xff]  ;;  %v9028_v55 = vld [vmem:[%s10450_s5 + $0x20] sm:$0xff] }
 0x77f   :  { %3173 = vmatprep.subr.mxu0 %v8544_v14  ;;  %3256 = vmatprep.subr.mxu1 %v8549_v2  ;;  %v8677_v2 = vld [vmem:[%s10450_s5 + $0x1f8] sm:$0xff]  ;;  %v8696_v14 = vld [vmem:[%s10450_s5 + $0x1c8] sm:$0xff]  ;;  %10903 = vst [vmem:[#allocation22_spill] sm:$0xff] %v9009_v40  ;;  %10906 = vst [vmem:[#allocation25_spill] sm:$0xff] %v9028_v55 }
 0x780   :  { %3174 = vmatpush1.msra.mxu0 %v10882_v42  ;;  %3257 = vmatpush1.msra.mxu1 %v8561_v15  ;;  %v8701_v15 = vld [vmem:[%s10450_s5 + $0x1d8] sm:$0xff]  ;;  %v9033_v42 = vld [vmem:[%s10450_s5 + $0x30] sm:$0xff] }
 0x781   :  { %3175 = vmatprep.subr.mxu0 %v8568_v63  ;;  %3258 = vmatprep.subr.mxu1 %v8573_v0  ;;  %v8689_v0 = vld [vmem:[%s10450_s5 + $0x1f0] sm:$0xff]  ;;  %v10883_v63 = vld [vmem:[#allocation42_spill] sm:$0xff]  ;;  %10907 = vst [vmem:[#allocation26_spill] sm:$0xff] %v9033_v42 }
 0x782   :  { %3176 = vmatpush1.msra.mxu0 %v8580_v60  ;;  %3209 = vmatprep.mubr.f32.mxu0 %v10856_v24  ;;  %v8684_v60 = vld [vmem:[%s10450_s5 + $0x1e0] sm:$0xff] }
 0x783   :  { %3259 = vmatpush1.msra.mxu1 %v8587_v41  ;;  %3292 = vmatprep.mubr.f32.mxu1 %v10856_v24  ;;  %v8710_v41 = vld [vmem:[%s10450_s5 + $0x1c0] sm:$0xff] }
 0x784   :  { %3210 = vmatmul.mubr.f32.vlgmr.msra.gmra.mxu0 %v10883_v63  ;;  %3293 = vmatmul.mubr.f32.vlgmr.msra.gmra.mxu1 %v10883_v63  ;;  %v9040_v63 = vld [vmem:[%s10450_s5 + $0x8] sm:$0xff] }
 0x785   :  { %3392 = vmatprep.subr.mxu0 %v8672_v43  ;;  %3463 = vmatprep.subr.mxu1 %v8677_v2  ;;  %10908 = vst [vmem:[#allocation27_spill] sm:$0xff] %v9040_v63 }
 0x786   :  { %3393 = vmatpush1.msra.mxu0 %v8684_v60  ;;  %3464 = vmatpush1.msra.mxu1 %v8689_v0 }
 0x787   :  { %3394 = vmatprep.subr.mxu0 %v8696_v14  ;;  %3465 = vmatprep.subr.mxu1 %v8701_v15 }
 0x788   :  { %3215 = vmatprep.mubr.f32.mxu0 %v10856_v24  ;;  %3298 = vmatprep.mubr.f32.mxu1 %v10856_v24 }
 0x789   :  { %3395 = vmatpush1.msra.mxu0 %v8710_v41  ;;  %3466 = vmatpush1.msra.mxu1 %v8715_v8 }
 0x78a   :  { %3216 = vmatmul.mubr.f32.gmra.mxu0 %v10884_v7  ;;  %3299 = vmatmul.mubr.f32.gmra.mxu1 %v10884_v7  ;;  %v9045_v7 = vld [vmem:[%s10450_s5 + $0x18] sm:$0xff] }
 0x78b   :  { %3396 = vmatprep.subr.mxu0 %v8724_v44  ;;  %3467 = vmatprep.subr.mxu1 %v8729_v57  ;;  %10909 = vst [vmem:[#allocation28_spill] sm:$0xff] %v9045_v7 }
 0x78c   :  { %3397 = vmatpush1.msra.mxu0 %v8736_v49  ;;  %3468 = vmatpush1.msra.mxu1 %v8741_v50 }
 0x78d   :  { %3398 = vmatprep.subr.mxu0 %v8748_v45  ;;  %3469 = vmatprep.subr.mxu1 %v8753_v47 }
 0x78e   :  { %3221 = vmatprep.mubr.f32.mxu0 %v10856_v24  ;;  %3304 = vmatprep.mubr.f32.mxu1 %v10856_v24 }
 0x78f   :  { %3399 = vmatpush1.msra.mxu0 %v8762_v59  ;;  %3470 = vmatpush1.msra.mxu1 %v8767_v51 }
 0x790   :  { %3222 = vmatmul.mubr.f32.gmra.mxu0 %v10885_v4  ;;  %3305 = vmatmul.mubr.f32.gmra.mxu1 %v10885_v4  ;;  %v9052_v4 = vld [vmem:[%s10450_s5] sm:$0xff] }
 0x791   :  { %3400 = vmatprep.subr.mxu0 %v8776_v54  ;;  %3471 = vmatprep.subr.mxu1 %v8781_v30  ;;  %10910 = vst [vmem:[#allocation53_spill] sm:$0xff] %v9052_v4 }
 0x792   :  { %3401 = vmatpush1.msra.mxu0 %v8788_v62  ;;  %3472 = vmatpush1.msra.mxu1 %v8793_v52 }
 0x793   :  { %3402 = vmatprep.subr.mxu0 %v8800_v53  ;;  %3473 = vmatprep.subr.mxu1 %v8805_v1 }
 0x794   :  { %3403 = vmatpush1.msra.mxu0 %v8812_v56  ;;  %3474 = vmatpush1.msra.mxu1 %v8817_v46 }
 0x795   :  { %3404 = vmatprep.subr.mxu0 %v8824_v61  ;;  %3475 = vmatprep.subr.mxu1 %v8829_v5 }
 0x796   :  { %3405 = vmatpush1.msra.mxu0 %v8836_v48  ;;  %3476 = vmatpush1.msra.mxu1 %v8841_v6 }
 0x797   :  { %3406 = vmatprep.subr.mxu0 %v8848_v9  ;;  %3477 = vmatprep.subr.mxu1 %v8853_v10 }
 0x798   :  { %3407 = vmatpush1.msra.mxu0 %v8860_v3  ;;  %3478 = vmatpush1.msra.mxu1 %v8865_v11 }
 0x799   :  { %3408 = vmatprep.subr.mxu0 %v8872_v12  ;;  %3479 = vmatprep.subr.mxu1 %v8877_v13 }
 0x79a   :  { %3409 = vmatpush1.msra.mxu0 %v8884_v16  ;;  %3480 = vmatpush1.msra.mxu1 %v8889_v17 }
 0x79b   :  { %3410 = vmatprep.subr.mxu0 %v8896_v18  ;;  %3481 = vmatprep.subr.mxu1 %v8901_v19 }
 0x79c   :  { %3411 = vmatpush1.msra.mxu0 %v8908_v20  ;;  %3482 = vmatpush1.msra.mxu1 %v8913_v21 }
 0x79d   :  { %3412 = vmatprep.subr.mxu0 %v8920_v22  ;;  %3483 = vmatprep.subr.mxu1 %v8925_v23 }
 0x79e   :  { %3413 = vmatpush1.msra.mxu0 %v8932_v25  ;;  %3484 = vmatpush1.msra.mxu1 %v8937_v26 }
 0x79f   :  { %3414 = vmatprep.subr.mxu0 %v8944_v27  ;;  %3485 = vmatprep.subr.mxu1 %v8949_v28 }
 0x7a0   :  { %3415 = vmatpush1.msra.mxu0 %v8956_v29  ;;  %3486 = vmatpush1.msra.mxu1 %v8961_v31 }
 0x7a1   :  { %3416 = vmatprep.subr.mxu0 %v8968_v32  ;;  %3487 = vmatprep.subr.mxu1 %v8973_v33 }
 0x7a2   :  { %3417 = vmatpush1.msra.mxu0 %v8980_v34  ;;  %3488 = vmatpush1.msra.mxu1 %v8985_v35 }
 0x7a3   :  { %3418 = vmatprep.subr.mxu0 %v8992_v36  ;;  %3489 = vmatprep.subr.mxu1 %v8997_v37 }
 0x7a4   :  { %3419 = vmatpush1.msra.mxu0 %v9004_v39  ;;  %3490 = vmatpush1.msra.mxu1 %v9009_v40  ;;  %v9059_v40 = vld [vmem:[%s10450_s5 + $0x10] sm:$0xff] }
 0x7a5   :  { %3420 = vmatprep.subr.mxu0 %v9016_v38  ;;  %3491 = vmatprep.subr.mxu1 %v9021_v58  ;;  %10911 = vst [vmem:[#allocation55_spill] sm:$0xff] %v9059_v40 }
 0x7a6   :  { %3421 = vmatpush1.msra.mxu0 %v9028_v55  ;;  %3492 = vmatpush1.msra.mxu1 %v9033_v42 }
 0x7a7   :  { %3422 = vmatprep.subr.mxu0 %v9040_v63  ;;  %3493 = vmatprep.subr.mxu1 %v9045_v7 }
 0x7a8   :  { %3423 = vmatpush1.msra.mxu0 %v9052_v4  ;;  %3456 = vmatprep.mubr.f32.mxu0 %v10856_v24 }
 0x7a9   :  { %3494 = vmatpush1.msra.mxu1 %v9059_v40  ;;  %3527 = vmatprep.mubr.f32.mxu1 %v10856_v24 }
 0x7aa   :  { %3457 = vmatmul.mubr.f32.vlgmr.msra.gmra.mxu0 %v10856_v24  ;;  %3528 = vmatmul.mubr.f32.vlgmr.msra.gmra.mxu1 %v10856_v24 }
 0x7ab   :  { %3634 = vmatprep.subr.mxu0 %v8672_v43  ;;  %3705 = vmatprep.subr.mxu1 %v8677_v2 }
 0x7ac   :  { %3635 = vmatpush1.msra.mxu0 %v8684_v60  ;;  %3706 = vmatpush1.msra.mxu1 %v8689_v0 }
 0x7ad   :  { %3636 = vmatprep.subr.mxu0 %v8696_v14  ;;  %3707 = vmatprep.subr.mxu1 %v8701_v15 }
 0x7ae   :  { %3637 = vmatpush1.msra.mxu0 %v8710_v41  ;;  %3708 = vmatpush1.msra.mxu1 %v8715_v8 }
 0x7af   :  { %3638 = vmatprep.subr.mxu0 %v8724_v44  ;;  %3709 = vmatprep.subr.mxu1 %v8729_v57 }
 0x7b0   :  { %3639 = vmatpush1.msra.mxu0 %v8736_v49  ;;  %3710 = vmatpush1.msra.mxu1 %v8741_v50 }
 0x7b1   :  { %3640 = vmatprep.subr.mxu0 %v8748_v45  ;;  %3711 = vmatprep.subr.mxu1 %v8753_v47 }
 0x7b2   :  { %3641 = vmatpush1.msra.mxu0 %v8762_v59  ;;  %3712 = vmatpush1.msra.mxu1 %v8767_v51 }
 0x7b3   :  { %3642 = vmatprep.subr.mxu0 %v8776_v54  ;;  %3713 = vmatprep.subr.mxu1 %v8781_v30 }
 0x7b4   :  { %3643 = vmatpush1.msra.mxu0 %v8788_v62  ;;  %3714 = vmatpush1.msra.mxu1 %v8793_v52 }
 0x7b5   :  { %3644 = vmatprep.subr.mxu0 %v8800_v53  ;;  %3715 = vmatprep.subr.mxu1 %v8805_v1 }
 0x7b6   :  { %3645 = vmatpush1.msra.mxu0 %v8812_v56  ;;  %3716 = vmatpush1.msra.mxu1 %v8817_v46 }
 0x7b7   :  { %3646 = vmatprep.subr.mxu0 %v8824_v61  ;;  %3717 = vmatprep.subr.mxu1 %v8829_v5 }
 0x7b8   :  { %3647 = vmatpush1.msra.mxu0 %v8836_v48  ;;  %3718 = vmatpush1.msra.mxu1 %v8841_v6 }
 0x7b9   :  { %3648 = vmatprep.subr.mxu0 %v8848_v9  ;;  %3719 = vmatprep.subr.mxu1 %v8853_v10 }
 0x7ba   :  { %3649 = vmatpush1.msra.mxu0 %v8860_v3  ;;  %3720 = vmatpush1.msra.mxu1 %v8865_v11 }
 0x7bb   :  { %3650 = vmatprep.subr.mxu0 %v8872_v12  ;;  %3721 = vmatprep.subr.mxu1 %v8877_v13 }
 0x7bc   :  { %3651 = vmatpush1.msra.mxu0 %v8884_v16  ;;  %3722 = vmatpush1.msra.mxu1 %v8889_v17 }
 0x7bd   :  { %3652 = vmatprep.subr.mxu0 %v8896_v18  ;;  %3723 = vmatprep.subr.mxu1 %v8901_v19 }
 0x7be   :  { %3653 = vmatpush1.msra.mxu0 %v8908_v20  ;;  %3724 = vmatpush1.msra.mxu1 %v8913_v21 }
 0x7bf   :  { %3654 = vmatprep.subr.mxu0 %v8920_v22  ;;  %3725 = vmatprep.subr.mxu1 %v8925_v23 }
 0x7c0   :  { %3655 = vmatpush1.msra.mxu0 %v8932_v25  ;;  %3726 = vmatpush1.msra.mxu1 %v8937_v26 }
 0x7c1   :  { %3656 = vmatprep.subr.mxu0 %v8944_v27  ;;  %3727 = vmatprep.subr.mxu1 %v8949_v28  ;;  %v10912_v27 = vld [vmem:[#allocation22_spill] sm:$0xff] }
 0x7c2   :  { %3657 = vmatpush1.msra.mxu0 %v8956_v29  ;;  %3728 = vmatpush1.msra.mxu1 %v8961_v31 }
 0x7c3   :  { %3658 = vmatprep.subr.mxu0 %v8968_v32  ;;  %3729 = vmatprep.subr.mxu1 %v8973_v33 }
 0x7c4   :  { %3659 = vmatpush1.msra.mxu0 %v8980_v34  ;;  %3730 = vmatpush1.msra.mxu1 %v8985_v35 }
 0x7c5   :  { %3660 = vmatprep.subr.mxu0 %v8992_v36  ;;  %3731 = vmatprep.subr.mxu1 %v8997_v37  ;;  %v10917_v37 = vld [vmem:[#allocation41_spill] sm:$0xff]  ;;  %v10918_v36 = vld [vmem:[#allocation59_spill] sm:$0xff] }
 0x7c6   :  { %3661 = vmatpush1.msra.mxu0 %v9004_v39  ;;  %3732 = vmatpush1.msra.mxu1 %v10912_v27  ;;  %v10916_v39 = vld [vmem:[#allocation45_spill] sm:$0xff] }
 0x7c7   :  { %3662 = vmatprep.subr.mxu0 %v9016_v38  ;;  %3733 = vmatprep.subr.mxu1 %v9021_v58  ;;  %v10913_v38 = vld [vmem:[#allocation51_spill] sm:$0xff] }
 0x7c8   :  { %3663 = vmatpush1.msra.mxu0 %v9028_v55  ;;  %3734 = vmatpush1.msra.mxu1 %v9033_v42  ;;  %v10914_v42 = vld [vmem:[#allocation60_spill] sm:$0xff] }
 0x7c9   :  { %3664 = vmatprep.subr.mxu0 %v9040_v63  ;;  %3735 = vmatprep.subr.mxu1 %v9045_v7  ;;  %v1471_v27 = vadd.f32 %v10914_v42, %v10913_v38  ;;  %v10915_v63 = vld [vmem:[#allocation48_spill] sm:$0xff] }
 0x7ca   :  { %3665 = vmatpush1.msra.mxu0 %v9052_v4  ;;  %3698 = vmatprep.mubr.f32.mxu0 %v10856_v24  ;;  %v1548_v7 = vadd.f32 %v10916_v39, %v10915_v63 }
 0x7cb   :  { %3736 = vmatpush1.msra.mxu1 %v9059_v40  ;;  %3769 = vmatprep.mubr.f32.mxu1 %v10856_v24 }
 0x7cc   :  { %3876 = vmatprep.subr.mxu0 %v8672_v43  ;;  %3947 = vmatprep.subr.mxu1 %v8677_v2 }
 0x7fd   :  { %v2678_v58 = vpop.f32.mrf.mxu0  ;;  %v2749_v55 = vpop.f32.mrf.mxu1 }
 0x7fe   :  { %v2754_v4 = vadd.f32 %v2678_v58, %v10917_v37  ;;  %v2756_v35 = vadd.f32 %v2749_v55, %v10918_v36 }
 0x7ff   :  { %v2680_v34 = vpop.f32.mrf.mxu0  ;;  %v2751_v40 = vpop.f32.mrf.mxu1 }
 0x800   :  { %v5634_v33 = vmul.f32 -1.442695, %v2754_v4  ;;  %v2755_v24 = vadd.f32 %v2680_v34, %v1471_v27  ;;  %v2757_v32 = vadd.f32 %v2751_v40, %v1548_v7  ;;  %v10920_v40 = vld [vmem:[#allocation30_spill] sm:$0xff]  ;;  %v10921_v7 = vld [vmem:[#allocation32_spill] sm:$0xff] }
 0x802   :  { %5828 = vpow2.f32 %v5634_v33  ;;  %v5635_v43 = vmul.f32 -1.442695, %v2755_v24  ;;  %v5636_v2 = vmul.f32 -1.442695, %v2757_v32  ;;  %v2856_v24 = vld [vmem:[%s10451_s6] sm:$0xf] }
 0x803   :  { %v2861_v63 = vrot.slane %v2856_v24, %v10920_v40  ;;  %v9153_v4 = vrot.slane %v2856_v24, %v10921_v7 }
 0x804   :  { %5830 = vpow2.f32 %v5635_v43  ;;  %v10922_v43 = vld [vmem:[#allocation31_spill] sm:$0xff] }
 0x805   :  { %5832 = vtanh.f32 %v2756_v35  ;;  %v10919_v35 = vld [vmem:[#allocation49_spill] sm:$0xff] }
 0x806   :  { %5834 = vpow2.f32 %v5636_v2  ;;  %v2865_v2 = vrot.slane %v2856_v24, %v10922_v43 }
 0x80f   :  { %v5829_v31 = vpop.eup %5828 }
 0x810   :  { %v2761_v29 = vadd.f32 1.0, %v5829_v31 }
 0x811   :  { %v5831_v38 = vpop.eup %5830 }
 0x812   :  { %5836 = vrcp.f32 %v2761_v29  ;;  %v2767_v39 = vadd.f32 1.0, %v5831_v38  ;;  %v5833_v37 = vpop.eup %5832 }
 0x813   :  { %v5835_v58 = vpop.eup %5834 }
 0x814   :  { %5838 = vrcp.f32 %v2767_v39  ;;  %v2774_v34 = vadd.f32 1.0, %v5835_v58 }
 0x816   :  { %5840 = vrcp.f32 %v2774_v34 }
 0x81e   :  { %v2944_v36 = vpop.f32.mrf.mxu0  ;;  %v9143_v55 = vpop.f32.mrf.mxu1 }
 0x81f   :  { %v5837_v42 = vpop.eup %5836 }
 0x820   :  { %v2779_v27 = vmul.f32 %v5837_v42, %v5833_v37  ;;  %v2946_v32 = vpop.f32.mrf.mxu0  ;;  %v9148_v33 = vpop.f32.mrf.mxu1  ;;  %v10923_v42 = vld [vmem:[#allocation33_spill] sm:$0xff] }
 0x821   :  { %v5839_v31 = vpop.eup %5838  ;;  %v2873_v28 = vrot.slane %v2856_v24, %v10923_v42 }
 0x822   :  { %v2778_v29 = vmul.f32 %v5839_v31, %v10919_v35 }
 0x824   :  { %v2950_v38 = vpop.f32.mrf.mxu0  ;;  %v3033_v39 = vpop.f32.mrf.mxu1  ;;  %v2780_v37 = vadd.f32 %v2779_v27, %v2778_v29 }
 0x825   :  { %v9157_v26 = vadd.f32 %v2950_v38, %v2861_v63  ;;  %v9160_v25 = vadd.f32 %v3033_v39, %v9153_v4  ;;  %v5841_v39 = vpop.eup %5840 }
 0x826   :  { %v2952_v58 = vpop.f32.mrf.mxu0  ;;  %v3035_v31 = vpop.f32.mrf.mxu1  ;;  %5842 = vtanh.f32 %v2780_v37 }
 0x827   :  { %10924 = vst [vmem:[#allocation57_spill] sm:$0xff] %v9160_v25  ;;  %v9162_v35 = vadd.f32 %v2952_v58, %v2865_v2  ;;  %v9164_v23 = vadd.f32 %v3035_v31, %v2873_v28 }
 0x829   :  { %10925 = vst [vmem:[#allocation56_spill] sm:$0xff] %v9162_v35  ;;  %10926 = vst [vmem:[#allocation35_spill] sm:$0xff] %v9164_v23 }
 0x82a   :  { %v2956_v22 = vpop.f32.mrf.mxu0  ;;  %v3039_v21 = vpop.f32.mrf.mxu1 }
 0x82b   :  { %v9166_v20 = vadd.f32 %v2956_v22, %v2861_v63  ;;  %v9169_v27 = vadd.f32 %v3039_v21, %v9153_v4  ;;  %v3123_v22 = vld [vmem:[%s10451_s6] sm:$0xf] }
 0x82c   :  { %v2958_v24 = vpop.f32.mrf.mxu0  ;;  %v3041_v34 = vpop.f32.mrf.mxu1 }
 0x82d   :  { %10927 = vst [vmem:[#allocation38_spill] sm:$0xff] %v9166_v20  ;;  %10928 = vst [vmem:[#allocation34_spill] sm:$0xff] %v9169_v27  ;;  %v9171_v29 = vadd.f32 %v2958_v24, %v2865_v2  ;;  %v9173_v38 = vadd.f32 %v3041_v34, %v2873_v28  ;;  %v9189_v24 = vrot.slane %v3123_v22, %v10920_v40 }
 0x82e   :  { %v9192_v34 = vrot.slane %v3123_v22, %v10921_v7 }
 0x82f   :  { %10929 = vst [vmem:[#allocation36_spill] sm:$0xff] %v9171_v29  ;;  %10930 = vst [vmem:[#allocation39_spill] sm:$0xff] %v9173_v38 }
 0x830   :  { %10936 = vst [vmem:[#allocation9_spill] sm:$0xff] %v9189_v24  ;;  %10937 = vst [vmem:[#allocation10_spill] sm:$0xff] %v9192_v34 }
 0x833   :  { %v5843_v25 = vpop.eup %5842 }
 0x834   :  { %v9175_v37 = vmul.f32 %v5843_v25, %v5841_v39 }
 0x836   :  { %10931 = vst [vmem:[#allocation40_spill] sm:$0xff] %v9175_v37 }
 0x844   :  { %v9177_v58 = vpop.f32.mrf.mxu0  ;;  %v9179_v31 = vpop.f32.mrf.mxu1 }
 0x845   :  { %10932 = vst [vmem:[#allocation37_spill] sm:$0xff] %v9177_v58  ;;  %10933 = vst [vmem:[#allocation58_spill] sm:$0xff] %v9179_v31  ;;  %v9195_v58 = vrot.slane %v3123_v22, %v10922_v43  ;;  %v9198_v31 = vrot.slane %v3123_v22, %v10923_v42 }
 0x846   :  { %v9184_v21 = vpop.f32.mrf.mxu0  ;;  %v9186_v27 = vpop.f32.mrf.mxu1 }
 0x847   :  { %10934 = vst [vmem:[#allocation6_spill] sm:$0xff] %v9184_v21  ;;  %10935 = vst [vmem:[#allocation29_spill] sm:$0xff] %v9186_v27 }
 0x848   :  { %10938 = vst [vmem:[#allocation42_spill] sm:$0xff] %v9195_v58  ;;  %10939 = vst [vmem:[#allocation46_spill] sm:$0xff] %v9198_v31 }
 0x84a   :  { %v3217_v25 = vpop.f32.mrf.mxu0  ;;  %v3300_v39 = vpop.f32.mrf.mxu1 }
 0x84b   :  { %v9201_v38 = vadd.f32 %v3217_v25, %v9189_v24  ;;  %v9204_v21 = vadd.f32 %v3300_v39, %v9192_v34 }
 0x84c   :  { %v3219_v27 = vpop.f32.mrf.mxu0  ;;  %v3302_v40 = vpop.f32.mrf.mxu1 }
 0x84d   :  { %10940 = vst [vmem:[#allocation43_spill] sm:$0xff] %v9201_v38  ;;  %10941 = vst [vmem:[#allocation51_spill] sm:$0xff] %v9204_v21  ;;  %v9207_v29 = vadd.f32 %v3219_v27, %v9195_v58  ;;  %v9210_v7 = vadd.f32 %v3302_v40, %v9198_v31  ;;  %v2945_v27 = vadd.f32 %v2944_v36, %v2861_v63 }
 0x84e   :  { %v2947_v40 = vadd.f32 %v2946_v32, %v2865_v2 }
 0x84f   :  { %10942 = vst [vmem:[#allocation60_spill] sm:$0xff] %v9207_v29  ;;  %10943 = vst [vmem:[#allocation48_spill] sm:$0xff] %v9210_v7 }
 0x850   :  { %v3223_v20 = vpop.f32.mrf.mxu0  ;;  %v3306_v43 = vpop.f32.mrf.mxu1 }
 0x851   :  { %v9213_v37 = vadd.f32 %v3223_v20, %v9189_v24  ;;  %v9216_v22 = vadd.f32 %v3306_v43, %v9192_v34  ;;  %v9868_v24 = vld [vmem:[%s10450_s5 + $0x18] sm:$0xff] }
 0x852   :  { %v3225_v25 = vpop.f32.mrf.mxu0  ;;  %v3308_v42 = vpop.f32.mrf.mxu1 }
 0x853   :  { %10944 = vst [vmem:[#allocation45_spill] sm:$0xff] %v9213_v37  ;;  %10945 = vst [vmem:[#allocation41_spill] sm:$0xff] %v9216_v22  ;;  %v9219_v39 = vadd.f32 %v3225_v25, %v9195_v58  ;;  %v9222_v21 = vadd.f32 %v3308_v42, %v9198_v31  ;;  %v3030_v22 = vadd.f32 %v9148_v33, %v2873_v28  ;;  %v9856_v31 = vld [vmem:[%s10450_s5 + $0x30] sm:$0xff]  ;;  %v9863_v58 = vld [vmem:[%s10450_s5 + $0x8] sm:$0xff] }
 0x854   :  { %v3028_v25 = vadd.f32 %v9143_v55, %v9153_v4 }
 0x855   :  { %10946 = vst [vmem:[#allocation59_spill] sm:$0xff] %v9219_v39  ;;  %10947 = vst [vmem:[#allocation49_spill] sm:$0xff] %v9222_v21  ;;  %v9851_v39 = vld [vmem:[%s10450_s5 + $0x20] sm:$0xff] }
 0x86a   :  { %v3458_v29 = vpop.f32.mrf.mxu0  ;;  %v3529_v20 = vpop.f32.mrf.mxu1 }
 0x86b   :  { %v3534_v7 = vadd.f32 %v3458_v29, %v2945_v27  ;;  %v3536_v36 = vadd.f32 %v3529_v20, %v3028_v25  ;;  %v10976_v27 = vld [vmem:[#allocation35_spill] sm:$0xff]  ;;  %v10977_v20 = vld [vmem:[#allocation57_spill] sm:$0xff] }
 0x86c   :  { %v3460_v38 = vpop.f32.mrf.mxu0  ;;  %v3531_v43 = vpop.f32.mrf.mxu1 }
 0x86d   :  { %v5637_v23 = vmul.f32 -1.442695, %v3534_v7  ;;  %v3535_v35 = vadd.f32 %v3460_v38, %v2947_v40  ;;  %v3537_v34 = vadd.f32 %v3531_v43, %v3030_v22 }
 0x86f   :  { %5844 = vpow2.f32 %v5637_v23  ;;  %v5638_v37 = vmul.f32 -1.442695, %v3535_v35  ;;  %v5639_v42 = vmul.f32 -1.442695, %v3537_v34 }
 0x871   :  { %5846 = vpow2.f32 %v5638_v37 }
 0x872   :  { %5848 = vpow2.f32 %v5639_v42 }
 0x87c   :  { %v5845_v21 = vpop.eup %5844 }
 0x87d   :  { %v3541_v63 = vadd.f32 1.0, %v5845_v21 }
 0x87e   :  { %v5847_v32 = vpop.eup %5846 }
 0x87f   :  { %5850 = vrcp.f32 %v3541_v63  ;;  %v3547_v7 = vadd.f32 1.0, %v5847_v32  ;;  %v5849_v23 = vpop.eup %5848 }
 0x880   :  { %5852 = vtanh.f32 %v3536_v36  ;;  %v3554_v38 = vadd.f32 1.0, %v5849_v23 }
 0x881   :  { %5854 = vrcp.f32 %v3547_v7 }
 0x882   :  { %5856 = vrcp.f32 %v3554_v38 }
 0x88c   :  { %v5851_v2 = vpop.eup %5850 }
 0x88d   :  { %v5853_v35 = vpop.eup %5852 }
 0x88e   :  { %v5855_v29 = vpop.eup %5854  ;;  %v3559_v33 = vmul.f32 %v5853_v35, %v5851_v2 }
 0x88f   :  { %v3558_v28 = vmul.f32 0.0, %v5855_v29  ;;  %v5857_v55 = vpop.eup %5856 }
 0x891   :  { %v9227_v37 = vadd.f32 %v3559_v33, %v3558_v28 }
 0x893   :  { %5858 = vtanh.f32 %v9227_v37 }
 0x8a0   :  { %v5859_v4 = vpop.eup %5858 }
 0x8a1   :  { %v3562_v21 = vmul.f32 %v5859_v4, %v5857_v55 }
 0x8a3   :  { %3699 = vmatmul.mubr.f32.vlgmr.msra.gmra.mxu0 %v3562_v21  ;;  %3770 = vmatmul.mubr.f32.vlgmr.msra.gmra.mxu1 %v3562_v21  ;;  %v4111_v21 = vld [vmem:[%s10449_s4 + $0x1e0] sm:$0xff] }
 0x8a4   :  { %3877 = vmatpush1.msra.mxu0 %v8684_v60  ;;  %3948 = vmatpush1.msra.mxu1 %v8689_v0  ;;  %v10948_v60 = vld [vmem:[#allocation11_spill] sm:$0xff] }
 0x8a5   :  { %3878 = vmatprep.subr.mxu0 %v8696_v14  ;;  %3949 = vmatprep.subr.mxu1 %v8701_v15  ;;  %v10949_v0 = vld [vmem:[#allocation7_spill] sm:$0xff]  ;;  %v10950_v14 = vld [vmem:[#allocation8_spill] sm:$0xff] }
 0x8a6   :  { %3879 = vmatpush1.msra.mxu0 %v8710_v41  ;;  %3950 = vmatpush1.msra.mxu1 %v8715_v8  ;;  %v10951_v15 = vld [vmem:[#allocation47_spill] sm:$0xff]  ;;  %v10952_v41 = vld [vmem:[#allocation50_spill] sm:$0xff] }
 0x8a7   :  { %3880 = vmatprep.subr.mxu0 %v8724_v44  ;;  %3951 = vmatprep.subr.mxu1 %v8729_v57  ;;  %v10953_v8 = vld [vmem:[#allocation54_spill] sm:$0xff]  ;;  %v10954_v44 = vld [vmem:[#allocation52_spill] sm:$0xff] }
 0x8a8   :  { %3881 = vmatpush1.msra.mxu0 %v8736_v49  ;;  %3952 = vmatpush1.msra.mxu1 %v8741_v50  ;;  %v10955_v57 = vld [vmem:[#allocation12_spill] sm:$0xff]  ;;  %v10956_v49 = vld [vmem:[#allocation13_spill] sm:$0xff]  ;;  %v10957_v50 = vld [vmem:[#allocation14_spill] sm:$0xff] }
 0x8a9   :  { %3882 = vmatprep.subr.mxu0 %v8748_v45  ;;  %3953 = vmatprep.subr.mxu1 %v8753_v47  ;;  %v10958_v45 = vld [vmem:[#allocation15_spill] sm:$0xff]  ;;  %v10959_v47 = vld [vmem:[#allocation16_spill] sm:$0xff] }
 0x8aa   :  { %3883 = vmatpush1.msra.mxu0 %v8762_v59  ;;  %3954 = vmatpush1.msra.mxu1 %v8767_v51  ;;  %v10960_v59 = vld [vmem:[#allocation17_spill] sm:$0xff]  ;;  %v10961_v51 = vld [vmem:[#allocation18_spill] sm:$0xff] }
 0x8ab   :  { %3884 = vmatprep.subr.mxu0 %v8776_v54  ;;  %3955 = vmatprep.subr.mxu1 %v8781_v30  ;;  %v10962_v54 = vld [vmem:[#allocation19_spill] sm:$0xff]  ;;  %v10963_v30 = vld [vmem:[#allocation20_spill] sm:$0xff] }
 0x8ac   :  { %3885 = vmatpush1.msra.mxu0 %v8788_v62  ;;  %3956 = vmatpush1.msra.mxu1 %v8793_v52  ;;  %v10964_v62 = vld [vmem:[#allocation21_spill] sm:$0xff]  ;;  %v10965_v52 = vld [vmem:[#allocation22_spill] sm:$0xff] }
 0x8ad   :  { %3886 = vmatprep.subr.mxu0 %v8800_v53  ;;  %3957 = vmatprep.subr.mxu1 %v8805_v1  ;;  %v10966_v53 = vld [vmem:[#allocation23_spill] sm:$0xff]  ;;  %v10967_v1 = vld [vmem:[#allocation24_spill] sm:$0xff]  ;;  %10996 = vst [vmem:[#allocation21_spill] sm:$0xff] %v9851_v39  ;;  %10997 = vst [vmem:[#allocation22_spill] sm:$0xff] %v9856_v31 }
 0x8ae   :  { %3887 = vmatpush1.msra.mxu0 %v8812_v56  ;;  %3958 = vmatpush1.msra.mxu1 %v8817_v46  ;;  %v10968_v56 = vld [vmem:[#allocation25_spill] sm:$0xff]  ;;  %v10969_v46 = vld [vmem:[#allocation26_spill] sm:$0xff]  ;;  %10998 = vst [vmem:[#allocation23_spill] sm:$0xff] %v9863_v58  ;;  %10999 = vst [vmem:[#allocation24_spill] sm:$0xff] %v9868_v24 }
 0x8af   :  { %3888 = vmatprep.subr.mxu0 %v8824_v61  ;;  %3959 = vmatprep.subr.mxu1 %v8829_v5  ;;  %v10970_v61 = vld [vmem:[#allocation27_spill] sm:$0xff]  ;;  %v10971_v5 = vld [vmem:[#allocation28_spill] sm:$0xff] }
 0x8b0   :  { %3889 = vmatpush1.msra.mxu0 %v8836_v48  ;;  %3960 = vmatpush1.msra.mxu1 %v8841_v6  ;;  %v10972_v48 = vld [vmem:[#allocation53_spill] sm:$0xff]  ;;  %v10973_v6 = vld [vmem:[#allocation55_spill] sm:$0xff] }
 0x8b1   :  { %3890 = vmatprep.subr.mxu0 %v8848_v9  ;;  %3961 = vmatprep.subr.mxu1 %v8853_v10  ;;  %v10974_v9 = vmov 0.0   ;;  %v4112_v10 = vld [vmem:[%s10449_s4 + $0x1e8] sm:$0xff] }
 0x8b2   :  { %3891 = vmatpush1.msra.mxu0 %v8860_v3  ;;  %3962 = vmatpush1.msra.mxu1 %v8865_v11  ;;  %v4114_v3 = vld [vmem:[%s10449_s4 + $0x1f8] sm:$0xff] }
 0x8b3   :  { %3892 = vmatprep.subr.mxu0 %v8872_v12  ;;  %3963 = vmatprep.subr.mxu1 %v8877_v13 }
 0x8b4   :  { %3893 = vmatpush1.msra.mxu0 %v8884_v16  ;;  %3964 = vmatpush1.msra.mxu1 %v8889_v17  ;;  %v10975_v17 = vld [vmem:[#allocation56_spill] sm:$0xff] }
 0x8b5   :  { %3894 = vmatprep.subr.mxu0 %v8896_v18  ;;  %3965 = vmatprep.subr.mxu1 %v8901_v19 }
 0x8b6   :  { %3895 = vmatpush1.msra.mxu0 %v10948_v60  ;;  %3966 = vmatpush1.msra.mxu1 %v10949_v0  ;;  %v4113_v60 = vld [vmem:[%s10449_s4 + $0x1f0] sm:$0xff]  ;;  %v4110_v0 = vld [vmem:[%s10449_s4 + $0x1d8] sm:$0xff] }
 0x8b7   :  { %3896 = vmatprep.subr.mxu0 %v10950_v14  ;;  %3967 = vmatprep.subr.mxu1 %v10951_v15  ;;  %v4107_v14 = vld [vmem:[%s10449_s4 + $0x1c0] sm:$0xff]  ;;  %v4109_v15 = vld [vmem:[%s10449_s4 + $0x1d0] sm:$0xff] }
 0x8b8   :  { %3897 = vmatpush1.msra.mxu0 %v10952_v41  ;;  %3968 = vmatpush1.msra.mxu1 %v10953_v8  ;;  %v4104_v41 = vld [vmem:[%s10449_s4 + $0x1a8] sm:$0xff]  ;;  %v4106_v8 = vld [vmem:[%s10449_s4 + $0x1b8] sm:$0xff] }
 0x8b9   :  { %3898 = vmatprep.subr.mxu0 %v10954_v44  ;;  %3969 = vmatprep.subr.mxu1 %v10955_v57  ;;  %v4103_v44 = vld [vmem:[%s10449_s4 + $0x1a0] sm:$0xff]  ;;  %v4105_v57 = vld [vmem:[%s10449_s4 + $0x1b0] sm:$0xff] }
 0x8ba   :  { %3899 = vmatpush1.msra.mxu0 %v10956_v49  ;;  %3970 = vmatpush1.msra.mxu1 %v10957_v50  ;;  %v4100_v49 = vld [vmem:[%s10449_s4 + $0x188] sm:$0xff]  ;;  %v4102_v50 = vld [vmem:[%s10449_s4 + $0x198] sm:$0xff] }
 0x8bb   :  { %3900 = vmatprep.subr.mxu0 %v10958_v45  ;;  %3971 = vmatprep.subr.mxu1 %v10959_v47  ;;  %v4099_v45 = vld [vmem:[%s10449_s4 + $0x180] sm:$0xff]  ;;  %v4101_v47 = vld [vmem:[%s10449_s4 + $0x190] sm:$0xff] }
 0x8bc   :  { %3901 = vmatpush1.msra.mxu0 %v10960_v59  ;;  %3972 = vmatpush1.msra.mxu1 %v10961_v51  ;;  %v4096_v59 = vld [vmem:[%s10449_s4 + $0x168] sm:$0xff]  ;;  %v4098_v51 = vld [vmem:[%s10449_s4 + $0x178] sm:$0xff] }
 0x8bd   :  { %3902 = vmatprep.subr.mxu0 %v10962_v54  ;;  %3973 = vmatprep.subr.mxu1 %v10963_v30  ;;  %v4095_v54 = vld [vmem:[%s10449_s4 + $0x160] sm:$0xff]  ;;  %v4097_v30 = vld [vmem:[%s10449_s4 + $0x170] sm:$0xff] }
 0x8be   :  { %3903 = vmatpush1.msra.mxu0 %v10964_v62  ;;  %3974 = vmatpush1.msra.mxu1 %v10965_v52  ;;  %v4092_v62 = vld [vmem:[%s10449_s4 + $0x148] sm:$0xff]  ;;  %v4094_v52 = vld [vmem:[%s10449_s4 + $0x158] sm:$0xff] }
 0x8bf   :  { %3904 = vmatprep.subr.mxu0 %v10966_v53  ;;  %3975 = vmatprep.subr.mxu1 %v10967_v1  ;;  %v4091_v53 = vld [vmem:[%s10449_s4 + $0x140] sm:$0xff]  ;;  %v4093_v1 = vld [vmem:[%s10449_s4 + $0x150] sm:$0xff] }
 0x8c0   :  { %3905 = vmatpush1.msra.mxu0 %v10968_v56  ;;  %3976 = vmatpush1.msra.mxu1 %v10969_v46  ;;  %v4088_v56 = vld [vmem:[%s10449_s4 + $0x128] sm:$0xff]  ;;  %v4090_v46 = vld [vmem:[%s10449_s4 + $0x138] sm:$0xff] }
 0x8c1   :  { %3906 = vmatprep.subr.mxu0 %v10970_v61  ;;  %3977 = vmatprep.subr.mxu1 %v10971_v5  ;;  %v4087_v61 = vld [vmem:[%s10449_s4 + $0x120] sm:$0xff]  ;;  %v4089_v5 = vld [vmem:[%s10449_s4 + $0x130] sm:$0xff] }
 0x8c2   :  { %3907 = vmatpush1.msra.mxu0 %v10972_v48  ;;  %3978 = vmatpush1.msra.mxu1 %v10973_v6  ;;  %v4084_v48 = vld [vmem:[%s10449_s4 + $0x108] sm:$0xff]  ;;  %v4086_v6 = vld [vmem:[%s10449_s4 + $0x118] sm:$0xff] }
 0x8c3   :  { %3940 = vmatprep.mubr.f32.mxu0 %v10974_v9  ;;  %4011 = vmatprep.mubr.f32.mxu1 %v10974_v9 }
 0x8c4   :  { %4137 = vmatprep.subr.mxu0 %v4112_v10  ;;  %4214 = vmatprep.subr.mxu1 %v4114_v3  ;;  %v4083_v10 = vld [vmem:[%s10449_s4 + $0x100] sm:$0xff]  ;;  %v4085_v3 = vld [vmem:[%s10449_s4 + $0x110] sm:$0xff] }
 0x963   :  { %v3700_v11 = vpop.f32.mrf.mxu0  ;;  %v3771_v19 = vpop.f32.mrf.mxu1 }
 0x964   :  { %v3776_v12 = vadd.f32 %v3700_v11, %v9157_v26  ;;  %v3778_v43 = vadd.f32 %v3771_v19, %v10977_v20  ;;  %v4080_v11 = vld [vmem:[%s10449_s4 + $0xe8] sm:$0xff]  ;;  %v4075_v19 = vld [vmem:[%s10449_s4 + $0xc0] sm:$0xff]  ;;  %v4073_v20 = vld [vmem:[%s10449_s4 + $0xb0] sm:$0xff] }
 0x965   :  { %v3702_v13 = vpop.f32.mrf.mxu0  ;;  %v3773_v22 = vpop.f32.mrf.mxu1 }
 0x966   :  { %v5640_v16 = vmul.f32 -1.442695, %v3776_v12  ;;  %v3777_v18 = vadd.f32 %v3702_v13, %v10975_v17  ;;  %v3779_v40 = vadd.f32 %v3773_v22, %v10976_v27  ;;  %v4082_v12 = vld [vmem:[%s10449_s4 + $0xf8] sm:$0xff]  ;;  %v4079_v13 = vld [vmem:[%s10449_s4 + $0xe0] sm:$0xff]  ;;  %v4076_v17 = vld [vmem:[%s10449_s4 + $0xc8] sm:$0xff] }
 0x967   :  { %v4072_v22 = vld [vmem:[%s10449_s4 + $0xa8] sm:$0xff]  ;;  %v4074_v27 = vld [vmem:[%s10449_s4 + $0xb8] sm:$0xff] }
 0x968   :  { %5860 = vpow2.f32 %v5640_v16  ;;  %v5641_v34 = vmul.f32 -1.442695, %v3777_v18  ;;  %v5642_v25 = vmul.f32 -1.442695, %v3779_v40  ;;  %v4081_v16 = vld [vmem:[%s10449_s4 + $0xf0] sm:$0xff]  ;;  %v4078_v18 = vld [vmem:[%s10449_s4 + $0xd8] sm:$0xff] }
 0x969   :  { %v4071_v40 = vld [vmem:[%s10449_s4 + $0xa0] sm:$0xff] }
 0x96a   :  { %5862 = vpow2.f32 %v5641_v34  ;;  %v4077_v34 = vld [vmem:[%s10449_s4 + $0xd0] sm:$0xff] }
 0x96b   :  { %5864 = vtanh.f32 %v3778_v43  ;;  %v4068_v43 = vld [vmem:[%s10449_s4 + $0x88] sm:$0xff] }
 0x96c   :  { %5866 = vpow2.f32 %v5642_v25  ;;  %v4070_v25 = vld [vmem:[%s10449_s4 + $0x98] sm:$0xff] }
 0x975   :  { %v5861_v42 = vpop.eup %5860 }
 0x976   :  { %v3783_v36 = vadd.f32 1.0, %v5861_v42  ;;  %v4067_v42 = vld [vmem:[%s10449_s4 + $0x80] sm:$0xff] }
 0x977   :  { %v5863_v63 = vpop.eup %5862 }
 0x978   :  { %5868 = vrcp.f32 %v3783_v36  ;;  %v3789_v26 = vadd.f32 1.0, %v5863_v63  ;;  %v5865_v32 = vpop.eup %5864  ;;  %v4069_v36 = vld [vmem:[%s10449_s4 + $0x90] sm:$0xff]  ;;  %v4064_v63 = vld [vmem:[%s10449_s4 + $0x68] sm:$0xff] }
 0x979   :  { %v5867_v7 = vpop.eup %5866 }
 0x97a   :  { %5870 = vrcp.f32 %v3789_v26  ;;  %v3796_v29 = vadd.f32 1.0, %v5867_v7  ;;  %v4066_v26 = vld [vmem:[%s10449_s4 + $0x78] sm:$0xff]  ;;  %v4065_v7 = vld [vmem:[%s10449_s4 + $0x70] sm:$0xff] }
 0x97c   :  { %5872 = vrcp.f32 %v3796_v29  ;;  %v4061_v29 = vld [vmem:[%s10449_s4 + $0x50] sm:$0xff] }
 0x985   :  { %v5869_v23 = vpop.eup %5868 }
 0x986   :  { %v3801_v2 = vmul.f32 %v5869_v23, %v5865_v32  ;;  %v4063_v32 = vld [vmem:[%s10449_s4 + $0x60] sm:$0xff]  ;;  %v4060_v23 = vld [vmem:[%s10449_s4 + $0x48] sm:$0xff] }
 0x987   :  { %v5871_v35 = vpop.eup %5870 }
 0x988   :  { %v3800_v38 = vmul.f32 %v5871_v35, %v9227_v37  ;;  %v4108_v37 = vld [vmem:[%s10449_s4 + $0x1c8] sm:$0xff]  ;;  %v4059_v35 = vld [vmem:[%s10449_s4 + $0x40] sm:$0xff] }
 0x989   :  { %v5873_v33 = vpop.eup %5872 }
 0x98a   :  { %v9305_v28 = vadd.f32 %v3801_v2, %v3800_v38  ;;  %v4062_v2 = vld [vmem:[%s10449_s4 + $0x58] sm:$0xff]  ;;  %v4056_v38 = vld [vmem:[%s10449_s4 + $0x28] sm:$0xff] }
 0x98c   :  { %5874 = vtanh.f32 %v9305_v28 }
 0x999   :  { %v5875_v55 = vpop.eup %5874 }
 0x99a   :  { %v3804_v4 = vmul.f32 %v5875_v55, %v5873_v33  ;;  %v4058_v33 = vld [vmem:[%s10449_s4 + $0x38] sm:$0xff]  ;;  %v4055_v55 = vld [vmem:[%s10449_s4 + $0x20] sm:$0xff] }
 0x99c   :  { %3941 = vmatmul.mubr.f32.vlgmr.msra.gmra.mxu0 %v3804_v4  ;;  %4012 = vmatmul.mubr.f32.vlgmr.msra.gmra.mxu1 %v3804_v4  ;;  %v4057_v4 = vld [vmem:[%s10449_s4 + $0x30] sm:$0xff] }
 0x99d   :  { %4138 = vmatpush1.msra.mxu0 %v4111_v21  ;;  %4215 = vmatpush1.msra.mxu1 %v4113_v60  ;;  %v4052_v21 = vld [vmem:[%s10449_s4 + $0x8] sm:$0xff]  ;;  %v4054_v60 = vld [vmem:[%s10449_s4 + $0x18] sm:$0xff] }
 0x99e   :  { %4139 = vmatprep.subr.mxu0 %v4108_v37  ;;  %4216 = vmatprep.subr.mxu1 %v4110_v0  ;;  %v4051_v37 = vld [vmem:[%s10449_s4] sm:$0xff]  ;;  %v4053_v0 = vld [vmem:[%s10449_s4 + $0x10] sm:$0xff] }
 0x99f   :  { %4140 = vmatpush1.msra.mxu0 %v4107_v14  ;;  %4217 = vmatpush1.msra.mxu1 %v4109_v15  ;;  %v10978_v14 = vld [vmem:[#allocation44_spill] sm:$0xff] }
 0x9a0   :  { %4141 = vmatprep.subr.mxu0 %v4104_v41  ;;  %4218 = vmatprep.subr.mxu1 %v4106_v8  ;;  %v10979_v15 = vld [vmem:[#allocation40_spill] sm:$0xff]  ;;  %v9507_v41 = vld [vmem:[%s10450_s5 + $0x1e8] sm:$0xff]  ;;  %v9512_v8 = vld [vmem:[%s10450_s5 + $0x1f8] sm:$0xff] }
 0x9a1   :  { %4142 = vmatpush1.msra.mxu0 %v4103_v44  ;;  %4219 = vmatpush1.msra.mxu1 %v4105_v57  ;;  %10980 = vst [vmem:[#allocation11_spill] sm:$0xff] %v9507_v41  ;;  %10981 = vst [vmem:[#allocation7_spill] sm:$0xff] %v9512_v8  ;;  %v9519_v44 = vld [vmem:[%s10450_s5 + $0x1e0] sm:$0xff]  ;;  %v9524_v57 = vld [vmem:[%s10450_s5 + $0x1f0] sm:$0xff] }
 0x9a2   :  { %4143 = vmatprep.subr.mxu0 %v4100_v49  ;;  %4220 = vmatprep.subr.mxu1 %v4102_v50  ;;  %v9531_v49 = vld [vmem:[%s10450_s5 + $0x1c8] sm:$0xff]  ;;  %v9536_v50 = vld [vmem:[%s10450_s5 + $0x1d8] sm:$0xff] }
 0x9a3   :  { %4144 = vmatpush1.msra.mxu0 %v4099_v45  ;;  %4221 = vmatpush1.msra.mxu1 %v4101_v47  ;;  %v9543_v45 = vld [vmem:[%s10450_s5 + $0x1c0] sm:$0xff]  ;;  %v9548_v47 = vld [vmem:[%s10450_s5 + $0x1d0] sm:$0xff] }
 0x9a4   :  { %4145 = vmatprep.subr.mxu0 %v4096_v59  ;;  %4222 = vmatprep.subr.mxu1 %v4098_v51  ;;  %v9555_v59 = vld [vmem:[%s10450_s5 + $0x1a8] sm:$0xff]  ;;  %v9560_v51 = vld [vmem:[%s10450_s5 + $0x1b8] sm:$0xff] }
 0x9a5   :  { %4146 = vmatpush1.msra.mxu0 %v4095_v54  ;;  %4223 = vmatpush1.msra.mxu1 %v4097_v30  ;;  %v9567_v54 = vld [vmem:[%s10450_s5 + $0x1a0] sm:$0xff]  ;;  %v9572_v30 = vld [vmem:[%s10450_s5 + $0x1b0] sm:$0xff] }
 0x9a6   :  { %4147 = vmatprep.subr.mxu0 %v4092_v62  ;;  %4224 = vmatprep.subr.mxu1 %v4094_v52  ;;  %v9579_v62 = vld [vmem:[%s10450_s5 + $0x188] sm:$0xff]  ;;  %v9584_v52 = vld [vmem:[%s10450_s5 + $0x198] sm:$0xff] }
 0x9a7   :  { %4148 = vmatpush1.msra.mxu0 %v4091_v53  ;;  %4225 = vmatpush1.msra.mxu1 %v4093_v1  ;;  %v9591_v53 = vld [vmem:[%s10450_s5 + $0x180] sm:$0xff]  ;;  %v9596_v1 = vld [vmem:[%s10450_s5 + $0x190] sm:$0xff] }
 0x9a8   :  { %4149 = vmatprep.subr.mxu0 %v4088_v56  ;;  %4226 = vmatprep.subr.mxu1 %v4090_v46  ;;  %v9603_v56 = vld [vmem:[%s10450_s5 + $0x168] sm:$0xff]  ;;  %v9608_v46 = vld [vmem:[%s10450_s5 + $0x178] sm:$0xff] }
 0x9a9   :  { %4150 = vmatpush1.msra.mxu0 %v4087_v61  ;;  %4227 = vmatpush1.msra.mxu1 %v4089_v5  ;;  %v9615_v61 = vld [vmem:[%s10450_s5 + $0x160] sm:$0xff]  ;;  %v9620_v5 = vld [vmem:[%s10450_s5 + $0x170] sm:$0xff] }
 0x9aa   :  { %4151 = vmatprep.subr.mxu0 %v4084_v48  ;;  %4228 = vmatprep.subr.mxu1 %v4086_v6  ;;  %v9627_v48 = vld [vmem:[%s10450_s5 + $0x148] sm:$0xff]  ;;  %v9632_v6 = vld [vmem:[%s10450_s5 + $0x158] sm:$0xff] }
 0x9ab   :  { %4152 = vmatpush1.msra.mxu0 %v4083_v10  ;;  %4229 = vmatpush1.msra.mxu1 %v4085_v3  ;;  %v9639_v10 = vld [vmem:[%s10450_s5 + $0x140] sm:$0xff]  ;;  %v9644_v3 = vld [vmem:[%s10450_s5 + $0x150] sm:$0xff] }
 0x9ac   :  { %4153 = vmatprep.subr.mxu0 %v4080_v11  ;;  %4230 = vmatprep.subr.mxu1 %v4082_v12  ;;  %v9651_v11 = vld [vmem:[%s10450_s5 + $0x128] sm:$0xff]  ;;  %v9656_v12 = vld [vmem:[%s10450_s5 + $0x138] sm:$0xff] }
 0x9ad   :  { %4154 = vmatpush1.msra.mxu0 %v4079_v13  ;;  %4231 = vmatpush1.msra.mxu1 %v4081_v16  ;;  %v9663_v13 = vld [vmem:[%s10450_s5 + $0x120] sm:$0xff]  ;;  %v9668_v16 = vld [vmem:[%s10450_s5 + $0x130] sm:$0xff] }
 0x9ae   :  { %4155 = vmatprep.subr.mxu0 %v4076_v17  ;;  %4232 = vmatprep.subr.mxu1 %v4078_v18  ;;  %v9675_v17 = vld [vmem:[%s10450_s5 + $0x108] sm:$0xff]  ;;  %v9680_v18 = vld [vmem:[%s10450_s5 + $0x118] sm:$0xff] }
 0x9af   :  { %4156 = vmatpush1.msra.mxu0 %v4075_v19  ;;  %4233 = vmatpush1.msra.mxu1 %v4077_v34  ;;  %v9687_v19 = vld [vmem:[%s10450_s5 + $0x100] sm:$0xff]  ;;  %v9692_v34 = vld [vmem:[%s10450_s5 + $0x110] sm:$0xff] }
 0x9b0   :  { %4157 = vmatprep.subr.mxu0 %v4072_v22  ;;  %4234 = vmatprep.subr.mxu1 %v4074_v27  ;;  %v9697_v22 = vld [vmem:[%s10450_s5 + $0xe8] sm:$0xff]  ;;  %v9704_v27 = vld [vmem:[%s10450_s5 + $0xf8] sm:$0xff] }
 0x9b1   :  { %4158 = vmatpush1.msra.mxu0 %v4071_v40  ;;  %4235 = vmatpush1.msra.mxu1 %v4073_v20  ;;  %v9709_v40 = vld [vmem:[%s10450_s5 + $0xe0] sm:$0xff]  ;;  %v9714_v20 = vld [vmem:[%s10450_s5 + $0xf0] sm:$0xff] }
 0x9b2   :  { %4159 = vmatprep.subr.mxu0 %v4068_v43  ;;  %4236 = vmatprep.subr.mxu1 %v4070_v25  ;;  %v9721_v43 = vld [vmem:[%s10450_s5 + $0xc8] sm:$0xff]  ;;  %v9726_v25 = vld [vmem:[%s10450_s5 + $0xd8] sm:$0xff] }
 0x9b3   :  { %4160 = vmatpush1.msra.mxu0 %v4067_v42  ;;  %4237 = vmatpush1.msra.mxu1 %v4069_v36  ;;  %v9731_v42 = vld [vmem:[%s10450_s5 + $0xc0] sm:$0xff]  ;;  %v9738_v36 = vld [vmem:[%s10450_s5 + $0xd0] sm:$0xff] }
 0x9b4   :  { %4161 = vmatprep.subr.mxu0 %v4064_v63  ;;  %4238 = vmatprep.subr.mxu1 %v4066_v26  ;;  %v9743_v63 = vld [vmem:[%s10450_s5 + $0xa8] sm:$0xff]  ;;  %v9748_v26 = vld [vmem:[%s10450_s5 + $0xb8] sm:$0xff] }
 0x9b5   :  { %4162 = vmatpush1.msra.mxu0 %v4063_v32  ;;  %4239 = vmatpush1.msra.mxu1 %v4065_v7  ;;  %v9755_v32 = vld [vmem:[%s10450_s5 + $0xa0] sm:$0xff]  ;;  %v9760_v7 = vld [vmem:[%s10450_s5 + $0xb0] sm:$0xff] }
 0x9b6   :  { %4163 = vmatprep.subr.mxu0 %v4060_v23  ;;  %4240 = vmatprep.subr.mxu1 %v4062_v2  ;;  %v9767_v23 = vld [vmem:[%s10450_s5 + $0x88] sm:$0xff]  ;;  %v9772_v2 = vld [vmem:[%s10450_s5 + $0x98] sm:$0xff] }
 0x9b7   :  { %4164 = vmatpush1.msra.mxu0 %v4059_v35  ;;  %4241 = vmatpush1.msra.mxu1 %v4061_v29  ;;  %10982 = vst [vmem:[#allocation8_spill] sm:$0xff] %v9767_v23  ;;  %10983 = vst [vmem:[#allocation47_spill] sm:$0xff] %v9772_v2  ;;  %v9779_v35 = vld [vmem:[%s10450_s5 + $0x80] sm:$0xff]  ;;  %v9784_v29 = vld [vmem:[%s10450_s5 + $0x90] sm:$0xff] }
 0x9b8   :  { %4165 = vmatprep.subr.mxu0 %v4056_v38  ;;  %4242 = vmatprep.subr.mxu1 %v4058_v33  ;;  %10984 = vst [vmem:[#allocation50_spill] sm:$0xff] %v9779_v35  ;;  %10985 = vst [vmem:[#allocation54_spill] sm:$0xff] %v9784_v29  ;;  %v9791_v38 = vld [vmem:[%s10450_s5 + $0x68] sm:$0xff]  ;;  %v9796_v33 = vld [vmem:[%s10450_s5 + $0x78] sm:$0xff] }
 0x9b9   :  { %4166 = vmatpush1.msra.mxu0 %v4055_v55  ;;  %4243 = vmatpush1.msra.mxu1 %v4057_v4  ;;  %10986 = vst [vmem:[#allocation52_spill] sm:$0xff] %v9791_v38  ;;  %10987 = vst [vmem:[#allocation12_spill] sm:$0xff] %v9796_v33  ;;  %v9803_v55 = vld [vmem:[%s10450_s5 + $0x60] sm:$0xff]  ;;  %v9808_v4 = vld [vmem:[%s10450_s5 + $0x70] sm:$0xff] }
 0x9ba   :  { %4167 = vmatprep.subr.mxu0 %v4052_v21  ;;  %4244 = vmatprep.subr.mxu1 %v4054_v60  ;;  %10988 = vst [vmem:[#allocation13_spill] sm:$0xff] %v9803_v55  ;;  %10989 = vst [vmem:[#allocation14_spill] sm:$0xff] %v9808_v4  ;;  %v9815_v21 = vld [vmem:[%s10450_s5 + $0x48] sm:$0xff]  ;;  %v9820_v60 = vld [vmem:[%s10450_s5 + $0x58] sm:$0xff] }
 0x9bb   :  { %4168 = vmatpush1.msra.mxu0 %v4051_v37  ;;  %4201 = vmatprep.mubr.f32.mxu0 %v10974_v9  ;;  %10990 = vst [vmem:[#allocation15_spill] sm:$0xff] %v9815_v21  ;;  %10991 = vst [vmem:[#allocation16_spill] sm:$0xff] %v9820_v60  ;;  %v9827_v37 = vld [vmem:[%s10450_s5 + $0x40] sm:$0xff] }
 0x9bc   :  { %4245 = vmatpush1.msra.mxu1 %v4053_v0  ;;  %4278 = vmatprep.mubr.f32.mxu1 %v10974_v9  ;;  %10992 = vst [vmem:[#allocation17_spill] sm:$0xff] %v9827_v37  ;;  %v9832_v0 = vld [vmem:[%s10450_s5 + $0x50] sm:$0xff] }
 0x9bd   :  { %4202 = vmatmul.mubr.f32.vlgmr.msra.gmra.mxu0 %v10978_v14  ;;  %4279 = vmatmul.mubr.f32.vlgmr.msra.gmra.mxu1 %v10978_v14  ;;  %10993 = vst [vmem:[#allocation18_spill] sm:$0xff] %v9832_v0  ;;  %v9839_v14 = vld [vmem:[%s10450_s5 + $0x28] sm:$0xff] }
 0x9be   :  { %4207 = vmatprep.mubr.f32.mxu0 %v10974_v9  ;;  %4284 = vmatprep.mubr.f32.mxu1 %v10974_v9  ;;  %10994 = vst [vmem:[#allocation19_spill] sm:$0xff] %v9839_v14 }
 0x9bf   :  { %4368 = vmatprep.subr.mxu0 %v9507_v41  ;;  %4439 = vmatprep.subr.mxu1 %v9512_v8 }
 0x9c0   :  { %4369 = vmatpush1.msra.mxu0 %v9519_v44  ;;  %4440 = vmatpush1.msra.mxu1 %v9524_v57 }
 0x9c1   :  { %4208 = vmatmul.mubr.f32.gmra.mxu0 %v10979_v15  ;;  %4285 = vmatmul.mubr.f32.gmra.mxu1 %v10979_v15  ;;  %v9844_v15 = vld [vmem:[%s10450_s5 + $0x38] sm:$0xff] }
 0x9c2   :  { %4432 = vmatprep.mubr.f32.mxu0 %v10974_v9  ;;  %4503 = vmatprep.mubr.f32.mxu1 %v10974_v9  ;;  %10995 = vst [vmem:[#allocation20_spill] sm:$0xff] %v9844_v15  ;;  %v9875_v9 = vld [vmem:[%s10450_s5] sm:$0xff] }
 0x9c3   :  { %4370 = vmatprep.subr.mxu0 %v9531_v49  ;;  %4441 = vmatprep.subr.mxu1 %v9536_v50  ;;  %11000 = vst [vmem:[#allocation25_spill] sm:$0xff] %v9875_v9 }
 0x9c4   :  { %4371 = vmatpush1.msra.mxu0 %v9543_v45  ;;  %4442 = vmatpush1.msra.mxu1 %v9548_v47 }
 0x9c5   :  { %4372 = vmatprep.subr.mxu0 %v9555_v59  ;;  %4443 = vmatprep.subr.mxu1 %v9560_v51 }
 0x9c6   :  { %4373 = vmatpush1.msra.mxu0 %v9567_v54  ;;  %4444 = vmatpush1.msra.mxu1 %v9572_v30 }
 0x9c7   :  { %4374 = vmatprep.subr.mxu0 %v9579_v62  ;;  %4445 = vmatprep.subr.mxu1 %v9584_v52 }
 0x9c8   :  { %4375 = vmatpush1.msra.mxu0 %v9591_v53  ;;  %4446 = vmatpush1.msra.mxu1 %v9596_v1 }
 0x9c9   :  { %4376 = vmatprep.subr.mxu0 %v9603_v56  ;;  %4447 = vmatprep.subr.mxu1 %v9608_v46 }
 0x9ca   :  { %4377 = vmatpush1.msra.mxu0 %v9615_v61  ;;  %4448 = vmatpush1.msra.mxu1 %v9620_v5 }
 0x9cb   :  { %4378 = vmatprep.subr.mxu0 %v9627_v48  ;;  %4449 = vmatprep.subr.mxu1 %v9632_v6 }
 0x9cc   :  { %4379 = vmatpush1.msra.mxu0 %v9639_v10  ;;  %4450 = vmatpush1.msra.mxu1 %v9644_v3 }
 0x9cd   :  { %4380 = vmatprep.subr.mxu0 %v9651_v11  ;;  %4451 = vmatprep.subr.mxu1 %v9656_v12 }
 0x9ce   :  { %4381 = vmatpush1.msra.mxu0 %v9663_v13  ;;  %4452 = vmatpush1.msra.mxu1 %v9668_v16 }
 0x9cf   :  { %4382 = vmatprep.subr.mxu0 %v9675_v17  ;;  %4453 = vmatprep.subr.mxu1 %v9680_v18 }
 0x9d0   :  { %4383 = vmatpush1.msra.mxu0 %v9687_v19  ;;  %4454 = vmatpush1.msra.mxu1 %v9692_v34 }
 0x9d1   :  { %4384 = vmatprep.subr.mxu0 %v9697_v22  ;;  %4455 = vmatprep.subr.mxu1 %v9704_v27 }
 0x9d2   :  { %4385 = vmatpush1.msra.mxu0 %v9709_v40  ;;  %4456 = vmatpush1.msra.mxu1 %v9714_v20 }
 0x9d3   :  { %4386 = vmatprep.subr.mxu0 %v9721_v43  ;;  %4457 = vmatprep.subr.mxu1 %v9726_v25 }
 0x9d4   :  { %4387 = vmatpush1.msra.mxu0 %v9731_v42  ;;  %4458 = vmatpush1.msra.mxu1 %v9738_v36 }
 0x9d5   :  { %4388 = vmatprep.subr.mxu0 %v9743_v63  ;;  %4459 = vmatprep.subr.mxu1 %v9748_v26 }
 0x9d6   :  { %4389 = vmatpush1.msra.mxu0 %v9755_v32  ;;  %4460 = vmatpush1.msra.mxu1 %v9760_v7 }
 0x9d7   :  { %4390 = vmatprep.subr.mxu0 %v9767_v23  ;;  %4461 = vmatprep.subr.mxu1 %v9772_v2 }
 0x9d8   :  { %4391 = vmatpush1.msra.mxu0 %v9779_v35  ;;  %4462 = vmatpush1.msra.mxu1 %v9784_v29 }
 0x9d9   :  { %4392 = vmatprep.subr.mxu0 %v9791_v38  ;;  %4463 = vmatprep.subr.mxu1 %v9796_v33  ;;  %v11005_v33 = vld [vmem:[#allocation34_spill] sm:$0xff] }
 0x9da   :  { %4393 = vmatpush1.msra.mxu0 %v9803_v55  ;;  %4464 = vmatpush1.msra.mxu1 %v9808_v4  ;;  %v11004_v55 = vld [vmem:[#allocation39_spill] sm:$0xff] }
 0x9db   :  { %4394 = vmatprep.subr.mxu0 %v9815_v21  ;;  %4465 = vmatprep.subr.mxu1 %v9820_v60 }
 0x9dc   :  { %4395 = vmatpush1.msra.mxu0 %v9827_v37  ;;  %4466 = vmatpush1.msra.mxu1 %v9832_v0  ;;  %v9880_v0 = vld [vmem:[%s10450_s5 + $0x10] sm:$0xff] }
 0x9dd   :  { %4396 = vmatprep.subr.mxu0 %v9839_v14  ;;  %4467 = vmatprep.subr.mxu1 %v9844_v15  ;;  %11001 = vst [vmem:[#allocation26_spill] sm:$0xff] %v9880_v0  ;;  %v11002_v14 = vld [vmem:[#allocation38_spill] sm:$0xff] }
 0x9de   :  { %4397 = vmatpush1.msra.mxu0 %v9851_v39  ;;  %4468 = vmatpush1.msra.mxu1 %v9856_v31  ;;  %v11003_v39 = vld [vmem:[#allocation36_spill] sm:$0xff] }
 0x9df   :  { %4398 = vmatprep.subr.mxu0 %v9863_v58  ;;  %4469 = vmatprep.subr.mxu1 %v9868_v24 }
 0x9e0   :  { %4399 = vmatpush1.msra.mxu0 %v9875_v9  ;;  %4470 = vmatpush1.msra.mxu1 %v9880_v0 }
 0x9e1   :  { %4610 = vmatprep.subr.mxu0 %v9507_v41  ;;  %4681 = vmatprep.subr.mxu1 %v9512_v8 }
 0xa5c   :  { %v3942_v15 = vpop.f32.mrf.mxu0  ;;  %v4013_v31 = vpop.f32.mrf.mxu1 }
 0xa5d   :  { %v4018_v37 = vadd.f32 %v3942_v15, %v11002_v14  ;;  %v4020_v0 = vadd.f32 %v4013_v31, %v11005_v33 }
 0xa5e   :  { %v3944_v60 = vpop.f32.mrf.mxu0  ;;  %v4015_v24 = vpop.f32.mrf.mxu1 }
 0xa5f   :  { %v5643_v21 = vmul.f32 -1.442695, %v4018_v37  ;;  %v4019_v4 = vadd.f32 %v3944_v60, %v11003_v39  ;;  %v4021_v9 = vadd.f32 %v4015_v24, %v11004_v55 }
 0xa61   :  { %5876 = vpow2.f32 %v5643_v21  ;;  %v5644_v58 = vmul.f32 -1.442695, %v4019_v4  ;;  %v5645_v38 = vmul.f32 -1.442695, %v4021_v9  ;;  %v11013_v21 = vld [vmem:[#allocation32_spill] sm:$0xff] }
 0xa63   :  { %5878 = vpow2.f32 %v5644_v58  ;;  %v9897_v58 = vld [vmem:[%s10451_s6] sm:$0xf] }
 0xa64   :  { %5880 = vtanh.f32 %v4020_v0  ;;  %11006 = vst [vmem:[#allocation27_spill] sm:$0xff] %v9897_v58  ;;  %v9913_v60 = vrot.slane %v9897_v58, %v11013_v21  ;;  %v11022_v21 = vld [vmem:[#allocation15_spill] sm:$0xff] }
 0xa65   :  { %5882 = vpow2.f32 %v5645_v38  ;;  %v11011_v38 = vld [vmem:[#allocation30_spill] sm:$0xff] }
 0xa66   :  { %v9909_v55 = vrot.slane %v9897_v58, %v11011_v38  ;;  %11014 = vst [vmem:[#allocation57_spill] sm:$0xff] %v9913_v60  ;;  %v11034_v58 = vld [vmem:[#allocation26_spill] sm:$0xff] }
 0xa68   :  { %11012 = vst [vmem:[#allocation35_spill] sm:$0xff] %v9909_v55 }
 0xa6e   :  { %v5877_v41 = vpop.eup %5876 }
 0xa6f   :  { %v4025_v29 = vadd.f32 1.0, %v5877_v41 }
 0xa70   :  { %v5879_v8 = vpop.eup %5878 }
 0xa71   :  { %5884 = vrcp.f32 %v4025_v29  ;;  %v4031_v14 = vadd.f32 1.0, %v5879_v8  ;;  %v5881_v37 = vpop.eup %5880 }
 0xa72   :  { %v5883_v39 = vpop.eup %5882 }
 0xa73   :  { %5886 = vrcp.f32 %v4031_v14  ;;  %v4038_v8 = vadd.f32 1.0, %v5883_v39 }
 0xa75   :  { %5888 = vrcp.f32 %v4038_v8  ;;  %v11021_v8 = vld [vmem:[#allocation14_spill] sm:$0xff] }
 0xa7d   :  { %v9899_v4 = vpop.f32.mrf.mxu0  ;;  %v9901_v24 = vpop.f32.mrf.mxu1 }
 0xa7e   :  { %11007 = vst [vmem:[#allocation28_spill] sm:$0xff] %v9899_v4  ;;  %11008 = vst [vmem:[#allocation53_spill] sm:$0xff] %v9901_v24  ;;  %v5885_v31 = vpop.eup %5884  ;;  %v11032_v4 = vld [vmem:[#allocation25_spill] sm:$0xff] }
 0xa7f   :  { %v4043_v9 = vmul.f32 %v5885_v31, %v5881_v37  ;;  %v9903_v41 = vpop.f32.mrf.mxu0  ;;  %v9905_v33 = vpop.f32.mrf.mxu1 }
 0xa80   :  { %11009 = vst [vmem:[#allocation55_spill] sm:$0xff] %v9903_v41  ;;  %11010 = vst [vmem:[#allocation56_spill] sm:$0xff] %v9905_v33  ;;  %v5887_v29 = vpop.eup %5886  ;;  %v11031_v41 = vld [vmem:[#allocation24_spill] sm:$0xff] }
 0xa81   :  { %v4042_v0 = vmul.f32 %v5887_v29, %v9305_v28  ;;  %v4209_v15 = vpop.f32.mrf.mxu0  ;;  %v4286_v14 = vpop.f32.mrf.mxu1  ;;  %v11017_v28 = vld [vmem:[#allocation54_spill] sm:$0xff]  ;;  %v11020_v29 = vld [vmem:[#allocation13_spill] sm:$0xff] }
 0xa82   :  { %v9917_v37 = vadd.f32 %v4209_v15, %v9909_v55  ;;  %v9920_v31 = vadd.f32 %v4286_v14, %v9913_v60  ;;  %v5889_v39 = vpop.eup %5888  ;;  %v11024_v15 = vld [vmem:[#allocation17_spill] sm:$0xff]  ;;  %v11025_v14 = vld [vmem:[#allocation18_spill] sm:$0xff]  ;;  %v11030_v60 = vld [vmem:[#allocation23_spill] sm:$0xff]  ;;  %v11033_v55 = vmov 0.0  }
 0xa83   :  { %v9922_v24 = vadd.f32 %v4043_v9, %v4042_v0  ;;  %v11018_v9 = vld [vmem:[#allocation52_spill] sm:$0xff] }
 0xa84   :  { %11015 = vst [vmem:[#allocation44_spill] sm:$0xff] %v9917_v37  ;;  %11016 = vst [vmem:[#allocation40_spill] sm:$0xff] %v9920_v31  ;;  %v11023_v0 = vld [vmem:[#allocation16_spill] sm:$0xff]  ;;  %v11028_v31 = vld [vmem:[#allocation21_spill] sm:$0xff] }
 0xa85   :  { %5890 = vtanh.f32 %v9922_v24  ;;  %v11029_v37 = vld [vmem:[#allocation22_spill] sm:$0xff] }
 0xa92   :  { %v5891_v38 = vpop.eup %5890 }
 0xa93   :  { %v4046_v33 = vmul.f32 %v5891_v38, %v5889_v39  ;;  %v11026_v39 = vld [vmem:[#allocation19_spill] sm:$0xff]  ;;  %v11027_v38 = vld [vmem:[#allocation20_spill] sm:$0xff] }
 0xa95   :  { %4433 = vmatmul.mubr.f32.vlgmr.msra.gmra.mxu0 %v4046_v33  ;;  %4504 = vmatmul.mubr.f32.vlgmr.msra.gmra.mxu1 %v4046_v33  ;;  %v11019_v33 = vld [vmem:[#allocation12_spill] sm:$0xff] }
 0xa96   :  { %4611 = vmatpush1.msra.mxu0 %v9519_v44  ;;  %4682 = vmatpush1.msra.mxu1 %v9524_v57 }
 0xa97   :  { %4612 = vmatprep.subr.mxu0 %v9531_v49  ;;  %4683 = vmatprep.subr.mxu1 %v9536_v50 }
 0xa98   :  { %4613 = vmatpush1.msra.mxu0 %v9543_v45  ;;  %4684 = vmatpush1.msra.mxu1 %v9548_v47 }
 0xa99   :  { %4614 = vmatprep.subr.mxu0 %v9555_v59  ;;  %4685 = vmatprep.subr.mxu1 %v9560_v51 }
 0xa9a   :  { %4615 = vmatpush1.msra.mxu0 %v9567_v54  ;;  %4686 = vmatpush1.msra.mxu1 %v9572_v30 }
 0xa9b   :  { %4616 = vmatprep.subr.mxu0 %v9579_v62  ;;  %4687 = vmatprep.subr.mxu1 %v9584_v52 }
 0xa9c   :  { %4617 = vmatpush1.msra.mxu0 %v9591_v53  ;;  %4688 = vmatpush1.msra.mxu1 %v9596_v1 }
 0xa9d   :  { %4618 = vmatprep.subr.mxu0 %v9603_v56  ;;  %4689 = vmatprep.subr.mxu1 %v9608_v46 }
 0xa9e   :  { %4619 = vmatpush1.msra.mxu0 %v9615_v61  ;;  %4690 = vmatpush1.msra.mxu1 %v9620_v5 }
 0xa9f   :  { %4620 = vmatprep.subr.mxu0 %v9627_v48  ;;  %4691 = vmatprep.subr.mxu1 %v9632_v6 }
 0xaa0   :  { %4621 = vmatpush1.msra.mxu0 %v9639_v10  ;;  %4692 = vmatpush1.msra.mxu1 %v9644_v3 }
 0xaa1   :  { %4622 = vmatprep.subr.mxu0 %v9651_v11  ;;  %4693 = vmatprep.subr.mxu1 %v9656_v12 }
 0xaa2   :  { %4623 = vmatpush1.msra.mxu0 %v9663_v13  ;;  %4694 = vmatpush1.msra.mxu1 %v9668_v16 }
 0xaa3   :  { %4624 = vmatprep.subr.mxu0 %v9675_v17  ;;  %4695 = vmatprep.subr.mxu1 %v9680_v18 }
 0xaa4   :  { %4625 = vmatpush1.msra.mxu0 %v9687_v19  ;;  %4696 = vmatpush1.msra.mxu1 %v9692_v34 }
 0xaa5   :  { %4626 = vmatprep.subr.mxu0 %v9697_v22  ;;  %4697 = vmatprep.subr.mxu1 %v9704_v27 }
 0xaa6   :  { %4627 = vmatpush1.msra.mxu0 %v9709_v40  ;;  %4698 = vmatpush1.msra.mxu1 %v9714_v20 }
 0xaa7   :  { %4628 = vmatprep.subr.mxu0 %v9721_v43  ;;  %4699 = vmatprep.subr.mxu1 %v9726_v25 }
 0xaa8   :  { %4629 = vmatpush1.msra.mxu0 %v9731_v42  ;;  %4700 = vmatpush1.msra.mxu1 %v9738_v36 }
 0xaa9   :  { %4630 = vmatprep.subr.mxu0 %v9743_v63  ;;  %4701 = vmatprep.subr.mxu1 %v9748_v26 }
 0xaaa   :  { %4631 = vmatpush1.msra.mxu0 %v9755_v32  ;;  %4702 = vmatpush1.msra.mxu1 %v9760_v7 }
 0xaab   :  { %4632 = vmatprep.subr.mxu0 %v9767_v23  ;;  %4703 = vmatprep.subr.mxu1 %v9772_v2 }
 0xaac   :  { %4633 = vmatpush1.msra.mxu0 %v9779_v35  ;;  %4704 = vmatpush1.msra.mxu1 %v11017_v28 }
 0xaad   :  { %4634 = vmatprep.subr.mxu0 %v11018_v9  ;;  %4705 = vmatprep.subr.mxu1 %v11019_v33  ;;  %v11043_v9 = vld [vmem:[#allocation46_spill] sm:$0xff] }
 0xaae   :  { %4635 = vmatpush1.msra.mxu0 %v11020_v29  ;;  %4706 = vmatpush1.msra.mxu1 %v11021_v8  ;;  %v9997_v29 = vpop.f32.mrf.mxu1 }
 0xaaf   :  { %4636 = vmatprep.subr.mxu0 %v11022_v21  ;;  %4707 = vmatprep.subr.mxu1 %v11023_v0  ;;  %v11040_v0 = vld [vmem:[#allocation42_spill] sm:$0xff]  ;;  %11042 = vst [vmem:[#allocation36_spill] sm:$0xff] %v9997_v29 }
 0xab0   :  { %4637 = vmatpush1.msra.mxu0 %v11024_v15  ;;  %4708 = vmatpush1.msra.mxu1 %v11025_v14  ;;  %v11035_v14 = vld [vmem:[#allocation11_spill] sm:$0xff]  ;;  %v11067_v29 = vld [vmem:[#allocation26_spill] sm:$0xff] }
 0xab1   :  { %4638 = vmatprep.subr.mxu0 %v11026_v39  ;;  %4709 = vmatprep.subr.mxu1 %v11027_v38  ;;  %v11036_v39 = vld [vmem:[#allocation7_spill] sm:$0xff]  ;;  %v9991_v38 = vpop.f32.mrf.mxu0 }
 0xab2   :  { %4639 = vmatpush1.msra.mxu0 %v11028_v31  ;;  %4710 = vmatpush1.msra.mxu1 %v11029_v37  ;;  %11037 = vst [vmem:[#allocation38_spill] sm:$0xff] %v9991_v38  ;;  %v11038_v31 = vld [vmem:[#allocation9_spill] sm:$0xff] }
 0xab3   :  { %4640 = vmatprep.subr.mxu0 %v11030_v60  ;;  %4711 = vmatprep.subr.mxu1 %v11031_v41  ;;  %v11039_v37 = vld [vmem:[#allocation37_spill] sm:$0xff]  ;;  %v11041_v41 = vld [vmem:[#allocation6_spill] sm:$0xff] }
 0xab4   :  { %4641 = vmatpush1.msra.mxu0 %v11032_v4  ;;  %4674 = vmatprep.mubr.f32.mxu0 %v11033_v55  ;;  %v3212_v15 = vadd.f32 %v11039_v37, %v11038_v31  ;;  %v3214_v21 = vadd.f32 %v11041_v41, %v11040_v0  ;;  %v11044_v38 = vld [vmem:[#allocation29_spill] sm:$0xff]  ;;  %v11045_v37 = vld [vmem:[#allocation10_spill] sm:$0xff] }
 0xab5   :  { %4712 = vmatpush1.msra.mxu1 %v11034_v58  ;;  %4745 = vmatprep.mubr.f32.mxu1 %v11033_v55  ;;  %v3297_v28 = vadd.f32 %v11044_v38, %v11043_v9  ;;  %v11046_v31 = vld [vmem:[#allocation58_spill] sm:$0xff] }
 0xab6   :  { %4852 = vmatprep.subr.mxu0 %v11035_v14  ;;  %4923 = vmatprep.subr.mxu1 %v11036_v39  ;;  %v3295_v2 = vadd.f32 %v11046_v31, %v11045_v37  ;;  %v11049_v38 = vld [vmem:[#allocation50_spill] sm:$0xff]  ;;  %v11051_v31 = vld [vmem:[#allocation52_spill] sm:$0xff] }
 0xab7   :  { %v11050_v37 = vld [vmem:[#allocation54_spill] sm:$0xff] }
 0xb55   :  { %v4434_v60 = vpop.f32.mrf.mxu0  ;;  %v4505_v55 = vpop.f32.mrf.mxu1 }
 0xb56   :  { %v4510_v4 = vadd.f32 %v4434_v60, %v3212_v15  ;;  %v4512_v23 = vadd.f32 %v4505_v55, %v3295_v2  ;;  %v11048_v55 = vld [vmem:[#allocation47_spill] sm:$0xff] }
 0xb57   :  { %v4436_v8 = vpop.f32.mrf.mxu0  ;;  %v4507_v39 = vpop.f32.mrf.mxu1 }
 0xb58   :  { %v5646_v58 = vmul.f32 -1.442695, %v4510_v4  ;;  %v4511_v33 = vadd.f32 %v4436_v8, %v3214_v21  ;;  %v4513_v35 = vadd.f32 %v4507_v39, %v3297_v28 }
 0xb5a   :  { %5892 = vpow2.f32 %v5646_v58  ;;  %v5647_v14 = vmul.f32 -1.442695, %v4511_v33  ;;  %v5648_v41 = vmul.f32 -1.442695, %v4513_v35 }
 0xb5c   :  { %5894 = vpow2.f32 %v5647_v14 }
 0xb5d   :  { %5896 = vtanh.f32 %v4512_v23 }
 0xb5e   :  { %5898 = vpow2.f32 %v5648_v41  ;;  %v11052_v41 = vld [vmem:[#allocation12_spill] sm:$0xff] }
 0xb67   :  { %v5893_v60 = vpop.eup %5892 }
 0xb68   :  { %v4517_v0 = vadd.f32 1.0, %v5893_v60  ;;  %v11053_v60 = vld [vmem:[#allocation13_spill] sm:$0xff] }
 0xb69   :  { %v5895_v15 = vpop.eup %5894 }
 0xb6a   :  { %5900 = vrcp.f32 %v4517_v0  ;;  %v4523_v58 = vadd.f32 1.0, %v5895_v15  ;;  %v5897_v4 = vpop.eup %5896  ;;  %v11054_v0 = vld [vmem:[#allocation14_spill] sm:$0xff]  ;;  %v11055_v15 = vld [vmem:[#allocation15_spill] sm:$0xff] }
 0xb6b   :  { %v5899_v33 = vpop.eup %5898 }
 0xb6c   :  { %5902 = vrcp.f32 %v4523_v58  ;;  %v4530_v9 = vadd.f32 1.0, %v5899_v33  ;;  %v11056_v58 = vld [vmem:[#allocation16_spill] sm:$0xff]  ;;  %v11058_v33 = vld [vmem:[#allocation18_spill] sm:$0xff] }
 0xb6e   :  { %5904 = vrcp.f32 %v4530_v9  ;;  %v11062_v9 = vld [vmem:[#allocation22_spill] sm:$0xff] }
 0xb77   :  { %v5901_v8 = vpop.eup %5900 }
 0xb78   :  { %v4535_v21 = vmul.f32 %v5901_v8, %v5897_v4  ;;  %v11057_v4 = vld [vmem:[#allocation17_spill] sm:$0xff]  ;;  %v11059_v8 = vld [vmem:[#allocation19_spill] sm:$0xff] }
 0xb79   :  { %v5903_v14 = vpop.eup %5902 }
 0xb7a   :  { %v4534_v28 = vmul.f32 %v5903_v14, %v9922_v24  ;;  %v11047_v24 = vld [vmem:[#allocation8_spill] sm:$0xff]  ;;  %v11061_v14 = vld [vmem:[#allocation21_spill] sm:$0xff] }
 0xb7b   :  { %v5905_v2 = vpop.eup %5904 }
 0xb7c   :  { %v10004_v39 = vadd.f32 %v4535_v21, %v4534_v28  ;;  %v11060_v21 = vld [vmem:[#allocation20_spill] sm:$0xff]  ;;  %v11063_v28 = vld [vmem:[#allocation23_spill] sm:$0xff] }
 0xb7e   :  { %5906 = vtanh.f32 %v10004_v39 }
 0xb8b   :  { %v5907_v23 = vpop.eup %5906 }
 0xb8c   :  { %v4538_v35 = vmul.f32 %v5907_v23, %v5905_v2  ;;  %v11064_v2 = vld [vmem:[#allocation24_spill] sm:$0xff]  ;;  %v11065_v23 = vld [vmem:[#allocation25_spill] sm:$0xff] }
 0xb8e   :  { %4675 = vmatmul.mubr.f32.vlgmr.msra.gmra.mxu0 %v4538_v35  ;;  %4746 = vmatmul.mubr.f32.vlgmr.msra.gmra.mxu1 %v4538_v35  ;;  %v11066_v35 = vmov 0.0  }
 0xb8f   :  { %4853 = vmatpush1.msra.mxu0 %v9519_v44  ;;  %4924 = vmatpush1.msra.mxu1 %v9524_v57 }
 0xb90   :  { %4854 = vmatprep.subr.mxu0 %v9531_v49  ;;  %4925 = vmatprep.subr.mxu1 %v9536_v50 }
 0xb91   :  { %4855 = vmatpush1.msra.mxu0 %v9543_v45  ;;  %4926 = vmatpush1.msra.mxu1 %v9548_v47 }
 0xb92   :  { %4856 = vmatprep.subr.mxu0 %v9555_v59  ;;  %4927 = vmatprep.subr.mxu1 %v9560_v51 }
 0xb93   :  { %4857 = vmatpush1.msra.mxu0 %v9567_v54  ;;  %4928 = vmatpush1.msra.mxu1 %v9572_v30 }
 0xb94   :  { %4858 = vmatprep.subr.mxu0 %v9579_v62  ;;  %4929 = vmatprep.subr.mxu1 %v9584_v52 }
 0xb95   :  { %4859 = vmatpush1.msra.mxu0 %v9591_v53  ;;  %4930 = vmatpush1.msra.mxu1 %v9596_v1 }
 0xb96   :  { %4860 = vmatprep.subr.mxu0 %v9603_v56  ;;  %4931 = vmatprep.subr.mxu1 %v9608_v46 }
 0xb97   :  { %4861 = vmatpush1.msra.mxu0 %v9615_v61  ;;  %4932 = vmatpush1.msra.mxu1 %v9620_v5 }
 0xb98   :  { %4862 = vmatprep.subr.mxu0 %v9627_v48  ;;  %4933 = vmatprep.subr.mxu1 %v9632_v6 }
 0xb99   :  { %4863 = vmatpush1.msra.mxu0 %v9639_v10  ;;  %4934 = vmatpush1.msra.mxu1 %v9644_v3 }
 0xb9a   :  { %4864 = vmatprep.subr.mxu0 %v9651_v11  ;;  %4935 = vmatprep.subr.mxu1 %v9656_v12 }
 0xb9b   :  { %4865 = vmatpush1.msra.mxu0 %v9663_v13  ;;  %4936 = vmatpush1.msra.mxu1 %v9668_v16 }
 0xb9c   :  { %4866 = vmatprep.subr.mxu0 %v9675_v17  ;;  %4937 = vmatprep.subr.mxu1 %v9680_v18 }
 0xb9d   :  { %4867 = vmatpush1.msra.mxu0 %v9687_v19  ;;  %4938 = vmatpush1.msra.mxu1 %v9692_v34 }
 0xb9e   :  { %4868 = vmatprep.subr.mxu0 %v9697_v22  ;;  %4939 = vmatprep.subr.mxu1 %v9704_v27 }
 0xb9f   :  { %4869 = vmatpush1.msra.mxu0 %v9709_v40  ;;  %4940 = vmatpush1.msra.mxu1 %v9714_v20 }
 0xba0   :  { %4870 = vmatprep.subr.mxu0 %v9721_v43  ;;  %4941 = vmatprep.subr.mxu1 %v9726_v25 }
 0xba1   :  { %4871 = vmatpush1.msra.mxu0 %v9731_v42  ;;  %4942 = vmatpush1.msra.mxu1 %v9738_v36 }
 0xba2   :  { %4872 = vmatprep.subr.mxu0 %v9743_v63  ;;  %4943 = vmatprep.subr.mxu1 %v9748_v26 }
 0xba3   :  { %4873 = vmatpush1.msra.mxu0 %v9755_v32  ;;  %4944 = vmatpush1.msra.mxu1 %v9760_v7 }
 0xba4   :  { %4874 = vmatprep.subr.mxu0 %v11047_v24  ;;  %4945 = vmatprep.subr.mxu1 %v11048_v55 }
 0xba5   :  { %4875 = vmatpush1.msra.mxu0 %v11049_v38  ;;  %4946 = vmatpush1.msra.mxu1 %v11050_v37 }
 0xba6   :  { %4876 = vmatprep.subr.mxu0 %v11051_v31  ;;  %4947 = vmatprep.subr.mxu1 %v11052_v41  ;;  %v11073_v41 = vld [vmem:[#allocation51_spill] sm:$0xff] }
 0xba7   :  { %4877 = vmatpush1.msra.mxu0 %v11053_v60  ;;  %4948 = vmatpush1.msra.mxu1 %v11054_v0  ;;  %v11072_v60 = vld [vmem:[#allocation48_spill] sm:$0xff] }
 0xba8   :  { %4878 = vmatprep.subr.mxu0 %v11055_v15  ;;  %4949 = vmatprep.subr.mxu1 %v11056_v58 }
 0xba9   :  { %4879 = vmatpush1.msra.mxu0 %v11057_v4  ;;  %4950 = vmatpush1.msra.mxu1 %v11058_v33  ;;  %v11068_v33 = vld [vmem:[#allocation11_spill] sm:$0xff] }
 0xbaa   :  { %4880 = vmatprep.subr.mxu0 %v11059_v8  ;;  %4951 = vmatprep.subr.mxu1 %v11060_v21  ;;  %v11069_v8 = vld [vmem:[#allocation7_spill] sm:$0xff] }
 0xbab   :  { %4881 = vmatpush1.msra.mxu0 %v11061_v14  ;;  %4952 = vmatpush1.msra.mxu1 %v11062_v9  ;;  %v11070_v14 = vld [vmem:[#allocation43_spill] sm:$0xff] }
 0xbac   :  { %4882 = vmatprep.subr.mxu0 %v11063_v28  ;;  %4953 = vmatprep.subr.mxu1 %v11064_v2  ;;  %v11071_v28 = vld [vmem:[#allocation60_spill] sm:$0xff] }
 0xbad   :  { %4883 = vmatpush1.msra.mxu0 %v11065_v23  ;;  %4916 = vmatprep.mubr.f32.mxu0 %v11066_v35 }
 0xbae   :  { %4954 = vmatpush1.msra.mxu1 %v11067_v29  ;;  %4987 = vmatprep.mubr.f32.mxu1 %v11066_v35 }
 0xbaf   :  { %5094 = vmatprep.subr.mxu0 %v11068_v33  ;;  %5165 = vmatprep.subr.mxu1 %v11069_v8 }
 0xc4e   :  { %v4676_v21 = vpop.f32.mrf.mxu0  ;;  %v4747_v2 = vpop.f32.mrf.mxu1 }
 0xc4f   :  { %v4752_v4 = vadd.f32 %v4676_v21, %v11070_v14  ;;  %v4754_v35 = vadd.f32 %v4747_v2, %v11073_v41  ;;  %v5333_v2 = vld [vmem:[%s10450_s5 + $0x1e8] sm:$0xff] }
 0xc50   :  { %v4678_v9 = vpop.f32.mrf.mxu0  ;;  %v4749_v0 = vpop.f32.mrf.mxu1 }
 0xc51   :  { %v5649_v58 = vmul.f32 -1.442695, %v4752_v4  ;;  %v4753_v15 = vadd.f32 %v4678_v9, %v11071_v28  ;;  %v4755_v29 = vadd.f32 %v4749_v0, %v11072_v60 }
 0xc53   :  { %5908 = vpow2.f32 %v5649_v58  ;;  %v5650_v23 = vmul.f32 -1.442695, %v4753_v15  ;;  %v5651_v31 = vmul.f32 -1.442695, %v4755_v29 }
 0xc55   :  { %5910 = vpow2.f32 %v5650_v23 }
 0xc56   :  { %5912 = vtanh.f32 %v4754_v35  ;;  %v5335_v35 = vld [vmem:[%s10450_s5 + $0x1f8] sm:$0xff] }
 0xc57   :  { %5914 = vpow2.f32 %v5651_v31 }
 0xc60   :  { %v5909_v33 = vpop.eup %5908 }
 0xc61   :  { %v4759_v37 = vadd.f32 1.0, %v5909_v33  ;;  %v5332_v33 = vld [vmem:[%s10450_s5 + $0x1e0] sm:$0xff] }
 0xc62   :  { %v5911_v8 = vpop.eup %5910 }
 0xc63   :  { %5916 = vrcp.f32 %v4759_v37  ;;  %v4765_v21 = vadd.f32 1.0, %v5911_v8  ;;  %v5913_v4 = vpop.eup %5912  ;;  %v5334_v8 = vld [vmem:[%s10450_s5 + $0x1f0] sm:$0xff] }
 0xc64   :  { %v5915_v14 = vpop.eup %5914 }
 0xc65   :  { %5918 = vrcp.f32 %v4765_v21  ;;  %v4772_v28 = vadd.f32 1.0, %v5915_v14  ;;  %v5329_v21 = vld [vmem:[%s10450_s5 + $0x1c8] sm:$0xff]  ;;  %v5328_v14 = vld [vmem:[%s10450_s5 + $0x1c0] sm:$0xff] }
 0xc67   :  { %5920 = vrcp.f32 %v4772_v28  ;;  %v5324_v28 = vld [vmem:[%s10450_s5 + $0x1a0] sm:$0xff] }
 0xc70   :  { %v5917_v58 = vpop.eup %5916 }
 0xc71   :  { %v4777_v9 = vmul.f32 %v5917_v58, %v5913_v4  ;;  %v5331_v4 = vld [vmem:[%s10450_s5 + $0x1d8] sm:$0xff]  ;;  %v5330_v58 = vld [vmem:[%s10450_s5 + $0x1d0] sm:$0xff] }
 0xc72   :  { %v5919_v15 = vpop.eup %5918 }
 0xc73   :  { %v4776_v23 = vmul.f32 %v5919_v15, %v10004_v39  ;;  %v5327_v15 = vld [vmem:[%s10450_s5 + $0x1b8] sm:$0xff] }
 0xc74   :  { %v5921_v29 = vpop.eup %5920 }
 0xc75   :  { %v10078_v60 = vadd.f32 %v4777_v9, %v4776_v23  ;;  %v5325_v9 = vld [vmem:[%s10450_s5 + $0x1a8] sm:$0xff]  ;;  %v5326_v23 = vld [vmem:[%s10450_s5 + $0x1b0] sm:$0xff] }
 0xc77   :  { %5922 = vtanh.f32 %v10078_v60 }
 0xc84   :  { %v5923_v41 = vpop.eup %5922 }
 0xc85   :  { %v4780_v0 = vmul.f32 %v5923_v41, %v5921_v29  ;;  %v5323_v29 = vld [vmem:[%s10450_s5 + $0x198] sm:$0xff]  ;;  %v5320_v41 = vld [vmem:[%s10450_s5 + $0x180] sm:$0xff] }
 0xc87   :  { %4917 = vmatmul.mubr.f32.vlgmr.msra.gmra.mxu0 %v4780_v0  ;;  %4988 = vmatmul.mubr.f32.vlgmr.msra.gmra.mxu1 %v4780_v0  ;;  %v5322_v0 = vld [vmem:[%s10450_s5 + $0x190] sm:$0xff] }
 0xc88   :  { %5095 = vmatpush1.msra.mxu0 %v9519_v44  ;;  %5166 = vmatpush1.msra.mxu1 %v9524_v57  ;;  %v11074_v44 = vld [vmem:[#allocation54_spill] sm:$0xff]  ;;  %v11075_v57 = vld [vmem:[#allocation52_spill] sm:$0xff] }
 0xc89   :  { %5096 = vmatprep.subr.mxu0 %v9531_v49  ;;  %5167 = vmatprep.subr.mxu1 %v9536_v50  ;;  %v11076_v49 = vld [vmem:[#allocation12_spill] sm:$0xff]  ;;  %v11077_v50 = vld [vmem:[#allocation13_spill] sm:$0xff] }
 0xc8a   :  { %5097 = vmatpush1.msra.mxu0 %v9543_v45  ;;  %5168 = vmatpush1.msra.mxu1 %v9548_v47  ;;  %v11078_v45 = vld [vmem:[#allocation14_spill] sm:$0xff]  ;;  %v11079_v47 = vld [vmem:[#allocation15_spill] sm:$0xff] }
 0xc8b   :  { %5098 = vmatprep.subr.mxu0 %v9555_v59  ;;  %5169 = vmatprep.subr.mxu1 %v9560_v51  ;;  %v11080_v59 = vld [vmem:[#allocation16_spill] sm:$0xff]  ;;  %v11081_v51 = vld [vmem:[#allocation17_spill] sm:$0xff] }
 0xc8c   :  { %5099 = vmatpush1.msra.mxu0 %v9567_v54  ;;  %5170 = vmatpush1.msra.mxu1 %v9572_v30  ;;  %v11082_v54 = vld [vmem:[#allocation18_spill] sm:$0xff]  ;;  %v11083_v30 = vld [vmem:[#allocation19_spill] sm:$0xff] }
 0xc8d   :  { %5100 = vmatprep.subr.mxu0 %v9579_v62  ;;  %5171 = vmatprep.subr.mxu1 %v9584_v52  ;;  %v11084_v62 = vld [vmem:[#allocation20_spill] sm:$0xff]  ;;  %v11085_v52 = vld [vmem:[#allocation21_spill] sm:$0xff] }
 0xc8e   :  { %5101 = vmatpush1.msra.mxu0 %v9591_v53  ;;  %5172 = vmatpush1.msra.mxu1 %v9596_v1  ;;  %v11086_v53 = vld [vmem:[#allocation22_spill] sm:$0xff]  ;;  %v11087_v1 = vld [vmem:[#allocation23_spill] sm:$0xff] }
 0xc8f   :  { %5102 = vmatprep.subr.mxu0 %v9603_v56  ;;  %5173 = vmatprep.subr.mxu1 %v9608_v46  ;;  %v11088_v56 = vld [vmem:[#allocation24_spill] sm:$0xff]  ;;  %v11089_v46 = vld [vmem:[#allocation25_spill] sm:$0xff] }
 0xc90   :  { %5103 = vmatpush1.msra.mxu0 %v9615_v61  ;;  %5174 = vmatpush1.msra.mxu1 %v9620_v5  ;;  %v11090_v61 = vmov 0.0   ;;  %v11091_v5 = vld [vmem:[#allocation26_spill] sm:$0xff] }
 0xc91   :  { %5104 = vmatprep.subr.mxu0 %v9627_v48  ;;  %5175 = vmatprep.subr.mxu1 %v9632_v6  ;;  %v11092_v6 = vld [vmem:[#allocation45_spill] sm:$0xff] }
 0xc92   :  { %5105 = vmatpush1.msra.mxu0 %v9639_v10  ;;  %5176 = vmatpush1.msra.mxu1 %v9644_v3 }
 0xc93   :  { %5106 = vmatprep.subr.mxu0 %v9651_v11  ;;  %5177 = vmatprep.subr.mxu1 %v9656_v12  ;;  %v11093_v12 = vld [vmem:[#allocation59_spill] sm:$0xff] }
 0xc94   :  { %5107 = vmatpush1.msra.mxu0 %v9663_v13  ;;  %5178 = vmatpush1.msra.mxu1 %v9668_v16 }
 0xc95   :  { %5108 = vmatprep.subr.mxu0 %v9675_v17  ;;  %5179 = vmatprep.subr.mxu1 %v9680_v18 }
 0xc96   :  { %5109 = vmatpush1.msra.mxu0 %v9687_v19  ;;  %5180 = vmatpush1.msra.mxu1 %v9692_v34  ;;  %v11094_v19 = vld [vmem:[#allocation49_spill] sm:$0xff] }
 0xc97   :  { %5110 = vmatprep.subr.mxu0 %v9697_v22  ;;  %5181 = vmatprep.subr.mxu1 %v9704_v27  ;;  %v11095_v22 = vld [vmem:[#allocation41_spill] sm:$0xff] }
 0xc98   :  { %5111 = vmatpush1.msra.mxu0 %v9709_v40  ;;  %5182 = vmatpush1.msra.mxu1 %v9714_v20 }
 0xc99   :  { %5112 = vmatprep.subr.mxu0 %v9721_v43  ;;  %5183 = vmatprep.subr.mxu1 %v9726_v25 }
 0xc9a   :  { %5113 = vmatpush1.msra.mxu0 %v9731_v42  ;;  %5184 = vmatpush1.msra.mxu1 %v9738_v36 }
 0xc9b   :  { %5114 = vmatprep.subr.mxu0 %v9743_v63  ;;  %5185 = vmatprep.subr.mxu1 %v9748_v26 }
 0xc9c   :  { %5115 = vmatpush1.msra.mxu0 %v9755_v32  ;;  %5186 = vmatpush1.msra.mxu1 %v9760_v7 }
 0xc9d   :  { %5116 = vmatprep.subr.mxu0 %v11047_v24  ;;  %5187 = vmatprep.subr.mxu1 %v11048_v55 }
 0xc9e   :  { %5117 = vmatpush1.msra.mxu0 %v11049_v38  ;;  %5188 = vmatpush1.msra.mxu1 %v11074_v44  ;;  %v5317_v44 = vld [vmem:[%s10450_s5 + $0x168] sm:$0xff] }
 0xc9f   :  { %5118 = vmatprep.subr.mxu0 %v11075_v57  ;;  %5189 = vmatprep.subr.mxu1 %v11076_v49  ;;  %v5319_v57 = vld [vmem:[%s10450_s5 + $0x178] sm:$0xff]  ;;  %v5316_v49 = vld [vmem:[%s10450_s5 + $0x160] sm:$0xff] }
 0xca0   :  { %5119 = vmatpush1.msra.mxu0 %v11077_v50  ;;  %5190 = vmatpush1.msra.mxu1 %v11078_v45  ;;  %v5318_v50 = vld [vmem:[%s10450_s5 + $0x170] sm:$0xff]  ;;  %v5313_v45 = vld [vmem:[%s10450_s5 + $0x148] sm:$0xff] }
 0xca1   :  { %5120 = vmatprep.subr.mxu0 %v11079_v47  ;;  %5191 = vmatprep.subr.mxu1 %v11080_v59  ;;  %v5315_v47 = vld [vmem:[%s10450_s5 + $0x158] sm:$0xff]  ;;  %v5312_v59 = vld [vmem:[%s10450_s5 + $0x140] sm:$0xff] }
 0xca2   :  { %5121 = vmatpush1.msra.mxu0 %v11081_v51  ;;  %5192 = vmatpush1.msra.mxu1 %v11082_v54  ;;  %v5314_v51 = vld [vmem:[%s10450_s5 + $0x150] sm:$0xff]  ;;  %v5309_v54 = vld [vmem:[%s10450_s5 + $0x128] sm:$0xff] }
 0xca3   :  { %5122 = vmatprep.subr.mxu0 %v11083_v30  ;;  %5193 = vmatprep.subr.mxu1 %v11084_v62  ;;  %v5311_v30 = vld [vmem:[%s10450_s5 + $0x138] sm:$0xff]  ;;  %v5308_v62 = vld [vmem:[%s10450_s5 + $0x120] sm:$0xff] }
 0xca4   :  { %5123 = vmatpush1.msra.mxu0 %v11085_v52  ;;  %5194 = vmatpush1.msra.mxu1 %v11086_v53  ;;  %v5310_v52 = vld [vmem:[%s10450_s5 + $0x130] sm:$0xff]  ;;  %v5305_v53 = vld [vmem:[%s10450_s5 + $0x108] sm:$0xff] }
 0xca5   :  { %5124 = vmatprep.subr.mxu0 %v11087_v1  ;;  %5195 = vmatprep.subr.mxu1 %v11088_v56  ;;  %v5307_v1 = vld [vmem:[%s10450_s5 + $0x118] sm:$0xff]  ;;  %v5304_v56 = vld [vmem:[%s10450_s5 + $0x100] sm:$0xff] }
 0xca6   :  { %5125 = vmatpush1.msra.mxu0 %v11089_v46  ;;  %5158 = vmatprep.mubr.f32.mxu0 %v11090_v61  ;;  %v5306_v46 = vld [vmem:[%s10450_s5 + $0x110] sm:$0xff] }
 0xca7   :  { %5196 = vmatpush1.msra.mxu1 %v11091_v5  ;;  %5229 = vmatprep.mubr.f32.mxu1 %v11090_v61  ;;  %v5301_v5 = vld [vmem:[%s10450_s5 + $0xe8] sm:$0xff] }
 0xca8   :  { %5336 = vmatprep.subr.mxu0 %v5333_v2  ;;  %5407 = vmatprep.subr.mxu1 %v5335_v35  ;;  %v5272_v2 = vld [vmem:[%s10450_s5] sm:$0xff]  ;;  %v5274_v35 = vld [vmem:[%s10450_s5 + $0x10] sm:$0xff] }
 0xd47   :  { %v4918_v48 = vpop.f32.mrf.mxu0  ;;  %v4989_v16 = vpop.f32.mrf.mxu1 }
 0xd48   :  { %v4994_v10 = vadd.f32 %v4918_v48, %v11092_v6  ;;  %v4996_v27 = vadd.f32 %v4989_v16, %v11095_v22  ;;  %v5303_v48 = vld [vmem:[%s10450_s5 + $0xf8] sm:$0xff]  ;;  %v5300_v6 = vld [vmem:[%s10450_s5 + $0xe0] sm:$0xff]  ;;  %v5293_v16 = vld [vmem:[%s10450_s5 + $0xa8] sm:$0xff] }
 0xd49   :  { %v4920_v3 = vpop.f32.mrf.mxu0  ;;  %v4991_v18 = vpop.f32.mrf.mxu1  ;;  %v5291_v22 = vld [vmem:[%s10450_s5 + $0x98] sm:$0xff] }
 0xd4a   :  { %v5652_v11 = vmul.f32 -1.442695, %v4994_v10  ;;  %v4995_v13 = vadd.f32 %v4920_v3, %v11093_v12  ;;  %v4997_v34 = vadd.f32 %v4991_v18, %v11094_v19  ;;  %v5302_v10 = vld [vmem:[%s10450_s5 + $0xf0] sm:$0xff]  ;;  %v5297_v3 = vld [vmem:[%s10450_s5 + $0xc8] sm:$0xff]  ;;  %v5296_v12 = vld [vmem:[%s10450_s5 + $0xc0] sm:$0xff] }
 0xd4b   :  { %v5292_v18 = vld [vmem:[%s10450_s5 + $0xa0] sm:$0xff]  ;;  %v5294_v19 = vld [vmem:[%s10450_s5 + $0xb0] sm:$0xff] }
 0xd4c   :  { %5924 = vpow2.f32 %v5652_v11  ;;  %v5653_v17 = vmul.f32 -1.442695, %v4995_v13  ;;  %v5654_v40 = vmul.f32 -1.442695, %v4997_v34  ;;  %v5299_v11 = vld [vmem:[%s10450_s5 + $0xd8] sm:$0xff]  ;;  %v5298_v13 = vld [vmem:[%s10450_s5 + $0xd0] sm:$0xff] }
 0xd4d   :  { %v5289_v34 = vld [vmem:[%s10450_s5 + $0x88] sm:$0xff] }
 0xd4e   :  { %5926 = vpow2.f32 %v5653_v17  ;;  %v5295_v17 = vld [vmem:[%s10450_s5 + $0xb8] sm:$0xff] }
 0xd4f   :  { %5928 = vtanh.f32 %v4996_v27  ;;  %v5288_v27 = vld [vmem:[%s10450_s5 + $0x80] sm:$0xff] }
 0xd50   :  { %5930 = vpow2.f32 %v5654_v40  ;;  %v5290_v40 = vld [vmem:[%s10450_s5 + $0x90] sm:$0xff] }
 0xd59   :  { %v5925_v20 = vpop.eup %5924 }
 0xd5a   :  { %v5001_v43 = vadd.f32 1.0, %v5925_v20  ;;  %v5285_v20 = vld [vmem:[%s10450_s5 + $0x68] sm:$0xff] }
 0xd5b   :  { %v5927_v25 = vpop.eup %5926 }
 0xd5c   :  { %5932 = vrcp.f32 %v5001_v43  ;;  %v5007_v42 = vadd.f32 1.0, %v5927_v25  ;;  %v5929_v36 = vpop.eup %5928  ;;  %v5287_v43 = vld [vmem:[%s10450_s5 + $0x78] sm:$0xff]  ;;  %v5284_v25 = vld [vmem:[%s10450_s5 + $0x60] sm:$0xff] }
 0xd5d   :  { %v5931_v63 = vpop.eup %5930 }
 0xd5e   :  { %5934 = vrcp.f32 %v5007_v42  ;;  %v5014_v39 = vadd.f32 1.0, %v5931_v63  ;;  %v5286_v42 = vld [vmem:[%s10450_s5 + $0x70] sm:$0xff]  ;;  %v5283_v63 = vld [vmem:[%s10450_s5 + $0x58] sm:$0xff] }
 0xd60   :  { %5936 = vrcp.f32 %v5014_v39  ;;  %v5279_v39 = vld [vmem:[%s10450_s5 + $0x38] sm:$0xff] }
 0xd69   :  { %v5933_v26 = vpop.eup %5932 }
 0xd6a   :  { %v5019_v32 = vmul.f32 %v5933_v26, %v5929_v36  ;;  %v5281_v36 = vld [vmem:[%s10450_s5 + $0x48] sm:$0xff]  ;;  %v5280_v26 = vld [vmem:[%s10450_s5 + $0x40] sm:$0xff] }
 0xd6b   :  { %v5935_v7 = vpop.eup %5934 }
 0xd6c   :  { %v5018_v24 = vmul.f32 %v5935_v7, %v10078_v60  ;;  %v5321_v60 = vld [vmem:[%s10450_s5 + $0x188] sm:$0xff] }
 0xd6d   :  { %v5937_v38 = vpop.eup %5936  ;;  %v5277_v7 = vld [vmem:[%s10450_s5 + $0x28] sm:$0xff] }
 0xd6e   :  { %v10150_v55 = vadd.f32 %v5019_v32, %v5018_v24  ;;  %v5282_v32 = vld [vmem:[%s10450_s5 + $0x50] sm:$0xff]  ;;  %v5276_v24 = vld [vmem:[%s10450_s5 + $0x20] sm:$0xff] }
 0xd70   :  { %5938 = vtanh.f32 %v10150_v55 }
 0xd7d   :  { %v5939_v37 = vpop.eup %5938 }
 0xd7e   :  { %v5022_v31 = vmul.f32 %v5939_v37, %v5937_v38  ;;  %v5278_v38 = vld [vmem:[%s10450_s5 + $0x30] sm:$0xff]  ;;  %v5273_v37 = vld [vmem:[%s10450_s5 + $0x8] sm:$0xff] }
 0xd80   :  { %5159 = vmatmul.mubr.f32.vlgmr.msra.gmra.mxu0 %v5022_v31  ;;  %5230 = vmatmul.mubr.f32.vlgmr.msra.gmra.mxu1 %v5022_v31  ;;  %v5275_v31 = vld [vmem:[%s10450_s5 + $0x18] sm:$0xff] }
 0xd81   :  { %5400 = vmatprep.mubr.f32.mxu0 %v11090_v61  ;;  %5471 = vmatprep.mubr.f32.mxu1 %v11090_v61 }
 0xd82   :  { %5337 = vmatpush1.msra.mxu0 %v5332_v33  ;;  %5408 = vmatpush1.msra.mxu1 %v5334_v8  ;;  %v11096_v33 = vld [vmem:[#allocation31_spill] sm:$0xff] }
 0xd83   :  { %5338 = vmatprep.subr.mxu0 %v5329_v21  ;;  %5409 = vmatprep.subr.mxu1 %v5331_v4  ;;  %v11097_v8 = vld [vmem:[#allocation27_spill] sm:$0xff] }
 0xd84   :  { %5339 = vmatpush1.msra.mxu0 %v5328_v14  ;;  %5410 = vmatpush1.msra.mxu1 %v5330_v58  ;;  %v10350_v21 = vrot.slane %v11097_v8, %v11096_v33  ;;  %v11098_v4 = vld [vmem:[#allocation35_spill] sm:$0xff]  ;;  %v11099_v14 = vld [vmem:[#allocation28_spill] sm:$0xff] }
 0xd85   :  { %5340 = vmatprep.subr.mxu0 %v5325_v9  ;;  %5411 = vmatprep.subr.mxu1 %v5327_v15  ;;  %v4204_v58 = vadd.f32 %v11099_v14, %v11098_v4  ;;  %v11100_v15 = vld [vmem:[#allocation55_spill] sm:$0xff] }
 0xd86   :  { %5341 = vmatpush1.msra.mxu0 %v5324_v28  ;;  %5412 = vmatpush1.msra.mxu1 %v5326_v23  ;;  %v4206_v28 = vadd.f32 %v11100_v15, %v10350_v21 }
 0xd87   :  { %5342 = vmatprep.subr.mxu0 %v5321_v60  ;;  %5413 = vmatprep.subr.mxu1 %v5323_v29 }
 0xd88   :  { %5343 = vmatpush1.msra.mxu0 %v5320_v41  ;;  %5414 = vmatpush1.msra.mxu1 %v5322_v0 }
 0xd89   :  { %5344 = vmatprep.subr.mxu0 %v5317_v44  ;;  %5415 = vmatprep.subr.mxu1 %v5319_v57  ;;  %v11101_v57 = vld [vmem:[#allocation33_spill] sm:$0xff] }
 0xd8a   :  { %5345 = vmatpush1.msra.mxu0 %v5316_v49  ;;  %5416 = vmatpush1.msra.mxu1 %v5318_v50  ;;  %v10358_v49 = vrot.slane %v11097_v8, %v11101_v57 }
 0xd8b   :  { %5346 = vmatprep.subr.mxu0 %v5313_v45  ;;  %5417 = vmatprep.subr.mxu1 %v5315_v47  ;;  %v11102_v45 = vld [vmem:[#allocation56_spill] sm:$0xff] }
 0xd8c   :  { %5347 = vmatpush1.msra.mxu0 %v5312_v59  ;;  %5418 = vmatpush1.msra.mxu1 %v5314_v51  ;;  %v4283_v47 = vadd.f32 %v11102_v45, %v10358_v49  ;;  %v11103_v51 = vld [vmem:[#allocation57_spill] sm:$0xff] }
 0xd8d   :  { %5348 = vmatprep.subr.mxu0 %v5309_v54  ;;  %5419 = vmatprep.subr.mxu1 %v5311_v30  ;;  %v11104_v54 = vld [vmem:[#allocation53_spill] sm:$0xff] }
 0xd8e   :  { %5349 = vmatpush1.msra.mxu0 %v5308_v62  ;;  %5420 = vmatpush1.msra.mxu1 %v5310_v52  ;;  %v4281_v30 = vadd.f32 %v11104_v54, %v11103_v51 }
 0xd8f   :  { %5350 = vmatprep.subr.mxu0 %v5305_v53  ;;  %5421 = vmatprep.subr.mxu1 %v5307_v1 }
 0xd90   :  { %5351 = vmatpush1.msra.mxu0 %v5304_v56  ;;  %5422 = vmatpush1.msra.mxu1 %v5306_v46 }
 0xd91   :  { %5352 = vmatprep.subr.mxu0 %v5301_v5  ;;  %5423 = vmatprep.subr.mxu1 %v5303_v48 }
 0xd92   :  { %5353 = vmatpush1.msra.mxu0 %v5300_v6  ;;  %5424 = vmatpush1.msra.mxu1 %v5302_v10 }
 0xd93   :  { %5354 = vmatprep.subr.mxu0 %v5297_v3  ;;  %5425 = vmatprep.subr.mxu1 %v5299_v11 }
 0xd94   :  { %5355 = vmatpush1.msra.mxu0 %v5296_v12  ;;  %5426 = vmatpush1.msra.mxu1 %v5298_v13 }
 0xd95   :  { %5356 = vmatprep.subr.mxu0 %v5293_v16  ;;  %5427 = vmatprep.subr.mxu1 %v5295_v17 }
 0xd96   :  { %5357 = vmatpush1.msra.mxu0 %v5292_v18  ;;  %5428 = vmatpush1.msra.mxu1 %v5294_v19  ;;  %v5525_v19 = vld [vmem:[%s10452_s7 + $0x78] sm:$0xff] }
 0xd97   :  { %5358 = vmatprep.subr.mxu0 %v5289_v34  ;;  %5429 = vmatprep.subr.mxu1 %v5291_v22  ;;  %v5523_v34 = vld [vmem:[%s10452_s7 + $0x68] sm:$0xff]  ;;  %v5522_v22 = vld [vmem:[%s10452_s7 + $0x60] sm:$0xff] }
 0xd98   :  { %5359 = vmatpush1.msra.mxu0 %v5288_v27  ;;  %5430 = vmatpush1.msra.mxu1 %v5290_v40  ;;  %v5521_v27 = vld [vmem:[%s10452_s7 + $0x58] sm:$0xff]  ;;  %v5520_v40 = vld [vmem:[%s10452_s7 + $0x50] sm:$0xff] }
 0xd99   :  { %5360 = vmatprep.subr.mxu0 %v5285_v20  ;;  %5431 = vmatprep.subr.mxu1 %v5287_v43  ;;  %v5519_v20 = vld [vmem:[%s10452_s7 + $0x48] sm:$0xff]  ;;  %v5518_v43 = vld [vmem:[%s10452_s7 + $0x40] sm:$0xff] }
 0xd9a   :  { %5361 = vmatpush1.msra.mxu0 %v5284_v25  ;;  %5432 = vmatpush1.msra.mxu1 %v5286_v42  ;;  %v5517_v25 = vld [vmem:[%s10452_s7 + $0x38] sm:$0xff]  ;;  %v5516_v42 = vld [vmem:[%s10452_s7 + $0x30] sm:$0xff] }
 0xd9b   :  { %5362 = vmatprep.subr.mxu0 %v5281_v36  ;;  %5433 = vmatprep.subr.mxu1 %v5283_v63  ;;  %v5515_v36 = vld [vmem:[%s10452_s7 + $0x28] sm:$0xff]  ;;  %v5514_v63 = vld [vmem:[%s10452_s7 + $0x20] sm:$0xff] }
 0xd9c   :  { %5363 = vmatpush1.msra.mxu0 %v5280_v26  ;;  %5434 = vmatpush1.msra.mxu1 %v5282_v32  ;;  %v5513_v26 = vld [vmem:[%s10452_s7 + $0x18] sm:$0xff]  ;;  %v5512_v32 = vld [vmem:[%s10452_s7 + $0x10] sm:$0xff] }
 0xd9d   :  { %5364 = vmatprep.subr.mxu0 %v5277_v7  ;;  %5435 = vmatprep.subr.mxu1 %v5279_v39  ;;  %v5511_v7 = vld [vmem:[%s10452_s7 + $0x8] sm:$0xff]  ;;  %v5510_v39 = vld [vmem:[%s10452_s7] sm:$0xff] }
 0xd9e   :  { %5365 = vmatpush1.msra.mxu0 %v5276_v24  ;;  %5436 = vmatpush1.msra.mxu1 %v5278_v38  ;;  %v11105_v38 = vld [vmem:[#allocation38_spill] sm:$0xff] }
 0xd9f   :  { %5366 = vmatprep.subr.mxu0 %v5273_v37  ;;  %5437 = vmatprep.subr.mxu1 %v5275_v31  ;;  %v4212_v37 = vadd.f32 %v11105_v38, %v10350_v21  ;;  %v11106_v31 = vld [vmem:[#allocation44_spill] sm:$0xff] }
 0xda0   :  { %5367 = vmatpush1.msra.mxu0 %v5272_v2  ;;  %5438 = vmatpush1.msra.mxu1 %v5274_v35 }
 0xda1   :  { %5679 = vmatprep.subr.mxu0 %v11090_v61 }
 0xe40   :  { %v5160_v9 = vpop.f32.mrf.mxu0  ;;  %v5231_v0 = vpop.f32.mrf.mxu1 }
 0xe41   :  { %v5236_v23 = vadd.f32 %v5160_v9, %v4204_v58  ;;  %v5238_v62 = vadd.f32 %v5231_v0, %v4281_v30  ;;  %v11107_v9 = vld [vmem:[#allocation36_spill] sm:$0xff] }
 0xe42   :  { %v5162_v60 = vpop.f32.mrf.mxu0  ;;  %v5233_v50 = vpop.f32.mrf.mxu1  ;;  %v4289_v15 = vadd.f32 %v11107_v9, %v10358_v49 }
 0xe43   :  { %v5655_v29 = vmul.f32 -1.442695, %v5236_v23  ;;  %v5237_v41 = vadd.f32 %v5162_v60, %v4206_v28  ;;  %v5239_v59 = vadd.f32 %v5233_v50, %v4283_v47 }
 0xe45   :  { %5940 = vpow2.f32 %v5655_v29  ;;  %v5656_v44 = vmul.f32 -1.442695, %v5237_v41  ;;  %v5657_v52 = vmul.f32 -1.442695, %v5239_v59 }
 0xe47   :  { %5942 = vpow2.f32 %v5656_v44 }
 0xe48   :  { %5944 = vtanh.f32 %v5238_v62 }
 0xe49   :  { %5946 = vpow2.f32 %v5657_v52  ;;  %v5661_v52 = vld [vmem:[%s10453_s8] ss:$0 sm:$0xff] }
 0xe52   :  { %v5941_v53 = vpop.eup %5940 }
 0xe53   :  { %v5243_v1 = vadd.f32 1.0, %v5941_v53 }
 0xe54   :  { %v5943_v56 = vpop.eup %5942 }
 0xe55   :  { %5948 = vrcp.f32 %v5243_v1  ;;  %v5249_v46 = vadd.f32 1.0, %v5943_v56  ;;  %v5945_v5 = vpop.eup %5944 }
 0xe56   :  { %v5947_v48 = vpop.eup %5946 }
 0xe57   :  { %5950 = vrcp.f32 %v5249_v46  ;;  %v5256_v11 = vadd.f32 1.0, %v5947_v48 }
 0xe59   :  { %5952 = vrcp.f32 %v5256_v11 }
 0xe62   :  { %v5949_v6 = vpop.eup %5948 }
 0xe63   :  { %v5261_v10 = vmul.f32 %v5949_v6, %v5945_v5 }
 0xe64   :  { %v5951_v3 = vpop.eup %5950 }
 0xe65   :  { %v5260_v12 = vmul.f32 %v5951_v3, %v10150_v55  ;;  %v5524_v55 = vld [vmem:[%s10452_s7 + $0x70] sm:$0xff] }
 0xe66   :  { %v5953_v16 = vpop.eup %5952 }
 0xe67   :  { %v10365_v13 = vadd.f32 %v5261_v10, %v5260_v12 }
 0xe69   :  { %5954 = vtanh.f32 %v10365_v13 }
 0xe76   :  { %v5955_v17 = vpop.eup %5954 }
 0xe77   :  { %v5264_v18 = vmul.f32 %v5955_v17, %v5953_v16 }
 0xe79   :  { %5401 = vmatmul.mubr.f32.vlgmr.msra.gmra.mxu0 %v5264_v18  ;;  %5472 = vmatmul.mubr.f32.vlgmr.msra.gmra.mxu1 %v5264_v18 }
 0xe7a   :  { %5680 = vmatpush3.msra.mxu0 %v5525_v19  ;;  %5711 = vmatprep.mubr.msk.f32.mxu0 %vm5973_vm0, %v11090_v61 }
 0xe7b   :  { %5681 = vmatprep.subr.mxu0 %v11090_v61 }
 0xe7c   :  { %5682 = vmatpush3.msra.mxu0 %v5524_v55 }
 0xe7d   :  { %5683 = vmatprep.subr.mxu0 %v11090_v61 }
 0xe7e   :  { %5684 = vmatpush3.msra.mxu0 %v5523_v34 }
 0xe7f   :  { %5685 = vmatprep.subr.mxu0 %v11090_v61 }
 0xe80   :  { %5686 = vmatpush3.msra.mxu0 %v5522_v22 }
 0xe81   :  { %5687 = vmatprep.subr.mxu0 %v11090_v61 }
 0xe82   :  { %5688 = vmatpush3.msra.mxu0 %v5521_v27 }
 0xe83   :  { %5689 = vmatprep.subr.mxu0 %v11090_v61 }
 0xe84   :  { %5690 = vmatpush3.msra.mxu0 %v5520_v40 }
 0xe85   :  { %5691 = vmatprep.subr.mxu0 %v11090_v61 }
 0xe86   :  { %5692 = vmatpush3.msra.mxu0 %v5519_v20 }
 0xe87   :  { %5693 = vmatprep.subr.mxu0 %v11090_v61 }
 0xe88   :  { %5694 = vmatpush3.msra.mxu0 %v5518_v43 }
 0xe89   :  { %5695 = vmatprep.subr.mxu0 %v11090_v61 }
 0xe8a   :  { %5696 = vmatpush3.msra.mxu0 %v5517_v25 }
 0xe8b   :  { %5697 = vmatprep.subr.mxu0 %v11090_v61 }
 0xe8c   :  { %5698 = vmatpush3.msra.mxu0 %v5516_v42 }
 0xe8d   :  { %5699 = vmatprep.subr.mxu0 %v11090_v61 }
 0xe8e   :  { %5700 = vmatpush3.msra.mxu0 %v5515_v36 }
 0xe8f   :  { %5701 = vmatprep.subr.mxu0 %v11090_v61 }
 0xe90   :  { %5702 = vmatpush3.msra.mxu0 %v5514_v63 }
 0xe91   :  { %5703 = vmatprep.subr.mxu0 %v11090_v61 }
 0xe92   :  { %5704 = vmatpush3.msra.mxu0 %v5513_v26 }
 0xe93   :  { %5705 = vmatprep.subr.mxu0 %v11090_v61 }
 0xe94   :  { %5706 = vmatpush3.msra.mxu0 %v5512_v32 }
 0xe95   :  { %5707 = vmatprep.subr.mxu0 %v11090_v61 }
 0xe96   :  { %5708 = vmatpush3.msra.mxu0 %v5511_v7 }
 0xe97   :  { %5709 = vmatprep.subr.mxu0 %v11090_v61  ;;  %v11108_v61 = vld [vmem:[#allocation40_spill] sm:$0xff] }
 0xe98   :  { %5710 = vmatpush3.msra.mxu0 %v5510_v39 }
 0xf39   :  { %v5402_v24 = vpop.f32.mrf.mxu0  ;;  %v5473_v4 = vpop.f32.mrf.mxu1 }
 0xf3a   :  { %v5478_v2 = vadd.f32 %v5402_v24, %v11106_v31  ;;  %v5480_v23 = vadd.f32 %v5473_v4, %v11108_v61 }
 0xf3b   :  { %v5404_v35 = vpop.f32.mrf.mxu0  ;;  %v5475_v58 = vpop.f32.mrf.mxu1 }
 0xf3c   :  { %v5658_v33 = vmul.f32 -1.442695, %v5478_v2  ;;  %v5479_v8 = vadd.f32 %v5404_v35, %v4212_v37  ;;  %v5481_v28 = vadd.f32 %v5475_v58, %v4289_v15 }
 0xf3e   :  { %5956 = vpow2.f32 %v5658_v33  ;;  %v5659_v14 = vmul.f32 -1.442695, %v5479_v8  ;;  %v5660_v60 = vmul.f32 -1.442695, %v5481_v28 }
 0xf40   :  { %5958 = vpow2.f32 %v5659_v14 }
 0xf41   :  { %5960 = vtanh.f32 %v5480_v23 }
 0xf42   :  { %5962 = vpow2.f32 %v5660_v60 }
 0xf4b   :  { %v5957_v29 = vpop.eup %5956 }
 0xf4c   :  { %v5485_v41 = vadd.f32 1.0, %v5957_v29 }
 0xf4d   :  { %v5959_v21 = vpop.eup %5958 }
 0xf4e   :  { %5964 = vrcp.f32 %v5485_v41  ;;  %v5491_v0 = vadd.f32 1.0, %v5959_v21  ;;  %v5961_v44 = vpop.eup %5960 }
 0xf4f   :  { %v5963_v57 = vpop.eup %5962 }
 0xf50   :  { %5966 = vrcp.f32 %v5491_v0  ;;  %v5498_v59 = vadd.f32 1.0, %v5963_v57 }
 0xf52   :  { %5968 = vrcp.f32 %v5498_v59 }
 0xf5b   :  { %v5965_v50 = vpop.eup %5964 }
 0xf5c   :  { %v5503_v45 = vmul.f32 %v5965_v50, %v5961_v44 }
 0xf5d   :  { %v5967_v47 = vpop.eup %5966 }
 0xf5e   :  { %v5502_v49 = vmul.f32 %v5967_v47, %v10365_v13 }
 0xf5f   :  { %v5969_v54 = vpop.eup %5968 }
 0xf60   :  { %v5504_v51 = vadd.f32 %v5503_v45, %v5502_v49 }
 0xf62   :  { %5970 = vtanh.f32 %v5504_v51 }
 0xf6f   :  { %v5971_v30 = vpop.eup %5970 }
 0xf70   :  { %v5506_v62 = vmul.f32 %v5971_v30, %v5969_v54 }
 0xf72   :  { %5712 = vmatmul.mubr.f32.vlgmr.msra.gmra.mxu0 %v5506_v62 }
0x1032   :  { %v5599_v53 = vpop.f32.mrf.mxu0 }
0x1033   :  { %v5600_v1 = vadd.f32 %v5661_v52, %v5599_v53 }
0x1034   :  { %v5713_v56 = vpop.f32.mrf.mxu0 }
0x1035   :  { %5603 = vst [vmem:[%s10454_s9] sm:$0xff] %v5600_v1 }

</bundles_post_ra>
